<compile_context>
chip_gen: v5e
topology: v5e:2x2
jax: 0.10.0
libtpu: 0.0.40
codegen_flags: <defaults>
</compile_context>

<pallas_src>
import jax
import jax.numpy as jnp
from jax import lax
from jax.experimental import pallas as pl
from jax.experimental.pallas import tpu as pltpu


# ------------------------------ small helpers -------------------------------

def _row_tile(m, cap=512):
    """Largest row tile: whole array if small, else a big divisor (VMEM-safe)."""
    if m <= cap:
        return m
    for t in (512, 256, 128, 64, 32, 16, 8):
        if m % t == 0:
            return t
    return m  # rare fallback


def _rot_matrix(d):
    # (y @ R) == rotate_every_two(y): out[2i] = -y[2i+1], out[2i+1] = y[2i]
    return jnp.kron(jnp.eye(d // 2, dtype=jnp.float32),
                    jnp.array([[0.0, 1.0], [-1.0, 0.0]], jnp.float32))


def _ln(y, g, b, eps=1e-6):
    mu = jnp.mean(y, axis=-1, keepdims=True)
    var = jnp.mean(jnp.square(y - mu), axis=-1, keepdims=True)
    return (y - mu) * lax.rsqrt(var + eps) * g + b


# ----------------------------- Pallas kernels ------------------------------

def _qkv_rope_kernel(x_ref, w_ref, b_ref, rot_ref, sin_ref, cos_ref, o_ref):
    # x:(tm,C) w:(C,3C) b:(1,3C) rot:(3C,3C) sin/cos:(tm,3C) -> o:(tm,3C)
    # sin/cos already carry the k scaling in the k columns and are (0,1) for v,
    # so one theta_shift over the whole 3C slab covers q, scaled-k and identity-v.
    y = jnp.dot(x_ref[...], w_ref[...],
                preferred_element_type=jnp.float32) + b_ref[...]
    rot = jnp.dot(y, rot_ref[...], preferred_element_type=jnp.float32)
    o_ref[...] = (y * cos_ref[...] + rot * sin_ref[...]).astype(o_ref.dtype)


def qkv_rope_pallas(x, w3, b3, rotm, sin3, cos3):
    M, C = x.shape
    C3 = w3.shape[1]
    tm = _row_tile(M)
    return pl.pallas_call(
        _qkv_rope_kernel,
        out_shape=jax.ShapeDtypeStruct((M, C3), x.dtype),
        grid=(M // tm,),
        in_specs=[pl.BlockSpec((tm, C), lambda i: (i, 0)),
                  pl.BlockSpec((C, C3), lambda i: (0, 0)),
                  pl.BlockSpec((1, C3), lambda i: (0, 0)),
                  pl.BlockSpec((C3, C3), lambda i: (0, 0)),
                  pl.BlockSpec((tm, C3), lambda i: (i, 0)),
                  pl.BlockSpec((tm, C3), lambda i: (i, 0))],
        out_specs=pl.BlockSpec((tm, C3), lambda i: (i, 0)),
        compiler_params=pltpu.CompilerParams(dimension_semantics=("parallel",)),
    )(x, w3, b3, rotm, sin3, cos3)


def _attn_kernel(q_ref, k_ref, v_ref, m_ref, o_ref):
    # q,k:(Gb,N,L,dk) v:(Gb,N,L,dv) m:(N,L,L) -> o:(Gb,N,L,dv)
    Gb, N, L, dk = q_ref.shape
    dv = v_ref.shape[-1]
    q = q_ref[...].reshape(Gb * N, L, dk)
    k = k_ref[...].reshape(Gb * N, L, dk)
    v = v_ref[...].reshape(Gb * N, L, dv)
    s = jnp.einsum('bqd,bkd->bqk', q, k, preferred_element_type=jnp.float32)
    s = s.reshape(Gb, N, L, L) + m_ref[...]
    s = s - jnp.max(s, axis=-1, keepdims=True)
    p = jnp.exp(s)
    # approx reciprocal -> EUP slot, keeps VALU free
    p = p * pl.reciprocal(jnp.sum(p, axis=-1, keepdims=True), approx=True)
    o = jnp.einsum('bqk,bkd->bqd', p.reshape(Gb * N, L, L), v,
                   preferred_element_type=jnp.float32)
    o_ref[...] = o.reshape(Gb, N, L, dv).astype(o_ref.dtype)


def attention_pallas(q, k, v, mask):
    # q,k:(G,N,L,dk) v:(G,N,L,dv) mask:(N,L,L)
    G, N, L, dk = q.shape
    dv = v.shape[-1]
    # Pack many groups per step (was 1 group/step); keep >=2 steps so v7x's two
    # TensorCores both get work when the grid is marked "parallel".
    gb = G // 2 if (G % 2 == 0 and G >= 2) else G
    return pl.pallas_call(
        _attn_kernel,
        out_shape=jax.ShapeDtypeStruct((G, N, L, dv), q.dtype),
        grid=(G // gb,),
        in_specs=[pl.BlockSpec((gb, N, L, dk), lambda g: (g, 0, 0, 0)),
                  pl.BlockSpec((gb, N, L, dk), lambda g: (g, 0, 0, 0)),
                  pl.BlockSpec((gb, N, L, dv), lambda g: (g, 0, 0, 0)),
                  pl.BlockSpec((N, L, L), lambda g: (0, 0, 0))],
        out_specs=pl.BlockSpec((gb, N, L, dv), lambda g: (g, 0, 0, 0)),
        compiler_params=pltpu.CompilerParams(dimension_semantics=("parallel",)),
    )(q, k, v, mask)


def _dwconv_kernel(x_ref, w_ref, b_ref, o_ref):
    # x:(B,H+4,W+4,C) zero-padded, w:(25,C), b:(1,C) -> o:(B,H,W,C)
    B, H, W, C = o_ref.shape
    acc = jnp.zeros((B, H, W, C), jnp.float32) + b_ref[0, :]
    for dw in range(5):                       # hoist the sublane (W) shift: 5 slices
        xw = x_ref[:, :, dw:dw + W, :]        # (B, H+4, W, C)
        for dh in range(5):                   # leading-axis slices are layout-free
            acc = acc + xw[:, dh:dh + H, :, :] * w_ref[dh * 5 + dw, :]
    o_ref[...] = acc.astype(o_ref.dtype)


def dwconv_pallas(x, w, b):
    # TODO(synk): the 2-pixel halo is still materialized via jnp.pad in HBM; an
    # in-kernel VMEM scratch pad would remove that roundtrip.
    B, H, W, C = x.shape
    xp = jnp.pad(x, ((0, 0), (2, 2), (2, 2), (0, 0)))
    return pl.pallas_call(
        _dwconv_kernel,
        out_shape=jax.ShapeDtypeStruct((B, H, W, C), x.dtype),
        grid=(1,),
        in_specs=[pl.BlockSpec((B, H + 4, W + 4, C), lambda i: (0, 0, 0, 0)),
                  pl.BlockSpec((25, C), lambda i: (0, 0)),
                  pl.BlockSpec((1, C), lambda i: (0, 0))],
        out_specs=pl.BlockSpec((B, H, W, C), lambda i: (0, 0, 0, 0)),
        compiler_params=pltpu.CompilerParams(dimension_semantics=("parallel",)),
    )(xp, w, b.reshape(1, C))


def _proj_res_ln_kernel(a_ref, lepe_ref, res_ref, w_ref, b_ref, g_ref, bb_ref, o_ref):
    # LN1(((attn + lepe) @ W_out + b_out) + shortcut)
    xv = a_ref[...] + lepe_ref[...]
    y = (jnp.dot(xv, w_ref[...], preferred_element_type=jnp.float32)
         + b_ref[...] + res_ref[...])
    o_ref[...] = _ln(y, g_ref[...], bb_ref[...]).astype(o_ref.dtype)


def proj_res_ln_pallas(attn, lepe, res, w, b, g, beta):
    M, C = attn.shape
    tm = _row_tile(M)
    row = pl.BlockSpec((tm, C), lambda i: (i, 0))
    vec = pl.BlockSpec((1, C), lambda i: (0, 0))
    return pl.pallas_call(
        _proj_res_ln_kernel,
        out_shape=jax.ShapeDtypeStruct((M, C), attn.dtype),
        grid=(M // tm,),
        in_specs=[row, row, row,
                  pl.BlockSpec((C, C), lambda i: (0, 0)), vec, vec, vec],
        out_specs=row,
        compiler_params=pltpu.CompilerParams(dimension_semantics=("parallel",)),
    )(attn, lepe, res, w, b.reshape(1, C), g.reshape(1, C), beta.reshape(1, C))


def _fc_res_ln_kernel(x_ref, w_ref, b_ref, g_ref, bb_ref, o_ref):
    # LN2((x @ W_fc + b_fc) + x)
    x = x_ref[...]
    y = jnp.dot(x, w_ref[...], preferred_element_type=jnp.float32) + b_ref[...] + x
    o_ref[...] = _ln(y, g_ref[...], bb_ref[...]).astype(o_ref.dtype)


def fc_res_ln_pallas(x, w, b, g, beta):
    M, C = x.shape
    tm = _row_tile(M)
    row = pl.BlockSpec((tm, C), lambda i: (i, 0))
    vec = pl.BlockSpec((1, C), lambda i: (0, 0))
    return pl.pallas_call(
        _fc_res_ln_kernel,
        out_shape=jax.ShapeDtypeStruct((M, C), x.dtype),
        grid=(M // tm,),
        in_specs=[row, pl.BlockSpec((C, C), lambda i: (0, 0)), vec, vec, vec],
        out_specs=row,
        compiler_params=pltpu.CompilerParams(dimension_semantics=("parallel",)),
    )(x, w, b.reshape(1, C), g.reshape(1, C), beta.reshape(1, C))


# ----------------------- relative position / rope tables --------------------

def rel_pos_2d(H, W, embed_dim, num_heads, initial_value, heads_range):
    dk = embed_dim // num_heads
    angle = 1.0 / (10000.0 ** jnp.linspace(0.0, 1.0, dk // 2))
    angle = jnp.repeat(angle, 2)                               # [a0,a0,a1,a1,...]
    decay = jnp.log(1.0 - 2.0 ** (-initial_value - heads_range *
                                  jnp.arange(num_heads, dtype=jnp.float32) / num_heads))
    index = jnp.arange(H * W, dtype=jnp.float32)
    sin = jnp.sin(index[:, None] * angle[None, :]).reshape(H, W, dk)
    cos = jnp.cos(index[:, None] * angle[None, :]).reshape(H, W, dk)

    def decay_1d(l):
        idx = jnp.arange(l, dtype=jnp.float32)
        m = jnp.abs(idx[:, None] - idx[None, :])
        return m * decay[:, None, None]                        # (num_heads, l, l)

    return sin, cos, decay_1d(H), decay_1d(W)


# ------------------------------ Pallas forward -------------------------------

def egf_forward_pallas(x_nchw, params, num_heads=8, initial_value=1,
                       heads_range=3, layer_num=1):
    x = jnp.transpose(x_nchw, (0, 2, 3, 1))                    # NCHW -> NHWC
    B, H, W, C = x.shape
    n = num_heads
    dk = C // n
    scaling = dk ** -0.5
    M = B * H * W
    C3 = 3 * C

    sin, cos, mask_h, mask_w = rel_pos_2d(H, W, C, n, initial_value, heads_range)
    # per-row sin/cos in flattened (M, 3C) layout: q cols get (sin,cos), k cols
    # get (scaling*sin, scaling*cos) -- theta_shift is linear so the k scaling
    # folds in -- and v cols get (0, 1) == identity.
    sin_hw = jnp.tile(sin.reshape(H * W, dk), (B, n))          # (M, C)
    cos_hw = jnp.tile(cos.reshape(H * W, dk), (B, n))
    zeros = jnp.zeros((M, C), jnp.float32)
    ones = jnp.ones((M, C), jnp.float32)
    sin3 = jnp.concatenate([sin_hw, scaling * sin_hw, zeros], axis=1)
    cos3 = jnp.concatenate([cos_hw, scaling * cos_hw, ones], axis=1)
    rotm = _rot_matrix(C3)

    for i in range(layer_num):
        lp = params['layers'][i]
        shortcut = x.reshape(M, C)

        # fused QKV + k-scaling + theta_shift (lane-dense (M, 3C) output)
        w3 = jnp.concatenate([lp['q_w'], lp['k_w'], lp['v_w']], axis=1)
        b3 = jnp.concatenate([lp['q_b'], lp['k_b'], lp['v_b']]).reshape(1, C3)
        qkv = qkv_rope_pallas(shortcut, w3, b3, rotm, sin3, cos3)
        qr = qkv[:, :C]
        kr = qkv[:, C:2 * C]
        v = qkv[:, 2 * C:]

        lepe = dwconv_pallas(v.reshape(B, H, W, C),
                             lp['conv_w'], lp['conv_b']).reshape(M, C)

        qr5 = qr.reshape(B, H, W, n, dk)
        kr5 = kr.reshape(B, H, W, n, dk)
        v5 = v.reshape(B, H, W, n, dk)

        # retention along W (per image row): groups = B*H
        qr_w = jnp.transpose(qr5, (0, 1, 3, 2, 4)).reshape(B * H, n, W, dk)
        kr_w = jnp.transpose(kr5, (0, 1, 3, 2, 4)).reshape(B * H, n, W, dk)
        v_w = jnp.transpose(v5, (0, 1, 3, 2, 4)).reshape(B * H, n, W, dk)
        vw = attention_pallas(qr_w, kr_w, v_w, mask_w).reshape(B, H, n, W, dk)

        # retention along H (per image column): groups = B*W
        qr_h = jnp.transpose(qr5, (0, 2, 3, 1, 4)).reshape(B * W, n, H, dk)
        kr_h = jnp.transpose(kr5, (0, 2, 3, 1, 4)).reshape(B * W, n, H, dk)
        v_h = jnp.transpose(vw, (0, 3, 2, 1, 4)).reshape(B * W, n, H, dk)
        out = attention_pallas(qr_h, kr_h, v_h, mask_h).reshape(B, W, n, H, dk)
        attn = jnp.transpose(out, (0, 3, 1, 2, 4)).reshape(M, C)

        # fused epilogues: out_proj + lepe + residual + LN1, then FC + res + LN2
        x = proj_res_ln_pallas(attn, lepe, shortcut, lp['out_w'], lp['out_b'],
                               params['ln1_w'], params['ln1_b'])
        x = fc_res_ln_pallas(x, lp['fc_w'], lp['fc_b'],
                             params['ln2_w'], params['ln2_b'])
        x = x.reshape(B, H, W, C)
    # TODO(synk): the head-layout transposes between the two retention passes
    # remain XLA-level glue; a single whole-block mega-kernel could keep them
    # in VMEM entirely.
    return jnp.transpose(x, (0, 3, 1, 2))                      # NHWC -> NCHW


# ---------------------------- pure-JAX reference -----------------------------

def rotate_every_two(x):
    x1 = x[..., ::2]
    x2 = x[..., 1::2]
    return jnp.stack([-x2, x1], axis=-1).reshape(x.shape)


def theta_shift(x, sin, cos):
    return x * cos + rotate_every_two(x) * sin


def _dwconv_ref(x, w, b):
    B, H, W, C = x.shape
    xp = jnp.pad(x, ((0, 0), (2, 2), (2, 2), (0, 0)))
    acc = jnp.zeros((B, H, W, C), jnp.float32) + b
    for dh in range(5):
        for dw in range(5):
            acc = acc + xp[:, dh:dh + H, dw:dw + W, :] * w[dh * 5 + dw]
    return acc


def egf_forward_ref(x_nchw, params, num_heads=8, initial_value=1,
                    heads_range=3, layer_num=1):
    x = jnp.transpose(x_nchw, (0, 2, 3, 1))
    B, H, W, C = x.shape
    n = num_heads
    dk = C // n
    scaling = dk ** -0.5
    sin, cos, mask_h, mask_w = rel_pos_2d(H, W, C, n, initial_value, heads_range)
    for i in range(layer_num):
        lp = params['layers'][i]
        shortcut = x
        xf = x.reshape(-1, C)
        q = (xf @ lp['q_w'] + lp['q_b']).reshape(B, H, W, C)
        k = (xf @ lp['k_w'] + lp['k_b']).reshape(B, H, W, C)
        v = (xf @ lp['v_w'] + lp['v_b']).reshape(B, H, W, C)
        lepe = _dwconv_ref(v, lp['conv_w'], lp['conv_b'])
        k = k * scaling
        qh = jnp.transpose(q.reshape(B, H, W, n, dk), (0, 3, 1, 2, 4))
        kh = jnp.transpose(k.reshape(B, H, W, n, dk), (0, 3, 1, 2, 4))
        qr = theta_shift(qh, sin, cos)
        kr = theta_shift(kh, sin, cos)
        qr_w = jnp.transpose(qr, (0, 2, 1, 3, 4))
        kr_w = jnp.transpose(kr, (0, 2, 1, 3, 4))
        v_w = jnp.transpose(v.reshape(B, H, W, n, dk), (0, 1, 3, 2, 4))
        s = jnp.einsum('bhnqd,bhnkd->bhnqk', qr_w, kr_w) + mask_w
        vv = jnp.einsum('bhnqk,bhnkd->bhnqd', jax.nn.softmax(s, -1), v_w)
        qr_h = jnp.transpose(qr, (0, 3, 1, 2, 4))
        kr_h = jnp.transpose(kr, (0, 3, 1, 2, 4))
        v_h = jnp.transpose(vv, (0, 3, 2, 1, 4))
        s2 = jnp.einsum('bwnqd,bwnkd->bwnqk', qr_h, kr_h) + mask_h
        out = jnp.einsum('bwnqk,bwnkd->bwnqd', jax.nn.softmax(s2, -1), v_h)
        out = jnp.transpose(out, (0, 3, 1, 2, 4)).reshape(B, H, W, C) + lepe
        out = (out.reshape(-1, C) @ lp['out_w'] + lp['out_b']).reshape(B, H, W, C)
        x = _ln(out + shortcut, params['ln1_w'], params['ln1_b'])
        shortcut2 = x
        xfc = (x.reshape(-1, C) @ lp['fc_w'] + lp['fc_b']).reshape(B, H, W, C)
        x = _ln(xfc + shortcut2, params['ln2_w'], params['ln2_b'])
    return jnp.transpose(x, (0, 3, 1, 2))


# ------------------------------ parameters ----------------------------------

def init_params(key, C, layer_num=1):
    cnt = [0]

    def nk():
        cnt[0] += 1
        return jax.random.fold_in(key, cnt[0])

    def xavier(cin, cout, gain=1.0):
        std = gain * (2.0 / (cin + cout)) ** 0.5
        return std * jax.random.normal(nk(), (cin, cout), jnp.float32)

    g = 2.0 ** (-2.5)
    layers = []
    for _ in range(layer_num):
        layers.append({
            'q_w': xavier(C, C, g), 'q_b': 0.02 * jax.random.normal(nk(), (C,), jnp.float32),
            'k_w': xavier(C, C, g), 'k_b': 0.02 * jax.random.normal(nk(), (C,), jnp.float32),
            'v_w': xavier(C, C, g), 'v_b': 0.02 * jax.random.normal(nk(), (C,), jnp.float32),
            'out_w': xavier(C, C, 1.0), 'out_b': jnp.zeros((C,), jnp.float32),
            'conv_w': 0.1 * jax.random.normal(nk(), (25, C), jnp.float32),
            'conv_b': 0.02 * jax.random.normal(nk(), (C,), jnp.float32),
            'fc_w': xavier(C, C, 1.0), 'fc_b': 0.02 * jax.random.normal(nk(), (C,), jnp.float32),
        })
    return {
        'layers': layers,
        'ln1_w': jnp.ones((C,), jnp.float32), 'ln1_b': jnp.zeros((C,), jnp.float32),
        'ln2_w': jnp.ones((C,), jnp.float32), 'ln2_b': jnp.zeros((C,), jnp.float32),
    }


# --------------------------------- main --------------------------------------

if __name__ == "__main__":
    B, C, H, W = 2, 64, 8, 8        # embed_dim=64, num_heads=8 -> key_dim=8
    num_heads = 8
    key = jax.random.PRNGKey(0)
    kx, kp = jax.random.split(key)
    x = jax.random.normal(kx, (B, C, H, W), jnp.float32)
    params = init_params(kp, C, layer_num=1)

    fwd = jax.jit(lambda xx: egf_forward_pallas(xx, params, num_heads=num_heads,
                                                initial_value=1, heads_range=3,
                                                layer_num=1))
    out = jax.block_until_ready(fwd(x))

    assert out.shape == (B, C, H, W)
    assert bool(jnp.all(jnp.isfinite(out)))

    # sanity check vs. a pure-JAX reference of the same math
    ref = egf_forward_ref(x, params, num_heads=num_heads, initial_value=1,
                          heads_range=3, layer_num=1)
    max_err = float(jnp.max(jnp.abs(out - ref)))
    assert max_err < 0.1, f"max abs diff vs reference = {max_err}"

    print("KERNEL_OK")
</pallas_src>

<mosaic_0001>
module attributes {stable_mosaic.version = 11 : i64} {
  func.func @_qkv_rope_kernel(%arg0: i32, %arg1: memref<128x64xf32, #tpu.memory_space<vmem>>, %arg2: memref<64x192xf32, #tpu.memory_space<vmem>>, %arg3: memref<1x192xf32, #tpu.memory_space<vmem>>, %arg4: memref<192x192xf32, #tpu.memory_space<vmem>>, %arg5: memref<128x192xf32, #tpu.memory_space<vmem>>, %arg6: memref<128x192xf32, #tpu.memory_space<vmem>>, %arg7: memref<128x192xf32, #tpu.memory_space<vmem>>) attributes {dimension_semantics = [#tpu.dimension_semantics<parallel>], iteration_bounds = array<i64: 1>, scalar_prefetch = 0 : i64, scratch_operands = 0 : i64, tpu.core_type = #tpu.core_type<tc>, window_params = [{transform_indices = @transform_0, window_bounds = array<i64: 128, 64>}, {pipeline_mode = #tpu.pipeline_mode<synchronous>, transform_indices = @transform_1, window_bounds = array<i64: 64, 192>}, {pipeline_mode = #tpu.pipeline_mode<synchronous>, transform_indices = @transform_2, window_bounds = array<i64: 1, 192>}, {pipeline_mode = #tpu.pipeline_mode<synchronous>, transform_indices = @transform_3, window_bounds = array<i64: 192, 192>}, {transform_indices = @transform_4, window_bounds = array<i64: 128, 192>}, {transform_indices = @transform_5, window_bounds = array<i64: 128, 192>}, {transform_indices = @transform_6, window_bounds = array<i64: 128, 192>}]} {
    %c0 = arith.constant 0 : index
    %c0_0 = arith.constant 0 : index
    %0 = vector.load %arg1[%c0, %c0_0] : memref<128x64xf32, #tpu.memory_space<vmem>>, vector<128x64xf32>
    %c0_1 = arith.constant 0 : index
    %c0_2 = arith.constant 0 : index
    %1 = vector.load %arg2[%c0_1, %c0_2] : memref<64x192xf32, #tpu.memory_space<vmem>>, vector<64x192xf32>
    %cst = arith.constant dense<0.000000e+00> : vector<128x192xf32>
    %2 = tpu.matmul %0, %1, %cst {dimension_numbers = #tpu.dot_dimension_numbers<[1], [0], [0], [1], [0, 0, 1, 1], [], []>} : vector<128x64xf32>, vector<64x192xf32>, vector<128x192xf32> -> vector<128x192xf32>
    %c0_3 = arith.constant 0 : index
    %c0_4 = arith.constant 0 : index
    %3 = vector.load %arg3[%c0_3, %c0_4] : memref<1x192xf32, #tpu.memory_space<vmem>>, vector<1x192xf32>
    %4 = vector.broadcast %3 : vector<1x192xf32> to vector<128x192xf32>
    %5 = arith.addf %2, %4 : vector<128x192xf32>
    %c0_5 = arith.constant 0 : index
    %c0_6 = arith.constant 0 : index
    %6 = vector.load %arg4[%c0_5, %c0_6] : memref<192x192xf32, #tpu.memory_space<vmem>>, vector<192x192xf32>
    %cst_7 = arith.constant dense<0.000000e+00> : vector<128x192xf32>
    %7 = tpu.matmul %5, %6, %cst_7 {dimension_numbers = #tpu.dot_dimension_numbers<[1], [0], [0], [1], [0, 0, 1, 1], [], []>} : vector<128x192xf32>, vector<192x192xf32>, vector<128x192xf32> -> vector<128x192xf32>
    %c0_8 = arith.constant 0 : index
    %c0_9 = arith.constant 0 : index
    %8 = vector.load %arg6[%c0_8, %c0_9] : memref<128x192xf32, #tpu.memory_space<vmem>>, vector<128x192xf32>
    %9 = arith.mulf %5, %8 : vector<128x192xf32>
    %c0_10 = arith.constant 0 : index
    %c0_11 = arith.constant 0 : index
    %10 = vector.load %arg5[%c0_10, %c0_11] : memref<128x192xf32, #tpu.memory_space<vmem>>, vector<128x192xf32>
    %11 = arith.mulf %7, %10 : vector<128x192xf32>
    %12 = arith.addf %9, %11 : vector<128x192xf32>
    %c0_12 = arith.constant 0 : index
    %c0_13 = arith.constant 0 : index
    %13 = vector.load %arg7[%c0_12, %c0_13] : memref<128x192xf32, #tpu.memory_space<vmem>>, vector<128x192xf32>
    tpu.vector_store %arg7[%c0_12, %c0_13], %12 {strides = array<i32>} : memref<128x192xf32, #tpu.memory_space<vmem>>, vector<128x192xf32>,
    return
  }
  func.func @transform_0(%arg0: i32) -> (i32, i32) {
    %c0_i32 = arith.constant 0 : i32
    %c0_i32_0 = arith.constant 0 : i32
    return %arg0, %c0_i32 : i32, i32
  }
  func.func @transform_1(%arg0: i32) -> (i32, i32) {
    %c0_i32 = arith.constant 0 : i32
    %c0_i32_0 = arith.constant 0 : i32
    %c0_i32_1 = arith.constant 0 : i32
    return %c0_i32, %c0_i32_0 : i32, i32
  }
  func.func @transform_2(%arg0: i32) -> (i32, i32) {
    %c0_i32 = arith.constant 0 : i32
    %c0_i32_0 = arith.constant 0 : i32
    %c0_i32_1 = arith.constant 0 : i32
    return %c0_i32, %c0_i32_0 : i32, i32
  }
  func.func @transform_3(%arg0: i32) -> (i32, i32) {
    %c0_i32 = arith.constant 0 : i32
    %c0_i32_0 = arith.constant 0 : i32
    %c0_i32_1 = arith.constant 0 : i32
    return %c0_i32, %c0_i32_0 : i32, i32
  }
  func.func @transform_4(%arg0: i32) -> (i32, i32) {
    %c0_i32 = arith.constant 0 : i32
    %c0_i32_0 = arith.constant 0 : i32
    return %arg0, %c0_i32 : i32, i32
  }
  func.func @transform_5(%arg0: i32) -> (i32, i32) {
    %c0_i32 = arith.constant 0 : i32
    %c0_i32_0 = arith.constant 0 : i32
    return %arg0, %c0_i32 : i32, i32
  }
  func.func @transform_6(%arg0: i32) -> (i32, i32) {
    %c0_i32 = arith.constant 0 : i32
    %c0_i32_0 = arith.constant 0 : i32
    return %arg0, %c0_i32 : i32, i32
  }
}

module attributes {stable_mosaic.version = 11 : i64} {
  func.func @_attn_kernel(%arg0: i32, %arg1: memref<8x8x8x8xf32, #tpu.memory_space<vmem>>, %arg2: memref<8x8x8x8xf32, #tpu.memory_space<vmem>>, %arg3: memref<8x8x8x8xf32, #tpu.memory_space<vmem>>, %arg4: memref<8x8x8xf32, #tpu.memory_space<vmem>>, %arg5: memref<8x8x8x8xf32, #tpu.memory_space<vmem>>) attributes {dimension_semantics = [#tpu.dimension_semantics<parallel>], iteration_bounds = array<i64: 2>, scalar_prefetch = 0 : i64, scratch_operands = 0 : i64, tpu.core_type = #tpu.core_type<tc>, window_params = [{transform_indices = @transform_0, window_bounds = array<i64: 8, 8, 8, 8>}, {transform_indices = @transform_1, window_bounds = array<i64: 8, 8, 8, 8>}, {transform_indices = @transform_2, window_bounds = array<i64: 8, 8, 8, 8>}, {pipeline_mode = #tpu.pipeline_mode<synchronous>, transform_indices = @transform_3, window_bounds = array<i64: 8, 8, 8>}, {transform_indices = @transform_4, window_bounds = array<i64: 8, 8, 8, 8>}]} {
    %c0 = arith.constant 0 : index
    %c0_0 = arith.constant 0 : index
    %c0_1 = arith.constant 0 : index
    %c0_2 = arith.constant 0 : index
    %0 = vector.load %arg1[%c0, %c0_0, %c0_1, %c0_2] : memref<8x8x8x8xf32, #tpu.memory_space<vmem>>, vector<8x8x8x8xf32>
    %1 = vector.shape_cast %0 : vector<8x8x8x8xf32> to vector<64x8x8xf32>
    %c0_3 = arith.constant 0 : index
    %c0_4 = arith.constant 0 : index
    %c0_5 = arith.constant 0 : index
    %c0_6 = arith.constant 0 : index
    %2 = vector.load %arg2[%c0_3, %c0_4, %c0_5, %c0_6] : memref<8x8x8x8xf32, #tpu.memory_space<vmem>>, vector<8x8x8x8xf32>
    %3 = vector.shape_cast %2 : vector<8x8x8x8xf32> to vector<64x8x8xf32>
    %c0_7 = arith.constant 0 : index
    %c0_8 = arith.constant 0 : index
    %c0_9 = arith.constant 0 : index
    %c0_10 = arith.constant 0 : index
    %4 = vector.load %arg3[%c0_7, %c0_8, %c0_9, %c0_10] : memref<8x8x8x8xf32, #tpu.memory_space<vmem>>, vector<8x8x8x8xf32>
    %5 = vector.shape_cast %4 : vector<8x8x8x8xf32> to vector<64x8x8xf32>
    "tpu.trace_start"() <{level = 10 : i32, message = "bqd,bkd->bqk"}> : () -> ()
    %cst = arith.constant dense<0.000000e+00> : vector<64x8x8xf32>
    %6 = tpu.matmul %1, %3, %cst {dimension_numbers = #tpu.dot_dimension_numbers<[2], [2], [1], [1], [0, 0, 0, 1, 1, 1], [0], [0]>} : vector<64x8x8xf32>, vector<64x8x8xf32>, vector<64x8x8xf32> -> vector<64x8x8xf32>
    "tpu.trace_stop"() : () -> ()
    %7 = vector.shape_cast %6 : vector<64x8x8xf32> to vector<8x8x8x8xf32>
    %c0_11 = arith.constant 0 : index
    %c0_12 = arith.constant 0 : index
    %c0_13 = arith.constant 0 : index
    %8 = vector.load %arg4[%c0_11, %c0_12, %c0_13] : memref<8x8x8xf32, #tpu.memory_space<vmem>>, vector<8x8x8xf32>
    %9 = vector.shape_cast %8 : vector<8x8x8xf32> to vector<1x8x8x8xf32>
    %10 = vector.broadcast %9 : vector<1x8x8x8xf32> to vector<8x8x8x8xf32>
    %11 = arith.addf %7, %10 : vector<8x8x8x8xf32>
    %cst_14 = arith.constant dense<0xFF800000> : vector<8x8x8xf32>
    %12 = vector.multi_reduction <maximumf>, %11, %cst_14 [3] : vector<8x8x8x8xf32> to vector<8x8x8xf32>
    %13 = vector.shape_cast %12 : vector<8x8x8xf32> to vector<8x8x8x1xf32>
    %14 = vector.broadcast %13 : vector<8x8x8x1xf32> to vector<8x8x8x8xf32>
    %15 = arith.subf %11, %14 : vector<8x8x8x8xf32>
    %16 = math.exp %15 : vector<8x8x8x8xf32>
    %cst_15 = arith.constant dense<0.000000e+00> : vector<8x8x8xf32>
    %17 = vector.multi_reduction <add>, %16, %cst_15 [3] : vector<8x8x8x8xf32> to vector<8x8x8xf32>
    %18 = vector.shape_cast %17 : vector<8x8x8xf32> to vector<8x8x8x1xf32>
    %19 = tpu.reciprocal %18 {approx = true} : vector<8x8x8x1xf32> -> vector<8x8x8x1xf32>
    %20 = vector.broadcast %19 : vector<8x8x8x1xf32> to vector<8x8x8x8xf32>
    %21 = arith.mulf %16, %20 : vector<8x8x8x8xf32>
    %22 = vector.shape_cast %21 : vector<8x8x8x8xf32> to vector<64x8x8xf32>
    "tpu.trace_start"() <{level = 10 : i32, message = "bqk,bkd->bqd"}> : () -> ()
    %cst_16 = arith.constant dense<0.000000e+00> : vector<64x8x8xf32>
    %23 = tpu.matmul %22, %5, %cst_16 {dimension_numbers = #tpu.dot_dimension_numbers<[2], [1], [1], [2], [0, 0, 0, 1, 1, 2], [0], [0]>} : vector<64x8x8xf32>, vector<64x8x8xf32>, vector<64x8x8xf32> -> vector<64x8x8xf32>
    "tpu.trace_stop"() : () -> ()
    %24 = vector.shape_cast %23 : vector<64x8x8xf32> to vector<8x8x8x8xf32>
    %c0_17 = arith.constant 0 : index
    %c0_18 = arith.constant 0 : index
    %c0_19 = arith.constant 0 : index
    %c0_20 = arith.constant 0 : index
    %25 = vector.load %arg5[%c0_17, %c0_18, %c0_19, %c0_20] : memref<8x8x8x8xf32, #tpu.memory_space<vmem>>, vector<8x8x8x8xf32>
    tpu.vector_store %arg5[%c0_17, %c0_18, %c0_19, %c0_20], %24 {strides = array<i32>} : memref<8x8x8x8xf32, #tpu.memory_space<vmem>>, vector<8x8x8x8xf32>,
    return
  }
  func.func @transform_0(%arg0: i32) -> (i32, i32, i32, i32) {
    %c0_i32 = arith.constant 0 : i32
    %c0_i32_0 = arith.constant 0 : i32
    %c0_i32_1 = arith.constant 0 : i32
    %c0_i32_2 = arith.constant 0 : i32
    return %arg0, %c0_i32, %c0_i32_0, %c0_i32_1 : i32, i32, i32, i32
  }
  func.func @transform_1(%arg0: i32) -> (i32, i32, i32, i32) {
    %c0_i32 = arith.constant 0 : i32
    %c0_i32_0 = arith.constant 0 : i32
    %c0_i32_1 = arith.constant 0 : i32
    %c0_i32_2 = arith.constant 0 : i32
    return %arg0, %c0_i32, %c0_i32_0, %c0_i32_1 : i32, i32, i32, i32
  }
  func.func @transform_2(%arg0: i32) -> (i32, i32, i32, i32) {
    %c0_i32 = arith.constant 0 : i32
    %c0_i32_0 = arith.constant 0 : i32
    %c0_i32_1 = arith.constant 0 : i32
    %c0_i32_2 = arith.constant 0 : i32
    return %arg0, %c0_i32, %c0_i32_0, %c0_i32_1 : i32, i32, i32, i32
  }
  func.func @transform_3(%arg0: i32) -> (i32, i32, i32) {
    %c0_i32 = arith.constant 0 : i32
    %c0_i32_0 = arith.constant 0 : i32
    %c0_i32_1 = arith.constant 0 : i32
    %c0_i32_2 = arith.constant 0 : i32
    return %c0_i32, %c0_i32_0, %c0_i32_1 : i32, i32, i32
  }
  func.func @transform_4(%arg0: i32) -> (i32, i32, i32, i32) {
    %c0_i32 = arith.constant 0 : i32
    %c0_i32_0 = arith.constant 0 : i32
    %c0_i32_1 = arith.constant 0 : i32
    %c0_i32_2 = arith.constant 0 : i32
    return %arg0, %c0_i32, %c0_i32_0, %c0_i32_1 : i32, i32, i32, i32
  }
}

module attributes {stable_mosaic.version = 11 : i64} {
  func.func @_dwconv_kernel(%arg0: i32, %arg1: memref<2x12x12x64xf32, #tpu.memory_space<vmem>>, %arg2: memref<25x64xf32, #tpu.memory_space<vmem>>, %arg3: memref<1x64xf32, #tpu.memory_space<vmem>>, %arg4: memref<2x8x8x64xf32, #tpu.memory_space<vmem>>) attributes {dimension_semantics = [#tpu.dimension_semantics<parallel>], iteration_bounds = array<i64: 1>, scalar_prefetch = 0 : i64, scratch_operands = 0 : i64, tpu.core_type = #tpu.core_type<tc>, window_params = [{pipeline_mode = #tpu.pipeline_mode<synchronous>, transform_indices = @transform_0, window_bounds = array<i64: 2, 12, 12, 64>}, {pipeline_mode = #tpu.pipeline_mode<synchronous>, transform_indices = @transform_1, window_bounds = array<i64: 25, 64>}, {pipeline_mode = #tpu.pipeline_mode<synchronous>, transform_indices = @transform_2, window_bounds = array<i64: 1, 64>}, {pipeline_mode = #tpu.pipeline_mode<synchronous>, transform_indices = @transform_3, window_bounds = array<i64: 2, 8, 8, 64>}]} {
    %cst = arith.constant 0.000000e+00 : f32
    %0 = vector.broadcast %cst : f32 to vector<2x8x8x64xf32>
    %c0 = arith.constant 0 : index
    %c0_0 = arith.constant 0 : index
    %1 = vector.load %arg3[%c0, %c0_0] : memref<1x64xf32, #tpu.memory_space<vmem>>, vector<1x64xf32>
    %2 = vector.shape_cast %1 : vector<1x64xf32> to vector<64xf32>
    %3 = vector.shape_cast %2 : vector<64xf32> to vector<1x1x1x64xf32>
    %4 = vector.broadcast %3 : vector<1x1x1x64xf32> to vector<2x8x8x64xf32>
    %5 = arith.addf %0, %4 : vector<2x8x8x64xf32>
    %c0_1 = arith.constant 0 : index
    %c0_2 = arith.constant 0 : index
    %c0_3 = arith.constant 0 : index
    %c0_4 = arith.constant 0 : index
    %6 = vector.load %arg1[%c0_1, %c0_2, %c0_3, %c0_4] : memref<2x12x12x64xf32, #tpu.memory_space<vmem>>, vector<2x12x8x64xf32>
    %7 = vector.extract_strided_slice %6 {offsets = [0, 0, 0, 0], sizes = [2, 8, 8, 64], strides = [1, 1, 1, 1]} : vector<2x12x8x64xf32> to vector<2x8x8x64xf32>
    %c0_5 = arith.constant 0 : index
    %c0_6 = arith.constant 0 : index
    %8 = vector.load %arg2[%c0_5, %c0_6] : memref<25x64xf32, #tpu.memory_space<vmem>>, vector<1x64xf32>
    %9 = vector.shape_cast %8 : vector<1x64xf32> to vector<64xf32>
    %10 = vector.shape_cast %9 : vector<64xf32> to vector<1x1x1x64xf32>
    %11 = vector.broadcast %10 : vector<1x1x1x64xf32> to vector<2x8x8x64xf32>
    %12 = arith.mulf %7, %11 : vector<2x8x8x64xf32>
    %13 = arith.addf %5, %12 : vector<2x8x8x64xf32>
    %14 = vector.extract_strided_slice %6 {offsets = [0, 1, 0, 0], sizes = [2, 8, 8, 64], strides = [1, 1, 1, 1]} : vector<2x12x8x64xf32> to vector<2x8x8x64xf32>
    %c5 = arith.constant 5 : index
    %c0_7 = arith.constant 0 : index
    %15 = vector.load %arg2[%c5, %c0_7] : memref<25x64xf32, #tpu.memory_space<vmem>>, vector<1x64xf32>
    %16 = vector.shape_cast %15 : vector<1x64xf32> to vector<64xf32>
    %17 = vector.shape_cast %16 : vector<64xf32> to vector<1x1x1x64xf32>
    %18 = vector.broadcast %17 : vector<1x1x1x64xf32> to vector<2x8x8x64xf32>
    %19 = arith.mulf %14, %18 : vector<2x8x8x64xf32>
    %20 = arith.addf %13, %19 : vector<2x8x8x64xf32>
    %21 = vector.extract_strided_slice %6 {offsets = [0, 2, 0, 0], sizes = [2, 8, 8, 64], strides = [1, 1, 1, 1]} : vector<2x12x8x64xf32> to vector<2x8x8x64xf32>
    %c10 = arith.constant 10 : index
    %c0_8 = arith.constant 0 : index
    %22 = vector.load %arg2[%c10, %c0_8] : memref<25x64xf32, #tpu.memory_space<vmem>>, vector<1x64xf32>
    %23 = vector.shape_cast %22 : vector<1x64xf32> to vector<64xf32>
    %24 = vector.shape_cast %23 : vector<64xf32> to vector<1x1x1x64xf32>
    %25 = vector.broadcast %24 : vector<1x1x1x64xf32> to vector<2x8x8x64xf32>
    %26 = arith.mulf %21, %25 : vector<2x8x8x64xf32>
    %27 = arith.addf %20, %26 : vector<2x8x8x64xf32>
    %28 = vector.extract_strided_slice %6 {offsets = [0, 3, 0, 0], sizes = [2, 8, 8, 64], strides = [1, 1, 1, 1]} : vector<2x12x8x64xf32> to vector<2x8x8x64xf32>
    %c15 = arith.constant 15 : index
    %c0_9 = arith.constant 0 : index
    %29 = vector.load %arg2[%c15, %c0_9] : memref<25x64xf32, #tpu.memory_space<vmem>>, vector<1x64xf32>
    %30 = vector.shape_cast %29 : vector<1x64xf32> to vector<64xf32>
    %31 = vector.shape_cast %30 : vector<64xf32> to vector<1x1x1x64xf32>
    %32 = vector.broadcast %31 : vector<1x1x1x64xf32> to vector<2x8x8x64xf32>
    %33 = arith.mulf %28, %32 : vector<2x8x8x64xf32>
    %34 = arith.addf %27, %33 : vector<2x8x8x64xf32>
    %35 = vector.extract_strided_slice %6 {offsets = [0, 4, 0, 0], sizes = [2, 8, 8, 64], strides = [1, 1, 1, 1]} : vector<2x12x8x64xf32> to vector<2x8x8x64xf32>
    %c20 = arith.constant 20 : index
    %c0_10 = arith.constant 0 : index
    %36 = vector.load %arg2[%c20, %c0_10] : memref<25x64xf32, #tpu.memory_space<vmem>>, vector<1x64xf32>
    %37 = vector.shape_cast %36 : vector<1x64xf32> to vector<64xf32>
    %38 = vector.shape_cast %37 : vector<64xf32> to vector<1x1x1x64xf32>
    %39 = vector.broadcast %38 : vector<1x1x1x64xf32> to vector<2x8x8x64xf32>
    %40 = arith.mulf %35, %39 : vector<2x8x8x64xf32>
    %41 = arith.addf %34, %40 : vector<2x8x8x64xf32>
    %c0_11 = arith.constant 0 : index
    %c0_12 = arith.constant 0 : index
    %c1 = arith.constant 1 : index
    %c0_13 = arith.constant 0 : index
    %42 = vector.load %arg1[%c0_11, %c0_12, %c1, %c0_13] : memref<2x12x12x64xf32, #tpu.memory_space<vmem>>, vector<2x12x8x64xf32>
    %43 = vector.extract_strided_slice %42 {offsets = [0, 0, 0, 0], sizes = [2, 8, 8, 64], strides = [1, 1, 1, 1]} : vector<2x12x8x64xf32> to vector<2x8x8x64xf32>
    %c1_14 = arith.constant 1 : index
    %c0_15 = arith.constant 0 : index
    %44 = vector.load %arg2[%c1_14, %c0_15] : memref<25x64xf32, #tpu.memory_space<vmem>>, vector<1x64xf32>
    %45 = vector.shape_cast %44 : vector<1x64xf32> to vector<64xf32>
    %46 = vector.shape_cast %45 : vector<64xf32> to vector<1x1x1x64xf32>
    %47 = vector.broadcast %46 : vector<1x1x1x64xf32> to vector<2x8x8x64xf32>
    %48 = arith.mulf %43, %47 : vector<2x8x8x64xf32>
    %49 = arith.addf %41, %48 : vector<2x8x8x64xf32>
    %50 = vector.extract_strided_slice %42 {offsets = [0, 1, 0, 0], sizes = [2, 8, 8, 64], strides = [1, 1, 1, 1]} : vector<2x12x8x64xf32> to vector<2x8x8x64xf32>
    %c6 = arith.constant 6 : index
    %c0_16 = arith.constant 0 : index
    %51 = vector.load %arg2[%c6, %c0_16] : memref<25x64xf32, #tpu.memory_space<vmem>>, vector<1x64xf32>
    %52 = vector.shape_cast %51 : vector<1x64xf32> to vector<64xf32>
    %53 = vector.shape_cast %52 : vector<64xf32> to vector<1x1x1x64xf32>
    %54 = vector.broadcast %53 : vector<1x1x1x64xf32> to vector<2x8x8x64xf32>
    %55 = arith.mulf %50, %54 : vector<2x8x8x64xf32>
    %56 = arith.addf %49, %55 : vector<2x8x8x64xf32>
    %57 = vector.extract_strided_slice %42 {offsets = [0, 2, 0, 0], sizes = [2, 8, 8, 64], strides = [1, 1, 1, 1]} : vector<2x12x8x64xf32> to vector<2x8x8x64xf32>
    %c11 = arith.constant 11 : index
    %c0_17 = arith.constant 0 : index
    %58 = vector.load %arg2[%c11, %c0_17] : memref<25x64xf32, #tpu.memory_space<vmem>>, vector<1x64xf32>
    %59 = vector.shape_cast %58 : vector<1x64xf32> to vector<64xf32>
    %60 = vector.shape_cast %59 : vector<64xf32> to vector<1x1x1x64xf32>
    %61 = vector.broadcast %60 : vector<1x1x1x64xf32> to vector<2x8x8x64xf32>
    %62 = arith.mulf %57, %61 : vector<2x8x8x64xf32>
    %63 = arith.addf %56, %62 : vector<2x8x8x64xf32>
    %64 = vector.extract_strided_slice %42 {offsets = [0, 3, 0, 0], sizes = [2, 8, 8, 64], strides = [1, 1, 1, 1]} : vector<2x12x8x64xf32> to vector<2x8x8x64xf32>
    %c16 = arith.constant 16 : index
    %c0_18 = arith.constant 0 : index
    %65 = vector.load %arg2[%c16, %c0_18] : memref<25x64xf32, #tpu.memory_space<vmem>>, vector<1x64xf32>
    %66 = vector.shape_cast %65 : vector<1x64xf32> to vector<64xf32>
    %67 = vector.shape_cast %66 : vector<64xf32> to vector<1x1x1x64xf32>
    %68 = vector.broadcast %67 : vector<1x1x1x64xf32> to vector<2x8x8x64xf32>
    %69 = arith.mulf %64, %68 : vector<2x8x8x64xf32>
    %70 = arith.addf %63, %69 : vector<2x8x8x64xf32>
    %71 = vector.extract_strided_slice %42 {offsets = [0, 4, 0, 0], sizes = [2, 8, 8, 64], strides = [1, 1, 1, 1]} : vector<2x12x8x64xf32> to vector<2x8x8x64xf32>
    %c21 = arith.constant 21 : index
    %c0_19 = arith.constant 0 : index
    %72 = vector.load %arg2[%c21, %c0_19] : memref<25x64xf32, #tpu.memory_space<vmem>>, vector<1x64xf32>
    %73 = vector.shape_cast %72 : vector<1x64xf32> to vector<64xf32>
    %74 = vector.shape_cast %73 : vector<64xf32> to vector<1x1x1x64xf32>
    %75 = vector.broadcast %74 : vector<1x1x1x64xf32> to vector<2x8x8x64xf32>
    %76 = arith.mulf %71, %75 : vector<2x8x8x64xf32>
    %77 = arith.addf %70, %76 : vector<2x8x8x64xf32>
    %c0_20 = arith.constant 0 : index
    %c0_21 = arith.constant 0 : index
    %c2 = arith.constant 2 : index
    %c0_22 = arith.constant 0 : index
    %78 = vector.load %arg1[%c0_20, %c0_21, %c2, %c0_22] : memref<2x12x12x64xf32, #tpu.memory_space<vmem>>, vector<2x12x8x64xf32>
    %79 = vector.extract_strided_slice %78 {offsets = [0, 0, 0, 0], sizes = [2, 8, 8, 64], strides = [1, 1, 1, 1]} : vector<2x12x8x64xf32> to vector<2x8x8x64xf32>
    %c2_23 = arith.constant 2 : index
    %c0_24 = arith.constant 0 : index
    %80 = vector.load %arg2[%c2_23, %c0_24] : memref<25x64xf32, #tpu.memory_space<vmem>>, vector<1x64xf32>
    %81 = vector.shape_cast %80 : vector<1x64xf32> to vector<64xf32>
    %82 = vector.shape_cast %81 : vector<64xf32> to vector<1x1x1x64xf32>
    %83 = vector.broadcast %82 : vector<1x1x1x64xf32> to vector<2x8x8x64xf32>
    %84 = arith.mulf %79, %83 : vector<2x8x8x64xf32>
    %85 = arith.addf %77, %84 : vector<2x8x8x64xf32>
    %86 = vector.extract_strided_slice %78 {offsets = [0, 1, 0, 0], sizes = [2, 8, 8, 64], strides = [1, 1, 1, 1]} : vector<2x12x8x64xf32> to vector<2x8x8x64xf32>
    %c7 = arith.constant 7 : index
    %c0_25 = arith.constant 0 : index
    %87 = vector.load %arg2[%c7, %c0_25] : memref<25x64xf32, #tpu.memory_space<vmem>>, vector<1x64xf32>
    %88 = vector.shape_cast %87 : vector<1x64xf32> to vector<64xf32>
    %89 = vector.shape_cast %88 : vector<64xf32> to vector<1x1x1x64xf32>
    %90 = vector.broadcast %89 : vector<1x1x1x64xf32> to vector<2x8x8x64xf32>
    %91 = arith.mulf %86, %90 : vector<2x8x8x64xf32>
    %92 = arith.addf %85, %91 : vector<2x8x8x64xf32>
    %93 = vector.extract_strided_slice %78 {offsets = [0, 2, 0, 0], sizes = [2, 8, 8, 64], strides = [1, 1, 1, 1]} : vector<2x12x8x64xf32> to vector<2x8x8x64xf32>
    %c12 = arith.constant 12 : index
    %c0_26 = arith.constant 0 : index
    %94 = vector.load %arg2[%c12, %c0_26] : memref<25x64xf32, #tpu.memory_space<vmem>>, vector<1x64xf32>
    %95 = vector.shape_cast %94 : vector<1x64xf32> to vector<64xf32>
    %96 = vector.shape_cast %95 : vector<64xf32> to vector<1x1x1x64xf32>
    %97 = vector.broadcast %96 : vector<1x1x1x64xf32> to vector<2x8x8x64xf32>
    %98 = arith.mulf %93, %97 : vector<2x8x8x64xf32>
    %99 = arith.addf %92, %98 : vector<2x8x8x64xf32>
    %100 = vector.extract_strided_slice %78 {offsets = [0, 3, 0, 0], sizes = [2, 8, 8, 64], strides = [1, 1, 1, 1]} : vector<2x12x8x64xf32> to vector<2x8x8x64xf32>
    %c17 = arith.constant 17 : index
    %c0_27 = arith.constant 0 : index
    %101 = vector.load %arg2[%c17, %c0_27] : memref<25x64xf32, #tpu.memory_space<vmem>>, vector<1x64xf32>
    %102 = vector.shape_cast %101 : vector<1x64xf32> to vector<64xf32>
    %103 = vector.shape_cast %102 : vector<64xf32> to vector<1x1x1x64xf32>
    %104 = vector.broadcast %103 : vector<1x1x1x64xf32> to vector<2x8x8x64xf32>
    %105 = arith.mulf %100, %104 : vector<2x8x8x64xf32>
    %106 = arith.addf %99, %105 : vector<2x8x8x64xf32>
    %107 = vector.extract_strided_slice %78 {offsets = [0, 4, 0, 0], sizes = [2, 8, 8, 64], strides = [1, 1, 1, 1]} : vector<2x12x8x64xf32> to vector<2x8x8x64xf32>
    %c22 = arith.constant 22 : index
    %c0_28 = arith.constant 0 : index
    %108 = vector.load %arg2[%c22, %c0_28] : memref<25x64xf32, #tpu.memory_space<vmem>>, vector<1x64xf32>
    %109 = vector.shape_cast %108 : vector<1x64xf32> to vector<64xf32>
    %110 = vector.shape_cast %109 : vector<64xf32> to vector<1x1x1x64xf32>
    %111 = vector.broadcast %110 : vector<1x1x1x64xf32> to vector<2x8x8x64xf32>
    %112 = arith.mulf %107, %111 : vector<2x8x8x64xf32>
    %113 = arith.addf %106, %112 : vector<2x8x8x64xf32>
    %c0_29 = arith.constant 0 : index
    %c0_30 = arith.constant 0 : index
    %c3 = arith.constant 3 : index
    %c0_31 = arith.constant 0 : index
    %114 = vector.load %arg1[%c0_29, %c0_30, %c3, %c0_31] : memref<2x12x12x64xf32, #tpu.memory_space<vmem>>, vector<2x12x8x64xf32>
    %115 = vector.extract_strided_slice %114 {offsets = [0, 0, 0, 0], sizes = [2, 8, 8, 64], strides = [1, 1, 1, 1]} : vector<2x12x8x64xf32> to vector<2x8x8x64xf32>
    %c3_32 = arith.constant 3 : index
    %c0_33 = arith.constant 0 : index
    %116 = vector.load %arg2[%c3_32, %c0_33] : memref<25x64xf32, #tpu.memory_space<vmem>>, vector<1x64xf32>
    %117 = vector.shape_cast %116 : vector<1x64xf32> to vector<64xf32>
    %118 = vector.shape_cast %117 : vector<64xf32> to vector<1x1x1x64xf32>
    %119 = vector.broadcast %118 : vector<1x1x1x64xf32> to vector<2x8x8x64xf32>
    %120 = arith.mulf %115, %119 : vector<2x8x8x64xf32>
    %121 = arith.addf %113, %120 : vector<2x8x8x64xf32>
    %122 = vector.extract_strided_slice %114 {offsets = [0, 1, 0, 0], sizes = [2, 8, 8, 64], strides = [1, 1, 1, 1]} : vector<2x12x8x64xf32> to vector<2x8x8x64xf32>
    %c8 = arith.constant 8 : index
    %c0_34 = arith.constant 0 : index
    %123 = vector.load %arg2[%c8, %c0_34] : memref<25x64xf32, #tpu.memory_space<vmem>>, vector<1x64xf32>
    %124 = vector.shape_cast %123 : vector<1x64xf32> to vector<64xf32>
    %125 = vector.shape_cast %124 : vector<64xf32> to vector<1x1x1x64xf32>
    %126 = vector.broadcast %125 : vector<1x1x1x64xf32> to vector<2x8x8x64xf32>
    %127 = arith.mulf %122, %126 : vector<2x8x8x64xf32>
    %128 = arith.addf %121, %127 : vector<2x8x8x64xf32>
    %129 = vector.extract_strided_slice %114 {offsets = [0, 2, 0, 0], sizes = [2, 8, 8, 64], strides = [1, 1, 1, 1]} : vector<2x12x8x64xf32> to vector<2x8x8x64xf32>
    %c13 = arith.constant 13 : index
    %c0_35 = arith.constant 0 : index
    %130 = vector.load %arg2[%c13, %c0_35] : memref<25x64xf32, #tpu.memory_space<vmem>>, vector<1x64xf32>
    %131 = vector.shape_cast %130 : vector<1x64xf32> to vector<64xf32>
    %132 = vector.shape_cast %131 : vector<64xf32> to vector<1x1x1x64xf32>
    %133 = vector.broadcast %132 : vector<1x1x1x64xf32> to vector<2x8x8x64xf32>
    %134 = arith.mulf %129, %133 : vector<2x8x8x64xf32>
    %135 = arith.addf %128, %134 : vector<2x8x8x64xf32>
    %136 = vector.extract_strided_slice %114 {offsets = [0, 3, 0, 0], sizes = [2, 8, 8, 64], strides = [1, 1, 1, 1]} : vector<2x12x8x64xf32> to vector<2x8x8x64xf32>
    %c18 = arith.constant 18 : index
    %c0_36 = arith.constant 0 : index
    %137 = vector.load %arg2[%c18, %c0_36] : memref<25x64xf32, #tpu.memory_space<vmem>>, vector<1x64xf32>
    %138 = vector.shape_cast %137 : vector<1x64xf32> to vector<64xf32>
    %139 = vector.shape_cast %138 : vector<64xf32> to vector<1x1x1x64xf32>
    %140 = vector.broadcast %139 : vector<1x1x1x64xf32> to vector<2x8x8x64xf32>
    %141 = arith.mulf %136, %140 : vector<2x8x8x64xf32>
    %142 = arith.addf %135, %141 : vector<2x8x8x64xf32>
    %143 = vector.extract_strided_slice %114 {offsets = [0, 4, 0, 0], sizes = [2, 8, 8, 64], strides = [1, 1, 1, 1]} : vector<2x12x8x64xf32> to vector<2x8x8x64xf32>
    %c23 = arith.constant 23 : index
    %c0_37 = arith.constant 0 : index
    %144 = vector.load %arg2[%c23, %c0_37] : memref<25x64xf32, #tpu.memory_space<vmem>>, vector<1x64xf32>
    %145 = vector.shape_cast %144 : vector<1x64xf32> to vector<64xf32>
    %146 = vector.shape_cast %145 : vector<64xf32> to vector<1x1x1x64xf32>
    %147 = vector.broadcast %146 : vector<1x1x1x64xf32> to vector<2x8x8x64xf32>
    %148 = arith.mulf %143, %147 : vector<2x8x8x64xf32>
    %149 = arith.addf %142, %148 : vector<2x8x8x64xf32>
    %c0_38 = arith.constant 0 : index
    %c0_39 = arith.constant 0 : index
    %c4 = arith.constant 4 : index
    %c0_40 = arith.constant 0 : index
    %150 = vector.load %arg1[%c0_38, %c0_39, %c4, %c0_40] : memref<2x12x12x64xf32, #tpu.memory_space<vmem>>, vector<2x12x8x64xf32>
    %151 = vector.extract_strided_slice %150 {offsets = [0, 0, 0, 0], sizes = [2, 8, 8, 64], strides = [1, 1, 1, 1]} : vector<2x12x8x64xf32> to vector<2x8x8x64xf32>
    %c4_41 = arith.constant 4 : index
    %c0_42 = arith.constant 0 : index
    %152 = vector.load %arg2[%c4_41, %c0_42] : memref<25x64xf32, #tpu.memory_space<vmem>>, vector<1x64xf32>
    %153 = vector.shape_cast %152 : vector<1x64xf32> to vector<64xf32>
    %154 = vector.shape_cast %153 : vector<64xf32> to vector<1x1x1x64xf32>
    %155 = vector.broadcast %154 : vector<1x1x1x64xf32> to vector<2x8x8x64xf32>
    %156 = arith.mulf %151, %155 : vector<2x8x8x64xf32>
    %157 = arith.addf %149, %156 : vector<2x8x8x64xf32>
    %158 = vector.extract_strided_slice %150 {offsets = [0, 1, 0, 0], sizes = [2, 8, 8, 64], strides = [1, 1, 1, 1]} : vector<2x12x8x64xf32> to vector<2x8x8x64xf32>
    %c9 = arith.constant 9 : index
    %c0_43 = arith.constant 0 : index
    %159 = vector.load %arg2[%c9, %c0_43] : memref<25x64xf32, #tpu.memory_space<vmem>>, vector<1x64xf32>
    %160 = vector.shape_cast %159 : vector<1x64xf32> to vector<64xf32>
    %161 = vector.shape_cast %160 : vector<64xf32> to vector<1x1x1x64xf32>
    %162 = vector.broadcast %161 : vector<1x1x1x64xf32> to vector<2x8x8x64xf32>
    %163 = arith.mulf %158, %162 : vector<2x8x8x64xf32>
    %164 = arith.addf %157, %163 : vector<2x8x8x64xf32>
    %165 = vector.extract_strided_slice %150 {offsets = [0, 2, 0, 0], sizes = [2, 8, 8, 64], strides = [1, 1, 1, 1]} : vector<2x12x8x64xf32> to vector<2x8x8x64xf32>
    %c14 = arith.constant 14 : index
    %c0_44 = arith.constant 0 : index
    %166 = vector.load %arg2[%c14, %c0_44] : memref<25x64xf32, #tpu.memory_space<vmem>>, vector<1x64xf32>
    %167 = vector.shape_cast %166 : vector<1x64xf32> to vector<64xf32>
    %168 = vector.shape_cast %167 : vector<64xf32> to vector<1x1x1x64xf32>
    %169 = vector.broadcast %168 : vector<1x1x1x64xf32> to vector<2x8x8x64xf32>
    %170 = arith.mulf %165, %169 : vector<2x8x8x64xf32>
    %171 = arith.addf %164, %170 : vector<2x8x8x64xf32>
    %172 = vector.extract_strided_slice %150 {offsets = [0, 3, 0, 0], sizes = [2, 8, 8, 64], strides = [1, 1, 1, 1]} : vector<2x12x8x64xf32> to vector<2x8x8x64xf32>
    %c19 = arith.constant 19 : index
    %c0_45 = arith.constant 0 : index
    %173 = vector.load %arg2[%c19, %c0_45] : memref<25x64xf32, #tpu.memory_space<vmem>>, vector<1x64xf32>
    %174 = vector.shape_cast %173 : vector<1x64xf32> to vector<64xf32>
    %175 = vector.shape_cast %174 : vector<64xf32> to vector<1x1x1x64xf32>
    %176 = vector.broadcast %175 : vector<1x1x1x64xf32> to vector<2x8x8x64xf32>
    %177 = arith.mulf %172, %176 : vector<2x8x8x64xf32>
    %178 = arith.addf %171, %177 : vector<2x8x8x64xf32>
    %179 = vector.extract_strided_slice %150 {offsets = [0, 4, 0, 0], sizes = [2, 8, 8, 64], strides = [1, 1, 1, 1]} : vector<2x12x8x64xf32> to vector<2x8x8x64xf32>
    %c24 = arith.constant 24 : index
    %c0_46 = arith.constant 0 : index
    %180 = vector.load %arg2[%c24, %c0_46] : memref<25x64xf32, #tpu.memory_space<vmem>>, vector<1x64xf32>
    %181 = vector.shape_cast %180 : vector<1x64xf32> to vector<64xf32>
    %182 = vector.shape_cast %181 : vector<64xf32> to vector<1x1x1x64xf32>
    %183 = vector.broadcast %182 : vector<1x1x1x64xf32> to vector<2x8x8x64xf32>
    %184 = arith.mulf %179, %183 : vector<2x8x8x64xf32>
    %185 = arith.addf %178, %184 : vector<2x8x8x64xf32>
    %c0_47 = arith.constant 0 : index
    %c0_48 = arith.constant 0 : index
    %c0_49 = arith.constant 0 : index
    %c0_50 = arith.constant 0 : index
    %186 = vector.load %arg4[%c0_47, %c0_48, %c0_49, %c0_50] : memref<2x8x8x64xf32, #tpu.memory_space<vmem>>, vector<2x8x8x64xf32>
    tpu.vector_store %arg4[%c0_47, %c0_48, %c0_49, %c0_50], %185 {strides = array<i32>} : memref<2x8x8x64xf32, #tpu.memory_space<vmem>>, vector<2x8x8x64xf32>,
    return
  }
  func.func @transform_0(%arg0: i32) -> (i32, i32, i32, i32) {
    %c0_i32 = arith.constant 0 : i32
    %c0_i32_0 = arith.constant 0 : i32
    %c0_i32_1 = arith.constant 0 : i32
    %c0_i32_2 = arith.constant 0 : i32
    %c0_i32_3 = arith.constant 0 : i32
    return %c0_i32, %c0_i32_0, %c0_i32_1, %c0_i32_2 : i32, i32, i32, i32
  }
  func.func @transform_1(%arg0: i32) -> (i32, i32) {
    %c0_i32 = arith.constant 0 : i32
    %c0_i32_0 = arith.constant 0 : i32
    %c0_i32_1 = arith.constant 0 : i32
    return %c0_i32, %c0_i32_0 : i32, i32
  }
  func.func @transform_2(%arg0: i32) -> (i32, i32) {
    %c0_i32 = arith.constant 0 : i32
    %c0_i32_0 = arith.constant 0 : i32
    %c0_i32_1 = arith.constant 0 : i32
    return %c0_i32, %c0_i32_0 : i32, i32
  }
  func.func @transform_3(%arg0: i32) -> (i32, i32, i32, i32) {
    %c0_i32 = arith.constant 0 : i32
    %c0_i32_0 = arith.constant 0 : i32
    %c0_i32_1 = arith.constant 0 : i32
    %c0_i32_2 = arith.constant 0 : i32
    %c0_i32_3 = arith.constant 0 : i32
    return %c0_i32, %c0_i32_0, %c0_i32_1, %c0_i32_2 : i32, i32, i32, i32
  }
}

module attributes {stable_mosaic.version = 11 : i64} {
  func.func @_proj_res_ln_kernel(%arg0: i32, %arg1: memref<128x64xf32, #tpu.memory_space<vmem>>, %arg2: memref<128x64xf32, #tpu.memory_space<vmem>>, %arg3: memref<128x64xf32, #tpu.memory_space<vmem>>, %arg4: memref<64x64xf32, #tpu.memory_space<vmem>>, %arg5: memref<1x64xf32, #tpu.memory_space<vmem>>, %arg6: memref<1x64xf32, #tpu.memory_space<vmem>>, %arg7: memref<1x64xf32, #tpu.memory_space<vmem>>, %arg8: memref<128x64xf32, #tpu.memory_space<vmem>>) attributes {dimension_semantics = [#tpu.dimension_semantics<parallel>], iteration_bounds = array<i64: 1>, scalar_prefetch = 0 : i64, scratch_operands = 0 : i64, tpu.core_type = #tpu.core_type<tc>, window_params = [{transform_indices = @transform_0, window_bounds = array<i64: 128, 64>}, {transform_indices = @transform_1, window_bounds = array<i64: 128, 64>}, {transform_indices = @transform_2, window_bounds = array<i64: 128, 64>}, {pipeline_mode = #tpu.pipeline_mode<synchronous>, transform_indices = @transform_3, window_bounds = array<i64: 64, 64>}, {pipeline_mode = #tpu.pipeline_mode<synchronous>, transform_indices = @transform_4, window_bounds = array<i64: 1, 64>}, {pipeline_mode = #tpu.pipeline_mode<synchronous>, transform_indices = @transform_5, window_bounds = array<i64: 1, 64>}, {pipeline_mode = #tpu.pipeline_mode<synchronous>, transform_indices = @transform_6, window_bounds = array<i64: 1, 64>}, {transform_indices = @transform_7, window_bounds = array<i64: 128, 64>}]} {
    %c0 = arith.constant 0 : index
    %c0_0 = arith.constant 0 : index
    %0 = vector.load %arg1[%c0, %c0_0] : memref<128x64xf32, #tpu.memory_space<vmem>>, vector<128x64xf32>
    %c0_1 = arith.constant 0 : index
    %c0_2 = arith.constant 0 : index
    %1 = vector.load %arg2[%c0_1, %c0_2] : memref<128x64xf32, #tpu.memory_space<vmem>>, vector<128x64xf32>
    %2 = arith.addf %0, %1 : vector<128x64xf32>
    %c0_3 = arith.constant 0 : index
    %c0_4 = arith.constant 0 : index
    %3 = vector.load %arg4[%c0_3, %c0_4] : memref<64x64xf32, #tpu.memory_space<vmem>>, vector<64x64xf32>
    %cst = arith.constant dense<0.000000e+00> : vector<128x64xf32>
    %4 = tpu.matmul %2, %3, %cst {dimension_numbers = #tpu.dot_dimension_numbers<[1], [0], [0], [1], [0, 0, 1, 1], [], []>} : vector<128x64xf32>, vector<64x64xf32>, vector<128x64xf32> -> vector<128x64xf32>
    %c0_5 = arith.constant 0 : index
    %c0_6 = arith.constant 0 : index
    %5 = vector.load %arg5[%c0_5, %c0_6] : memref<1x64xf32, #tpu.memory_space<vmem>>, vector<1x64xf32>
    %6 = vector.broadcast %5 : vector<1x64xf32> to vector<128x64xf32>
    %7 = arith.addf %4, %6 : vector<128x64xf32>
    %c0_7 = arith.constant 0 : index
    %c0_8 = arith.constant 0 : index
    %8 = vector.load %arg3[%c0_7, %c0_8] : memref<128x64xf32, #tpu.memory_space<vmem>>, vector<128x64xf32>
    %9 = arith.addf %7, %8 : vector<128x64xf32>
    %c0_9 = arith.constant 0 : index
    %c0_10 = arith.constant 0 : index
    %10 = vector.load %arg6[%c0_9, %c0_10] : memref<1x64xf32, #tpu.memory_space<vmem>>, vector<1x64xf32>
    %c0_11 = arith.constant 0 : index
    %c0_12 = arith.constant 0 : index
    %11 = vector.load %arg7[%c0_11, %c0_12] : memref<1x64xf32, #tpu.memory_space<vmem>>, vector<1x64xf32>
    %cst_13 = arith.constant dense<0.000000e+00> : vector<128xf32>
    %12 = vector.multi_reduction <add>, %9, %cst_13 [1] : vector<128x64xf32> to vector<128xf32>
    %13 = vector.shape_cast %12 : vector<128xf32> to vector<128x1xf32>
    %cst_14 = arith.constant 6.400000e+01 : f32
    %14 = vector.broadcast %cst_14 : f32 to vector<128x1xf32>
    %15 = arith.divf %13, %14 : vector<128x1xf32>
    %16 = vector.broadcast %15 : vector<128x1xf32> to vector<128x64xf32>
    %17 = arith.subf %9, %16 : vector<128x64xf32>
    %18 = arith.mulf %17, %17 : vector<128x64xf32>
    %cst_15 = arith.constant dense<0.000000e+00> : vector<128xf32>
    %19 = vector.multi_reduction <add>, %18, %cst_15 [1] : vector<128x64xf32> to vector<128xf32>
    %20 = vector.shape_cast %19 : vector<128xf32> to vector<128x1xf32>
    %cst_16 = arith.constant 6.400000e+01 : f32
    %21 = vector.broadcast %cst_16 : f32 to vector<128x1xf32>
    %22 = arith.divf %20, %21 : vector<128x1xf32>
    %23 = vector.broadcast %15 : vector<128x1xf32> to vector<128x64xf32>
    %24 = arith.subf %9, %23 : vector<128x64xf32>
    %cst_17 = arith.constant 9.99999997E-7 : f32
    %25 = vector.broadcast %cst_17 : f32 to vector<128x1xf32>
    %26 = arith.addf %22, %25 : vector<128x1xf32>
    %27 = math.rsqrt %26 : vector<128x1xf32>
    %28 = vector.broadcast %27 : vector<128x1xf32> to vector<128x64xf32>
    %29 = arith.mulf %24, %28 : vector<128x64xf32>
    %30 = vector.broadcast %10 : vector<1x64xf32> to vector<128x64xf32>
    %31 = arith.mulf %29, %30 : vector<128x64xf32>
    %32 = vector.broadcast %11 : vector<1x64xf32> to vector<128x64xf32>
    %33 = arith.addf %31, %32 : vector<128x64xf32>
    %c0_18 = arith.constant 0 : index
    %c0_19 = arith.constant 0 : index
    %34 = vector.load %arg8[%c0_18, %c0_19] : memref<128x64xf32, #tpu.memory_space<vmem>>, vector<128x64xf32>
    tpu.vector_store %arg8[%c0_18, %c0_19], %33 {strides = array<i32>} : memref<128x64xf32, #tpu.memory_space<vmem>>, vector<128x64xf32>,
    return
  }
  func.func @transform_0(%arg0: i32) -> (i32, i32) {
    %c0_i32 = arith.constant 0 : i32
    %c0_i32_0 = arith.constant 0 : i32
    return %arg0, %c0_i32 : i32, i32
  }
  func.func @transform_1(%arg0: i32) -> (i32, i32) {
    %c0_i32 = arith.constant 0 : i32
    %c0_i32_0 = arith.constant 0 : i32
    return %arg0, %c0_i32 : i32, i32
  }
  func.func @transform_2(%arg0: i32) -> (i32, i32) {
    %c0_i32 = arith.constant 0 : i32
    %c0_i32_0 = arith.constant 0 : i32
    return %arg0, %c0_i32 : i32, i32
  }
  func.func @transform_3(%arg0: i32) -> (i32, i32) {
    %c0_i32 = arith.constant 0 : i32
    %c0_i32_0 = arith.constant 0 : i32
    %c0_i32_1 = arith.constant 0 : i32
    return %c0_i32, %c0_i32_0 : i32, i32
  }
  func.func @transform_4(%arg0: i32) -> (i32, i32) {
    %c0_i32 = arith.constant 0 : i32
    %c0_i32_0 = arith.constant 0 : i32
    %c0_i32_1 = arith.constant 0 : i32
    return %c0_i32, %c0_i32_0 : i32, i32
  }
  func.func @transform_5(%arg0: i32) -> (i32, i32) {
    %c0_i32 = arith.constant 0 : i32
    %c0_i32_0 = arith.constant 0 : i32
    %c0_i32_1 = arith.constant 0 : i32
    return %c0_i32, %c0_i32_0 : i32, i32
  }
  func.func @transform_6(%arg0: i32) -> (i32, i32) {
    %c0_i32 = arith.constant 0 : i32
    %c0_i32_0 = arith.constant 0 : i32
    %c0_i32_1 = arith.constant 0 : i32
    return %c0_i32, %c0_i32_0 : i32, i32
  }
  func.func @transform_7(%arg0: i32) -> (i32, i32) {
    %c0_i32 = arith.constant 0 : i32
    %c0_i32_0 = arith.constant 0 : i32
    return %arg0, %c0_i32 : i32, i32
  }
}

module attributes {stable_mosaic.version = 11 : i64} {
  func.func @_fc_res_ln_kernel(%arg0: i32, %arg1: memref<128x64xf32, #tpu.memory_space<vmem>>, %arg2: memref<64x64xf32, #tpu.memory_space<vmem>>, %arg3: memref<1x64xf32, #tpu.memory_space<vmem>>, %arg4: memref<1x64xf32, #tpu.memory_space<vmem>>, %arg5: memref<1x64xf32, #tpu.memory_space<vmem>>, %arg6: memref<128x64xf32, #tpu.memory_space<vmem>>) attributes {dimension_semantics = [#tpu.dimension_semantics<parallel>], iteration_bounds = array<i64: 1>, scalar_prefetch = 0 : i64, scratch_operands = 0 : i64, tpu.core_type = #tpu.core_type<tc>, window_params = [{transform_indices = @transform_0, window_bounds = array<i64: 128, 64>}, {pipeline_mode = #tpu.pipeline_mode<synchronous>, transform_indices = @transform_1, window_bounds = array<i64: 64, 64>}, {pipeline_mode = #tpu.pipeline_mode<synchronous>, transform_indices = @transform_2, window_bounds = array<i64: 1, 64>}, {pipeline_mode = #tpu.pipeline_mode<synchronous>, transform_indices = @transform_3, window_bounds = array<i64: 1, 64>}, {pipeline_mode = #tpu.pipeline_mode<synchronous>, transform_indices = @transform_4, window_bounds = array<i64: 1, 64>}, {transform_indices = @transform_5, window_bounds = array<i64: 128, 64>}]} {
    %c0 = arith.constant 0 : index
    %c0_0 = arith.constant 0 : index
    %0 = vector.load %arg1[%c0, %c0_0] : memref<128x64xf32, #tpu.memory_space<vmem>>, vector<128x64xf32>
    %c0_1 = arith.constant 0 : index
    %c0_2 = arith.constant 0 : index
    %1 = vector.load %arg2[%c0_1, %c0_2] : memref<64x64xf32, #tpu.memory_space<vmem>>, vector<64x64xf32>
    %cst = arith.constant dense<0.000000e+00> : vector<128x64xf32>
    %2 = tpu.matmul %0, %1, %cst {dimension_numbers = #tpu.dot_dimension_numbers<[1], [0], [0], [1], [0, 0, 1, 1], [], []>} : vector<128x64xf32>, vector<64x64xf32>, vector<128x64xf32> -> vector<128x64xf32>
    %c0_3 = arith.constant 0 : index
    %c0_4 = arith.constant 0 : index
    %3 = vector.load %arg3[%c0_3, %c0_4] : memref<1x64xf32, #tpu.memory_space<vmem>>, vector<1x64xf32>
    %4 = vector.broadcast %3 : vector<1x64xf32> to vector<128x64xf32>
    %5 = arith.addf %2, %4 : vector<128x64xf32>
    %6 = arith.addf %5, %0 : vector<128x64xf32>
    %c0_5 = arith.constant 0 : index
    %c0_6 = arith.constant 0 : index
    %7 = vector.load %arg4[%c0_5, %c0_6] : memref<1x64xf32, #tpu.memory_space<vmem>>, vector<1x64xf32>
    %c0_7 = arith.constant 0 : index
    %c0_8 = arith.constant 0 : index
    %8 = vector.load %arg5[%c0_7, %c0_8] : memref<1x64xf32, #tpu.memory_space<vmem>>, vector<1x64xf32>
    %cst_9 = arith.constant dense<0.000000e+00> : vector<128xf32>
    %9 = vector.multi_reduction <add>, %6, %cst_9 [1] : vector<128x64xf32> to vector<128xf32>
    %10 = vector.shape_cast %9 : vector<128xf32> to vector<128x1xf32>
    %cst_10 = arith.constant 6.400000e+01 : f32
    %11 = vector.broadcast %cst_10 : f32 to vector<128x1xf32>
    %12 = arith.divf %10, %11 : vector<128x1xf32>
    %13 = vector.broadcast %12 : vector<128x1xf32> to vector<128x64xf32>
    %14 = arith.subf %6, %13 : vector<128x64xf32>
    %15 = arith.mulf %14, %14 : vector<128x64xf32>
    %cst_11 = arith.constant dense<0.000000e+00> : vector<128xf32>
    %16 = vector.multi_reduction <add>, %15, %cst_11 [1] : vector<128x64xf32> to vector<128xf32>
    %17 = vector.shape_cast %16 : vector<128xf32> to vector<128x1xf32>
    %cst_12 = arith.constant 6.400000e+01 : f32
    %18 = vector.broadcast %cst_12 : f32 to vector<128x1xf32>
    %19 = arith.divf %17, %18 : vector<128x1xf32>
    %20 = vector.broadcast %12 : vector<128x1xf32> to vector<128x64xf32>
    %21 = arith.subf %6, %20 : vector<128x64xf32>
    %cst_13 = arith.constant 9.99999997E-7 : f32
    %22 = vector.broadcast %cst_13 : f32 to vector<128x1xf32>
    %23 = arith.addf %19, %22 : vector<128x1xf32>
    %24 = math.rsqrt %23 : vector<128x1xf32>
    %25 = vector.broadcast %24 : vector<128x1xf32> to vector<128x64xf32>
    %26 = arith.mulf %21, %25 : vector<128x64xf32>
    %27 = vector.broadcast %7 : vector<1x64xf32> to vector<128x64xf32>
    %28 = arith.mulf %26, %27 : vector<128x64xf32>
    %29 = vector.broadcast %8 : vector<1x64xf32> to vector<128x64xf32>
    %30 = arith.addf %28, %29 : vector<128x64xf32>
    %c0_14 = arith.constant 0 : index
    %c0_15 = arith.constant 0 : index
    %31 = vector.load %arg6[%c0_14, %c0_15] : memref<128x64xf32, #tpu.memory_space<vmem>>, vector<128x64xf32>
    tpu.vector_store %arg6[%c0_14, %c0_15], %30 {strides = array<i32>} : memref<128x64xf32, #tpu.memory_space<vmem>>, vector<128x64xf32>,
    return
  }
  func.func @transform_0(%arg0: i32) -> (i32, i32) {
    %c0_i32 = arith.constant 0 : i32
    %c0_i32_0 = arith.constant 0 : i32
    return %arg0, %c0_i32 : i32, i32
  }
  func.func @transform_1(%arg0: i32) -> (i32, i32) {
    %c0_i32 = arith.constant 0 : i32
    %c0_i32_0 = arith.constant 0 : i32
    %c0_i32_1 = arith.constant 0 : i32
    return %c0_i32, %c0_i32_0 : i32, i32
  }
  func.func @transform_2(%arg0: i32) -> (i32, i32) {
    %c0_i32 = arith.constant 0 : i32
    %c0_i32_0 = arith.constant 0 : i32
    %c0_i32_1 = arith.constant 0 : i32
    return %c0_i32, %c0_i32_0 : i32, i32
  }
  func.func @transform_3(%arg0: i32) -> (i32, i32) {
    %c0_i32 = arith.constant 0 : i32
    %c0_i32_0 = arith.constant 0 : i32
    %c0_i32_1 = arith.constant 0 : i32
    return %c0_i32, %c0_i32_0 : i32, i32
  }
  func.func @transform_4(%arg0: i32) -> (i32, i32) {
    %c0_i32 = arith.constant 0 : i32
    %c0_i32_0 = arith.constant 0 : i32
    %c0_i32_1 = arith.constant 0 : i32
    return %c0_i32, %c0_i32_0 : i32, i32
  }
  func.func @transform_5(%arg0: i32) -> (i32, i32) {
    %c0_i32 = arith.constant 0 : i32
    %c0_i32_0 = arith.constant 0 : i32
    return %arg0, %c0_i32 : i32, i32
  }
}

</mosaic_0001>

<bundles_post_ra>
// kernel: tile.10
= control target key start
LH: loop header
LB: loop body
LE: loop exit
PB: predicated region body
PF: predicated region fallthrough
CT: control target
= control target key end

     0   :  { %s442_s0 = inlined_call_operand.vmem [shape: f32[64,8], index: 0, kind: input, shape index: {}]   ;;  %s443_s1 = inlined_call_operand.vmem [shape: f32[2,64,8,8], index: 1, kind: output, shape index: {}]  }
   0x1   :  { %v4_v0 = vld [vmem:[%s442_s0] ss:$0 sm:$0xff]  ;;  %v153_v1 = vld [vmem:[%s442_s0 + $0x1] ss:$0 sm:$0xff]  ;;  %v162_v2 = vld [vmem:[%s442_s0 + $0x2] ss:$0 sm:$0xff] }
   0x2   :  { %5 = vst [vmem:[%s443_s1] sm:$0x3] %v4_v0  ;;  %v171_v3 = vld [vmem:[%s442_s0 + $0x3] ss:$0 sm:$0xff]  ;;  %v180_v4 = vld [vmem:[%s442_s0 + $0x4] ss:$0 sm:$0xff] }
   0x3   :  { %146 = vst [vmem:[%s443_s1 + $0x10] sm:$0x3] %v4_v0  ;;  %v189_v5 = vld [vmem:[%s442_s0 + $0x5] ss:$0 sm:$0xff]  ;;  %v198_v6 = vld [vmem:[%s442_s0 + $0x6] ss:$0 sm:$0xff] }
   0x4   :  { %147 = vst [vmem:[%s443_s1 + $0x20] sm:$0x3] %v4_v0  ;;  %v207_v7 = vld [vmem:[%s442_s0 + $0x7] ss:$0 sm:$0xff] }
   0x5   :  { %148 = vst [vmem:[%s443_s1 + $0x30] sm:$0x3] %v4_v0 }
   0x6   :  { %149 = vst [vmem:[%s443_s1 + $0x40] sm:$0x3] %v4_v0 }
   0x7   :  { %150 = vst [vmem:[%s443_s1 + $0x50] sm:$0x3] %v4_v0 }
   0x8   :  { %151 = vst [vmem:[%s443_s1 + $0x60] sm:$0x3] %v4_v0 }
   0x9   :  { %152 = vst [vmem:[%s443_s1 + $0x70] sm:$0x3] %v4_v0 }
   0xa   :  { %154 = vst [vmem:[%s443_s1 + $0x2] sm:$0x3] %v153_v1 }
   0xb   :  { %155 = vst [vmem:[%s443_s1 + $0x12] sm:$0x3] %v153_v1 }
   0xc   :  { %156 = vst [vmem:[%s443_s1 + $0x22] sm:$0x3] %v153_v1 }
   0xd   :  { %157 = vst [vmem:[%s443_s1 + $0x32] sm:$0x3] %v153_v1 }
   0xe   :  { %158 = vst [vmem:[%s443_s1 + $0x42] sm:$0x3] %v153_v1 }
   0xf   :  { %159 = vst [vmem:[%s443_s1 + $0x52] sm:$0x3] %v153_v1 }
  0x10   :  { %160 = vst [vmem:[%s443_s1 + $0x62] sm:$0x3] %v153_v1 }
  0x11   :  { %161 = vst [vmem:[%s443_s1 + $0x72] sm:$0x3] %v153_v1 }
  0x12   :  { %163 = vst [vmem:[%s443_s1 + $0x4] sm:$0x3] %v162_v2 }
  0x13   :  { %164 = vst [vmem:[%s443_s1 + $0x14] sm:$0x3] %v162_v2 }
  0x14   :  { %165 = vst [vmem:[%s443_s1 + $0x24] sm:$0x3] %v162_v2 }
  0x15   :  { %166 = vst [vmem:[%s443_s1 + $0x34] sm:$0x3] %v162_v2 }
  0x16   :  { %167 = vst [vmem:[%s443_s1 + $0x44] sm:$0x3] %v162_v2 }
  0x17   :  { %168 = vst [vmem:[%s443_s1 + $0x54] sm:$0x3] %v162_v2 }
  0x18   :  { %169 = vst [vmem:[%s443_s1 + $0x64] sm:$0x3] %v162_v2 }
  0x19   :  { %170 = vst [vmem:[%s443_s1 + $0x74] sm:$0x3] %v162_v2 }
  0x1a   :  { %172 = vst [vmem:[%s443_s1 + $0x6] sm:$0x3] %v171_v3 }
  0x1b   :  { %173 = vst [vmem:[%s443_s1 + $0x16] sm:$0x3] %v171_v3 }
  0x1c   :  { %174 = vst [vmem:[%s443_s1 + $0x26] sm:$0x3] %v171_v3 }
  0x1d   :  { %175 = vst [vmem:[%s443_s1 + $0x36] sm:$0x3] %v171_v3 }
  0x1e   :  { %176 = vst [vmem:[%s443_s1 + $0x46] sm:$0x3] %v171_v3 }
  0x1f   :  { %177 = vst [vmem:[%s443_s1 + $0x56] sm:$0x3] %v171_v3 }
  0x20   :  { %178 = vst [vmem:[%s443_s1 + $0x66] sm:$0x3] %v171_v3 }
  0x21   :  { %179 = vst [vmem:[%s443_s1 + $0x76] sm:$0x3] %v171_v3 }
  0x22   :  { %181 = vst [vmem:[%s443_s1 + $0x8] sm:$0x3] %v180_v4 }
  0x23   :  { %182 = vst [vmem:[%s443_s1 + $0x18] sm:$0x3] %v180_v4 }
  0x24   :  { %183 = vst [vmem:[%s443_s1 + $0x28] sm:$0x3] %v180_v4 }
  0x25   :  { %184 = vst [vmem:[%s443_s1 + $0x38] sm:$0x3] %v180_v4 }
  0x26   :  { %185 = vst [vmem:[%s443_s1 + $0x48] sm:$0x3] %v180_v4 }
  0x27   :  { %186 = vst [vmem:[%s443_s1 + $0x58] sm:$0x3] %v180_v4 }
  0x28   :  { %187 = vst [vmem:[%s443_s1 + $0x68] sm:$0x3] %v180_v4 }
  0x29   :  { %188 = vst [vmem:[%s443_s1 + $0x78] sm:$0x3] %v180_v4 }
  0x2a   :  { %190 = vst [vmem:[%s443_s1 + $0xa] sm:$0x3] %v189_v5 }
  0x2b   :  { %191 = vst [vmem:[%s443_s1 + $0x1a] sm:$0x3] %v189_v5 }
  0x2c   :  { %192 = vst [vmem:[%s443_s1 + $0x2a] sm:$0x3] %v189_v5 }
  0x2d   :  { %193 = vst [vmem:[%s443_s1 + $0x3a] sm:$0x3] %v189_v5 }
  0x2e   :  { %194 = vst [vmem:[%s443_s1 + $0x4a] sm:$0x3] %v189_v5 }
  0x2f   :  { %195 = vst [vmem:[%s443_s1 + $0x5a] sm:$0x3] %v189_v5 }
  0x30   :  { %196 = vst [vmem:[%s443_s1 + $0x6a] sm:$0x3] %v189_v5 }
  0x31   :  { %197 = vst [vmem:[%s443_s1 + $0x7a] sm:$0x3] %v189_v5 }
  0x32   :  { %199 = vst [vmem:[%s443_s1 + $0xc] sm:$0x3] %v198_v6 }
  0x33   :  { %200 = vst [vmem:[%s443_s1 + $0x1c] sm:$0x3] %v198_v6 }
  0x34   :  { %201 = vst [vmem:[%s443_s1 + $0x2c] sm:$0x3] %v198_v6 }
  0x35   :  { %202 = vst [vmem:[%s443_s1 + $0x3c] sm:$0x3] %v198_v6 }
  0x36   :  { %203 = vst [vmem:[%s443_s1 + $0x4c] sm:$0x3] %v198_v6 }
  0x37   :  { %204 = vst [vmem:[%s443_s1 + $0x5c] sm:$0x3] %v198_v6 }
  0x38   :  { %205 = vst [vmem:[%s443_s1 + $0x6c] sm:$0x3] %v198_v6 }
  0x39   :  { %206 = vst [vmem:[%s443_s1 + $0x7c] sm:$0x3] %v198_v6 }
  0x3a   :  { %208 = vst [vmem:[%s443_s1 + $0xe] sm:$0x3] %v207_v7 }
  0x3b   :  { %209 = vst [vmem:[%s443_s1 + $0x1e] sm:$0x3] %v207_v7 }
  0x3c   :  { %210 = vst [vmem:[%s443_s1 + $0x2e] sm:$0x3] %v207_v7 }
  0x3d   :  { %211 = vst [vmem:[%s443_s1 + $0x3e] sm:$0x3] %v207_v7 }
  0x3e   :  { %212 = vst [vmem:[%s443_s1 + $0x4e] sm:$0x3] %v207_v7 }
  0x3f   :  { %213 = vst [vmem:[%s443_s1 + $0x5e] sm:$0x3] %v207_v7 }
  0x40   :  { %214 = vst [vmem:[%s443_s1 + $0x6e] sm:$0x3] %v207_v7 }
  0x41   :  { %215 = vst [vmem:[%s443_s1 + $0x7e] sm:$0x3] %v207_v7 }

// kernel: tile.11
= control target key start
LH: loop header
LB: loop body
LE: loop exit
PB: predicated region body
PF: predicated region fallthrough
CT: control target
= control target key end

     0   :  { %vm260_vm0 = vcmask 1047556   ;;  %s492_s15 = smov 64   ;;  %vm262_vm1 = vcmask 523264   ;;  %vm335_vm2 = vcmask 1048064   ;;  %s783_s0 = inlined_call_operand.vmem [shape: f32[2,64,8,8], index: 0, kind: input, shape index: {}]   ;;  %s784_s1 = inlined_call_operand.vmem [shape: f32[128,64], index: 1, kind: output, shape index: {}]  }
   0x1   :  { %v470_v0 = vld [vmem:[%s783_s0 + $0xe] sm:$0x3]  ;;  %v471_v1 = vld [vmem:[%s783_s0 + $0xc] sm:$0x3]  ;;  %v472_v2 = vld [vmem:[%s783_s0 + $0xa] sm:$0x3] }
   0x2   :  { %231 = vst [vmem:[#allocation0 + $0x38] sm:$0x3] %v470_v0  ;;  %v473_v3 = vld [vmem:[%s783_s0 + $0x8] sm:$0x3]  ;;  %v474_v4 = vld [vmem:[%s783_s0 + $0x6] sm:$0x3] }
   0x3   :  { %235 = vst [vmem:[#allocation0 + $0x30] sm:$0x3] %v471_v1  ;;  %v475_v5 = vld [vmem:[%s783_s0 + $0x4] sm:$0x3]  ;;  %v476_v6 = vld [vmem:[%s783_s0 + $0x2] sm:$0x3] }
   0x4   :  { %239 = vst [vmem:[#allocation0 + $0x28] sm:$0x3] %v472_v2  ;;  %v256_v7 = vld [vmem:[%s783_s0] sm:$0x3]  ;;  %v462_v8 = vld [vmem:[%s783_s0 + $0x1e] sm:$0x3] }
   0x5   :  { %243 = vst [vmem:[#allocation0 + $0x20] sm:$0x3] %v473_v3  ;;  %v463_v9 = vld [vmem:[%s783_s0 + $0x1c] sm:$0x3]  ;;  %v464_v10 = vld [vmem:[%s783_s0 + $0x1a] sm:$0x3] }
   0x6   :  { %247 = vst [vmem:[#allocation0 + $0x18] sm:$0x3] %v474_v4  ;;  %v465_v11 = vld [vmem:[%s783_s0 + $0x18] sm:$0x3]  ;;  %v466_v12 = vld [vmem:[%s783_s0 + $0x16] sm:$0x3] }
   0x7   :  { %251 = vst [vmem:[#allocation0 + $0x10] sm:$0x3] %v475_v5  ;;  %v467_v13 = vld [vmem:[%s783_s0 + $0x14] sm:$0x3]  ;;  %v468_v14 = vld [vmem:[%s783_s0 + $0x12] sm:$0x3] }
   0x8   :  { %255 = vst [vmem:[#allocation0 + $0x8] sm:$0x3] %v476_v6  ;;  %v469_v15 = vld [vmem:[%s783_s0 + $0x10] sm:$0x3]  ;;  %v438_v17 = vld [vmem:[%s783_s0 + $0x4e] sm:$0x3] }
   0x9   :  { %257 = vst [vmem:[#allocation0] sm:$0x3] %v256_v7  ;;  %v439_v18 = vld [vmem:[%s783_s0 + $0x4c] sm:$0x3]  ;;  %v440_v21 = vld [vmem:[%s783_s0 + $0x4a] sm:$0x3] }
   0xa   :  { %199 = vst [vmem:[#allocation0 + $0x78] sm:$0x3] %v462_v8  ;;  %v441_v22 = vld [vmem:[%s783_s0 + $0x48] sm:$0x3]  ;;  %v442_v23 = vld [vmem:[%s783_s0 + $0x46] sm:$0x3] }
   0xb   :  { %203 = vst [vmem:[#allocation0 + $0x70] sm:$0x3] %v463_v9  ;;  %v443_v24 = vld [vmem:[%s783_s0 + $0x44] sm:$0x3]  ;;  %v444_v25 = vld [vmem:[%s783_s0 + $0x42] sm:$0x3] }
   0xc   :  { %207 = vst [vmem:[#allocation0 + $0x68] sm:$0x3] %v464_v10  ;;  %v330_v16 = vld [vmem:[#allocation0 + $0x1] ss:$8 sm:$0xf0]  }
   0xd   :  { %211 = vst [vmem:[#allocation0 + $0x60] sm:$0x3] %v465_v11  ;;  %v445_v26 = vld [vmem:[%s783_s0 + $0x40] sm:$0x3]  ;;  %v430_v28 = vld [vmem:[%s783_s0 + $0x5e] sm:$0x3] }
   0xe   :  { %215 = vst [vmem:[#allocation0 + $0x58] sm:$0x3] %v466_v12  ;;  %v431_v29 = vld [vmem:[%s783_s0 + $0x5c] sm:$0x3]  ;;  %v432_v32 = vld [vmem:[%s783_s0 + $0x5a] sm:$0x3] }
   0xf   :  { %219 = vst [vmem:[#allocation0 + $0x50] sm:$0x3] %v467_v13  ;;  %v433_v33 = vld [vmem:[%s783_s0 + $0x58] sm:$0x3]  ;;  %v434_v34 = vld [vmem:[%s783_s0 + $0x56] sm:$0x3] }
  0x10   :  { %v328_v19 = vld [vmem:[#allocation0 + $0x1] ss:$8 sm:$0xf]   ;;  %223 = vst [vmem:[#allocation0 + $0x48] sm:$0x3] %v468_v14 }
  0x11   :  { %v332_v20 = vsel %vm260_vm0, %v330_v16, %v328_v19  ;;  %227 = vst [vmem:[#allocation0 + $0x40] sm:$0x3] %v469_v15  ;;  %v435_v35 = vld [vmem:[%s783_s0 + $0x54] sm:$0x3]  ;;  %v436_v36 = vld [vmem:[%s783_s0 + $0x52] sm:$0x3] }
  0x12   :  { %333 = vrot.lane.b32.xlu0 %v332_v20, %s492_s15  ;;  %103 = vst [vmem:[#allocation0 + $0x138] sm:$0x3] %v438_v17  ;;  %v437_v37 = vld [vmem:[%s783_s0 + $0x50] sm:$0x3]  ;;  %v446_v39 = vld [vmem:[%s783_s0 + $0x3e] sm:$0x3] }
  0x13   :  { %107 = vst [vmem:[#allocation0 + $0x130] sm:$0x3] %v439_v18  ;;  %v447_v40 = vld [vmem:[%s783_s0 + $0x3c] sm:$0x3]  ;;  %v448_v43 = vld [vmem:[%s783_s0 + $0x3a] sm:$0x3] }
  0x14   :  { %111 = vst [vmem:[#allocation0 + $0x128] sm:$0x3] %v440_v21  ;;  %v351_v27 = vld [vmem:[#allocation0 + $0x41] ss:$8 sm:$0xf0]  }
  0x15   :  { %115 = vst [vmem:[#allocation0 + $0x120] sm:$0x3] %v441_v22  ;;  %v449_v44 = vld [vmem:[%s783_s0 + $0x38] sm:$0x3]  ;;  %v450_v45 = vld [vmem:[%s783_s0 + $0x36] sm:$0x3] }
  0x16   :  { %119 = vst [vmem:[#allocation0 + $0x118] sm:$0x3] %v442_v23  ;;  %v451_v46 = vld [vmem:[%s783_s0 + $0x34] sm:$0x3]  ;;  %v452_v47 = vld [vmem:[%s783_s0 + $0x32] sm:$0x3] }
  0x17   :  { %123 = vst [vmem:[#allocation0 + $0x110] sm:$0x3] %v443_v24  ;;  %v453_v48 = vld [vmem:[%s783_s0 + $0x30] sm:$0x3]  ;;  %v414_v50 = vld [vmem:[%s783_s0 + $0x7e] sm:$0x3] }
  0x18   :  { %v349_v30 = vld [vmem:[#allocation0 + $0x41] ss:$8 sm:$0xf]   ;;  %127 = vst [vmem:[#allocation0 + $0x108] sm:$0x3] %v444_v25 }
  0x19   :  { %v353_v31 = vsel %vm260_vm0, %v351_v27, %v349_v30  ;;  %131 = vst [vmem:[#allocation0 + $0x100] sm:$0x3] %v445_v26  ;;  %v415_v51 = vld [vmem:[%s783_s0 + $0x7c] sm:$0x3]  ;;  %v416_v54 = vld [vmem:[%s783_s0 + $0x7a] sm:$0x3] }
  0x1a   :  { %354 = vrot.lane.b32.xlu1 %v353_v31, %s492_s15  ;;  %71 = vst [vmem:[#allocation0 + $0x178] sm:$0x3] %v430_v28  ;;  %v417_v55 = vld [vmem:[%s783_s0 + $0x78] sm:$0x3]  ;;  %v418_v56 = vld [vmem:[%s783_s0 + $0x76] sm:$0x3] }
  0x1b   :  { %75 = vst [vmem:[#allocation0 + $0x170] sm:$0x3] %v431_v29  ;;  %v419_v57 = vld [vmem:[%s783_s0 + $0x74] sm:$0x3]  ;;  %v420_v58 = vld [vmem:[%s783_s0 + $0x72] sm:$0x3] }
  0x1c   :  { %79 = vst [vmem:[#allocation0 + $0x168] sm:$0x3] %v432_v32  ;;  %v340_v38 = vld [vmem:[#allocation0 + $0x101] ss:$8 sm:$0xf0]  }
  0x1d   :  { %83 = vst [vmem:[#allocation0 + $0x160] sm:$0x3] %v433_v33  ;;  %v421_v59 = vld [vmem:[%s783_s0 + $0x70] sm:$0x3]  ;;  %v454_v61 = vld [vmem:[%s783_s0 + $0x2e] sm:$0x3] }
  0x1e   :  { %87 = vst [vmem:[#allocation0 + $0x158] sm:$0x3] %v434_v34  ;;  %v455_v62 = vld [vmem:[%s783_s0 + $0x2c] sm:$0x3]  ;;  %v456_v1 = vld [vmem:[%s783_s0 + $0x2a] sm:$0x3] }
  0x1f   :  { %91 = vst [vmem:[#allocation0 + $0x150] sm:$0x3] %v435_v35  ;;  %v457_v2 = vld [vmem:[%s783_s0 + $0x28] sm:$0x3]  ;;  %v458_v3 = vld [vmem:[%s783_s0 + $0x26] sm:$0x3] }
  0x20   :  { %v338_v41 = vld [vmem:[#allocation0 + $0x101] ss:$8 sm:$0xf]   ;;  %95 = vst [vmem:[#allocation0 + $0x148] sm:$0x3] %v436_v36 }
  0x21   :  { %v342_v42 = vsel %vm260_vm0, %v340_v38, %v338_v41  ;;  %99 = vst [vmem:[#allocation0 + $0x140] sm:$0x3] %v437_v37  ;;  %v459_v4 = vld [vmem:[%s783_s0 + $0x24] sm:$0x3]  ;;  %v460_v5 = vld [vmem:[%s783_s0 + $0x22] sm:$0x3] }
  0x22   :  { %343 = vrot.lane.b32.xlu0 %v342_v42, %s492_s15  ;;  %135 = vst [vmem:[#allocation0 + $0xf8] sm:$0x3] %v446_v39  ;;  %v461_v6 = vld [vmem:[%s783_s0 + $0x20] sm:$0x3]  ;;  %v422_v8 = vld [vmem:[%s783_s0 + $0x6e] sm:$0x3] }
  0x23   :  { %139 = vst [vmem:[#allocation0 + $0xf0] sm:$0x3] %v447_v40  ;;  %v423_v9 = vld [vmem:[%s783_s0 + $0x6c] sm:$0x3]  ;;  %v424_v12 = vld [vmem:[%s783_s0 + $0x6a] sm:$0x3] }
  0x24   :  { %143 = vst [vmem:[#allocation0 + $0xe8] sm:$0x3] %v448_v43  ;;  %v362_v49 = vld [vmem:[#allocation0 + $0x141] ss:$8 sm:$0xf0]  }
  0x25   :  { %147 = vst [vmem:[#allocation0 + $0xe0] sm:$0x3] %v449_v44  ;;  %v425_v13 = vld [vmem:[%s783_s0 + $0x68] sm:$0x3]  ;;  %v426_v14 = vld [vmem:[%s783_s0 + $0x66] sm:$0x3] }
  0x26   :  { %151 = vst [vmem:[#allocation0 + $0xd8] sm:$0x3] %v450_v45  ;;  %v427_v15 = vld [vmem:[%s783_s0 + $0x64] sm:$0x3]  ;;  %v428_v16 = vld [vmem:[%s783_s0 + $0x62] sm:$0x3] }
  0x27   :  { %155 = vst [vmem:[#allocation0 + $0xd0] sm:$0x3] %v451_v46  ;;  %v429_v17 = vld [vmem:[%s783_s0 + $0x60] sm:$0x3] }
  0x28   :  { %v360_v52 = vld [vmem:[#allocation0 + $0x141] ss:$8 sm:$0xf]   ;;  %159 = vst [vmem:[#allocation0 + $0xc8] sm:$0x3] %v452_v47 }
  0x29   :  { %v364_v53 = vsel %vm260_vm0, %v362_v49, %v360_v52  ;;  %163 = vst [vmem:[#allocation0 + $0xc0] sm:$0x3] %v453_v48  ;;  %v258_v24 = vld [vmem:[#allocation0] ss:$8 sm:$0xf]  }
  0x2a   :  { %365 = vrot.lane.b32.xlu1 %v364_v53, %s492_s15  ;;  %7 = vst [vmem:[#allocation0 + $0x1f8] sm:$0x3] %v414_v50  ;;  %v259_v25 = vld [vmem:[#allocation0] ss:$8 sm:$0xf0]  }
  0x2b   :  { %11 = vst [vmem:[#allocation0 + $0x1f0] sm:$0x3] %v415_v51  ;;  %v261_v26 = vsel %vm260_vm0, %v259_v25, %v258_v24  ;;  %v265_v27 = vld [vmem:[#allocation0 + $0x40] ss:$8 sm:$0xf]  }
  0x2c   :  { %15 = vst [vmem:[#allocation0 + $0x1e8] sm:$0x3] %v416_v54  ;;  %v395_v60 = vld [vmem:[#allocation0 + $0xc1] ss:$8 sm:$0xf0]  }
  0x2d   :  { %19 = vst [vmem:[#allocation0 + $0x1e0] sm:$0x3] %v417_v55  ;;  %v267_v28 = vld [vmem:[#allocation0 + $0x40] ss:$8 sm:$0xf0]  }
  0x2e   :  { %23 = vst [vmem:[#allocation0 + $0x1d8] sm:$0x3] %v418_v56  ;;  %v269_v29 = vsel %vm260_vm0, %v267_v28, %v265_v27  ;;  %v292_v33 = vld [vmem:[#allocation0 + $0x100] ss:$8 sm:$0xf]  }
  0x2f   :  { %27 = vst [vmem:[#allocation0 + $0x1d0] sm:$0x3] %v419_v57  ;;  %v294_v34 = vld [vmem:[#allocation0 + $0x100] ss:$8 sm:$0xf0]  }
  0x30   :  { %v393_v63 = vld [vmem:[#allocation0 + $0xc1] ss:$8 sm:$0xf]   ;;  %31 = vst [vmem:[#allocation0 + $0x1c8] sm:$0x3] %v420_v58  ;;  %v296_v35 = vsel %vm260_vm0, %v294_v34, %v292_v33 }
  0x31   :  { %v397_v0 = vsel %vm260_vm0, %v395_v60, %v393_v63  ;;  %35 = vst [vmem:[#allocation0 + $0x1c0] sm:$0x3] %v421_v59  ;;  %v301_v36 = vld [vmem:[#allocation0 + $0x140] ss:$8 sm:$0xf]  }
  0x32   :  { %398 = vrot.lane.b32.xlu0 %v397_v0, %s492_s15  ;;  %167 = vst [vmem:[#allocation0 + $0xb8] sm:$0x3] %v454_v61  ;;  %v303_v37 = vld [vmem:[#allocation0 + $0x140] ss:$8 sm:$0xf0]  }
  0x33   :  { %171 = vst [vmem:[#allocation0 + $0xb0] sm:$0x3] %v455_v62  ;;  %v305_v38 = vsel %vm260_vm0, %v303_v37, %v301_v36  ;;  %v283_v39 = vld [vmem:[#allocation0 + $0xc0] ss:$8 sm:$0xf]  }
  0x34   :  { %175 = vst [vmem:[#allocation0 + $0xa8] sm:$0x3] %v456_v1  ;;  %v406_v7 = vld [vmem:[#allocation0 + $0x1c1] ss:$8 sm:$0xf0]  }
  0x35   :  { %179 = vst [vmem:[#allocation0 + $0xa0] sm:$0x3] %v457_v2  ;;  %v285_v40 = vld [vmem:[#allocation0 + $0xc0] ss:$8 sm:$0xf0]  }
  0x36   :  { %183 = vst [vmem:[#allocation0 + $0x98] sm:$0x3] %v458_v3  ;;  %v287_v41 = vsel %vm260_vm0, %v285_v40, %v283_v39  ;;  %v321_v47 = vld [vmem:[#allocation0 + $0x1c0] ss:$8 sm:$0xf0]  }
  0x37   :  { %187 = vst [vmem:[#allocation0 + $0x90] sm:$0x3] %v459_v4 }
  0x38   :  { %v404_v10 = vld [vmem:[#allocation0 + $0x1c1] ss:$8 sm:$0xf]   ;;  %191 = vst [vmem:[#allocation0 + $0x88] sm:$0x3] %v460_v5 }
  0x39   :  { %v408_v11 = vsel %vm260_vm0, %v406_v7, %v404_v10  ;;  %195 = vst [vmem:[#allocation0 + $0x80] sm:$0x3] %v461_v6  ;;  %v319_v46 = vld [vmem:[#allocation0 + $0x1c0] ss:$8 sm:$0xf]  }
  0x3a   :  { %409 = vrot.lane.b32.xlu1 %v408_v11, %s492_s15  ;;  %39 = vst [vmem:[#allocation0 + $0x1b8] sm:$0x3] %v422_v8  ;;  %v323_v48 = vsel %vm260_vm0, %v321_v47, %v319_v46 }
  0x3b   :  { %43 = vst [vmem:[#allocation0 + $0x1b0] sm:$0x3] %v423_v9 }
  0x3c   :  { %47 = vst [vmem:[#allocation0 + $0x1a8] sm:$0x3] %v424_v12  ;;  %v373_v18 = vld [vmem:[#allocation0 + $0x81] ss:$8 sm:$0xf0]  }
  0x3d   :  { %51 = vst [vmem:[#allocation0 + $0x1a0] sm:$0x3] %v425_v13  ;;  %v276_v31 = vld [vmem:[#allocation0 + $0x80] ss:$8 sm:$0xf0]  }
  0x3e   :  { %55 = vst [vmem:[#allocation0 + $0x198] sm:$0x3] %v426_v14 }
  0x3f   :  { %59 = vst [vmem:[#allocation0 + $0x190] sm:$0x3] %v427_v15 }
  0x40   :  { %v371_v19 = vld [vmem:[#allocation0 + $0x81] ss:$8 sm:$0xf]   ;;  %63 = vst [vmem:[#allocation0 + $0x188] sm:$0x3] %v428_v16 }
  0x41   :  { %v375_v20 = vsel %vm260_vm0, %v373_v18, %v371_v19  ;;  %67 = vst [vmem:[#allocation0 + $0x180] sm:$0x3] %v429_v17  ;;  %v274_v30 = vld [vmem:[#allocation0 + $0x80] ss:$8 sm:$0xf]  }
  0x42   :  { %376 = vrot.lane.b32.xlu2 %v375_v20, %s492_s15  ;;  %263 = vst.msk [vmem:[%s784_s1] sm:$0xff] %vm262_vm1, %v261_v26   ;;  %v278_v32 = vsel %vm260_vm0, %v276_v31, %v274_v30 }
  0x43   :  { %477 = vst.msk [vmem:[%s784_s1 + $0x8] sm:$0xff] %vm262_vm1, %v269_v29  }
  0x44   :  { %v384_v21 = vld [vmem:[#allocation0 + $0x181] ss:$8 sm:$0xf0]   ;;  %478 = vst.msk [vmem:[%s784_s1 + $0x10] sm:$0xff] %vm262_vm1, %v278_v32  }
  0x45   :  { %480 = vst.msk [vmem:[%s784_s1 + $0x20] sm:$0xff] %vm262_vm1, %v296_v35   ;;  %v312_v44 = vld [vmem:[#allocation0 + $0x180] ss:$8 sm:$0xf0]  }
  0x46   :  { %481 = vst.msk [vmem:[%s784_s1 + $0x28] sm:$0xff] %vm262_vm1, %v305_v38  }
  0x47   :  { %479 = vst.msk [vmem:[%s784_s1 + $0x18] sm:$0xff] %vm262_vm1, %v287_v41  }
  0x48   :  { %v382_v22 = vld [vmem:[#allocation0 + $0x181] ss:$8 sm:$0xf]   ;;  %v310_v43 = vld [vmem:[#allocation0 + $0x180] ss:$8 sm:$0xf]  }
  0x49   :  { %v386_v23 = vsel %vm260_vm0, %v384_v21, %v382_v22  ;;  %v314_v45 = vsel %vm260_vm0, %v312_v44, %v310_v43  ;;  %483 = vst.msk [vmem:[%s784_s1 + $0x38] sm:$0xff] %vm262_vm1, %v323_v48  }
  0x4a   :  { %387 = vrot.lane.b32.xlu2 %v386_v23, %s492_s15  ;;  %482 = vst.msk [vmem:[%s784_s1 + $0x30] sm:$0xff] %vm262_vm1, %v314_v45  }
  0x84   :  { %v334_v42 = vpop.permute.xlu0 %333  }
  0x85   :  { %336 = vst.msk [vmem:[%s784_s1] sm:$0xff] %vm335_vm2, %v334_v42  }
  0x8c   :  { %v355_v49 = vpop.permute.xlu1 %354  }
  0x8d   :  { %485 = vst.msk [vmem:[%s784_s1 + $0x8] sm:$0xff] %vm335_vm2, %v355_v49  }
  0x94   :  { %v344_v50 = vpop.permute.xlu0 %343  }
  0x95   :  { %484 = vst.msk [vmem:[%s784_s1 + $0x20] sm:$0xff] %vm335_vm2, %v344_v50  }
  0x9c   :  { %v377_v51 = vpop.permute.xlu2 %376   ;;  %v366_v52 = vpop.permute.xlu1 %365  }
  0x9d   :  { %487 = vst.msk [vmem:[%s784_s1 + $0x10] sm:$0xff] %vm335_vm2, %v377_v51  }
  0x9e   :  { %486 = vst.msk [vmem:[%s784_s1 + $0x28] sm:$0xff] %vm335_vm2, %v366_v52  }
  0xa4   :  { %v399_v53 = vpop.permute.xlu0 %398   ;;  %v388_v54 = vpop.permute.xlu2 %387  }
  0xa5   :  { %489 = vst.msk [vmem:[%s784_s1 + $0x18] sm:$0xff] %vm335_vm2, %v399_v53  }
  0xa6   :  { %488 = vst.msk [vmem:[%s784_s1 + $0x30] sm:$0xff] %vm335_vm2, %v388_v54  }
  0xac   :  { %v410_v55 = vpop.permute.xlu1 %409  }
  0xad   :  { %490 = vst.msk [vmem:[%s784_s1 + $0x38] sm:$0xff] %vm335_vm2, %v410_v55  }

// kernel: _lambda_.6
= control target key start
LH: loop header
LB: loop body
LE: loop exit
PB: predicated region body
PF: predicated region fallthrough
CT: control target
= control target key end

     0   :  { %vm61_vm0 = vcmask 523264   ;;  %s1758_s1 = inlined_call_operand.vmem [shape: f32[64,192], index: 1, kind: input, shape index: {}]   ;;  %s1759_s0 = inlined_call_operand.vmem [shape: f32[128,64], index: 0, kind: input, shape index: {}]   ;;  %s1760_s3 = inlined_call_operand.vmem [shape: f32[192,192], index: 3, kind: input, shape index: {}]   ;;  %s1761_s2 = inlined_call_operand.vmem [shape: f32[1,192], index: 2, kind: input, shape index: {}]   ;;  %s1762_s5 = inlined_call_operand.vmem [shape: f32[128,192], index: 5, kind: input, shape index: {}]   ;;  %s1763_s4 = inlined_call_operand.vmem [shape: f32[128,192], index: 4, kind: input, shape index: {}]   ;;  %s1764_s6 = inlined_call_operand.vmem [shape: f32[128,192], index: 6, kind: output, shape index: {}]  }
   0x1   :  { %v53_v0 = vld [vmem:[%s1758_s1 + $0x70] sm:$0xff]  ;;  %v54_v1 = vld [vmem:[%s1758_s1 + $0x78] sm:$0xff]  ;;  %v51_v2 = vld [vmem:[%s1758_s1 + $0x60] sm:$0xff] }
   0x2   :  { %118 = vmatpush.msra.mxu0 %v53_v0  ;;  %183 = vmatpush.msra.mxu1 %v54_v1  ;;  %v52_v3 = vld [vmem:[%s1758_s1 + $0x68] sm:$0xff]  ;;  %v49_v4 = vld [vmem:[%s1758_s1 + $0x50] sm:$0xff]  ;;  %v50_v5 = vld [vmem:[%s1758_s1 + $0x58] sm:$0xff] }
   0x3   :  { %864 = vmatpush.msra.mxu2 %v54_v1  ;;  %856 = vmatpush.msra.mxu3 %v53_v0  ;;  %v47_v6 = vld [vmem:[%s1758_s1 + $0x40] sm:$0xff]  ;;  %v48_v7 = vld [vmem:[%s1758_s1 + $0x48] sm:$0xff]  ;;  %v45_v8 = vld [vmem:[%s1758_s1 + $0x30] sm:$0xff] }
   0x4   :  { %119 = vmatpush.msra.mxu0 %v51_v2  ;;  %184 = vmatpush.msra.mxu1 %v52_v3  ;;  %v46_v9 = vld [vmem:[%s1758_s1 + $0x38] sm:$0xff]  ;;  %v43_v10 = vld [vmem:[%s1758_s1 + $0x20] sm:$0xff]  ;;  %v44_v11 = vld [vmem:[%s1758_s1 + $0x28] sm:$0xff] }
   0x5   :  { %865 = vmatpush.msra.mxu2 %v52_v3  ;;  %857 = vmatpush.msra.mxu3 %v51_v2  ;;  %v41_v12 = vld [vmem:[%s1758_s1 + $0x10] sm:$0xff]  ;;  %v42_v13 = vld [vmem:[%s1758_s1 + $0x18] sm:$0xff]  ;;  %v39_v14 = vld [vmem:[%s1758_s1] sm:$0xff] }
   0x6   :  { %120 = vmatpush.msra.mxu0 %v49_v4  ;;  %185 = vmatpush.msra.mxu1 %v50_v5  ;;  %v40_v15 = vld [vmem:[%s1758_s1 + $0x8] sm:$0xff]  ;;  %v23_v16 = vld [vmem:[%s1759_s0] sm:$0xff]  ;;  %v25_v18 = vld [vmem:[%s1759_s0 + $0x10] sm:$0xff] }
   0x7   :  { %866 = vmatpush.msra.mxu2 %v50_v5  ;;  %858 = vmatpush.msra.mxu3 %v49_v4  ;;  %v24_v17 = vld [vmem:[%s1759_s0 + $0x8] sm:$0xff]  ;;  %v26_v19 = vld [vmem:[%s1759_s0 + $0x18] sm:$0xff]  ;;  %v994_v20 = vld [vmem:[%s1759_s0 + $0x40] sm:$0xff] }
   0x8   :  { %121 = vmatpush.msra.mxu0 %v47_v6  ;;  %186 = vmatpush.msra.mxu1 %v48_v7  ;;  %v27_v21 = vld [vmem:[%s1759_s0 + $0x20] sm:$0xff]  ;;  %v32_v22 = vld [vmem:[%s1759_s0 + $0x48] sm:$0xff]  ;;  %v270_v23 = vld [vmem:[%s1760_s3 + $0xf0] sm:$0xff] }
   0x9   :  { %867 = vmatpush.msra.mxu2 %v48_v7  ;;  %859 = vmatpush.msra.mxu3 %v47_v6  ;;  %v286_v24 = vld [vmem:[%s1760_s3 + $0x170] sm:$0xff]  ;;  %v268_v25 = vld [vmem:[%s1760_s3 + $0xe0] sm:$0xff]  ;;  %v1020_v26 = vld [vmem:[%s1760_s3 + $0xf8] sm:$0xff] }
   0xa   :  { %122 = vmatpush.msra.mxu0 %v45_v8  ;;  %187 = vmatpush.msra.mxu1 %v46_v9  ;;  %v287_v27 = vld [vmem:[%s1760_s3 + $0x178] sm:$0xff]  ;;  %v284_v28 = vld [vmem:[%s1760_s3 + $0x160] sm:$0xff]  ;;  %v266_v29 = vld [vmem:[%s1760_s3 + $0xd0] sm:$0xff] }
   0xb   :  { %868 = vmatpush.msra.mxu2 %v46_v9  ;;  %860 = vmatpush.msra.mxu3 %v45_v8  ;;  %v1035_v30 = vld [vmem:[%s1760_s3 + $0xe8] sm:$0xff]  ;;  %v282_v31 = vld [vmem:[%s1760_s3 + $0x150] sm:$0xff]  ;;  %v1046_v33 = vld [vmem:[%s1760_s3 + $0xd8] sm:$0xff] }
   0xc   :  { %123 = vmatpush.msra.mxu0 %v43_v10  ;;  %188 = vmatpush.msra.mxu1 %v44_v11  ;;  %v285_v32 = vld [vmem:[%s1760_s3 + $0x168] sm:$0xff]  ;;  %v33_v35 = vld [vmem:[%s1759_s0 + $0x50] sm:$0xff]  ;;  %v283_v36 = vld [vmem:[%s1760_s3 + $0x158] sm:$0xff] }
   0xd   :  { %869 = vmatpush.msra.mxu2 %v44_v11  ;;  %861 = vmatpush.msra.mxu3 %v43_v10  ;;  %v28_v34 = vld [vmem:[%s1759_s0 + $0x28] sm:$0xff]  ;;  %v264_v37 = vld [vmem:[%s1760_s3 + $0xc0] sm:$0xff]  ;;  %v262_v40 = vld [vmem:[%s1760_s3 + $0xb0] sm:$0xff] }
   0xe   :  { %124 = vmatpush.msra.mxu0 %v41_v12  ;;  %189 = vmatpush.msra.mxu1 %v42_v13  ;;  %v1065_v38 = vld [vmem:[%s1760_s3 + $0xc8] sm:$0xff]  ;;  %v280_v39 = vld [vmem:[%s1760_s3 + $0x140] sm:$0xff]  ;;  %v1080_v41 = vld [vmem:[%s1760_s3 + $0xb8] sm:$0xff] }
   0xf   :  { %870 = vmatpush.msra.mxu2 %v42_v13  ;;  %862 = vmatpush.msra.mxu3 %v41_v12  ;;  %v281_v42 = vld [vmem:[%s1760_s3 + $0x148] sm:$0xff]  ;;  %v278_v43 = vld [vmem:[%s1760_s3 + $0x130] sm:$0xff]  ;;  %v260_v44 = vld [vmem:[%s1760_s3 + $0xa0] sm:$0xff] }
  0x10   :  { %125 = vmatpush.msra.mxu0 %v39_v14  ;;  %190 = vmatpush.msra.mxu1 %v40_v15  ;;  %v1095_v45 = vld [vmem:[%s1760_s3 + $0xa8] sm:$0xff]  ;;  %v279_v46 = vld [vmem:[%s1760_s3 + $0x138] sm:$0xff]  ;;  %v276_v47 = vld [vmem:[%s1760_s3 + $0x120] sm:$0xff] }
  0x11   :  { %792 = vmatmul.msk.f32.vlgmr.msra.gmra.mxu0 %vm61_vm0, %v23_v16  ;;  %808 = vmatmul.msk.f32.vlgmr.msra.gmra.mxu1 %vm61_vm0, %v23_v16  ;;  %v29_v48 = vld [vmem:[%s1759_s0 + $0x30] sm:$0xff]  ;;  %v34_v49 = vld [vmem:[%s1759_s0 + $0x58] sm:$0xff]  ;;  %v256_v52 = vld [vmem:[%s1760_s3 + $0x80] sm:$0xff] }
  0x12   :  { %871 = vmatpush.msra.mxu2 %v40_v15  ;;  %863 = vmatpush.msra.mxu3 %v39_v14  ;;  %v258_v50 = vld [vmem:[%s1760_s3 + $0x90] sm:$0xff]  ;;  %v259_v51 = vld [vmem:[%s1760_s3 + $0x98] sm:$0xff]  ;;  %v257_v53 = vld [vmem:[%s1760_s3 + $0x88] sm:$0xff] }
  0x13   :  { %816 = vmatmul.msk.f32.vlgmr.msra.gmra.mxu2 %vm61_vm0, %v994_v20  ;;  %801 = vmatmul.msk.f32.vlgmr.msra.gmra.mxu3 %vm61_vm0, %v32_v22  ;;  %v274_v54 = vld [vmem:[%s1760_s3 + $0x110] sm:$0xff]  ;;  %v277_v55 = vld [vmem:[%s1760_s3 + $0x128] sm:$0xff]  ;;  %v255_v57 = vld [vmem:[%s1760_s3 + $0x78] sm:$0xff] }
  0x14   :  { %336 = vmatpush.msrb.mxu2 %v270_v23  ;;  %409 = vmatpush.msrb.mxu3 %v286_v24  ;;  %v254_v56 = vld [vmem:[%s1760_s3 + $0x70] sm:$0xff]  ;;  %v272_v58 = vld [vmem:[%s1760_s3 + $0x100] sm:$0xff]  ;;  %v30_v59 = vld [vmem:[%s1759_s0 + $0x38] sm:$0xff] }
  0x15   :  { %466 = vmatpush.msrb.mxu0 %v1020_v26  ;;  %539 = vmatpush.msrb.mxu1 %v287_v27  ;;  %v35_v60 = vld [vmem:[%s1759_s0 + $0x60] sm:$0xff]  ;;  %v253_v62 = vld [vmem:[%s1760_s3 + $0x68] sm:$0xff]  ;;  %v250_v63 = vld [vmem:[%s1760_s3 + $0x50] sm:$0xff] }
  0x16   :  { %337 = vmatpush.msrb.mxu2 %v268_v25  ;;  %410 = vmatpush.msrb.mxu3 %v284_v28  ;;  %v252_v61 = vld [vmem:[%s1760_s3 + $0x60] sm:$0xff]  ;;  %v251_v0 = vld [vmem:[%s1760_s3 + $0x58] sm:$0xff]  ;;  %v249_v2 = vld [vmem:[%s1760_s3 + $0x48] sm:$0xff] }
  0x17   :  { %467 = vmatpush.msrb.mxu0 %v1035_v30  ;;  %540 = vmatpush.msrb.mxu1 %v285_v32  ;;  %v248_v1 = vld [vmem:[%s1760_s3 + $0x40] sm:$0xff]  ;;  %v246_v3 = vld [vmem:[%s1760_s3 + $0x30] sm:$0xff]  ;;  %v36_v4 = vld [vmem:[%s1759_s0 + $0x68] sm:$0xff] }
  0x18   :  { %338 = vmatpush.msrb.mxu2 %v266_v29  ;;  %411 = vmatpush.msrb.mxu3 %v282_v31  ;;  %v247_v5 = vld [vmem:[%s1760_s3 + $0x38] sm:$0xff]  ;;  %v244_v6 = vld [vmem:[%s1760_s3 + $0x20] sm:$0xff]  ;;  %v245_v7 = vld [vmem:[%s1760_s3 + $0x28] sm:$0xff] }
  0x19   :  { %793 = vmatmul.msk.f32.gmra.mxu0 %vm61_vm0, %v24_v17  ;;  %809 = vmatmul.msk.f32.gmra.mxu1 %vm61_vm0, %v24_v17  ;;  %v37_v8 = vld [vmem:[%s1759_s0 + $0x70] sm:$0xff]  ;;  %v38_v9 = vld [vmem:[%s1759_s0 + $0x78] sm:$0xff]  ;;  %v240_v13 = vld [vmem:[%s1760_s3] sm:$0xff] }
  0x1a   :  { %468 = vmatpush.msrb.mxu0 %v1046_v33  ;;  %541 = vmatpush.msrb.mxu1 %v283_v36  ;;  %v242_v10 = vld [vmem:[%s1760_s3 + $0x10] sm:$0xff]  ;;  %v243_v11 = vld [vmem:[%s1760_s3 + $0x18] sm:$0xff]  ;;  %v241_v14 = vld [vmem:[%s1760_s3 + $0x8] sm:$0xff] }
  0x1b   :  { %817 = vmatmul.msk.f32.gmra.mxu2 %vm61_vm0, %v32_v22  ;;  %802 = vmatmul.msk.f32.gmra.mxu3 %vm61_vm0, %v33_v35  ;;  %v275_v12 = vld [vmem:[%s1760_s3 + $0x118] sm:$0xff]  ;;  %v273_v15 = vld [vmem:[%s1760_s3 + $0x108] sm:$0xff]  ;;  %v55_v16 = vld [vmem:[%s1761_s2] sm:$0x3] }
  0x1c   :  { %339 = vmatpush.msrb.mxu2 %v264_v37  ;;  %469 = vmatpush.msrb.mxu0 %v1065_v38  ;;  %v1226_v17 = vperm.slane %v55_v16, 0 }
  0x1d   :  { %412 = vmatpush.msrb.mxu3 %v280_v39  ;;  %542 = vmatpush.msrb.mxu1 %v281_v42 }
  0x1e   :  { %340 = vmatpush.msrb.mxu2 %v262_v40  ;;  %470 = vmatpush.msrb.mxu0 %v1080_v41 }
  0x1f   :  { %413 = vmatpush.msrb.mxu3 %v278_v43  ;;  %543 = vmatpush.msrb.mxu1 %v279_v46 }
  0x20   :  { %341 = vmatpush.msrb.mxu2 %v260_v44  ;;  %471 = vmatpush.msrb.mxu0 %v1095_v45 }
  0x21   :  { %794 = vmatmul.msk.f32.gmra.mxu0 %vm61_vm0, %v25_v18  ;;  %810 = vmatmul.msk.f32.gmra.mxu1 %vm61_vm0, %v25_v18  ;;  %v1228_v18 = vperm.slane %v55_v16, 1 }
  0x22   :  { %414 = vmatpush.msrb.mxu3 %v276_v47  ;;  %342 = vmatpush.msrb.mxu2 %v258_v50 }
  0x23   :  { %818 = vmatmul.msk.f32.gmra.mxu2 %vm61_vm0, %v33_v35  ;;  %803 = vmatmul.msk.f32.gmra.mxu3 %vm61_vm0, %v34_v49 }
  0x24   :  { %472 = vmatpush.msrb.mxu0 %v259_v51  ;;  %415 = vmatpush.msrb.mxu3 %v274_v54 }
  0x25   :  { %544 = vmatpush.msrb.mxu1 %v277_v55  ;;  %343 = vmatpush.msrb.mxu2 %v256_v52 }
  0x26   :  { %473 = vmatpush.msrb.mxu0 %v257_v53  ;;  %416 = vmatpush.msrb.mxu3 %v272_v58 }
  0x27   :  { %344 = vmatpush.msrb.mxu2 %v254_v56  ;;  %545 = vmatpush.msrb.mxu1 %v275_v12 }
  0x28   :  { %474 = vmatpush.msrb.mxu0 %v255_v57  ;;  %872 = vmatpush.msra.mxu3 %v1020_v26 }
  0x29   :  { %795 = vmatmul.msk.f32.gmra.mxu0 %vm61_vm0, %v26_v19  ;;  %811 = vmatmul.msk.f32.gmra.mxu1 %vm61_vm0, %v26_v19 }
  0x2a   :  { %345 = vmatpush.msrb.mxu2 %v252_v61  ;;  %475 = vmatpush.msrb.mxu0 %v253_v62 }
  0x2b   :  { %819 = vmatmul.msk.f32.gmra.mxu2 %vm61_vm0, %v34_v49  ;;  %804 = vmatmul.msk.f32.gmra.mxu3 %vm61_vm0, %v35_v60 }
  0x2c   :  { %873 = vmatpush.msra.mxu3 %v1035_v30  ;;  %346 = vmatpush.msrb.mxu2 %v250_v63 }
  0x2d   :  { %476 = vmatpush.msrb.mxu0 %v251_v0  ;;  %546 = vmatpush.msrb.mxu1 %v273_v15 }
  0x2e   :  { %874 = vmatpush.msra.mxu3 %v1046_v33  ;;  %347 = vmatpush.msrb.mxu2 %v248_v1 }
  0x2f   :  { %477 = vmatpush.msrb.mxu0 %v249_v2 }
  0x30   :  { %875 = vmatpush.msra.mxu3 %v1065_v38  ;;  %348 = vmatpush.msrb.mxu2 %v246_v3 }
  0x31   :  { %796 = vmatmul.msk.f32.gmra.mxu0 %vm61_vm0, %v27_v21  ;;  %812 = vmatmul.msk.f32.gmra.mxu1 %vm61_vm0, %v27_v21 }
  0x32   :  { %478 = vmatpush.msrb.mxu0 %v247_v5  ;;  %349 = vmatpush.msrb.mxu2 %v244_v6 }
  0x33   :  { %820 = vmatmul.msk.f32.gmra.mxu2 %vm61_vm0, %v35_v60  ;;  %805 = vmatmul.msk.f32.gmra.mxu3 %vm61_vm0, %v36_v4 }
  0x34   :  { %876 = vmatpush.msra.mxu3 %v1080_v41  ;;  %479 = vmatpush.msrb.mxu0 %v245_v7 }
  0x35   :  { %350 = vmatpush.msrb.mxu2 %v242_v10 }
  0x36   :  { %877 = vmatpush.msra.mxu3 %v1095_v45  ;;  %480 = vmatpush.msrb.mxu0 %v243_v11 }
  0x37   :  { %351 = vmatpush.msrb.mxu2 %v240_v13 }
  0x38   :  { %878 = vmatpush.msra.mxu3 %v259_v51  ;;  %481 = vmatpush.msrb.mxu0 %v241_v14 }
  0x39   :  { %797 = vmatmul.msk.f32.gmra.mxu0 %vm61_vm0, %v28_v34  ;;  %813 = vmatmul.msk.f32.gmra.mxu1 %vm61_vm0, %v28_v34 }
  0x3a   :  { %879 = vmatpush.msra.mxu3 %v257_v53 }
  0x3b   :  { %821 = vmatmul.msk.f32.gmra.mxu2 %vm61_vm0, %v36_v4  ;;  %806 = vmatmul.msk.f32.gmra.mxu3 %vm61_vm0, %v37_v8 }
  0x3c   :  { %880 = vmatpush.msra.mxu3 %v255_v57 }
  0x3e   :  { %881 = vmatpush.msra.mxu3 %v253_v62 }
  0x40   :  { %882 = vmatpush.msra.mxu3 %v251_v0 }
  0x41   :  { %798 = vmatmul.msk.f32.gmra.mxu0 %vm61_vm0, %v29_v48  ;;  %814 = vmatmul.msk.f32.gmra.mxu1 %vm61_vm0, %v29_v48 }
  0x42   :  { %883 = vmatpush.msra.mxu3 %v249_v2 }
  0x43   :  { %822 = vmatmul.msk.f32.gmra.mxu2 %vm61_vm0, %v37_v8  ;;  %807 = vmatmul.msk.f32.gmra.mxu3 %vm61_vm0, %v38_v9 }
  0x44   :  { %884 = vmatpush.msra.mxu3 %v247_v5 }
  0x46   :  { %885 = vmatpush.msra.mxu3 %v245_v7 }
  0x48   :  { %886 = vmatpush.msra.mxu3 %v243_v11 }
  0x49   :  { %799 = vmatmul.msk.f32.gmra.mxu0 %vm61_vm0, %v30_v59  ;;  %815 = vmatmul.msk.f32.gmra.mxu1 %vm61_vm0, %v30_v59 }
  0x4a   :  { %887 = vmatpush.msra.mxu3 %v241_v14 }
  0x4b   :  { %823 = vmatmul.msk.f32.gmra.mxu2 %vm61_vm0, %v38_v9 }
  0x51   :  { %800 = vmatmul.msk.f32.gmra.mxu0 %vm61_vm0, %v994_v20 }
  0x8e   :  { %v127_v19 = vpop.f32.mrf.mxu0  ;;  %v192_v20 = vpop.f32.mrf.mxu1 }
  0x8f   :  { %v1231_v21 = vadd.f32 %v127_v19, %v1226_v17  ;;  %v1234_v22 = vadd.f32 %v192_v20, %v1228_v18 }
  0x91   :  { %352 = vmatmul.f32.vlgmr.msrb.gmra.mxu2 %v1231_v21  ;;  %824 = vmatmul.msk.f32.vlgmr.msrb.gmra.mxu3 %vm61_vm0, %v1234_v22 }
  0x92   :  { %482 = vmatmul.f32.vlgmr.msrb.gmra.mxu0 %v1231_v21  ;;  %840 = vmatmul.msk.f32.vlgmr.msrb.gmra.mxu1 %vm61_vm0, %v1234_v22 }
  0x96   :  { %v130_v23 = vpop.f32.mrf.mxu0  ;;  %v195_v24 = vpop.f32.mrf.mxu1 }
  0x97   :  { %v1243_v25 = vadd.f32 %v130_v23, %v1226_v17  ;;  %v1246_v26 = vadd.f32 %v195_v24, %v1228_v18  ;;  %v216_v43 = vpop.f32.mrf.mxu2  ;;  %v154_v48 = vpop.f32.mrf.mxu3  ;;  %v597_v23 = vld [vmem:[%s1762_s5 + $0x8] sm:$0xff] }
  0x98   :  { %v1327_v54 = vadd.f32 %v216_v43, %v1228_v18  ;;  %v1339_v59 = vadd.f32 %v154_v48, %v1226_v17 }
  0x99   :  { %355 = vmatmul.f32.gmra.mxu2 %v1243_v25  ;;  %825 = vmatmul.msk.f32.gmra.mxu3 %vm61_vm0, %v1246_v26 }
  0x9a   :  { %485 = vmatmul.f32.gmra.mxu0 %v1243_v25  ;;  %841 = vmatmul.msk.f32.gmra.mxu1 %vm61_vm0, %v1246_v26 }
  0x9e   :  { %v133_v27 = vpop.f32.mrf.mxu0  ;;  %v198_v28 = vpop.f32.mrf.mxu1 }
  0x9f   :  { %v1255_v29 = vadd.f32 %v133_v27, %v1226_v17  ;;  %v1258_v30 = vadd.f32 %v198_v28, %v1228_v18  ;;  %v219_v49 = vpop.f32.mrf.mxu2  ;;  %v157_v57 = vpop.f32.mrf.mxu3  ;;  %v629_v28 = vmul.f32 %v597_v23, %v1234_v22 }
  0xa0   :  { %v1342_v60 = vadd.f32 %v219_v49, %v1228_v18  ;;  %v1351_v63 = vadd.f32 %v157_v57, %v1226_v17 }
  0xa1   :  { %358 = vmatmul.f32.gmra.mxu2 %v1255_v29  ;;  %826 = vmatmul.msk.f32.gmra.mxu3 %vm61_vm0, %v1258_v30 }
  0xa2   :  { %488 = vmatmul.f32.gmra.mxu0 %v1255_v29  ;;  %842 = vmatmul.msk.f32.gmra.mxu1 %vm61_vm0, %v1258_v30 }
  0xa6   :  { %v136_v31 = vpop.f32.mrf.mxu0  ;;  %v201_v32 = vpop.f32.mrf.mxu1 }
  0xa7   :  { %v1267_v33 = vadd.f32 %v136_v31, %v1226_v17  ;;  %v1270_v34 = vadd.f32 %v201_v32, %v1228_v18  ;;  %v222_v58 = vpop.f32.mrf.mxu2  ;;  %v160_v61 = vpop.f32.mrf.mxu3  ;;  %v596_v32 = vld [vmem:[%s1762_s5] sm:$0xff] }
  0xa8   :  { %v1354_v0 = vadd.f32 %v222_v58, %v1228_v18  ;;  %v1363_v3 = vadd.f32 %v160_v61, %v1226_v17  ;;  %v628_v22 = vmul.f32 %v596_v32, %v1231_v21  ;;  %v598_v21 = vld [vmem:[%s1762_s5 + $0x10] sm:$0xff]  ;;  %v664_v32 = vld [vmem:[%s1763_s4 + $0x20] sm:$0xff] }
  0xa9   :  { %361 = vmatmul.f32.gmra.mxu2 %v1267_v33  ;;  %827 = vmatmul.msk.f32.gmra.mxu3 %vm61_vm0, %v1270_v34 }
  0xaa   :  { %491 = vmatmul.f32.gmra.mxu0 %v1267_v33  ;;  %843 = vmatmul.msk.f32.gmra.mxu1 %vm61_vm0, %v1270_v34 }
  0xae   :  { %v139_v35 = vpop.f32.mrf.mxu0  ;;  %v204_v36 = vpop.f32.mrf.mxu1 }
  0xaf   :  { %v1279_v37 = vadd.f32 %v139_v35, %v1226_v17  ;;  %v1282_v38 = vadd.f32 %v204_v36, %v1228_v18  ;;  %v225_v62 = vpop.f32.mrf.mxu2  ;;  %v163_v1 = vpop.f32.mrf.mxu3 }
  0xb0   :  { %v1366_v4 = vadd.f32 %v225_v62, %v1228_v18  ;;  %v1375_v5 = vadd.f32 %v163_v1, %v1226_v17 }
  0xb1   :  { %364 = vmatmul.f32.gmra.mxu2 %v1279_v37  ;;  %828 = vmatmul.msk.f32.gmra.mxu3 %vm61_vm0, %v1282_v38 }
  0xb2   :  { %494 = vmatmul.f32.gmra.mxu0 %v1279_v37  ;;  %844 = vmatmul.msk.f32.gmra.mxu1 %vm61_vm0, %v1282_v38 }
  0xb6   :  { %v142_v39 = vpop.f32.mrf.mxu0  ;;  %v207_v40 = vpop.f32.mrf.mxu1 }
  0xb7   :  { %v1291_v41 = vadd.f32 %v142_v39, %v1226_v17  ;;  %v1294_v42 = vadd.f32 %v207_v40, %v1228_v18  ;;  %v228_v2 = vpop.f32.mrf.mxu2  ;;  %v166_v7 = vpop.f32.mrf.mxu3  ;;  %v660_v40 = vld [vmem:[%s1763_s4] sm:$0xff] }
  0xb8   :  { %v1378_v6 = vadd.f32 %v228_v2, %v1228_v18  ;;  %v1387_v9 = vadd.f32 %v166_v7, %v1226_v17  ;;  %v662_v2 = vld [vmem:[%s1763_s4 + $0x10] sm:$0xff] }
  0xb9   :  { %367 = vmatmul.f32.gmra.mxu2 %v1291_v41  ;;  %829 = vmatmul.msk.f32.gmra.mxu3 %vm61_vm0, %v1294_v42 }
  0xba   :  { %497 = vmatmul.f32.gmra.mxu0 %v1291_v41  ;;  %845 = vmatmul.msk.f32.gmra.mxu1 %vm61_vm0, %v1294_v42 }
  0xbe   :  { %v145_v44 = vpop.f32.mrf.mxu0  ;;  %v210_v45 = vpop.f32.mrf.mxu1 }
  0xbf   :  { %v1303_v46 = vadd.f32 %v145_v44, %v1226_v17  ;;  %v1306_v47 = vadd.f32 %v210_v45, %v1228_v18  ;;  %v231_v8 = vpop.f32.mrf.mxu2  ;;  %v169_v11 = vpop.f32.mrf.mxu3  ;;  %v599_v44 = vld [vmem:[%s1762_s5 + $0x18] sm:$0xff] }
  0xc0   :  { %v1390_v10 = vadd.f32 %v231_v8, %v1228_v18  ;;  %v1399_v13 = vadd.f32 %v169_v11, %v1226_v17  ;;  %v631_v57 = vmul.f32 %v599_v44, %v1246_v26  ;;  %v630_v26 = vmul.f32 %v598_v21, %v1243_v25  ;;  %v601_v8 = vld [vmem:[%s1762_s5 + $0x28] sm:$0xff]  ;;  %v600_v25 = vld [vmem:[%s1762_s5 + $0x20] sm:$0xff] }
  0xc1   :  { %370 = vmatmul.f32.gmra.mxu2 %v1303_v46  ;;  %830 = vmatmul.msk.f32.gmra.mxu3 %vm61_vm0, %v1306_v47  ;;  %v605_v21 = vld [vmem:[%s1762_s5 + $0x48] sm:$0xff] }
  0xc2   :  { %500 = vmatmul.f32.gmra.mxu0 %v1303_v46  ;;  %846 = vmatmul.msk.f32.gmra.mxu1 %vm61_vm0, %v1306_v47 }
  0xc6   :  { %v148_v50 = vpop.f32.mrf.mxu0  ;;  %v213_v51 = vpop.f32.mrf.mxu1 }
  0xc7   :  { %v1315_v52 = vadd.f32 %v148_v50, %v1226_v17  ;;  %v1318_v53 = vadd.f32 %v213_v51, %v1228_v18  ;;  %v234_v12 = vpop.f32.mrf.mxu2  ;;  %v172_v15 = vpop.f32.mrf.mxu3  ;;  %v663_v50 = vld [vmem:[%s1763_s4 + $0x18] sm:$0xff] }
  0xc8   :  { %v1402_v14 = vadd.f32 %v234_v12, %v1228_v18  ;;  %v1411_v19 = vadd.f32 %v172_v15, %v1226_v17 }
  0xc9   :  { %373 = vmatmul.f32.gmra.mxu2 %v1315_v52  ;;  %831 = vmatmul.msk.f32.gmra.mxu3 %vm61_vm0, %v1318_v53 }
  0xca   :  { %503 = vmatmul.f32.gmra.mxu0 %v1315_v52  ;;  %847 = vmatmul.msk.f32.gmra.mxu1 %vm61_vm0, %v1318_v53 }
  0xce   :  { %v151_v55 = vpop.f32.mrf.mxu0 }
  0xcf   :  { %v1330_v56 = vadd.f32 %v151_v55, %v1226_v17  ;;  %v237_v16 = vpop.f32.mrf.mxu2  ;;  %v661_v17 = vld [vmem:[%s1763_s4 + $0x8] sm:$0xff] }
  0xd0   :  { %v1414_v20 = vadd.f32 %v237_v16, %v1228_v18  ;;  %v665_v16 = vld [vmem:[%s1763_s4 + $0x28] sm:$0xff] }
  0xd1   :  { %376 = vmatmul.f32.gmra.mxu2 %v1330_v56  ;;  %832 = vmatmul.msk.f32.gmra.mxu3 %vm61_vm0, %v1327_v54 }
  0xd2   :  { %506 = vmatmul.f32.gmra.mxu0 %v1330_v56  ;;  %848 = vmatmul.msk.f32.gmra.mxu1 %vm61_vm0, %v1327_v54 }
  0xd9   :  { %379 = vmatmul.f32.gmra.mxu2 %v1339_v59  ;;  %833 = vmatmul.msk.f32.gmra.mxu3 %vm61_vm0, %v1342_v60 }
  0xda   :  { %509 = vmatmul.f32.gmra.mxu0 %v1339_v59  ;;  %849 = vmatmul.msk.f32.gmra.mxu1 %vm61_vm0, %v1342_v60 }
  0xe1   :  { %382 = vmatmul.f32.gmra.mxu2 %v1351_v63  ;;  %834 = vmatmul.msk.f32.gmra.mxu3 %vm61_vm0, %v1354_v0 }
  0xe2   :  { %512 = vmatmul.f32.gmra.mxu0 %v1351_v63  ;;  %850 = vmatmul.msk.f32.gmra.mxu1 %vm61_vm0, %v1354_v0 }
  0xe9   :  { %385 = vmatmul.f32.gmra.mxu2 %v1363_v3  ;;  %835 = vmatmul.msk.f32.gmra.mxu3 %vm61_vm0, %v1366_v4 }
  0xea   :  { %515 = vmatmul.f32.gmra.mxu0 %v1363_v3  ;;  %851 = vmatmul.msk.f32.gmra.mxu1 %vm61_vm0, %v1366_v4 }
  0xf1   :  { %388 = vmatmul.f32.gmra.mxu2 %v1375_v5  ;;  %836 = vmatmul.msk.f32.gmra.mxu3 %vm61_vm0, %v1378_v6 }
  0xf2   :  { %518 = vmatmul.f32.gmra.mxu0 %v1375_v5  ;;  %852 = vmatmul.msk.f32.gmra.mxu1 %vm61_vm0, %v1378_v6 }
  0xf9   :  { %391 = vmatmul.f32.gmra.mxu2 %v1387_v9  ;;  %837 = vmatmul.msk.f32.gmra.mxu3 %vm61_vm0, %v1390_v10 }
  0xfa   :  { %521 = vmatmul.f32.gmra.mxu0 %v1387_v9  ;;  %853 = vmatmul.msk.f32.gmra.mxu1 %vm61_vm0, %v1390_v10 }
 0x101   :  { %394 = vmatmul.f32.gmra.mxu2 %v1399_v13  ;;  %838 = vmatmul.msk.f32.gmra.mxu3 %vm61_vm0, %v1402_v14 }
 0x102   :  { %524 = vmatmul.f32.gmra.mxu0 %v1399_v13  ;;  %854 = vmatmul.msk.f32.gmra.mxu1 %vm61_vm0, %v1402_v14 }
 0x109   :  { %397 = vmatmul.f32.gmra.mxu2 %v1411_v19  ;;  %839 = vmatmul.msk.f32.gmra.mxu3 %vm61_vm0, %v1414_v20 }
 0x10a   :  { %855 = vmatmul.msk.f32.gmra.mxu1 %vm61_vm0, %v1414_v20 }
 0x10f   :  { %v483_v24 = vpop.f32.mrf.mxu0  ;;  %v548_v27 = vpop.f32.mrf.mxu1 }
 0x110   :  { %v549_v18 = vadd.f32 %v548_v27, %v483_v24  ;;  %v633_v27 = vmul.f32 %v601_v8, %v1258_v30  ;;  %v632_v30 = vmul.f32 %v600_v25, %v1255_v29  ;;  %v602_v29 = vld [vmem:[%s1762_s5 + $0x30] sm:$0xff]  ;;  %v637_v8 = vmul.f32 %v605_v21, %v1282_v38 }
 0x111   :  { %527 = vmatmul.f32.vlgmr.msra.gmra.mxu3 %v1411_v19 }
 0x112   :  { %v693_v31 = vmul.f32 %v661_v17, %v549_v18 }
 0x114   :  { %v725_v35 = vadd.f32 %v693_v31, %v629_v28  ;;  %v353_v36 = vpop.f32.mrf.mxu2  ;;  %v418_v39 = vpop.f32.mrf.mxu3 }
 0x115   :  { %v419_v43 = vadd.f32 %v418_v39, %v353_v36  ;;  %v603_v36 = vld [vmem:[%s1762_s5 + $0x38] sm:$0xff] }
 0x116   :  { %757 = vst.msk [vmem:[%s1764_s6 + $0x8] sm:$0xff] %vm61_vm0, %v725_v35 }
 0x117   :  { %v692_v45 = vmul.f32 %v660_v40, %v419_v43  ;;  %v486_v48 = vpop.f32.mrf.mxu0  ;;  %v551_v49 = vpop.f32.mrf.mxu1 }
 0x118   :  { %v552_v51 = vadd.f32 %v551_v49, %v486_v48  ;;  %v635_v48 = vmul.f32 %v603_v36, %v1270_v34  ;;  %v634_v34 = vmul.f32 %v602_v29, %v1267_v33  ;;  %v604_v33 = vld [vmem:[%s1762_s5 + $0x40] sm:$0xff]  ;;  %v673_v29 = vld [vmem:[%s1763_s4 + $0x68] sm:$0xff] }
 0x119   :  { %v724_v55 = vadd.f32 %v692_v45, %v628_v22  ;;  %v667_v22 = vld [vmem:[%s1763_s4 + $0x38] sm:$0xff]  ;;  %v636_v38 = vmul.f32 %v604_v33, %v1279_v37  ;;  %v606_v37 = vld [vmem:[%s1762_s5 + $0x50] sm:$0xff] }
 0x11a   :  { %v695_v58 = vmul.f32 %v663_v50, %v552_v51 }
 0x11b   :  { %756 = vst [vmem:[%s1764_s6] sm:$0xff] %v724_v55 }
 0x11c   :  { %v727_v61 = vadd.f32 %v695_v58, %v631_v57  ;;  %v356_v62 = vpop.f32.mrf.mxu2  ;;  %v421_v1 = vpop.f32.mrf.mxu3  ;;  %v666_v57 = vld [vmem:[%s1763_s4 + $0x30] sm:$0xff] }
 0x11d   :  { %v422_v7 = vadd.f32 %v421_v1, %v356_v62 }
 0x11e   :  { %759 = vst.msk [vmem:[%s1764_s6 + $0x18] sm:$0xff] %vm61_vm0, %v727_v61 }
 0x11f   :  { %v694_v11 = vmul.f32 %v662_v2, %v422_v7  ;;  %v489_v12 = vpop.f32.mrf.mxu0  ;;  %v554_v15 = vpop.f32.mrf.mxu1  ;;  %v669_v2 = vld [vmem:[%s1763_s4 + $0x48] sm:$0xff] }
 0x120   :  { %v555_v23 = vadd.f32 %v554_v15, %v489_v12 }
 0x121   :  { %v726_v24 = vadd.f32 %v694_v11, %v630_v26 }
 0x122   :  { %v697_v17 = vmul.f32 %v665_v16, %v555_v23  ;;  %v668_v23 = vld [vmem:[%s1763_s4 + $0x40] sm:$0xff] }
 0x123   :  { %758 = vst [vmem:[%s1764_s6 + $0x10] sm:$0xff] %v726_v24 }
 0x124   :  { %v729_v18 = vadd.f32 %v697_v17, %v633_v27  ;;  %v359_v28 = vpop.f32.mrf.mxu2  ;;  %v424_v31 = vpop.f32.mrf.mxu3  ;;  %v607_v27 = vld [vmem:[%s1762_s5 + $0x58] sm:$0xff] }
 0x125   :  { %v425_v35 = vadd.f32 %v424_v31, %v359_v28  ;;  %v671_v28 = vld [vmem:[%s1763_s4 + $0x58] sm:$0xff] }
 0x126   :  { %761 = vst.msk [vmem:[%s1764_s6 + $0x28] sm:$0xff] %vm61_vm0, %v729_v18 }
 0x127   :  { %v696_v39 = vmul.f32 %v664_v32, %v425_v35  ;;  %v492_v40 = vpop.f32.mrf.mxu0  ;;  %v557_v43 = vpop.f32.mrf.mxu1  ;;  %v639_v35 = vmul.f32 %v607_v27, %v1294_v42  ;;  %v638_v42 = vmul.f32 %v606_v37, %v1291_v41  ;;  %v608_v41 = vld [vmem:[%s1762_s5 + $0x60] sm:$0xff] }
 0x128   :  { %v558_v44 = vadd.f32 %v557_v43, %v492_v40  ;;  %v670_v43 = vld [vmem:[%s1763_s4 + $0x50] sm:$0xff] }
 0x129   :  { %v728_v45 = vadd.f32 %v696_v39, %v632_v30 }
 0x12a   :  { %v699_v49 = vmul.f32 %v667_v22, %v558_v44  ;;  %v609_v44 = vld [vmem:[%s1762_s5 + $0x68] sm:$0xff] }
 0x12b   :  { %760 = vst [vmem:[%s1764_s6 + $0x20] sm:$0xff] %v728_v45 }
 0x12c   :  { %v731_v50 = vadd.f32 %v699_v49, %v635_v48  ;;  %v362_v51 = vpop.f32.mrf.mxu2  ;;  %v427_v55 = vpop.f32.mrf.mxu3 }
 0x12d   :  { %v428_v58 = vadd.f32 %v427_v55, %v362_v51  ;;  %v641_v55 = vmul.f32 %v609_v44, %v1306_v47  ;;  %v640_v47 = vmul.f32 %v608_v41, %v1303_v46  ;;  %v610_v46 = vld [vmem:[%s1762_s5 + $0x70] sm:$0xff] }
 0x12e   :  { %763 = vst.msk [vmem:[%s1764_s6 + $0x38] sm:$0xff] %vm61_vm0, %v731_v50 }
 0x12f   :  { %v698_v61 = vmul.f32 %v666_v57, %v428_v58  ;;  %v495_v62 = vpop.f32.mrf.mxu0  ;;  %v560_v1 = vpop.f32.mrf.mxu1 }
 0x130   :  { %v561_v7 = vadd.f32 %v560_v1, %v495_v62  ;;  %v611_v1 = vld [vmem:[%s1762_s5 + $0x78] sm:$0xff] }
 0x131   :  { %v730_v26 = vadd.f32 %v698_v61, %v634_v34  ;;  %v672_v61 = vld [vmem:[%s1763_s4 + $0x60] sm:$0xff] }
 0x132   :  { %v701_v11 = vmul.f32 %v669_v2, %v561_v7 }
 0x133   :  { %762 = vst [vmem:[%s1764_s6 + $0x30] sm:$0xff] %v730_v26 }
 0x134   :  { %v733_v12 = vadd.f32 %v701_v11, %v637_v8  ;;  %v365_v15 = vpop.f32.mrf.mxu2  ;;  %v430_v16 = vpop.f32.mrf.mxu3  ;;  %v675_v8 = vld [vmem:[%s1763_s4 + $0x78] sm:$0xff] }
 0x135   :  { %v431_v24 = vadd.f32 %v430_v16, %v365_v15 }
 0x136   :  { %765 = vst.msk [vmem:[%s1764_s6 + $0x48] sm:$0xff] %vm61_vm0, %v733_v12  ;;  %v643_v12 = vmul.f32 %v611_v1, %v1318_v53  ;;  %v642_v53 = vmul.f32 %v610_v46, %v1315_v52  ;;  %v612_v52 = vld [vmem:[%s1762_s5 + $0x80] sm:$0xff] }
 0x137   :  { %v700_v17 = vmul.f32 %v668_v23, %v431_v24  ;;  %v498_v25 = vpop.f32.mrf.mxu0  ;;  %v563_v18 = vpop.f32.mrf.mxu1  ;;  %v680_v46 = vld [vmem:[%s1763_s4 + $0xa0] sm:$0xff] }
 0x138   :  { %v564_v31 = vadd.f32 %v563_v18, %v498_v25 }
 0x139   :  { %v732_v32 = vadd.f32 %v700_v17, %v636_v38  ;;  %v674_v38 = vld [vmem:[%s1763_s4 + $0x70] sm:$0xff]  ;;  %v613_v17 = vld [vmem:[%s1762_s5 + $0x88] sm:$0xff] }
 0x13a   :  { %v703_v30 = vmul.f32 %v671_v28, %v564_v31  ;;  %v677_v31 = vld [vmem:[%s1763_s4 + $0x88] sm:$0xff] }
 0x13b   :  { %764 = vst [vmem:[%s1764_s6 + $0x40] sm:$0xff] %v732_v32 }
 0x13c   :  { %v735_v36 = vadd.f32 %v703_v30, %v639_v35  ;;  %v368_v39 = vpop.f32.mrf.mxu2  ;;  %v433_v40 = vpop.f32.mrf.mxu3  ;;  %v645_v30 = vmul.f32 %v613_v17, %v1327_v54  ;;  %v644_v54 = vmul.f32 %v612_v52, %v1330_v56  ;;  %v614_v56 = vld [vmem:[%s1762_s5 + $0x90] sm:$0xff]  ;;  %v621_v52 = vld [vmem:[%s1762_s5 + $0xc8] sm:$0xff] }
 0x13d   :  { %v434_v22 = vadd.f32 %v433_v40, %v368_v39 }
 0x13e   :  { %767 = vst.msk [vmem:[%s1764_s6 + $0x58] sm:$0xff] %vm61_vm0, %v735_v36 }
 0x13f   :  { %v702_v45 = vmul.f32 %v670_v43, %v434_v22  ;;  %v501_v48 = vpop.f32.mrf.mxu0  ;;  %v566_v49 = vpop.f32.mrf.mxu1  ;;  %v676_v43 = vld [vmem:[%s1763_s4 + $0x80] sm:$0xff] }
 0x140   :  { %v567_v50 = vadd.f32 %v566_v49, %v501_v48  ;;  %v679_v49 = vld [vmem:[%s1763_s4 + $0x98] sm:$0xff] }
 0x141   :  { %v734_v51 = vadd.f32 %v702_v45, %v638_v42  ;;  %v615_v42 = vld [vmem:[%s1762_s5 + $0x98] sm:$0xff] }
 0x142   :  { %v705_v57 = vmul.f32 %v673_v29, %v567_v50 }
 0x143   :  { %766 = vst [vmem:[%s1764_s6 + $0x50] sm:$0xff] %v734_v51  ;;  %v647_v51 = vmul.f32 %v615_v42, %v1342_v60  ;;  %v646_v60 = vmul.f32 %v614_v56, %v1339_v59  ;;  %v616_v59 = vld [vmem:[%s1762_s5 + $0xa0] sm:$0xff]  ;;  %v653_v42 = vmul.f32 %v621_v52, %v1378_v6 }
 0x144   :  { %v737_v58 = vadd.f32 %v705_v57, %v641_v55  ;;  %v371_v34 = vpop.f32.mrf.mxu2  ;;  %v436_v21 = vpop.f32.mrf.mxu3 }
 0x145   :  { %v437_v62 = vadd.f32 %v436_v21, %v371_v34  ;;  %v678_v34 = vld [vmem:[%s1763_s4 + $0x90] sm:$0xff] }
 0x146   :  { %769 = vst.msk [vmem:[%s1764_s6 + $0x68] sm:$0xff] %vm61_vm0, %v737_v58 }
 0x147   :  { %v704_v2 = vmul.f32 %v672_v61, %v437_v62  ;;  %v504_v7 = vpop.f32.mrf.mxu0  ;;  %v569_v26 = vpop.f32.mrf.mxu1  ;;  %v617_v61 = vld [vmem:[%s1762_s5 + $0xa8] sm:$0xff] }
 0x148   :  { %v570_v11 = vadd.f32 %v569_v26, %v504_v7 }
 0x149   :  { %v736_v33 = vadd.f32 %v704_v2, %v640_v47  ;;  %v681_v2 = vld [vmem:[%s1763_s4 + $0xa8] sm:$0xff] }
 0x14a   :  { %v707_v15 = vmul.f32 %v675_v8, %v570_v11  ;;  %v649_v8 = vmul.f32 %v617_v61, %v1354_v0  ;;  %v648_v0 = vmul.f32 %v616_v59, %v1351_v63  ;;  %v618_v63 = vld [vmem:[%s1762_s5 + $0xb0] sm:$0xff]  ;;  %v689_v59 = vld [vmem:[%s1763_s4 + $0xe8] sm:$0xff] }
 0x14b   :  { %768 = vst [vmem:[%s1764_s6 + $0x60] sm:$0xff] %v736_v33 }
 0x14c   :  { %v739_v16 = vadd.f32 %v707_v15, %v643_v12  ;;  %v374_v23 = vpop.f32.mrf.mxu2  ;;  %v439_v24 = vpop.f32.mrf.mxu3 }
 0x14d   :  { %v440_v27 = vadd.f32 %v439_v24, %v374_v23  ;;  %v619_v23 = vld [vmem:[%s1762_s5 + $0xb8] sm:$0xff] }
 0x14e   :  { %771 = vst.msk [vmem:[%s1764_s6 + $0x78] sm:$0xff] %vm61_vm0, %v739_v16 }
 0x14f   :  { %v706_v25 = vmul.f32 %v674_v38, %v440_v27  ;;  %v507_v18 = vpop.f32.mrf.mxu0  ;;  %v572_v28 = vpop.f32.mrf.mxu1 }
 0x150   :  { %v573_v32 = vadd.f32 %v572_v28, %v507_v18  ;;  %v651_v18 = vmul.f32 %v619_v23, %v1366_v4  ;;  %v650_v4 = vmul.f32 %v618_v63, %v1363_v3  ;;  %v620_v3 = vld [vmem:[%s1762_s5 + $0xc0] sm:$0xff] }
 0x151   :  { %v738_v35 = vadd.f32 %v706_v25, %v642_v53  ;;  %v683_v53 = vld [vmem:[%s1763_s4 + $0xb8] sm:$0xff]  ;;  %v652_v6 = vmul.f32 %v620_v3, %v1375_v5  ;;  %v622_v5 = vld [vmem:[%s1762_s5 + $0xd0] sm:$0xff] }
 0x152   :  { %v709_v37 = vmul.f32 %v677_v31, %v573_v32 }
 0x153   :  { %770 = vst [vmem:[%s1764_s6 + $0x70] sm:$0xff] %v738_v35 }
 0x154   :  { %v741_v36 = vadd.f32 %v709_v37, %v645_v30  ;;  %v377_v39 = vpop.f32.mrf.mxu2  ;;  %v442_v40 = vpop.f32.mrf.mxu3  ;;  %v682_v30 = vld [vmem:[%s1763_s4 + $0xb0] sm:$0xff] }
 0x155   :  { %v443_v22 = vadd.f32 %v442_v40, %v377_v39 }
 0x156   :  { %773 = vst.msk [vmem:[%s1764_s6 + $0x88] sm:$0xff] %vm61_vm0, %v741_v36 }
 0x157   :  { %v708_v44 = vmul.f32 %v676_v43, %v443_v22  ;;  %v510_v45 = vpop.f32.mrf.mxu0  ;;  %v575_v48 = vpop.f32.mrf.mxu1  ;;  %v685_v43 = vld [vmem:[%s1763_s4 + $0xc8] sm:$0xff] }
 0x158   :  { %v576_v29 = vadd.f32 %v575_v48, %v510_v45 }
 0x159   :  { %v740_v50 = vadd.f32 %v708_v44, %v644_v54 }
 0x15a   :  { %v711_v55 = vmul.f32 %v679_v49, %v576_v29  ;;  %v684_v29 = vld [vmem:[%s1763_s4 + $0xc0] sm:$0xff] }
 0x15b   :  { %772 = vst [vmem:[%s1764_s6 + $0x80] sm:$0xff] %v740_v50 }
 0x15c   :  { %v743_v57 = vadd.f32 %v711_v55, %v647_v51  ;;  %v380_v41 = vpop.f32.mrf.mxu2  ;;  %v445_v58 = vpop.f32.mrf.mxu3  ;;  %v623_v51 = vld [vmem:[%s1762_s5 + $0xd8] sm:$0xff] }
 0x15d   :  { %v446_v21 = vadd.f32 %v445_v58, %v380_v41  ;;  %v687_v41 = vld [vmem:[%s1763_s4 + $0xd8] sm:$0xff] }
 0x15e   :  { %775 = vst.msk [vmem:[%s1764_s6 + $0x98] sm:$0xff] %vm61_vm0, %v743_v57 }
 0x15f   :  { %v710_v62 = vmul.f32 %v678_v34, %v446_v21  ;;  %v513_v47 = vpop.f32.mrf.mxu0  ;;  %v578_v1 = vpop.f32.mrf.mxu1  ;;  %v655_v21 = vmul.f32 %v623_v51, %v1390_v10  ;;  %v654_v10 = vmul.f32 %v622_v5, %v1387_v9  ;;  %v624_v9 = vld [vmem:[%s1762_s5 + $0xe0] sm:$0xff] }
 0x160   :  { %v579_v7 = vadd.f32 %v578_v1, %v513_v47  ;;  %v686_v1 = vld [vmem:[%s1763_s4 + $0xd0] sm:$0xff] }
 0x161   :  { %v742_v26 = vadd.f32 %v710_v62, %v646_v60 }
 0x162   :  { %v713_v11 = vmul.f32 %v681_v2, %v579_v7  ;;  %v625_v7 = vld [vmem:[%s1762_s5 + $0xe8] sm:$0xff] }
 0x163   :  { %774 = vst [vmem:[%s1764_s6 + $0x90] sm:$0xff] %v742_v26 }
 0x164   :  { %v745_v33 = vadd.f32 %v713_v11, %v649_v8  ;;  %v383_v12 = vpop.f32.mrf.mxu2  ;;  %v448_v15 = vpop.f32.mrf.mxu3 }
 0x165   :  { %v449_v16 = vadd.f32 %v448_v15, %v383_v12  ;;  %v657_v15 = vmul.f32 %v625_v7, %v1402_v14  ;;  %v656_v14 = vmul.f32 %v624_v9, %v1399_v13 }
 0x166   :  { %777 = vst.msk [vmem:[%s1764_s6 + $0xa8] sm:$0xff] %vm61_vm0, %v745_v33 }
 0x167   :  { %v712_v24 = vmul.f32 %v680_v46, %v449_v16  ;;  %v516_v38 = vpop.f32.mrf.mxu0  ;;  %v581_v27 = vpop.f32.mrf.mxu1 }
 0x168   :  { %v582_v17 = vadd.f32 %v581_v27, %v516_v38 }
 0x169   :  { %v744_v25 = vadd.f32 %v712_v24, %v648_v0  ;;  %v688_v24 = vld [vmem:[%s1763_s4 + $0xe0] sm:$0xff] }
 0x16a   :  { %v715_v28 = vmul.f32 %v683_v53, %v582_v17  ;;  %v626_v17 = vld [vmem:[%s1762_s5 + $0xf0] sm:$0xff] }
 0x16b   :  { %776 = vst [vmem:[%s1764_s6 + $0xa0] sm:$0xff] %v744_v25 }
 0x16c   :  { %v747_v31 = vadd.f32 %v715_v28, %v651_v18  ;;  %v386_v32 = vpop.f32.mrf.mxu2  ;;  %v451_v35 = vpop.f32.mrf.mxu3  ;;  %v690_v28 = vld [vmem:[%s1763_s4 + $0xf0] sm:$0xff] }
 0x16d   :  { %v452_v37 = vadd.f32 %v451_v35, %v386_v32  ;;  %v627_v35 = vld [vmem:[%s1762_s5 + $0xf8] sm:$0xff] }
 0x16e   :  { %779 = vst.msk [vmem:[%s1764_s6 + $0xb8] sm:$0xff] %vm61_vm0, %v747_v31  ;;  %v658_v31 = vmul.f32 %v626_v17, %v1411_v19 }
 0x16f   :  { %v714_v36 = vmul.f32 %v682_v30, %v452_v37  ;;  %v519_v39 = vpop.f32.mrf.mxu0  ;;  %v584_v40 = vpop.f32.mrf.mxu1 }
 0x170   :  { %v585_v22 = vadd.f32 %v584_v40, %v519_v39 }
 0x171   :  { %v746_v54 = vadd.f32 %v714_v36, %v650_v4  ;;  %v691_v4 = vld [vmem:[%s1763_s4 + $0xf8] sm:$0xff]  ;;  %v659_v36 = vmul.f32 %v627_v35, %v1414_v20 }
 0x172   :  { %v717_v44 = vmul.f32 %v685_v43, %v585_v22 }
 0x173   :  { %778 = vst [vmem:[%s1764_s6 + $0xb0] sm:$0xff] %v746_v54 }
 0x174   :  { %v749_v45 = vadd.f32 %v717_v44, %v653_v42  ;;  %v389_v48 = vpop.f32.mrf.mxu2  ;;  %v454_v49 = vpop.f32.mrf.mxu3 }
 0x175   :  { %v455_v50 = vadd.f32 %v454_v49, %v389_v48 }
 0x176   :  { %781 = vst.msk [vmem:[%s1764_s6 + $0xc8] sm:$0xff] %vm61_vm0, %v749_v45 }
 0x177   :  { %v716_v55 = vmul.f32 %v684_v29, %v455_v50  ;;  %v522_v56 = vpop.f32.mrf.mxu0  ;;  %v587_v57 = vpop.f32.mrf.mxu1 }
 0x178   :  { %v588_v58 = vadd.f32 %v587_v57, %v522_v56 }
 0x179   :  { %v748_v34 = vadd.f32 %v716_v55, %v652_v6 }
 0x17a   :  { %v719_v60 = vmul.f32 %v687_v41, %v588_v58 }
 0x17b   :  { %780 = vst [vmem:[%s1764_s6 + $0xc0] sm:$0xff] %v748_v34 }
 0x17c   :  { %v751_v61 = vadd.f32 %v719_v60, %v655_v21  ;;  %v392_v62 = vpop.f32.mrf.mxu2  ;;  %v457_v47 = vpop.f32.mrf.mxu3 }
 0x17d   :  { %v458_v2 = vadd.f32 %v457_v47, %v392_v62 }
 0x17e   :  { %783 = vst.msk [vmem:[%s1764_s6 + $0xd8] sm:$0xff] %vm61_vm0, %v751_v61 }
 0x17f   :  { %v718_v26 = vmul.f32 %v686_v1, %v458_v2  ;;  %v525_v8 = vpop.f32.mrf.mxu0  ;;  %v590_v11 = vpop.f32.mrf.mxu1 }
 0x180   :  { %v591_v33 = vadd.f32 %v590_v11, %v525_v8 }
 0x181   :  { %v750_v12 = vadd.f32 %v718_v26, %v654_v10 }
 0x182   :  { %v721_v46 = vmul.f32 %v689_v59, %v591_v33 }
 0x183   :  { %782 = vst [vmem:[%s1764_s6 + $0xd0] sm:$0xff] %v750_v12 }
 0x184   :  { %v753_v16 = vadd.f32 %v721_v46, %v657_v15  ;;  %v395_v0 = vpop.f32.mrf.mxu2  ;;  %v460_v23 = vpop.f32.mrf.mxu3 }
 0x185   :  { %v461_v38 = vadd.f32 %v460_v23, %v395_v0 }
 0x186   :  { %785 = vst.msk [vmem:[%s1764_s6 + $0xe8] sm:$0xff] %vm61_vm0, %v753_v16 }
 0x187   :  { %v720_v27 = vmul.f32 %v688_v24, %v461_v38  ;;  %v593_v30 = vpop.f32.mrf.mxu1 }
 0x189   :  { %v752_v53 = vadd.f32 %v720_v27, %v656_v14 }
 0x18b   :  { %784 = vst [vmem:[%s1764_s6 + $0xe0] sm:$0xff] %v752_v53 }
 0x18c   :  { %v398_v25 = vpop.f32.mrf.mxu2  ;;  %v463_v18 = vpop.f32.mrf.mxu3 }
 0x18d   :  { %v464_v63 = vadd.f32 %v463_v18, %v398_v25 }
 0x18f   :  { %v722_v13 = vmul.f32 %v690_v28, %v464_v63 }
 0x191   :  { %v754_v32 = vadd.f32 %v722_v13, %v658_v31 }
 0x193   :  { %786 = vst [vmem:[%s1764_s6 + $0xf0] sm:$0xff] %v754_v32 }
 0x194   :  { %v528_v37 = vpop.f32.mrf.mxu3 }
 0x195   :  { %v594_v52 = vadd.f32 %v593_v30, %v528_v37 }
 0x197   :  { %v723_v19 = vmul.f32 %v691_v4, %v594_v52 }
 0x199   :  { %v755_v39 = vadd.f32 %v723_v19, %v659_v36 }
 0x19b   :  { %787 = vst.msk [vmem:[%s1764_s6 + $0xf8] sm:$0xff] %vm61_vm0, %v755_v39 }

// kernel: _lambda_.8
= control target key start
LH: loop header
LB: loop body
LE: loop exit
PB: predicated region body
PF: predicated region fallthrough
CT: control target
= control target key end

     0   :  { %s5019_s15 = smov 0   ;;  %s6504_s0 = inlined_call_operand.vmem [shape: f32[16,8,8,8], index: 0, kind: input, shape index: {}]   ;;  %s6505_s1 = inlined_call_operand.vmem [shape: f32[16,8,8,8], index: 1, kind: input, shape index: {}]   ;;  %s6506_s2 = inlined_call_operand.vmem [shape: f32[16,8,8,8], index: 2, kind: input, shape index: {}]   ;;  %s6507_s3 = inlined_call_operand.vmem [shape: f32[8,8,8], index: 3, kind: input, shape index: {}]   ;;  %s6508_s4 = inlined_call_operand.vmem [shape: f32[16,8,8,8], index: 4, kind: output, shape index: {}]  }
   0x1 LB: > { %s4507_s16 = sadd.s32 4294967295, %s4992_s15   ;;  %p4511_p0 = scmp.ge.s32.totalorder %s4992_s15, 1  ;;  %s4992_s15 = sphi %s5019_s15, %s14_s15  }
   0x2   : > { %p188_p1 = scmp.lt.s32.totalorder %s4992_s15, 3 }
   0x4   : > { %p189_p2 = pnand %p4511_p0, %p188_p1 }
   0x6   : > { %192 = sbr.rel (%p189_p2) target bundleno = 747 (0x2eb), region = 36 }
   0xb   : > { %s4512_s17 = sshll.u32 %s4507_s16, 3  ;;  %vm448_vm0 = vcmask 64512  }
   0xc   : > { %p229_p3 = scmp.lt.s32.totalorder %s4512_s17, 15 }
   0xe   : > { %s6645_s17 = smov (!%p229_p3, %s4512_s17), 15 }
   0xf   : > { %s5027_s18 = sshll.u32 %s6645_s17, 6 }
  0x10   : > { %s5033_s21 = scalar_lea.vmem %s6505_s1, %s5027_s18  ;;  %s5039_s24 = scalar_lea.vmem %s6504_s0, %s5027_s18 }
  0x11   : > { %v320_v0 = vld [vmem:[%s5033_s21] sm:$0xff]  ;;  %v322_v1 = vld [vmem:[%s5033_s21 + $0x10] sm:$0xff]  ;;  %v321_v5 = vld [vmem:[%s5033_s21 + $0x8] sm:$0xff]  ;;  %s5999_s19 = scalar_lea.vmem %s6506_s2, %s5027_s18  ;;  %s6331_s22 = scalar_lea.vmem %s6508_s4, %s5027_s18 }
  0x12   : > { %v256_v2 = vld [vmem:[%s5039_s24] sm:$0xff]  ;;  %4524 = vmatpush.xpose.msk.msra.mxu0 %vm448_vm0, %v320_v0  ;;  %4528 = vmatpush.xpose.msk.msra.mxu2 %vm448_vm0, %v322_v1  ;;  %v258_v3 = vld [vmem:[%s5039_s24 + $0x10] sm:$0xff]  ;;  %v323_v6 = vld [vmem:[%s5033_s21 + $0x18] sm:$0xff] }
  0x13   : > { %v324_v4 = vld [vmem:[%s5033_s21 + $0x20] sm:$0xff]  ;;  %4526 = vmatpush.xpose.msk.msra.mxu1 %vm448_vm0, %v321_v5  ;;  %v326_v7 = vld [vmem:[%s5033_s21 + $0x30] sm:$0xff]  ;;  %v257_v8 = vld [vmem:[%s5039_s24 + $0x8] sm:$0xff]  ;;  %4530 = vmatpush.xpose.msk.msra.mxu3 %vm448_vm0, %v323_v6 }
  0x14   : > { %v259_v9 = vld [vmem:[%s5039_s24 + $0x18] sm:$0xff]  ;;  %v325_v10 = vld [vmem:[%s5033_s21 + $0x28] sm:$0xff]  ;;  %v328_v12 = vld [vmem:[%s5033_s21 + $0x40] sm:$0xff] }
  0x15   : > { %4525 = vmatmul.msk.f32.vlgmr.msra.gmra.mxu0 %vm448_vm0, %v256_v2  ;;  %4529 = vmatmul.msk.f32.vlgmr.msra.gmra.mxu2 %vm448_vm0, %v258_v3  ;;  %v327_v11 = vld [vmem:[%s5033_s21 + $0x38] sm:$0xff]  ;;  %v330_v13 = vld [vmem:[%s5033_s21 + $0x50] sm:$0xff]  ;;  %v329_v15 = vld [vmem:[%s5033_s21 + $0x48] sm:$0xff] }
  0x16   : > { %4532 = vmatpush.xpose.msk.msrb.mxu0 %vm448_vm0, %v324_v4  ;;  %4536 = vmatpush.xpose.msk.msrb.mxu2 %vm448_vm0, %v326_v7  ;;  %v331_v14 = vld [vmem:[%s5033_s21 + $0x58] sm:$0xff]  ;;  %v260_v16 = vld [vmem:[%s5039_s24 + $0x20] sm:$0xff]  ;;  %v262_v17 = vld [vmem:[%s5039_s24 + $0x30] sm:$0xff] }
  0x17   : > { %4527 = vmatmul.msk.f32.vlgmr.msra.gmra.mxu1 %vm448_vm0, %v257_v8  ;;  %4538 = vmatpush.xpose.msk.msrb.mxu3 %vm448_vm0, %v327_v11  ;;  %v261_v18 = vld [vmem:[%s5039_s24 + $0x28] sm:$0xff]  ;;  %v334_v19 = vld [vmem:[%s5033_s21 + $0x70] sm:$0xff]  ;;  %v263_v20 = vld [vmem:[%s5039_s24 + $0x38] sm:$0xff] }
  0x18   : > { %4531 = vmatmul.msk.f32.vlgmr.msra.gmra.mxu3 %vm448_vm0, %v259_v9  ;;  %4534 = vmatpush.xpose.msk.msrb.mxu1 %vm448_vm0, %v325_v10  ;;  %v332_v21 = vld [vmem:[%s5033_s21 + $0x60] sm:$0xff]  ;;  %v333_v22 = vld [vmem:[%s5033_s21 + $0x68] sm:$0xff]  ;;  %v335_v23 = vld [vmem:[%s5033_s21 + $0x78] sm:$0xff] }
  0x19   : > { %v264_v24 = vld [vmem:[%s5039_s24 + $0x40] sm:$0xff]  ;;  %v266_v25 = vld [vmem:[%s5039_s24 + $0x50] sm:$0xff]  ;;  %v265_v26 = vld [vmem:[%s5039_s24 + $0x48] sm:$0xff] }
  0x1a   : > { %4540 = vmatpush.xpose.msk.msra.mxu0 %vm448_vm0, %v328_v12  ;;  %4544 = vmatpush.xpose.msk.msra.mxu2 %vm448_vm0, %v330_v13  ;;  %v336_v27 = vld [vmem:[%s5033_s21 + $0x80] sm:$0xff]  ;;  %v267_v28 = vld [vmem:[%s5039_s24 + $0x58] sm:$0xff]  ;;  %v338_v29 = vld [vmem:[%s5033_s21 + $0x90] sm:$0xff] }
  0x1b   : > { %4546 = vmatpush.xpose.msk.msra.mxu3 %vm448_vm0, %v331_v14  ;;  %v337_v30 = vld [vmem:[%s5033_s21 + $0x88] sm:$0xff]  ;;  %v339_v31 = vld [vmem:[%s5033_s21 + $0x98] sm:$0xff]  ;;  %v268_v32 = vld [vmem:[%s5039_s24 + $0x60] sm:$0xff] }
  0x1c   : > { %4542 = vmatpush.xpose.msk.msra.mxu1 %vm448_vm0, %v329_v15  ;;  %v270_v33 = vld [vmem:[%s5039_s24 + $0x70] sm:$0xff]  ;;  %v269_v34 = vld [vmem:[%s5039_s24 + $0x68] sm:$0xff]  ;;  %v340_v35 = vld [vmem:[%s5033_s21 + $0xa0] sm:$0xff] }
  0x1d   : > { %4533 = vmatmul.msk.f32.vlgmr.msrb.gmra.mxu0 %vm448_vm0, %v260_v16  ;;  %4537 = vmatmul.msk.f32.vlgmr.msrb.gmra.mxu2 %vm448_vm0, %v262_v17  ;;  %v271_v36 = vld [vmem:[%s5039_s24 + $0x78] sm:$0xff]  ;;  %v342_v37 = vld [vmem:[%s5033_s21 + $0xb0] sm:$0xff]  ;;  %v341_v39 = vld [vmem:[%s5033_s21 + $0xa8] sm:$0xff] }
  0x1e   : > { %4552 = vmatpush.xpose.msk.msrb.mxu2 %vm448_vm0, %v334_v19  ;;  %4548 = vmatpush.xpose.msk.msrb.mxu0 %vm448_vm0, %v332_v21  ;;  %v343_v38 = vld [vmem:[%s5033_s21 + $0xb8] sm:$0xff]  ;;  %v274_v40 = vld [vmem:[%s5039_s24 + $0x90] sm:$0xff]  ;;  %v272_v41 = vld [vmem:[%s5039_s24 + $0x80] sm:$0xff] }
  0x1f   : > { %4535 = vmatmul.msk.f32.vlgmr.msrb.gmra.mxu1 %vm448_vm0, %v261_v18  ;;  %v273_v42 = vld [vmem:[%s5039_s24 + $0x88] sm:$0xff]  ;;  %v344_v43 = vld [vmem:[%s5033_s21 + $0xc0] sm:$0xff]  ;;  %v275_v44 = vld [vmem:[%s5039_s24 + $0x98] sm:$0xff] }
  0x20   : > { %4539 = vmatmul.msk.f32.vlgmr.msrb.gmra.mxu3 %vm448_vm0, %v263_v20  ;;  %4550 = vmatpush.xpose.msk.msrb.mxu1 %vm448_vm0, %v333_v22  ;;  %v346_v45 = vld [vmem:[%s5033_s21 + $0xd0] sm:$0xff]  ;;  %v345_v46 = vld [vmem:[%s5033_s21 + $0xc8] sm:$0xff]  ;;  %v347_v47 = vld [vmem:[%s5033_s21 + $0xd8] sm:$0xff] }
  0x21   : > { %4554 = vmatpush.xpose.msk.msrb.mxu3 %vm448_vm0, %v335_v23  ;;  %v276_v48 = vld [vmem:[%s5039_s24 + $0xa0] sm:$0xff]  ;;  %v278_v49 = vld [vmem:[%s5039_s24 + $0xb0] sm:$0xff]  ;;  %v277_v50 = vld [vmem:[%s5039_s24 + $0xa8] sm:$0xff] }
  0x22   : > { %v348_v51 = vld [vmem:[%s5033_s21 + $0xe0] sm:$0xff]  ;;  %v279_v52 = vld [vmem:[%s5039_s24 + $0xb8] sm:$0xff]  ;;  %v350_v53 = vld [vmem:[%s5033_s21 + $0xf0] sm:$0xff] }
  0x23   : > { %v349_v54 = vld [vmem:[%s5033_s21 + $0xe8] sm:$0xff]  ;;  %v351_v55 = vld [vmem:[%s5033_s21 + $0xf8] sm:$0xff]  ;;  %v280_v56 = vld [vmem:[%s5039_s24 + $0xc0] sm:$0xff] }
  0x24   : > { %v282_v57 = vld [vmem:[%s5039_s24 + $0xd0] sm:$0xff]  ;;  %v281_v58 = vld [vmem:[%s5039_s24 + $0xc8] sm:$0xff]  ;;  %v352_v59 = vld [vmem:[%s5033_s21 + $0x100] sm:$0xff] }
  0x25   : > { %4541 = vmatmul.msk.f32.vlgmr.msra.gmra.mxu0 %vm448_vm0, %v264_v24  ;;  %4545 = vmatmul.msk.f32.vlgmr.msra.gmra.mxu2 %vm448_vm0, %v266_v25  ;;  %v283_v60 = vld [vmem:[%s5039_s24 + $0xd8] sm:$0xff]  ;;  %v354_v61 = vld [vmem:[%s5033_s21 + $0x110] sm:$0xff]  ;;  %v353_v62 = vld [vmem:[%s5033_s21 + $0x108] sm:$0xff] }
  0x26   : > { %4556 = vmatpush.xpose.msk.msra.mxu0 %vm448_vm0, %v336_v27  ;;  %4560 = vmatpush.xpose.msk.msra.mxu2 %vm448_vm0, %v338_v29  ;;  %v355_v63 = vld [vmem:[%s5033_s21 + $0x118] sm:$0xff]  ;;  %v284_v0 = vld [vmem:[%s5039_s24 + $0xe0] sm:$0xff]  ;;  %v286_v1 = vld [vmem:[%s5039_s24 + $0xf0] sm:$0xff] }
  0x27   : > { %4543 = vmatmul.msk.f32.vlgmr.msra.gmra.mxu1 %vm448_vm0, %v265_v26  ;;  %v285_v2 = vld [vmem:[%s5039_s24 + $0xe8] sm:$0xff]  ;;  %v356_v3 = vld [vmem:[%s5033_s21 + $0x120] sm:$0xff]  ;;  %v287_v4 = vld [vmem:[%s5039_s24 + $0xf8] sm:$0xff] }
  0x28   : > { %4547 = vmatmul.msk.f32.vlgmr.msra.gmra.mxu3 %vm448_vm0, %v267_v28  ;;  %4558 = vmatpush.xpose.msk.msra.mxu1 %vm448_vm0, %v337_v30  ;;  %v357_v5 = vld [vmem:[%s5033_s21 + $0x128] sm:$0xff]  ;;  %v358_v6 = vld [vmem:[%s5033_s21 + $0x130] sm:$0xff]  ;;  %v359_v7 = vld [vmem:[%s5033_s21 + $0x138] sm:$0xff] }
  0x29   : > { %4562 = vmatpush.xpose.msk.msra.mxu3 %vm448_vm0, %v339_v31  ;;  %v288_v8 = vld [vmem:[%s5039_s24 + $0x100] sm:$0xff]  ;;  %v290_v9 = vld [vmem:[%s5039_s24 + $0x110] sm:$0xff]  ;;  %v289_v10 = vld [vmem:[%s5039_s24 + $0x108] sm:$0xff] }
  0x2a   : > { %v360_v11 = vld [vmem:[%s5033_s21 + $0x140] sm:$0xff]  ;;  %v291_v12 = vld [vmem:[%s5039_s24 + $0x118] sm:$0xff]  ;;  %v362_v13 = vld [vmem:[%s5033_s21 + $0x150] sm:$0xff] }
  0x2b   : > { %v361_v14 = vld [vmem:[%s5033_s21 + $0x148] sm:$0xff]  ;;  %v363_v15 = vld [vmem:[%s5033_s21 + $0x158] sm:$0xff]  ;;  %v292_v16 = vld [vmem:[%s5039_s24 + $0x120] sm:$0xff] }
  0x2c   : > { %v294_v17 = vld [vmem:[%s5039_s24 + $0x130] sm:$0xff]  ;;  %v293_v18 = vld [vmem:[%s5039_s24 + $0x128] sm:$0xff]  ;;  %v364_v19 = vld [vmem:[%s5033_s21 + $0x160] sm:$0xff] }
  0x2d   : > { %4549 = vmatmul.msk.f32.vlgmr.msrb.gmra.mxu0 %vm448_vm0, %v268_v32  ;;  %4553 = vmatmul.msk.f32.vlgmr.msrb.gmra.mxu2 %vm448_vm0, %v270_v33  ;;  %v295_v20 = vld [vmem:[%s5039_s24 + $0x138] sm:$0xff]  ;;  %v366_v21 = vld [vmem:[%s5033_s21 + $0x170] sm:$0xff]  ;;  %v365_v22 = vld [vmem:[%s5033_s21 + $0x168] sm:$0xff] }
  0x2e   : > { %4564 = vmatpush.xpose.msk.msrb.mxu0 %vm448_vm0, %v340_v35  ;;  %4568 = vmatpush.xpose.msk.msrb.mxu2 %vm448_vm0, %v342_v37  ;;  %v367_v23 = vld [vmem:[%s5033_s21 + $0x178] sm:$0xff]  ;;  %v296_v24 = vld [vmem:[%s5039_s24 + $0x140] sm:$0xff]  ;;  %v298_v25 = vld [vmem:[%s5039_s24 + $0x150] sm:$0xff] }
  0x2f   : > { %4551 = vmatmul.msk.f32.vlgmr.msrb.gmra.mxu1 %vm448_vm0, %v269_v34  ;;  %v297_v26 = vld [vmem:[%s5039_s24 + $0x148] sm:$0xff]  ;;  %v368_v27 = vld [vmem:[%s5033_s21 + $0x180] sm:$0xff]  ;;  %v299_v28 = vld [vmem:[%s5039_s24 + $0x158] sm:$0xff] }
  0x30   : > { %4555 = vmatmul.msk.f32.vlgmr.msrb.gmra.mxu3 %vm448_vm0, %v271_v36  ;;  %4566 = vmatpush.xpose.msk.msrb.mxu1 %vm448_vm0, %v341_v39  ;;  %v369_v29 = vld [vmem:[%s5033_s21 + $0x188] sm:$0xff]  ;;  %v370_v30 = vld [vmem:[%s5033_s21 + $0x190] sm:$0xff]  ;;  %v371_v31 = vld [vmem:[%s5033_s21 + $0x198] sm:$0xff] }
  0x31   : > { %4570 = vmatpush.xpose.msk.msrb.mxu3 %vm448_vm0, %v343_v38  ;;  %v300_v32 = vld [vmem:[%s5039_s24 + $0x160] sm:$0xff]  ;;  %v302_v33 = vld [vmem:[%s5039_s24 + $0x170] sm:$0xff]  ;;  %v301_v34 = vld [vmem:[%s5039_s24 + $0x168] sm:$0xff] }
  0x32   : > { %v303_v35 = vld [vmem:[%s5039_s24 + $0x178] sm:$0xff]  ;;  %v304_v36 = vld [vmem:[%s5039_s24 + $0x180] sm:$0xff]  ;;  %v306_v37 = vld [vmem:[%s5039_s24 + $0x190] sm:$0xff] }
  0x33   : > { %v305_v38 = vld [vmem:[%s5039_s24 + $0x188] sm:$0xff]  ;;  %v372_v39 = vld [vmem:[%s5033_s21 + $0x1a0] sm:$0xff] }
  0x35   : > { %4561 = vmatmul.msk.f32.vlgmr.msra.gmra.mxu2 %vm448_vm0, %v274_v40  ;;  %4557 = vmatmul.msk.f32.vlgmr.msra.gmra.mxu0 %vm448_vm0, %v272_v41  ;;  %v307_v40 = vld [vmem:[%s5039_s24 + $0x198] sm:$0xff]  ;;  %v374_v41 = vld [vmem:[%s5033_s21 + $0x1b0] sm:$0xff] }
  0x36   : > { %4572 = vmatpush.xpose.msk.msra.mxu0 %vm448_vm0, %v344_v43  ;;  %4576 = vmatpush.xpose.msk.msra.mxu2 %vm448_vm0, %v346_v45  ;;  %v308_v43 = vld [vmem:[%s5039_s24 + $0x1a0] sm:$0xff] }
  0x37   : > { %4559 = vmatmul.msk.f32.vlgmr.msra.gmra.mxu1 %vm448_vm0, %v273_v42  ;;  %v373_v42 = vld [vmem:[%s5033_s21 + $0x1a8] sm:$0xff]  ;;  %v376_v45 = vld [vmem:[%s5033_s21 + $0x1c0] sm:$0xff] }
  0x38   : > { %4563 = vmatmul.msk.f32.vlgmr.msra.gmra.mxu3 %vm448_vm0, %v275_v44  ;;  %4574 = vmatpush.xpose.msk.msra.mxu1 %vm448_vm0, %v345_v46  ;;  %v375_v44 = vld [vmem:[%s5033_s21 + $0x1b8] sm:$0xff]  ;;  %v310_v46 = vld [vmem:[%s5039_s24 + $0x1b0] sm:$0xff] }
  0x39   : > { %4578 = vmatpush.xpose.msk.msra.mxu3 %vm448_vm0, %v347_v47  ;;  %v378_v47 = vld [vmem:[%s5033_s21 + $0x1d0] sm:$0xff] }
  0x3d   : > { %4565 = vmatmul.msk.f32.vlgmr.msrb.gmra.mxu0 %vm448_vm0, %v276_v48  ;;  %4569 = vmatmul.msk.f32.vlgmr.msrb.gmra.mxu2 %vm448_vm0, %v278_v49  ;;  %v309_v48 = vld [vmem:[%s5039_s24 + $0x1a8] sm:$0xff]  ;;  %v311_v49 = vld [vmem:[%s5039_s24 + $0x1b8] sm:$0xff] }
  0x3e   : > { %4580 = vmatpush.xpose.msk.msrb.mxu0 %vm448_vm0, %v348_v51  ;;  %4584 = vmatpush.xpose.msk.msrb.mxu2 %vm448_vm0, %v350_v53  ;;  %v377_v51 = vld [vmem:[%s5033_s21 + $0x1c8] sm:$0xff]  ;;  %v379_v53 = vld [vmem:[%s5033_s21 + $0x1d8] sm:$0xff] }
  0x3f   : > { %4567 = vmatmul.msk.f32.vlgmr.msrb.gmra.mxu1 %vm448_vm0, %v277_v50  ;;  %v312_v50 = vld [vmem:[%s5039_s24 + $0x1c0] sm:$0xff] }
  0x40   : > { %4571 = vmatmul.msk.f32.vlgmr.msrb.gmra.mxu3 %vm448_vm0, %v279_v52  ;;  %4582 = vmatpush.xpose.msk.msrb.mxu1 %vm448_vm0, %v349_v54  ;;  %v314_v52 = vld [vmem:[%s5039_s24 + $0x1d0] sm:$0xff]  ;;  %v380_v54 = vld [vmem:[%s5033_s21 + $0x1e0] sm:$0xff] }
  0x41   : > { %4586 = vmatpush.xpose.msk.msrb.mxu3 %vm448_vm0, %v351_v55  ;;  %v313_v55 = vld [vmem:[%s5039_s24 + $0x1c8] sm:$0xff] }
  0x45   : > { %4573 = vmatmul.msk.f32.vlgmr.msra.gmra.mxu0 %vm448_vm0, %v280_v56  ;;  %4577 = vmatmul.msk.f32.vlgmr.msra.gmra.mxu2 %vm448_vm0, %v282_v57  ;;  %v381_v56 = vld [vmem:[%s5033_s21 + $0x1e8] sm:$0xff]  ;;  %v382_v57 = vld [vmem:[%s5033_s21 + $0x1f0] sm:$0xff] }
  0x46   : > { %4588 = vmatpush.xpose.msk.msra.mxu0 %vm448_vm0, %v352_v59  ;;  %4592 = vmatpush.xpose.msk.msra.mxu2 %vm448_vm0, %v354_v61  ;;  %v383_v59 = vld [vmem:[%s5033_s21 + $0x1f8] sm:$0xff]  ;;  %v5293_v61 = vld [vmem:[%s6507_s3] sm:$0xff] }
  0x47   : > { %4575 = vmatmul.msk.f32.vlgmr.msra.gmra.mxu1 %vm448_vm0, %v281_v58  ;;  %v315_v58 = vld [vmem:[%s5039_s24 + $0x1d8] sm:$0xff] }
  0x48   : > { %4579 = vmatmul.msk.f32.vlgmr.msra.gmra.mxu3 %vm448_vm0, %v283_v60  ;;  %4590 = vmatpush.xpose.msk.msra.mxu1 %vm448_vm0, %v353_v62  ;;  %v316_v60 = vld [vmem:[%s5039_s24 + $0x1e0] sm:$0xff] }
  0x49   : > { %4594 = vmatpush.xpose.msk.msra.mxu3 %vm448_vm0, %v355_v63 }
  0x4d   : > { %4581 = vmatmul.msk.f32.vlgmr.msrb.gmra.mxu0 %vm448_vm0, %v284_v0  ;;  %4585 = vmatmul.msk.f32.vlgmr.msrb.gmra.mxu2 %vm448_vm0, %v286_v1  ;;  %v5302_v1 = vld [vmem:[%s6507_s3 + $0x8] sm:$0xff] }
  0x4e   : > { %4596 = vmatpush.xpose.msk.msrb.mxu0 %vm448_vm0, %v356_v3  ;;  %4600 = vmatpush.xpose.msk.msrb.mxu2 %vm448_vm0, %v358_v6  ;;  %v318_v3 = vld [vmem:[%s5039_s24 + $0x1f0] sm:$0xff]  ;;  %v319_v6 = vld [vmem:[%s5039_s24 + $0x1f8] sm:$0xff] }
  0x4f   : > { %4583 = vmatmul.msk.f32.vlgmr.msrb.gmra.mxu1 %vm448_vm0, %v285_v2  ;;  %v317_v2 = vld [vmem:[%s5039_s24 + $0x1e8] sm:$0xff] }
  0x50   : > { %4587 = vmatmul.msk.f32.vlgmr.msrb.gmra.mxu3 %vm448_vm0, %v287_v4  ;;  %4598 = vmatpush.xpose.msk.msrb.mxu1 %vm448_vm0, %v357_v5  ;;  %v5313_v5 = vld [vmem:[%s6507_s3 + $0x10] sm:$0xff] }
  0x51   : > { %4602 = vmatpush.xpose.msk.msrb.mxu3 %vm448_vm0, %v359_v7 }
  0x55   : > { %4589 = vmatmul.msk.f32.vlgmr.msra.gmra.mxu0 %vm448_vm0, %v288_v8  ;;  %4593 = vmatmul.msk.f32.vlgmr.msra.gmra.mxu2 %vm448_vm0, %v290_v9  ;;  %v5323_v9 = vld [vmem:[%s6507_s3 + $0x20] sm:$0xff] }
  0x56   : > { %4604 = vmatpush.xpose.msk.msra.mxu0 %vm448_vm0, %v360_v11  ;;  %4608 = vmatpush.xpose.msk.msra.mxu2 %vm448_vm0, %v362_v13  ;;  %v5331_v13 = vld [vmem:[%s6507_s3 + $0x18] sm:$0xff] }
  0x57   : > { %4591 = vmatmul.msk.f32.vlgmr.msra.gmra.mxu1 %vm448_vm0, %v289_v10 }
  0x58   : > { %4595 = vmatmul.msk.f32.vlgmr.msra.gmra.mxu3 %vm448_vm0, %v291_v12  ;;  %4606 = vmatpush.xpose.msk.msra.mxu1 %vm448_vm0, %v361_v14 }
  0x59   : > { %4610 = vmatpush.xpose.msk.msra.mxu3 %vm448_vm0, %v363_v15 }
  0x5d   : > { %4597 = vmatmul.msk.f32.vlgmr.msrb.gmra.mxu0 %vm448_vm0, %v292_v16  ;;  %4601 = vmatmul.msk.f32.vlgmr.msrb.gmra.mxu2 %vm448_vm0, %v294_v17 }
  0x5e   : > { %4612 = vmatpush.xpose.msk.msrb.mxu0 %vm448_vm0, %v364_v19  ;;  %4616 = vmatpush.xpose.msk.msrb.mxu2 %vm448_vm0, %v366_v21  ;;  %v5353_v21 = vld [vmem:[%s6507_s3 + $0x30] sm:$0xff] }
  0x5f   : > { %4599 = vmatmul.msk.f32.vlgmr.msrb.gmra.mxu1 %vm448_vm0, %v293_v18  ;;  %v5343_v18 = vld [vmem:[%s6507_s3 + $0x28] sm:$0xff] }
  0x60   : > { %4603 = vmatmul.msk.f32.vlgmr.msrb.gmra.mxu3 %vm448_vm0, %v295_v20  ;;  %4614 = vmatpush.xpose.msk.msrb.mxu1 %vm448_vm0, %v365_v22 }
  0x61   : > { %4618 = vmatpush.xpose.msk.msrb.mxu3 %vm448_vm0, %v367_v23 }
  0x65   : > { %4605 = vmatmul.msk.f32.vlgmr.msra.gmra.mxu0 %vm448_vm0, %v296_v24  ;;  %4609 = vmatmul.msk.f32.vlgmr.msra.gmra.mxu2 %vm448_vm0, %v298_v25 }
  0x66   : > { %4620 = vmatpush.xpose.msk.msra.mxu0 %vm448_vm0, %v368_v27  ;;  %4624 = vmatpush.xpose.msk.msra.mxu2 %vm448_vm0, %v370_v30  ;;  %v5366_v27 = vld [vmem:[%s6507_s3 + $0x38] sm:$0xff] }
  0x67   : > { %4607 = vmatmul.msk.f32.vlgmr.msra.gmra.mxu1 %vm448_vm0, %v297_v26 }
  0x68   : > { %4611 = vmatmul.msk.f32.vlgmr.msra.gmra.mxu3 %vm448_vm0, %v299_v28  ;;  %4622 = vmatpush.xpose.msk.msra.mxu1 %vm448_vm0, %v369_v29 }
  0x69   : > { %4626 = vmatpush.xpose.msk.msra.mxu3 %vm448_vm0, %v371_v31 }
  0x6d   : > { %4613 = vmatmul.msk.f32.vlgmr.msrb.gmra.mxu0 %vm448_vm0, %v300_v32  ;;  %4617 = vmatmul.msk.f32.vlgmr.msrb.gmra.mxu2 %vm448_vm0, %v302_v33 }
  0x6e   : > { %4628 = vmatpush.xpose.msk.msrb.mxu0 %vm448_vm0, %v372_v39  ;;  %4632 = vmatpush.xpose.msk.msrb.mxu2 %vm448_vm0, %v374_v41 }
  0x6f   : > { %4615 = vmatmul.msk.f32.vlgmr.msrb.gmra.mxu1 %vm448_vm0, %v301_v34 }
  0x70   : > { %4619 = vmatmul.msk.f32.vlgmr.msrb.gmra.mxu3 %vm448_vm0, %v303_v35  ;;  %4630 = vmatpush.xpose.msk.msrb.mxu1 %vm448_vm0, %v373_v42 }
  0x71   : > { %4634 = vmatpush.xpose.msk.msrb.mxu3 %vm448_vm0, %v375_v44 }
  0x75   : > { %4621 = vmatmul.msk.f32.vlgmr.msra.gmra.mxu0 %vm448_vm0, %v304_v36  ;;  %4625 = vmatmul.msk.f32.vlgmr.msra.gmra.mxu2 %vm448_vm0, %v306_v37 }
  0x76   : > { %4636 = vmatpush.xpose.msk.msra.mxu0 %vm448_vm0, %v376_v45  ;;  %4640 = vmatpush.xpose.msk.msra.mxu2 %vm448_vm0, %v378_v47 }
  0x77   : > { %4623 = vmatmul.msk.f32.vlgmr.msra.gmra.mxu1 %vm448_vm0, %v305_v38 }
  0x78   : > { %4627 = vmatmul.msk.f32.vlgmr.msra.gmra.mxu3 %vm448_vm0, %v307_v40  ;;  %4638 = vmatpush.xpose.msk.msra.mxu1 %vm448_vm0, %v377_v51 }
  0x79   : > { %4642 = vmatpush.xpose.msk.msra.mxu3 %vm448_vm0, %v379_v53 }
  0x7d   : > { %4629 = vmatmul.msk.f32.vlgmr.msrb.gmra.mxu0 %vm448_vm0, %v308_v43  ;;  %4633 = vmatmul.msk.f32.vlgmr.msrb.gmra.mxu2 %vm448_vm0, %v310_v46 }
  0x7e   : > { %4644 = vmatpush.xpose.msk.msrb.mxu0 %vm448_vm0, %v380_v54  ;;  %4648 = vmatpush.xpose.msk.msrb.mxu2 %vm448_vm0, %v382_v57 }
  0x7f   : > { %4631 = vmatmul.msk.f32.vlgmr.msrb.gmra.mxu1 %vm448_vm0, %v309_v48 }
  0x80   : > { %4635 = vmatmul.msk.f32.vlgmr.msrb.gmra.mxu3 %vm448_vm0, %v311_v49  ;;  %4646 = vmatpush.xpose.msk.msrb.mxu1 %vm448_vm0, %v381_v56 }
  0x81   : > { %4650 = vmatpush.xpose.msk.msrb.mxu3 %vm448_vm0, %v383_v59 }
  0x85   : > { %4637 = vmatmul.msk.f32.vlgmr.msra.gmra.mxu0 %vm448_vm0, %v312_v50  ;;  %4641 = vmatmul.msk.f32.vlgmr.msra.gmra.mxu2 %vm448_vm0, %v314_v52 }
  0x87   : > { %4639 = vmatmul.msk.f32.vlgmr.msra.gmra.mxu1 %vm448_vm0, %v313_v55 }
  0x88   : > { %4643 = vmatmul.msk.f32.vlgmr.msra.gmra.mxu3 %vm448_vm0, %v315_v58 }
  0x8d   : > { %4645 = vmatmul.msk.f32.vlgmr.msrb.gmra.mxu0 %vm448_vm0, %v316_v60  ;;  %4649 = vmatmul.msk.f32.vlgmr.msrb.gmra.mxu2 %vm448_vm0, %v318_v3 }
  0x8f   : > { %4647 = vmatmul.msk.f32.vlgmr.msrb.gmra.mxu1 %vm448_vm0, %v317_v2 }
  0x90   : > { %4651 = vmatmul.msk.f32.vlgmr.msrb.gmra.mxu3 %vm448_vm0, %v319_v6 }
  0x92   : > { %v472_v62 = vpop.f32.mrf.mxu0 }
  0x93   : > { %v5297_v63 = vadd.f32 %v5293_v61, %v472_v62 }
  0x94   : > { %v498_v0 = vpop.f32.mrf.mxu1 }
  0x95   : > { %v2185_v4 = vsel %vm448_vm0, %v5297_v63, -inf  ;;  %v5317_v7 = vadd.f32 %v5302_v1, %v498_v0 }
  0x96   : > { %2186 = vmax.xlane.f32.xlu0 %v2185_v4 }
  0x97   : > { %v2188_v15 = vsel %vm448_vm0, %v5317_v7, -inf }
  0x98   : > { %v524_v8 = vpop.f32.mrf.mxu2 }
  0x99   : > { %v5326_v10 = vadd.f32 %v5313_v5, %v524_v8 }
  0x9a   : > { %v576_v11 = vpop.f32.mrf.mxu0 }
  0x9b   : > { %v550_v12 = vpop.f32.mrf.mxu3  ;;  %v2191_v14 = vsel %vm448_vm0, %v5326_v10, -inf  ;;  %v5338_v16 = vadd.f32 %v5323_v9, %v576_v11 }
  0x9c   : > { %v602_v17 = vpop.f32.mrf.mxu1  ;;  %2192 = vmax.xlane.f32.xlu1 %v2191_v14  ;;  %v5348_v20 = vadd.f32 %v5331_v13, %v550_v12 }
  0x9d   : > { %v2197_v19 = vsel %vm448_vm0, %v5338_v16, -inf  ;;  %v5356_v22 = vadd.f32 %v5343_v18, %v602_v17 }
  0x9e   : > { %2189 = vmax.xlane.f32.xlu0 %v2188_v15  ;;  %2198 = vmax.xlane.f32.xlu2 %v2197_v19  ;;  %v2194_v25 = vsel %vm448_vm0, %v5348_v20, -inf }
  0x9f   : > { %v2200_v30 = vsel %vm448_vm0, %v5356_v22, -inf }
  0xa0   : > { %v628_v23 = vpop.f32.mrf.mxu2 }
  0xa1   : > { %v5359_v24 = vadd.f32 %v5353_v21, %v628_v23 }
  0xa2   : > { %v680_v28 = vpop.f32.mrf.mxu0 }
  0xa3   : > { %v654_v26 = vpop.f32.mrf.mxu3  ;;  %v2203_v29 = vsel %vm448_vm0, %v5359_v24, -inf  ;;  %v5376_v33 = vadd.f32 %v5293_v61, %v680_v28 }
  0xa4   : > { %2195 = vmax.xlane.f32.xlu1 %v2194_v25  ;;  %v706_v31 = vpop.f32.mrf.mxu1  ;;  %v5373_v32 = vadd.f32 %v5366_v27, %v654_v26 }
  0xa5   : > { %v5379_v34 = vadd.f32 %v5302_v1, %v706_v31  ;;  %v2209_v39 = vsel %vm448_vm0, %v5376_v33, -inf }
  0xa6   : > { %2204 = vmax.xlane.f32.xlu0 %v2203_v29  ;;  %2201 = vmax.xlane.f32.xlu2 %v2200_v30  ;;  %v2206_v35 = vsel %vm448_vm0, %v5373_v32, -inf }
  0xa7   : > { %v2212_v38 = vsel %vm448_vm0, %v5379_v34, -inf }
  0xa8   : > { %v732_v36 = vpop.f32.mrf.mxu2 }
  0xa9   : > { %v5388_v41 = vadd.f32 %v5313_v5, %v732_v36 }
  0xaa   : > { %v784_v40 = vpop.f32.mrf.mxu0 }
  0xab   : > { %v758_v37 = vpop.f32.mrf.mxu3  ;;  %v5394_v43 = vadd.f32 %v5323_v9, %v784_v40  ;;  %v2215_v44 = vsel %vm448_vm0, %v5388_v41, -inf }
  0xac   : > { %2207 = vmax.xlane.f32.xlu1 %v2206_v35  ;;  %v5391_v42 = vadd.f32 %v5331_v13, %v758_v37  ;;  %v810_v45 = vpop.f32.mrf.mxu1 }
  0xad   : > { %v2221_v48 = vsel %vm448_vm0, %v5394_v43, -inf  ;;  %v5403_v50 = vadd.f32 %v5343_v18, %v810_v45 }
  0xae   : > { %2213 = vmax.xlane.f32.xlu0 %v2212_v38  ;;  %2210 = vmax.xlane.f32.xlu2 %v2209_v39  ;;  %v2218_v47 = vsel %vm448_vm0, %v5391_v42, -inf }
  0xaf   : > { %v2224_v54 = vsel %vm448_vm0, %v5403_v50, -inf }
  0xb0   : > { %v836_v46 = vpop.f32.mrf.mxu2 }
  0xb1   : > { %v5406_v52 = vadd.f32 %v5353_v21, %v836_v46 }
  0xb2   : > { %v888_v51 = vpop.f32.mrf.mxu0 }
  0xb3   : > { %v862_v49 = vpop.f32.mrf.mxu3  ;;  %v2227_v56 = vsel %vm448_vm0, %v5406_v52, -inf  ;;  %v5418_v59 = vadd.f32 %v5293_v61, %v888_v51 }
  0xb4   : > { %2216 = vmax.xlane.f32.xlu1 %v2215_v44  ;;  %v5409_v53 = vadd.f32 %v5366_v27, %v862_v49  ;;  %v914_v55 = vpop.f32.mrf.mxu1 }
  0xb5   : > { %v5421_v62 = vadd.f32 %v5302_v1, %v914_v55  ;;  %v2233_v2 = vsel %vm448_vm0, %v5418_v59, -inf }
  0xb6   : > { %2219 = vmax.xlane.f32.xlu2 %v2218_v47  ;;  %2222 = vmax.xlane.f32.xlu0 %v2221_v48  ;;  %v2230_v57 = vsel %vm448_vm0, %v5409_v53, -inf }
  0xb7   : > { %v2236_v4 = vsel %vm448_vm0, %v5421_v62, -inf }
  0xb8   : > { %v940_v58 = vpop.f32.mrf.mxu2 }
  0xb9   : > { %v5424_v0 = vadd.f32 %v5313_v5, %v940_v58 }
  0xba   : > { %v992_v60 = vpop.f32.mrf.mxu0 }
  0xbb   : > { %v966_v3 = vpop.f32.mrf.mxu3  ;;  %v2239_v6 = vsel %vm448_vm0, %v5424_v0, -inf  ;;  %v5436_v12 = vadd.f32 %v5323_v9, %v992_v60 }
  0xbc   : > { %2225 = vmax.xlane.f32.xlu1 %v2224_v54  ;;  %v1018_v8 = vpop.f32.mrf.mxu1  ;;  %v5433_v11 = vadd.f32 %v5331_v13, %v966_v3 }
  0xbd   : > { %v5439_v14 = vadd.f32 %v5343_v18, %v1018_v8  ;;  %v2245_v26 = vsel %vm448_vm0, %v5436_v12, -inf }
  0xbe   : > { %2228 = vmax.xlane.f32.xlu2 %v2227_v56  ;;  %2231 = vmax.xlane.f32.xlu0 %v2230_v57  ;;  %v2242_v19 = vsel %vm448_vm0, %v5433_v11, -inf }
  0xbf   : > { %v2248_v25 = vsel %vm448_vm0, %v5439_v14, -inf }
  0xc0   : > { %v1044_v15 = vpop.f32.mrf.mxu2 }
  0xc1   : > { %v5448_v28 = vadd.f32 %v5353_v21, %v1044_v15 }
  0xc2   : > { %v1096_v17 = vpop.f32.mrf.mxu0 }
  0xc3   : > { %v1070_v23 = vpop.f32.mrf.mxu3  ;;  %v5454_v30 = vadd.f32 %v5293_v61, %v1096_v17  ;;  %v2251_v36 = vsel %vm448_vm0, %v5448_v28, -inf }
  0xc4   : > { %2234 = vmax.xlane.f32.xlu1 %v2233_v2  ;;  %v5451_v29 = vadd.f32 %v5366_v27, %v1070_v23  ;;  %v1122_v31 = vpop.f32.mrf.mxu1 }
  0xc5   : > { %v2257_v39 = vsel %vm448_vm0, %v5454_v30, -inf  ;;  %v5463_v44 = vadd.f32 %v5302_v1, %v1122_v31 }
  0xc6   : > { %2237 = vmax.xlane.f32.xlu2 %v2236_v4  ;;  %2240 = vmax.xlane.f32.xlu0 %v2239_v6  ;;  %v2254_v38 = vsel %vm448_vm0, %v5451_v29, -inf }
  0xc7   : > { %v2260_v47 = vsel %vm448_vm0, %v5463_v44, -inf }
  0xc8   : > { %v1148_v35 = vpop.f32.mrf.mxu2 }
  0xc9   : > { %v5466_v45 = vadd.f32 %v5313_v5, %v1148_v35 }
  0xca   : > { %v1200_v37 = vpop.f32.mrf.mxu0 }
  0xcb   : > { %v1174_v40 = vpop.f32.mrf.mxu3  ;;  %v2263_v51 = vsel %vm448_vm0, %v5466_v45, -inf  ;;  %v5484_v58 = vadd.f32 %v5323_v9, %v1200_v37 }
  0xcc   : > { %2243 = vmax.xlane.f32.xlu1 %v2242_v19  ;;  %v5469_v46 = vadd.f32 %v5331_v13, %v1174_v40  ;;  %v1226_v48 = vpop.f32.mrf.mxu1 }
  0xcd   : > { %v5478_v56 = vadd.f32 %v5343_v18, %v1226_v48  ;;  %v2269_v8 = vsel %vm448_vm0, %v5484_v58, -inf }
  0xce   : > { %2249 = vmax.xlane.f32.xlu0 %v2248_v25  ;;  %2246 = vmax.xlane.f32.xlu2 %v2245_v26  ;;  %v2266_v54 = vsel %vm448_vm0, %v5469_v46, -inf }
  0xcf   : > { %6554 = vst [vmem:[#allocation2_spill] sm:$0xff] %v5478_v56  ;;  %v2272_v60 = vsel %vm448_vm0, %v5478_v56, -inf }
  0xd0   : > { %v1252_v49 = vpop.f32.mrf.mxu2 }
  0xd1   : > { %v5499_v19 = vadd.f32 %v5353_v21, %v1252_v49 }
  0xd2   : > { %v1304_v55 = vpop.f32.mrf.mxu0 }
  0xd3   : > { %v5481_v57 = vadd.f32 %v5293_v61, %v1304_v55  ;;  %v1278_v2 = vpop.f32.mrf.mxu3 }
  0xd4   : > { %2252 = vmax.xlane.f32.xlu1 %v2251_v36  ;;  %v1330_v3 = vpop.f32.mrf.mxu1  ;;  %v5493_v15 = vadd.f32 %v5366_v27, %v1278_v2  ;;  %v2275_v36 = vsel %vm448_vm0, %v5499_v19, -inf }
  0xd5   : > { %v2281_v4 = vsel %vm448_vm0, %v5481_v57, -inf }
  0xd6   : > { %2255 = vmax.xlane.f32.xlu2 %v2254_v38  ;;  %2258 = vmax.xlane.f32.xlu0 %v2257_v39  ;;  %6555 = vst [vmem:[#allocation3_spill] sm:$0xff] %v5493_v15  ;;  %v2278_v23 = vsel %vm448_vm0, %v5493_v15, -inf  ;;  %v5514_v39 = vadd.f32 %v5302_v1, %v1330_v3 }
  0xd8   : > { %v1356_v6 = vpop.f32.mrf.mxu2  ;;  %6559 = vst [vmem:[#allocation7_spill] sm:$0xff] %v5514_v39 }
  0xd9   : > { %v5496_v17 = vadd.f32 %v5313_v5, %v1356_v6 }
  0xda   : > { %v1408_v25 = vpop.f32.mrf.mxu0 }
  0xdb   : > { %6556 = vst [vmem:[#allocation4_spill] sm:$0xff] %v5496_v17  ;;  %v1382_v26 = vpop.f32.mrf.mxu3  ;;  %v2287_v31 = vsel %vm448_vm0, %v5496_v17, -inf  ;;  %v5508_v37 = vadd.f32 %v5323_v9, %v1408_v25 }
  0xdc   : > { %2261 = vmax.xlane.f32.xlu1 %v2260_v47  ;;  %v1434_v35 = vpop.f32.mrf.mxu1  ;;  %v5529_v2 = vadd.f32 %v5331_v13, %v1382_v26 }
  0xdd   : > { %6557 = vst [vmem:[#allocation5_spill] sm:$0xff] %v5508_v37  ;;  %v5511_v38 = vadd.f32 %v5343_v18, %v1434_v35  ;;  %v2293_v40 = vsel %vm448_vm0, %v5508_v37, -inf }
  0xde   : > { %2264 = vmax.xlane.f32.xlu2 %v2263_v51  ;;  %2267 = vmax.xlane.f32.xlu0 %v2266_v54  ;;  %v2284_v54 = vsel %vm448_vm0, %v5514_v39, -inf  ;;  %6562 = vst [vmem:[#allocation10_spill] sm:$0xff] %v5529_v2  ;;  %v2290_v25 = vsel %vm448_vm0, %v5529_v2, -inf }
  0xdf   : > { %6558 = vst [vmem:[#allocation6_spill] sm:$0xff] %v5511_v38  ;;  %v2296_v49 = vsel %vm448_vm0, %v5511_v38, -inf }
  0xe0   : > { %v1460_v47 = vpop.f32.mrf.mxu2 }
  0xe1   : > { %v5523_v55 = vadd.f32 %v5353_v21, %v1460_v47 }
  0xe2   : > { %v1512_v48 = vpop.f32.mrf.mxu0 }
  0xe3   : > { %v1486_v51 = vpop.f32.mrf.mxu3  ;;  %6560 = vst [vmem:[#allocation8_spill] sm:$0xff] %v5523_v55  ;;  %v2299_v3 = vsel %vm448_vm0, %v5523_v55, -inf  ;;  %v5544_v35 = vadd.f32 %v5293_v61, %v1512_v48 }
  0xe4   : > { %2273 = vmax.xlane.f32.xlu1 %v2272_v60  ;;  %v5526_v60 = vadd.f32 %v5366_v27, %v1486_v51 }
  0xe5   : > { %6565 = vst [vmem:[#allocation13_spill] sm:$0xff] %v5544_v35 }
  0xe6   : > { %2270 = vmax.xlane.f32.xlu0 %v2269_v8  ;;  %2282 = vmax.xlane.f32.xlu2 %v2281_v4  ;;  %6561 = vst [vmem:[#allocation9_spill] sm:$0xff] %v5526_v60  ;;  %v1538_v4 = vpop.f32.mrf.mxu1  ;;  %v2302_v8 = vsel %vm448_vm0, %v5526_v60, -inf }
  0xe8   : > { %v1564_v6 = vpop.f32.mrf.mxu2 }
  0xec   : > { %2279 = vmax.xlane.f32.xlu1 %v2278_v23  ;;  %v1616_v23 = vpop.f32.mrf.mxu0 }
  0xed   : > { %v5541_v26 = vadd.f32 %v5323_v9, %v1616_v23 }
  0xee   : > { %2276 = vmax.xlane.f32.xlu0 %v2275_v36  ;;  %2288 = vmax.xlane.f32.xlu2 %v2287_v31  ;;  %v5538_v31 = vadd.f32 %v5302_v1, %v1538_v4  ;;  %v1642_v47 = vpop.f32.mrf.mxu1  ;;  %v5559_v4 = vadd.f32 %v5313_v5, %v1564_v6 }
  0xef   : > { %6564 = vst [vmem:[#allocation12_spill] sm:$0xff] %v5541_v26 }
  0xf0   : > { %6563 = vst [vmem:[#allocation11_spill] sm:$0xff] %v5538_v31  ;;  %v2308_v36 = vsel %vm448_vm0, %v5538_v31, -inf  ;;  %v1668_v51 = vpop.f32.mrf.mxu2 }
  0xf1   : > { %v5556_v48 = vadd.f32 %v5353_v21, %v1668_v51  ;;  %6568 = vst [vmem:[#allocation16_spill] sm:$0xff] %v5559_v4 }
  0xf3   : > { %6567 = vst [vmem:[#allocation15_spill] sm:$0xff] %v5556_v48 }
  0xf4   : > { %2294 = vmax.xlane.f32.xlu1 %v2293_v40  ;;  %v1590_v40 = vpop.f32.mrf.mxu3 }
  0xf6   : > { %2285 = vmax.xlane.f32.xlu0 %v2284_v54  ;;  %2297 = vmax.xlane.f32.xlu2 %v2296_v49  ;;  %v2317_v49 = vsel %vm448_vm0, %v5541_v26, -inf  ;;  %v2305_v54 = vsel %vm448_vm0, %v5544_v35, -inf  ;;  %v2323_v26 = vsel %vm448_vm0, %v5556_v48, -inf  ;;  %v5578_v35 = vadd.f32 %v5343_v18, %v1642_v47 }
  0xf8   : > { %6571 = vst [vmem:[#allocation19_spill] sm:$0xff] %v5578_v35 }
  0xfc   : > { %2300 = vmax.xlane.f32.xlu1 %v2299_v3  ;;  %v5553_v3 = vadd.f32 %v5331_v13, %v1590_v40  ;;  %v1746_v40 = vpop.f32.mrf.mxu1 }
  0xfe   : > { %2291 = vmax.xlane.f32.xlu0 %v2290_v25  ;;  %2303 = vmax.xlane.f32.xlu2 %v2302_v8  ;;  %6566 = vst [vmem:[#allocation14_spill] sm:$0xff] %v5553_v3  ;;  %v2314_v23 = vsel %vm448_vm0, %v5553_v3, -inf  ;;  %v1720_v25 = vpop.f32.mrf.mxu0 }
  0xff   : > { %v5570_v51 = vadd.f32 %v5293_v61, %v1720_v25 }
 0x101   : > { %6569 = vst [vmem:[#allocation17_spill] sm:$0xff] %v5570_v51  ;;  %v2329_v48 = vsel %vm448_vm0, %v5570_v51, -inf }
 0x104   : > { %2309 = vmax.xlane.f32.xlu1 %v2308_v36  ;;  %v1694_v36 = vpop.f32.mrf.mxu3 }
 0x105   : > { %v5599_v51 = vadd.f32 %v5366_v27, %v1694_v36 }
 0x106   : > { %2306 = vmax.xlane.f32.xlu0 %v2305_v54  ;;  %2318 = vmax.xlane.f32.xlu2 %v2317_v49  ;;  %v2311_v49 = vsel %vm448_vm0, %v5559_v4, -inf  ;;  %v5575_v54 = vadd.f32 %v5302_v1, %v1746_v40  ;;  %v1772_v4 = vpop.f32.mrf.mxu2  ;;  %v1824_v25 = vpop.f32.mrf.mxu0  ;;  %v2320_v40 = vsel %vm448_vm0, %v5578_v35, -inf }
 0x107   : > { %v5591_v47 = vadd.f32 %v5313_v5, %v1772_v4  ;;  %6574 = vst [vmem:[#allocation22_spill] sm:$0xff] %v5599_v51  ;;  %v1850_v35 = vpop.f32.mrf.mxu1 }
 0x108   : > { %6570 = vst [vmem:[#allocation18_spill] sm:$0xff] %v5575_v54  ;;  %v5612_v36 = vadd.f32 %v5343_v18, %v1850_v35 }
 0x109   : > { %v5561_v8 = vpop.xlane.xlu0 %2186  ;;  %6572 = vst [vmem:[#allocation20_spill] sm:$0xff] %v5591_v47 }
 0x10a   : > { %6575 = vst [vmem:[#allocation23_spill] sm:$0xff] %v5612_v36 }
 0x10c   : > { %2315 = vmax.xlane.f32.xlu1 %v2314_v23 }
 0x10e   : > { %2312 = vmax.xlane.f32.xlu0 %v2311_v49  ;;  %2324 = vmax.xlane.f32.xlu2 %v2323_v26  ;;  %v2332_v26 = vsel %vm448_vm0, %v5575_v54, -inf  ;;  %v1798_v49 = vpop.f32.mrf.mxu3  ;;  %v2335_v54 = vsel %vm448_vm0, %v5591_v47, -inf  ;;  %v1876_v4 = vpop.f32.mrf.mxu2  ;;  %v5620_v47 = vadd.f32 %v5323_v9, %v1824_v25 }
 0x10f   : > { %v5572_v6 = vpop.xlane.xlu1 %2192  ;;  %v5596_v38 = vadd.f32 %v5331_v13, %v1798_v49  ;;  %v2326_v49 = vsel %vm448_vm0, %v5599_v51, -inf  ;;  %v1954_v35 = vpop.f32.mrf.mxu1 }
 0x110   : > { %6577 = vst [vmem:[#allocation25_spill] sm:$0xff] %v5620_v47 }
 0x111   : > { %v5580_v3 = vpop.xlane.xlu0 %2189  ;;  %v5582_v23 = vpop.xlane.xlu2 %2198  ;;  %6573 = vst [vmem:[#allocation21_spill] sm:$0xff] %v5596_v38 }
 0x114   : > { %2330 = vmax.xlane.f32.xlu1 %v2329_v48 }
 0x116   : > { %2321 = vmax.xlane.f32.xlu0 %v2320_v40  ;;  %2333 = vmax.xlane.f32.xlu2 %v2332_v26  ;;  %v2338_v26 = vsel %vm448_vm0, %v5596_v38, -inf  ;;  %v1928_v40 = vpop.f32.mrf.mxu0  ;;  %v2344_v38 = vsel %vm448_vm0, %v5612_v36, -inf  ;;  %v1902_v51 = vpop.f32.mrf.mxu3  ;;  %v5641_v36 = vadd.f32 %v5353_v21, %v1876_v4 }
 0x117   : > { %v5593_v31 = vpop.xlane.xlu1 %2195  ;;  %v5617_v2 = vadd.f32 %v5293_v61, %v1928_v40  ;;  %v2341_v61 = vsel %vm448_vm0, %v5620_v47, -inf  ;;  %v5633_v25 = vadd.f32 %v5366_v27, %v1902_v51 }
 0x119   : > { %v5601_v60 = vpop.xlane.xlu0 %2204  ;;  %v5603_v48 = vpop.xlane.xlu2 %2201  ;;  %6576 = vst [vmem:[#allocation24_spill] sm:$0xff] %v5617_v2 }
 0x11a   : > { %6578 = vst [vmem:[#allocation26_spill] sm:$0xff] %v5633_v25 }
 0x11c   : > { %2336 = vmax.xlane.f32.xlu1 %v2335_v54 }
 0x11e   : > { %2327 = vmax.xlane.f32.xlu0 %v2326_v49  ;;  %2339 = vmax.xlane.f32.xlu2 %v2338_v26  ;;  %v2353_v26 = vsel %vm448_vm0, %v5617_v2, -inf  ;;  %v1980_v49 = vpop.f32.mrf.mxu2  ;;  %v2350_v2 = vsel %vm448_vm0, %v5633_v25, -inf  ;;  %v2032_v47 = vpop.f32.mrf.mxu0  ;;  %v5662_v25 = vadd.f32 %v5302_v1, %v1954_v35  ;;  %v2378_v1 = vsub.f32 %v5317_v7, %v5580_v3 }
 0x11f   : > { %v5614_v55 = vpop.xlane.xlu1 %2207  ;;  %v5638_v15 = vadd.f32 %v5313_v5, %v1980_v49  ;;  %v2006_v51 = vpop.f32.mrf.mxu3  ;;  %v2347_v5 = vsel %vm448_vm0, %v5641_v36, -inf  ;;  %v5654_v4 = vadd.f32 %v5323_v9, %v2032_v47  ;;  %v2379_v9 = vsub.f32 %v5326_v10, %v5572_v6 }
 0x120   : > { %v5689_v7 = vadd.f32 %v5331_v13, %v2006_v51 }
 0x121   : > { %v5622_v37 = vpop.xlane.xlu0 %2213  ;;  %v5624_v54 = vpop.xlane.xlu2 %2210  ;;  %6579 = vst [vmem:[#allocation27_spill] sm:$0xff] %v5638_v15 }
 0x122   : > { %6580 = vst [vmem:[#allocation28_spill] sm:$0xff] %v5654_v4  ;;  %v2385_v13 = vsub.f32 %v5376_v33, %v5624_v54  ;;  %v2362_v51 = vsel %vm448_vm0, %v5689_v7, -inf  ;;  %v2383_v54 = vsub.f32 %v5359_v24, %v5601_v60 }
 0x124   : > { %2345 = vmax.xlane.f32.xlu1 %v2344_v38 }
 0x126   : > { %2342 = vmax.xlane.f32.xlu0 %v2341_v61  ;;  %2354 = vmax.xlane.f32.xlu2 %v2353_v26  ;;  %v2359_v26 = vsel %vm448_vm0, %v5638_v15, -inf  ;;  %v2058_v61 = vpop.f32.mrf.mxu1  ;;  %v2365_v15 = vsel %vm448_vm0, %v5654_v4, -inf  ;;  %v2084_v47 = vpop.f32.mrf.mxu2  ;;  %v2445_v4 = vmul.f32 1.442695, %v2379_v9  ;;  %v2381_v9 = vsub.f32 %v5338_v16, %v5582_v23 }
 0x127   : > { %v5635_v40 = vpop.xlane.xlu1 %2216  ;;  %v5659_v17 = vadd.f32 %v5343_v18, %v2058_v61  ;;  %v2110_v35 = vpop.f32.mrf.mxu3  ;;  %v2356_v61 = vsel %vm448_vm0, %v5662_v25, -inf }
 0x128   : > { %4730 = vpow2.f32 %v2445_v4 }
 0x129   : > { %v5643_v39 = vpop.xlane.xlu2 %2219  ;;  %v5645_v38 = vpop.xlane.xlu0 %2222  ;;  %v2368_v18 = vsel %vm448_vm0, %v5659_v17, -inf }
 0x12c   : > { %2351 = vmax.xlane.f32.xlu1 %v2350_v2 }
 0x12e   : > { %2348 = vmax.xlane.f32.xlu0 %v2347_v5  ;;  %2360 = vmax.xlane.f32.xlu2 %v2359_v26  ;;  %v2377_v26 = vsub.f32 %v5297_v63, %v5561_v8  ;;  %v5681_v5 = vadd.f32 %v5353_v21, %v2084_v47  ;;  %v5686_v63 = vadd.f32 %v5366_v27, %v2110_v35  ;;  %v2443_v8 = vmul.f32 1.442695, %v2378_v1  ;;  %v5709_v23 = vpop.eup %4730 }
 0x12f   : > { %v5656_v49 = vpop.xlane.xlu1 %2225  ;;  %v2380_v27 = vsub.f32 %v5348_v20, %v5593_v31  ;;  %v2457_v20 = vmul.f32 1.442695, %v2385_v13  ;;  %v2382_v35 = vsub.f32 %v5356_v22, %v5603_v48  ;;  %v2386_v13 = vsub.f32 %v5379_v34, %v5622_v37 }
 0x130   : > { %v2441_v10 = vmul.f32 1.442695, %v2377_v26  ;;  %v2371_v21 = vsel %vm448_vm0, %v5681_v5, -inf  ;;  %v2374_v47 = vsel %vm448_vm0, %v5686_v63, -inf  ;;  %v2449_v26 = vmul.f32 1.442695, %v2381_v9 }
 0x131   : > { %v5664_v56 = vpop.xlane.xlu2 %2228  ;;  %v5666_v2 = vpop.xlane.xlu0 %2231  ;;  %v2447_v4 = vmul.f32 1.442695, %v2380_v27  ;;  %v2453_v9 = vmul.f32 1.442695, %v2383_v54  ;;  %v2451_v24 = vmul.f32 1.442695, %v2382_v35 }
 0x132   : > { %4732 = vpow2.f32 %v2441_v10  ;;  %v2387_v10 = vsub.f32 %v5388_v41, %v5635_v40  ;;  %v2459_v35 = vmul.f32 1.442695, %v2386_v13 }
 0x133   : > { %4734 = vpow2.f32 %v2443_v8 }
 0x134   : > { %2366 = vmax.xlane.f32.xlu1 %v2365_v15  ;;  %4736 = vpow2.f32 %v2449_v26  ;;  %v2461_v48 = vmul.f32 1.442695, %v2387_v10 }
 0x135   : > { %4738 = vpow2.f32 %v2447_v4  ;;  %v2390_v4 = vsub.f32 %v5403_v50, %v5656_v49 }
 0x136   : > { %2357 = vmax.xlane.f32.xlu0 %v2356_v61  ;;  %2369 = vmax.xlane.f32.xlu2 %v2368_v18  ;;  %v2575_v61 = vsel %vm448_vm0, %v5709_v23, 0.0  ;;  %4740 = vpow2.f32 %v2457_v20 }
 0x137   : > { %v5683_v6 = vpop.xlane.xlu1 %2234  ;;  %4742 = vpow2.f32 %v2453_v9 }
 0x138   : > { %v5711_v31 = vpop.eup %4732  ;;  %4744 = vpow2.f32 %v2451_v24  ;;  %v2392_v24 = vsub.f32 %v5409_v53, %v5666_v2 }
 0x139   : > { %v5691_v15 = vpop.xlane.xlu2 %2237  ;;  %v5693_v3 = vpop.xlane.xlu0 %2240  ;;  %4746 = vpow2.f32 %v2461_v48 }
 0x13a   : > { %v5717_v33 = vpop.eup %4734  ;;  %4748 = vpow2.f32 %v2459_v35 }
 0x13b   : > { %v2572_v8 = vsel %vm448_vm0, %v5717_v33, 0.0  ;;  %v5733_v22 = vpop.eup %4736 }
 0x13c   : > { %2372 = vmax.xlane.f32.xlu1 %v2371_v21  ;;  %v2569_v21 = vsel %vm448_vm0, %v5711_v31, 0.0  ;;  %v5735_v27 = vpop.eup %4738  ;;  %v2581_v26 = vsel %vm448_vm0, %v5733_v22, 0.0 }
 0x13d   : > { %v5741_v40 = vpop.eup %4740  ;;  %v2578_v54 = vsel %vm448_vm0, %v5735_v27, 0.0 }
 0x13e   : > { %2363 = vmax.xlane.f32.xlu0 %v2362_v51  ;;  %2375 = vmax.xlane.f32.xlu2 %v2374_v47  ;;  %v2384_v51 = vsub.f32 %v5373_v32, %v5614_v55  ;;  %v2593_v20 = vsel %vm448_vm0, %v5741_v40, 0.0  ;;  %v5757_v32 = vpop.eup %4742  ;;  %v2467_v55 = vmul.f32 1.442695, %v2390_v4 }
 0x13f   : > { %v5707_v16 = vpop.xlane.xlu1 %2243  ;;  %v2587_v9 = vsel %vm448_vm0, %v5757_v32, 0.0 }
 0x140   : > { %v2455_v34 = vmul.f32 1.442695, %v2384_v51 }
 0x141   : > { %v5713_v18 = vpop.xlane.xlu0 %2249  ;;  %v5715_v1 = vpop.xlane.xlu2 %2246 }
 0x142   : > { %4750 = vpow2.f32 %v2455_v34  ;;  %v2397_v34 = vsub.f32 %v5436_v12, %v5715_v1 }
 0x143   : > { %4752 = vpow2.f32 %v2467_v55 }
 0x144   : > { %2576 = vadd.xlane.f32.xlu1 %v2575_v61  ;;  %v5759_v61 = vpop.eup %4744 }
 0x145   : > { %v5765_v49 = vpop.eup %4746  ;;  %v2584_v13 = vsel %vm448_vm0, %v5759_v61, 0.0 }
 0x146   : > { %2573 = vadd.xlane.f32.xlu0 %v2572_v8  ;;  %2570 = vadd.xlane.f32.xlu2 %v2569_v21  ;;  %v2388_v8 = vsub.f32 %v5391_v42, %v5643_v39  ;;  %v2389_v21 = vsub.f32 %v5394_v43, %v5645_v38  ;;  %v2599_v48 = vsel %vm448_vm0, %v5765_v49, 0.0  ;;  %v5781_v43 = vpop.eup %4748  ;;  %v2471_v38 = vmul.f32 1.442695, %v2392_v24 }
 0x147   : > { %v5731_v60 = vpop.xlane.xlu1 %2252  ;;  %v2596_v35 = vsel %vm448_vm0, %v5781_v43, 0.0 }
 0x148   : > { %v2463_v51 = vmul.f32 1.442695, %v2388_v8  ;;  %v2465_v42 = vmul.f32 1.442695, %v2389_v21 }
 0x149   : > { %v5737_v47 = vpop.xlane.xlu2 %2255  ;;  %v5739_v41 = vpop.xlane.xlu0 %2258 }
 0x14a   : > { %4754 = vpow2.f32 %v2463_v51 }
 0x14b   : > { %4756 = vpow2.f32 %v2465_v42  ;;  %v2399_v42 = vsub.f32 %v5448_v28, %v5731_v60 }
 0x14c   : > { %2582 = vadd.xlane.f32.xlu1 %v2581_v26  ;;  %v5783_v26 = vpop.eup %4750  ;;  %4758 = vpow2.f32 %v2471_v38 }
 0x14d   : > { %v5789_v2 = vpop.eup %4752  ;;  %v2590_v8 = vsel %vm448_vm0, %v5783_v26, 0.0 }
 0x14e   : > { %2594 = vadd.xlane.f32.xlu0 %v2593_v20  ;;  %2579 = vadd.xlane.f32.xlu2 %v2578_v54  ;;  %v2393_v20 = vsub.f32 %v5418_v59, %v5683_v6  ;;  %v2391_v54 = vsub.f32 %v5406_v52, %v5664_v56  ;;  %v2608_v55 = vsel %vm448_vm0, %v5789_v2, 0.0  ;;  %v2481_v56 = vmul.f32 1.442695, %v2397_v34 }
 0x14f   : > { %v5755_v37 = vpop.xlane.xlu1 %2261 }
 0x150   : > { %v2473_v21 = vmul.f32 1.442695, %v2393_v20  ;;  %v2469_v59 = vmul.f32 1.442695, %v2391_v54  ;;  %v5805_v52 = vpop.eup %4754 }
 0x151   : > { %v5761_v10 = vpop.xlane.xlu2 %2264  ;;  %v5763_v50 = vpop.xlane.xlu0 %2267  ;;  %v2602_v51 = vsel %vm448_vm0, %v5805_v52, 0.0 }
 0x152   : > { %4760 = vpow2.f32 %v2473_v21 }
 0x153   : > { %4762 = vpow2.f32 %v2469_v59  ;;  %v2402_v59 = vsub.f32 %v5463_v44, %v5755_v37 }
 0x154   : > { %2588 = vadd.xlane.f32.xlu1 %v2587_v9  ;;  %v5807_v9 = vpop.eup %4756  ;;  %4764 = vpow2.f32 %v2481_v56 }
 0x155   : > { %v5813_v1 = vpop.eup %4758  ;;  %v2605_v20 = vsel %vm448_vm0, %v5807_v9, 0.0 }
 0x156   : > { %2600 = vadd.xlane.f32.xlu0 %v2599_v48  ;;  %2585 = vadd.xlane.f32.xlu2 %v2584_v13  ;;  %v2395_v48 = vsub.f32 %v5424_v0, %v5693_v3  ;;  %v2394_v13 = vsub.f32 %v5421_v62, %v5691_v15  ;;  %v2614_v38 = vsel %vm448_vm0, %v5813_v1, 0.0  ;;  %v2485_v15 = vmul.f32 1.442695, %v2399_v42 }
 0x157   : > { %v5779_v39 = vpop.xlane.xlu1 %2273 }
 0x158   : > { %v2477_v54 = vmul.f32 1.442695, %v2395_v48  ;;  %v2475_v0 = vmul.f32 1.442695, %v2394_v13  ;;  %v5829_v62 = vpop.eup %4760 }
 0x159   : > { %v5785_v4 = vpop.xlane.xlu0 %2270  ;;  %v5787_v53 = vpop.xlane.xlu2 %2282  ;;  %v2617_v21 = vsel %vm448_vm0, %v5829_v62, 0.0 }
 0x15a   : > { %4766 = vpow2.f32 %v2477_v54 }
 0x15b   : > { %4768 = vpow2.f32 %v2475_v0  ;;  %v2404_v0 = vsub.f32 %v5469_v46, %v5763_v50 }
 0x15c   : > { %2597 = vadd.xlane.f32.xlu1 %v2596_v35  ;;  %v5831_v35 = vpop.eup %4762  ;;  %4770 = vpow2.f32 %v2485_v15 }
 0x15d   : > { %v5837_v60 = vpop.eup %4764  ;;  %v2611_v48 = vsel %vm448_vm0, %v5831_v35, 0.0 }
 0x15e   : > { %2609 = vadd.xlane.f32.xlu0 %v2608_v55  ;;  %2591 = vadd.xlane.f32.xlu2 %v2590_v8  ;;  %v2398_v55 = vsub.f32 %v5439_v14, %v5713_v18  ;;  %v2396_v8 = vsub.f32 %v5433_v11, %v5707_v16  ;;  %v2629_v56 = vsel %vm448_vm0, %v5837_v60, 0.0  ;;  %v2491_v16 = vmul.f32 1.442695, %v2402_v59 }
 0x15f   : > { %v5803_v6 = vpop.xlane.xlu1 %2279 }
 0x160   : > { %v2483_v13 = vmul.f32 1.442695, %v2398_v55  ;;  %v2479_v14 = vmul.f32 1.442695, %v2396_v8  ;;  %v5853_v11 = vpop.eup %4766 }
 0x161   : > { %v5809_v24 = vpop.xlane.xlu0 %2276  ;;  %v5811_v12 = vpop.xlane.xlu2 %2288  ;;  %v2623_v54 = vsel %vm448_vm0, %v5853_v11, 0.0 }
 0x162   : > { %4772 = vpow2.f32 %v2483_v13 }
 0x163   : > { %4774 = vpow2.f32 %v2479_v14  ;;  %v2409_v14 = vsub.f32 %v5481_v57, %v5787_v53 }
 0x164   : > { %2603 = vadd.xlane.f32.xlu1 %v2602_v51  ;;  %v5855_v51 = vpop.eup %4768  ;;  %4776 = vpow2.f32 %v2491_v16 }
 0x165   : > { %v5861_v37 = vpop.eup %4770  ;;  %v2620_v55 = vsel %vm448_vm0, %v5855_v51, 0.0 }
 0x166   : > { %2615 = vadd.xlane.f32.xlu0 %v2614_v38  ;;  %2606 = vadd.xlane.f32.xlu2 %v2605_v20  ;;  %v2400_v38 = vsub.f32 %v5451_v29, %v5737_v47  ;;  %v2401_v20 = vsub.f32 %v5454_v30, %v5739_v41  ;;  %v2635_v15 = vsel %vm448_vm0, %v5861_v37, 0.0  ;;  %v2495_v41 = vmul.f32 1.442695, %v2404_v0 }
 0x167   : > { %v5827_v3 = vpop.xlane.xlu1 %2294 }
 0x168   : > { %v2487_v8 = vmul.f32 1.442695, %v2400_v38  ;;  %v2489_v29 = vmul.f32 1.442695, %v2401_v20  ;;  %v5877_v30 = vpop.eup %4772 }
 0x169   : > { %v5833_v34 = vpop.xlane.xlu0 %2285  ;;  %v5835_v28 = vpop.xlane.xlu2 %2297  ;;  %v2632_v13 = vsel %vm448_vm0, %v5877_v30, 0.0 }
 0x16a   : > { %4778 = vpow2.f32 %v2487_v8 }
 0x16b   : > { %4780 = vpow2.f32 %v2489_v29 }
 0x16c   : > { %2618 = vadd.xlane.f32.xlu1 %v2617_v21  ;;  %v5879_v21 = vpop.eup %4774  ;;  %4782 = vpow2.f32 %v2495_v41  ;;  %v6582_v41 = vld [vmem:[#allocation4_spill] sm:$0xff] }
 0x16d   : > { %v5885_v50 = vpop.eup %4776  ;;  %v2626_v38 = vsel %vm448_vm0, %v5879_v21, 0.0 }
 0x16e   : > { %2630 = vadd.xlane.f32.xlu0 %v2629_v56  ;;  %2612 = vadd.xlane.f32.xlu2 %v2611_v48  ;;  %v2405_v56 = vsub.f32 %v5484_v58, %v5785_v4  ;;  %v2403_v48 = vsub.f32 %v5466_v45, %v5761_v10  ;;  %v2644_v16 = vsel %vm448_vm0, %v5885_v50, 0.0  ;;  %v2505_v10 = vmul.f32 1.442695, %v2409_v14 }
 0x16f   : > { %v5851_v18 = vpop.xlane.xlu1 %2300 }
 0x170   : > { %v2497_v20 = vmul.f32 1.442695, %v2405_v56  ;;  %v2493_v58 = vmul.f32 1.442695, %v2403_v48  ;;  %v5901_v45 = vpop.eup %4778  ;;  %v2411_v56 = vsub.f32 %v6582_v41, %v5811_v12  ;;  %v6588_v41 = vld [vmem:[#allocation5_spill] sm:$0xff] }
 0x171   : > { %v5857_v42 = vpop.xlane.xlu0 %2291  ;;  %v5859_v44 = vpop.xlane.xlu2 %2303  ;;  %v2638_v29 = vsel %vm448_vm0, %v5901_v45, 0.0 }
 0x172   : > { %4784 = vpow2.f32 %v2497_v20 }
 0x173   : > { %4786 = vpow2.f32 %v2493_v58 }
 0x174   : > { %2624 = vadd.xlane.f32.xlu1 %v2623_v54  ;;  %v5903_v54 = vpop.eup %4780  ;;  %4788 = vpow2.f32 %v2505_v10  ;;  %v6586_v10 = vld [vmem:[#allocation7_spill] sm:$0xff] }
 0x175   : > { %v5909_v53 = vpop.eup %4782 }
 0x176   : > { %2636 = vadd.xlane.f32.xlu0 %v2635_v15  ;;  %2621 = vadd.xlane.f32.xlu2 %v2620_v55  ;;  %v2407_v15 = vsub.f32 %v5499_v19, %v5809_v24  ;;  %v6581_v55 = vld [vmem:[#allocation2_spill] sm:$0xff]  ;;  %v2650_v48 = vsel %vm448_vm0, %v5909_v53, 0.0 }
 0x177   : > { %v5875_v47 = vpop.xlane.xlu1 %2309  ;;  %v2406_v8 = vsub.f32 %v6581_v55, %v5779_v39  ;;  %v6587_v55 = vld [vmem:[#allocation3_spill] sm:$0xff] }
 0x178   : > { %v2501_v14 = vmul.f32 1.442695, %v2407_v15  ;;  %v5925_v39 = vpop.eup %4784  ;;  %v2410_v15 = vsub.f32 %v6586_v10, %v5833_v34 }
 0x179   : > { %v5881_v59 = vpop.xlane.xlu0 %2306  ;;  %v5883_v46 = vpop.xlane.xlu2 %2318  ;;  %v2499_v19 = vmul.f32 1.442695, %v2406_v8  ;;  %6583 = vst [vmem:[#allocation2_spill] sm:$0xff] %v5925_v39  ;;  %v2408_v8 = vsub.f32 %v6587_v55, %v5803_v6 }
 0x17a   : > { %4790 = vpow2.f32 %v2501_v14  ;;  %v2507_v14 = vmul.f32 1.442695, %v2410_v15 }
 0x17b   : > { %4792 = vpow2.f32 %v2499_v19  ;;  %v2503_v34 = vmul.f32 1.442695, %v2408_v8  ;;  %v6593_v8 = vld [vmem:[#allocation8_spill] sm:$0xff] }
 0x17c   : > { %2633 = vadd.xlane.f32.xlu1 %v2632_v13  ;;  %v2641_v13 = vsel %vm448_vm0, %v5903_v54, 0.0 }
 0x17e   : > { %2645 = vadd.xlane.f32.xlu0 %v2644_v16  ;;  %2627 = vadd.xlane.f32.xlu2 %v2626_v38  ;;  %v2509_v16 = vmul.f32 1.442695, %v2411_v56  ;;  %v5927_v38 = vpop.eup %4786  ;;  %v2413_v56 = vsub.f32 %v6588_v41, %v5827_v3  ;;  %v6592_v41 = vld [vmem:[#allocation10_spill] sm:$0xff] }
 0x17f   : > { %v5899_v4 = vpop.xlane.xlu1 %2315  ;;  %6584 = vst [vmem:[#allocation4_spill] sm:$0xff] %v5927_v38  ;;  %v5933_v58 = vpop.eup %4788  ;;  %v2412_v15 = vsub.f32 %v6592_v41, %v5857_v42 }
 0x180   : > { %6585 = vst [vmem:[#allocation29_spill] sm:$0xff] %v5933_v58  ;;  %4794 = vpow2.f32 %v2509_v16  ;;  %v5949_v6 = vpop.eup %4790  ;;  %v2513_v10 = vmul.f32 1.442695, %v2413_v56  ;;  %v6594_v56 = vld [vmem:[#allocation9_spill] sm:$0xff] }
 0x181   : > { %v5905_v0 = vpop.xlane.xlu0 %2312  ;;  %v5907_v57 = vpop.xlane.xlu2 %2324  ;;  %6589 = vst [vmem:[#allocation7_spill] sm:$0xff] %v5949_v6  ;;  %4796 = vpow2.f32 %v2507_v14 }
 0x182   : > { %v5951_v16 = vpop.eup %4792  ;;  %4798 = vpow2.f32 %v2503_v34 }
 0x183   : > { %6590 = vst [vmem:[#allocation3_spill] sm:$0xff] %v5951_v16  ;;  %4800 = vpow2.f32 %v2513_v10  ;;  %v2656_v14 = vsel %vm448_vm0, %v5951_v16, 0.0 }
 0x184   : > { %2639 = vadd.xlane.f32.xlu1 %v2638_v29  ;;  %v2653_v29 = vsel %vm448_vm0, %v5925_v39, 0.0 }
 0x186   : > { %2651 = vadd.xlane.f32.xlu0 %v2650_v48  ;;  %2642 = vadd.xlane.f32.xlu2 %v2641_v13  ;;  %v2665_v48 = vsel %vm448_vm0, %v5933_v58, 0.0  ;;  %v2647_v13 = vsel %vm448_vm0, %v5927_v38, 0.0  ;;  %v2416_v58 = vsub.f32 %v6594_v56, %v5859_v44  ;;  %v2511_v38 = vmul.f32 1.442695, %v2412_v15  ;;  %v6598_v56 = vld [vmem:[#allocation6_spill] sm:$0xff] }
 0x187   : > { %v5923_v24 = vpop.xlane.xlu1 %2330  ;;  %v2414_v15 = vsub.f32 %v6598_v56, %v5835_v28 }
 0x188   : > { %v2519_v10 = vmul.f32 1.442695, %v2416_v58  ;;  %4802 = vpow2.f32 %v2511_v38  ;;  %v6600_v58 = vld [vmem:[#allocation14_spill] sm:$0xff] }
 0x189   : > { %v5929_v20 = vpop.xlane.xlu0 %2321  ;;  %v5931_v12 = vpop.xlane.xlu2 %2333  ;;  %v2515_v28 = vmul.f32 1.442695, %v2414_v15  ;;  %v384_v15 = vld [vmem:[%s5999_s19] sm:$0xff] }
 0x18a   : > { %2907 = vmatpush.msra.mxu0 %v384_v15 }
 0x18c   : > { %2654 = vadd.xlane.f32.xlu1 %v2653_v29  ;;  %v5957_v29 = vpop.eup %4794 }
 0x18d   : > { %6591 = vst [vmem:[#allocation5_spill] sm:$0xff] %v5957_v29  ;;  %v2671_v39 = vsel %vm448_vm0, %v5957_v29, 0.0  ;;  %v2420_v29 = vsub.f32 %v6600_v58, %v5899_v4 }
 0x18e   : > { %2666 = vadd.xlane.f32.xlu0 %v2665_v48  ;;  %2648 = vadd.xlane.f32.xlu2 %v2647_v13  ;;  %v2415_v48 = vsub.f32 %v6593_v8, %v5851_v18  ;;  %v2659_v13 = vsel %vm448_vm0, %v5949_v6, 0.0  ;;  %v5973_v18 = vpop.eup %4796 }
 0x18f   : > { %v5947_v19 = vpop.xlane.xlu1 %2336  ;;  %6595 = vst [vmem:[#allocation10_spill] sm:$0xff] %v5973_v18  ;;  %v5975_v41 = vpop.eup %4798 }
 0x190   : > { %v2517_v42 = vmul.f32 1.442695, %v2415_v48  ;;  %6596 = vst [vmem:[#allocation8_spill] sm:$0xff] %v5975_v41  ;;  %v2662_v6 = vsel %vm448_vm0, %v5975_v41, 0.0  ;;  %v6605_v41 = vld [vmem:[#allocation16_spill] sm:$0xff] }
 0x191   : > { %v5953_v55 = vpop.xlane.xlu0 %2327  ;;  %v5955_v3 = vpop.xlane.xlu2 %2339 }
 0x192   : > { %4804 = vpow2.f32 %v2517_v42  ;;  %v2527_v42 = vmul.f32 1.442695, %v2420_v29  ;;  %v2419_v29 = vsub.f32 %v6605_v41, %v5905_v0 }
 0x193   : > { %4806 = vpow2.f32 %v2519_v10  ;;  %v386_v10 = vld [vmem:[%s5999_s19 + $0x10] sm:$0xff] }
 0x194   : > { %2660 = vadd.xlane.f32.xlu1 %v2659_v13  ;;  %v5981_v13 = vpop.eup %4800  ;;  %2953 = vmatpush.msra.mxu2 %v386_v10  ;;  %4808 = vpow2.f32 %v2515_v28  ;;  %v6606_v10 = vld [vmem:[#allocation19_spill] sm:$0xff]  ;;  %v2525_v0 = vmul.f32 1.442695, %v2419_v29  ;;  %v6610_v29 = vld [vmem:[#allocation12_spill] sm:$0xff] }
 0x195   : > { %6597 = vst [vmem:[#allocation9_spill] sm:$0xff] %v5981_v13  ;;  %v2677_v16 = vsel %vm448_vm0, %v5981_v13, 0.0  ;;  %v6003_v38 = vpop.eup %4802  ;;  %v2422_v13 = vsub.f32 %v6606_v10, %v5929_v20  ;;  %v6609_v10 = vld [vmem:[#allocation22_spill] sm:$0xff] }
 0x196   : > { %2672 = vadd.xlane.f32.xlu0 %v2671_v39  ;;  %2657 = vadd.xlane.f32.xlu2 %v2656_v14  ;;  %v6599_v39 = vld [vmem:[#allocation11_spill] sm:$0xff]  ;;  %v2668_v14 = vsel %vm448_vm0, %v5973_v18, 0.0  ;;  %6601 = vst [vmem:[#allocation6_spill] sm:$0xff] %v6003_v38  ;;  %v2674_v18 = vsel %vm448_vm0, %v6003_v38, 0.0 }
 0x197   : > { %v5971_v34 = vpop.xlane.xlu1 %2345  ;;  %v2418_v48 = vsub.f32 %v6599_v39, %v5875_v47 }
 0x198   : > { %v6006_v56 = vpop.eup %4804 }
 0x199   : > { %v5977_v44 = vpop.xlane.xlu0 %2342  ;;  %v5979_v8 = vpop.xlane.xlu2 %2354  ;;  %v2523_v47 = vmul.f32 1.442695, %v2418_v48  ;;  %6602 = vst [vmem:[#allocation11_spill] sm:$0xff] %v6006_v56  ;;  %v385_v48 = vld [vmem:[%s5999_s19 + $0x8] sm:$0xff]  ;;  %v2683_v28 = vsel %vm448_vm0, %v6006_v56, 0.0 }
 0x19a   : > { %v6012_v58 = vpop.eup %4806  ;;  %2930 = vmatpush.msra.mxu1 %v385_v48  ;;  %v6611_v56 = vld [vmem:[#allocation15_spill] sm:$0xff] }
 0x19b   : > { %6603 = vst [vmem:[#allocation14_spill] sm:$0xff] %v6012_v58  ;;  %4810 = vpow2.f32 %v2523_v47  ;;  %v2423_v38 = vsub.f32 %v6611_v56, %v5907_v57  ;;  %v390_v56 = vld [vmem:[%s5999_s19 + $0x30] sm:$0xff] }
 0x19c   : > { %2669 = vadd.xlane.f32.xlu1 %v2668_v14  ;;  %4812 = vpow2.f32 %v2527_v42  ;;  %v2531_v42 = vmul.f32 1.442695, %v2422_v13  ;;  %3045 = vmatpush.msrb.mxu2 %v390_v56 }
 0x19d   : > { %v2533_v57 = vmul.f32 1.442695, %v2423_v38 }
 0x19e   : > { %2678 = vadd.xlane.f32.xlu0 %v2677_v16  ;;  %2663 = vadd.xlane.f32.xlu2 %v2662_v6  ;;  %v6604_v16 = vld [vmem:[#allocation13_spill] sm:$0xff] }
 0x19f   : > { %v6001_v4 = vpop.xlane.xlu1 %2351  ;;  %v2417_v6 = vsub.f32 %v6604_v16, %v5881_v59  ;;  %v2686_v59 = vsel %vm448_vm0, %v6012_v58, 0.0  ;;  %v6030_v16 = vpop.eup %4808  ;;  %v2421_v58 = vsub.f32 %v6610_v29, %v5883_v46 }
 0x1a0   : > { %v2680_v13 = vsel %vm448_vm0, %v6030_v16, 0.0 }
 0x1a1   : > { %v6008_v39 = vpop.xlane.xlu0 %2348  ;;  %v6010_v14 = vpop.xlane.xlu2 %2360  ;;  %v2521_v47 = vmul.f32 1.442695, %v2417_v6  ;;  %v2424_v6 = vsub.f32 %v6609_v10, %v5953_v55  ;;  %v2529_v46 = vmul.f32 1.442695, %v2421_v58 }
 0x1a2   : > { %v6032_v15 = vpop.eup %4810 }
 0x1a3   : > { %6607 = vst [vmem:[#allocation13_spill] sm:$0xff] %v6032_v15  ;;  %v6038_v48 = vpop.eup %4812  ;;  %4814 = vpow2.f32 %v2521_v47  ;;  %v2692_v47 = vsel %vm448_vm0, %v6032_v15, 0.0  ;;  %v2535_v10 = vmul.f32 1.442695, %v2424_v6 }
 0x1a4   : > { %2675 = vadd.xlane.f32.xlu1 %v2674_v18  ;;  %6608 = vst [vmem:[#allocation16_spill] sm:$0xff] %v6038_v48  ;;  %4816 = vpow2.f32 %v2525_v0  ;;  %v2698_v55 = vsel %vm448_vm0, %v6038_v48, 0.0  ;;  %v6612_v0 = vld [vmem:[#allocation17_spill] sm:$0xff] }
 0x1a5   : > { %4818 = vpow2.f32 %v2531_v42 }
 0x1a6   : > { %2687 = vadd.xlane.f32.xlu0 %v2686_v59  ;;  %2684 = vadd.xlane.f32.xlu2 %v2683_v28  ;;  %v387_v59 = vld [vmem:[%s5999_s19 + $0x18] sm:$0xff]  ;;  %v388_v28 = vld [vmem:[%s5999_s19 + $0x20] sm:$0xff]  ;;  %4820 = vpow2.f32 %v2535_v10 }
 0x1a7   : > { %v6028_v41 = vpop.xlane.xlu1 %2366  ;;  %2976 = vmatpush.msra.mxu3 %v387_v59  ;;  %2999 = vmatpush.msrb.mxu0 %v388_v28  ;;  %v2425_v59 = vsub.f32 %v6612_v0, %v5923_v24  ;;  %v389_v24 = vld [vmem:[%s5999_s19 + $0x28] sm:$0xff]  ;;  %4822 = vpow2.f32 %v2529_v46 }
 0x1a8   : > { %3022 = vmatpush.msrb.mxu1 %v389_v24  ;;  %4824 = vpow2.f32 %v2533_v57 }
 0x1a9   : > { %v6034_v20 = vpop.xlane.xlu0 %2357  ;;  %v6036_v18 = vpop.xlane.xlu2 %2369 }
 0x1aa   : > { %v6058_v29 = vpop.eup %4814 }
 0x1ab   : > { %v6061_v42 = vpop.eup %4816  ;;  %v2689_v38 = vsel %vm448_vm0, %v6058_v29, 0.0 }
 0x1ac   : > { %2681 = vadd.xlane.f32.xlu1 %v2680_v13  ;;  %v6613_v13 = vld [vmem:[#allocation18_spill] sm:$0xff]  ;;  %v6069_v58 = vpop.eup %4818  ;;  %v2695_v56 = vsel %vm448_vm0, %v6061_v42, 0.0 }
 0x1ad   : > { %v2426_v48 = vsub.f32 %v6613_v13, %v5931_v12  ;;  %6614 = vst [vmem:[#allocation19_spill] sm:$0xff] %v6069_v58  ;;  %v2704_v13 = vsel %vm448_vm0, %v6069_v58, 0.0  ;;  %v6080_v46 = vpop.eup %4820  ;;  %v6620_v58 = vld [vmem:[#allocation23_spill] sm:$0xff] }
 0x1ae   : > { %2699 = vadd.xlane.f32.xlu0 %v2698_v55  ;;  %2693 = vadd.xlane.f32.xlu2 %v2692_v47  ;;  %v2537_v55 = vmul.f32 1.442695, %v2425_v59  ;;  %v6615_v47 = vld [vmem:[#allocation21_spill] sm:$0xff]  ;;  %6616 = vst [vmem:[#allocation22_spill] sm:$0xff] %v6080_v46  ;;  %v6617_v59 = vld [vmem:[#allocation20_spill] sm:$0xff] }
 0x1af   : > { %v6056_v28 = vpop.xlane.xlu1 %2372  ;;  %v2428_v0 = vsub.f32 %v6615_v47, %v5955_v3  ;;  %v2539_v12 = vmul.f32 1.442695, %v2426_v48  ;;  %v2427_v57 = vsub.f32 %v6617_v59, %v5947_v19  ;;  %v6084_v3 = vpop.eup %4822 }
 0x1b0   : > { %4826 = vpow2.f32 %v2537_v55  ;;  %6618 = vst [vmem:[#allocation12_spill] sm:$0xff] %v6084_v3  ;;  %v6086_v47 = vpop.eup %4824  ;;  %v391_v55 = vld [vmem:[%s5999_s19 + $0x38] sm:$0xff] }
 0x1b1   : > { %v6065_v15 = vpop.xlane.xlu0 %2363  ;;  %v6067_v6 = vpop.xlane.xlu2 %2375  ;;  %v2543_v24 = vmul.f32 1.442695, %v2428_v0  ;;  %6619 = vst [vmem:[#allocation15_spill] sm:$0xff] %v6086_v47  ;;  %3068 = vmatpush.msrb.mxu3 %v391_v55  ;;  %v2541_v19 = vmul.f32 1.442695, %v2427_v57  ;;  %v6621_v0 = vld [vmem:[#allocation26_spill] sm:$0xff] }
 0x1b2   : > { %v2707_v59 = vsel %vm448_vm0, %v6086_v47, 0.0  ;;  %v6622_v57 = vld [vmem:[#allocation25_spill] sm:$0xff] }
 0x1b4   : > { %2690 = vadd.xlane.f32.xlu1 %v2689_v38 }
 0x1b6   : > { %2705 = vadd.xlane.f32.xlu0 %v2704_v13  ;;  %2696 = vadd.xlane.f32.xlu2 %v2695_v56  ;;  %v2430_v13 = vsub.f32 %v6620_v58, %v5971_v34  ;;  %v2710_v56 = vsel %vm448_vm0, %v6080_v46, 0.0  ;;  %v2701_v34 = vsel %vm448_vm0, %v6084_v3, 0.0 }
 0x1b7   : > { %v2577_v10 = vpop.xlane.xlu1 %2576 }
 0x1b8   : > { %4828 = vrcp.f32 %v2577_v10  ;;  %v6095_v10 = vpop.eup %4826 }
 0x1b9   : > { %4830 = vpow2.f32 %v2539_v12  ;;  %v2574_v48 = vpop.xlane.xlu0 %2573  ;;  %v2571_v38 = vpop.xlane.xlu2 %2570  ;;  %v2432_v12 = vsub.f32 %v6621_v0, %v6001_v4 }
 0x1ba   : > { %4832 = vrcp.f32 %v2574_v48  ;;  %v2547_v48 = vmul.f32 1.442695, %v2430_v13 }
 0x1bb   : > { %4834 = vrcp.f32 %v2571_v38  ;;  %v2551_v46 = vmul.f32 1.442695, %v2432_v12 }
 0x1bc   : > { %4836 = vpow2.f32 %v2543_v24  ;;  %2711 = vadd.xlane.f32.xlu1 %v2710_v56  ;;  %v2429_v24 = vsub.f32 %v6622_v57, %v5977_v44  ;;  %v394_v56 = vld [vmem:[%s5999_s19 + $0x50] sm:$0xff]  ;;  %v6623_v57 = vld [vmem:[#allocation27_spill] sm:$0xff] }
 0x1bd   : > { %4838 = vpow2.f32 %v2541_v19  ;;  %v393_v19 = vld [vmem:[%s5999_s19 + $0x48] sm:$0xff] }
 0x1be   : > { %v4829_v58 = vpop.eup %4828  ;;  %2708 = vadd.xlane.f32.xlu0 %v2707_v59  ;;  %2702 = vadd.xlane.f32.xlu2 %v2701_v34  ;;  %v2545_v12 = vmul.f32 1.442695, %v2429_v24 }
 0x1bf   : > { %v6101_v38 = vpop.eup %4830  ;;  %v2827_v4 = vmul.f32 %v4829_v58, %v5709_v23  ;;  %v2583_v55 = vpop.xlane.xlu1 %2582  ;;  %v2431_v23 = vsub.f32 %v5641_v36, %v6008_v39  ;;  %v392_v58 = vld [vmem:[%s5999_s19 + $0x40] sm:$0xff]  ;;  %v2713_v36 = vsel %vm448_vm0, %v6095_v10, 0.0 }
 0x1c0   : > { %v4833_v0 = vpop.eup %4832  ;;  %4840 = vrcp.f32 %v2583_v55 }
 0x1c1   : > { %v4835_v47 = vpop.eup %4834  ;;  %v2826_v3 = vmul.f32 %v4833_v0, %v5717_v33  ;;  %v2595_v13 = vpop.xlane.xlu0 %2594  ;;  %4654 = vmatmul.msk.f32.vlgmr.msra.gmra.mxu2 %vm448_vm0, %v2827_v4  ;;  %4842 = vpow2.f32 %v2547_v48  ;;  %v2716_v33 = vsel %vm448_vm0, %v6101_v38, 0.0  ;;  %v2435_v4 = vsub.f32 %v6623_v57, %v6010_v14  ;;  %v6624_v48 = vld [vmem:[#allocation24_spill] sm:$0xff]  ;;  %v396_v57 = vld [vmem:[%s5999_s19 + $0x60] sm:$0xff] }
 0x1c2   : > { %v2580_v59 = vpop.xlane.xlu2 %2579  ;;  %v6109_v34 = vpop.eup %4836  ;;  %v2825_v44 = vmul.f32 %v4835_v47, %v5711_v31  ;;  %3137 = vmatpush.msra.mxu2 %v394_v56  ;;  %v2433_v24 = vsub.f32 %v6624_v48, %v5979_v8 }
 0x1c3   : > { %4844 = vrcp.f32 %v2580_v59  ;;  %4653 = vmatmul.msk.f32.vlgmr.msra.gmra.mxu1 %vm448_vm0, %v2826_v3  ;;  %v2722_v31 = vsel %vm448_vm0, %v6109_v34, 0.0  ;;  %v6126_v39 = vpop.eup %4838  ;;  %v2549_v3 = vmul.f32 1.442695, %v2431_v23  ;;  %v2557_v55 = vmul.f32 1.442695, %v2435_v4  ;;  %v6625_v4 = vld [vmem:[#allocation28_spill] sm:$0xff] }
 0x1c4   : > { %4846 = vpow2.f32 %v2551_v46  ;;  %4652 = vmatmul.msk.f32.vlgmr.msra.gmra.mxu0 %vm448_vm0, %v2825_v44  ;;  %2717 = vadd.xlane.f32.xlu1 %v2716_v33  ;;  %v2436_v23 = vsub.f32 %v5689_v7, %v6065_v15  ;;  %v2553_v8 = vmul.f32 1.442695, %v2433_v24  ;;  %v2719_v33 = vsel %vm448_vm0, %v6126_v39, 0.0 }
 0x1c5   : > { %3091 = vmatpush.msra.mxu0 %v392_v58  ;;  %3114 = vmatpush.msra.mxu1 %v393_v19  ;;  %4848 = vpow2.f32 %v2545_v12  ;;  %v395_v12 = vld [vmem:[%s5999_s19 + $0x58] sm:$0xff]  ;;  %v2439_v24 = vsub.f32 %v5681_v5, %v6056_v28  ;;  %v2440_v28 = vsub.f32 %v5686_v63, %v6067_v6 }
 0x1c6   : > { %2714 = vadd.xlane.f32.xlu0 %v2713_v36  ;;  %2723 = vadd.xlane.f32.xlu2 %v2722_v31  ;;  %v4841_v46 = vpop.eup %4840  ;;  %v2559_v15 = vmul.f32 1.442695, %v2436_v23  ;;  %v2437_v36 = vsub.f32 %v6625_v4, %v6028_v41  ;;  %v397_v23 = vld [vmem:[%s5999_s19 + $0x68] sm:$0xff] }
 0x1c7   : > { %v2589_v14 = vpop.xlane.xlu1 %2588  ;;  %v6128_v47 = vpop.eup %4842  ;;  %v2829_v58 = vmul.f32 %v4841_v46, %v5733_v22  ;;  %v398_v46 = vld [vmem:[%s5999_s19 + $0x70] sm:$0xff]  ;;  %v2565_v5 = vmul.f32 1.442695, %v2439_v24 }
 0x1c8   : > { %4850 = vrcp.f32 %v2589_v14 }
 0x1c9   : > { %v4845_v56 = vpop.eup %4844  ;;  %4852 = vrcp.f32 %v2595_v13  ;;  %v2601_v0 = vpop.xlane.xlu0 %2600  ;;  %v2434_v13 = vsub.f32 %v5662_v25, %v6034_v20 }
 0x1ca   : > { %v2586_v59 = vpop.xlane.xlu2 %2585  ;;  %v6132_v44 = vpop.eup %4846  ;;  %4854 = vpow2.f32 %v2549_v3  ;;  %v2828_v19 = vmul.f32 %v4845_v56, %v5735_v27  ;;  %v2728_v27 = vsel %vm448_vm0, %v6128_v47, 0.0 }
 0x1cb   : > { %4856 = vrcp.f32 %v2586_v59  ;;  %v6146_v7 = vpop.eup %4848  ;;  %v2734_v22 = vsel %vm448_vm0, %v6132_v44, 0.0  ;;  %v2555_v48 = vmul.f32 1.442695, %v2434_v13 }
 0x1cc   : > { %4858 = vpow2.f32 %v2557_v55  ;;  %4655 = vmatmul.msk.f32.vlgmr.msra.gmra.mxu3 %vm448_vm0, %v2828_v19  ;;  %4656 = vmatmul.msk.f32.vlgmr.msrb.gmra.mxu0 %vm448_vm0, %v2829_v58  ;;  %v2561_v58 = vmul.f32 1.442695, %v2437_v36 }
 0x1cd   : > { %2720 = vadd.xlane.f32.xlu1 %v2719_v33  ;;  %3160 = vmatpush.msra.mxu3 %v395_v12  ;;  %4860 = vrcp.f32 %v2601_v0  ;;  %v400_v12 = vld [vmem:[%s5999_s19 + $0x80] sm:$0xff] }
 0x1ce   : > { %v4851_v25 = vpop.eup %4850  ;;  %2735 = vadd.xlane.f32.xlu0 %v2734_v22  ;;  %2729 = vadd.xlane.f32.xlu2 %v2728_v27  ;;  %4862 = vpow2.f32 %v2553_v8  ;;  %v2438_v27 = vsub.f32 %v5659_v17, %v6036_v18 }
 0x1cf   : > { %v4853_v20 = vpop.eup %4852  ;;  %v2831_v31 = vmul.f32 %v4851_v25, %v5757_v32  ;;  %v2598_v3 = vpop.xlane.xlu1 %2597  ;;  %3183 = vmatpush.msrb.mxu0 %v396_v57  ;;  %v402_v57 = vld [vmem:[%s5999_s19 + $0x90] sm:$0xff]  ;;  %v2567_v25 = vmul.f32 1.442695, %v2440_v28 }
 0x1d0   : > { %v6156_v14 = vpop.eup %4854  ;;  %4864 = vrcp.f32 %v2598_v3  ;;  %v2833_v32 = vmul.f32 %v4853_v20, %v5741_v40  ;;  %v2725_v40 = vsel %vm448_vm0, %v6146_v7, 0.0  ;;  %v399_v3 = vld [vmem:[%s5999_s19 + $0x78] sm:$0xff]  ;;  %v2563_v17 = vmul.f32 1.442695, %v2438_v27 }
 0x1d1   : > { %v4857_v55 = vpop.eup %4856  ;;  %v2610_v56 = vpop.xlane.xlu0 %2609  ;;  %4658 = vmatmul.msk.f32.vlgmr.msrb.gmra.mxu2 %vm448_vm0, %v2831_v31  ;;  %4866 = vpow2.f32 %v2559_v15 }
 0x1d2   : > { %v2592_v0 = vpop.xlane.xlu2 %2591  ;;  %v6161_v41 = vpop.eup %4858  ;;  %v2830_v59 = vmul.f32 %v4857_v55, %v5759_v61  ;;  %3229 = vmatpush.msrb.mxu2 %v398_v46  ;;  %v2731_v61 = vsel %vm448_vm0, %v6156_v14, 0.0  ;;  %v401_v46 = vld [vmem:[%s5999_s19 + $0x88] sm:$0xff] }
 0x1d3   : > { %4868 = vrcp.f32 %v2592_v0  ;;  %v4861_v19 = vpop.eup %4860  ;;  %v2743_v8 = vsel %vm448_vm0, %v6161_v41, 0.0 }
 0x1d4   : > { %4870 = vpow2.f32 %v2555_v48  ;;  %4657 = vmatmul.msk.f32.vlgmr.msrb.gmra.mxu1 %vm448_vm0, %v2830_v59  ;;  %4660 = vmatmul.msk.f32.vlgmr.msra.gmra.mxu0 %vm448_vm0, %v2833_v32  ;;  %v6177_v13 = vpop.eup %4862  ;;  %v2835_v6 = vmul.f32 %v4861_v19, %v5765_v49 }
 0x1d5   : > { %2726 = vadd.xlane.f32.xlu1 %v2725_v40  ;;  %3206 = vmatpush.msrb.mxu1 %v397_v23  ;;  %4872 = vpow2.f32 %v2561_v58 }
 0x1d6   : > { %2732 = vadd.xlane.f32.xlu2 %v2731_v61  ;;  %2744 = vadd.xlane.f32.xlu0 %v2743_v8  ;;  %v4865_v63 = vpop.eup %4864  ;;  %4874 = vpow2.f32 %v2565_v5  ;;  %v403_v61 = vld [vmem:[%s5999_s19 + $0x98] sm:$0xff] }
 0x1d7   : > { %v2604_v33 = vpop.xlane.xlu1 %2603  ;;  %3275 = vmatpush.msra.mxu0 %v400_v12  ;;  %v6181_v22 = vpop.eup %4866  ;;  %v2834_v49 = vmul.f32 %v4865_v63, %v5781_v43  ;;  %v2737_v43 = vsel %vm448_vm0, %v6177_v13, 0.0  ;;  %v404_v12 = vld [vmem:[%s5999_s19 + $0xa0] sm:$0xff] }
 0x1d8   : > { %4876 = vrcp.f32 %v2604_v33  ;;  %v2746_v18 = vsel %vm448_vm0, %v6181_v22, 0.0 }
 0x1d9   : > { %v4869_v15 = vpop.eup %4868  ;;  %v2616_v20 = vpop.xlane.xlu0 %2615  ;;  %4662 = vmatmul.msk.f32.vlgmr.msra.gmra.mxu2 %vm448_vm0, %v2835_v6  ;;  %4878 = vrcp.f32 %v2610_v56 }
 0x1da   : > { %v2607_v4 = vpop.xlane.xlu2 %2606  ;;  %v6186_v36 = vpop.eup %4870  ;;  %v2832_v31 = vmul.f32 %v4869_v15, %v5783_v26  ;;  %3321 = vmatpush.msra.mxu2 %v402_v57 }
 0x1db   : > { %4880 = vrcp.f32 %v2607_v4  ;;  %v6196_v48 = vpop.eup %4872  ;;  %v2740_v26 = vsel %vm448_vm0, %v6186_v36, 0.0 }
 0x1dc   : > { %4882 = vpow2.f32 %v2567_v25  ;;  %4659 = vmatmul.msk.f32.vlgmr.msrb.gmra.mxu3 %vm448_vm0, %v2832_v31  ;;  %4661 = vmatmul.msk.f32.vlgmr.msra.gmra.mxu1 %vm448_vm0, %v2834_v49  ;;  %v6202_v24 = vpop.eup %4874  ;;  %v406_v49 = vld [vmem:[%s5999_s19 + $0xb0] sm:$0xff]  ;;  %v407_v31 = vld [vmem:[%s5999_s19 + $0xb8] sm:$0xff] }
 0x1dd   : > { %2747 = vadd.xlane.f32.xlu1 %v2746_v18  ;;  %3252 = vmatpush.msrb.mxu3 %v399_v3  ;;  %4884 = vpow2.f32 %v2563_v17  ;;  %v2755_v40 = vsel %vm448_vm0, %v6202_v24, 0.0  ;;  %v408_v17 = vld [vmem:[%s5999_s19 + $0xc0] sm:$0xff] }
 0x1de   : > { %2738 = vadd.xlane.f32.xlu2 %v2737_v43  ;;  %2741 = vadd.xlane.f32.xlu0 %v2740_v26  ;;  %v4877_v55 = vpop.eup %4876  ;;  %4886 = vrcp.f32 %v2616_v20 }
 0x1df   : > { %v2619_v56 = vpop.xlane.xlu1 %2618  ;;  %3298 = vmatpush.msra.mxu1 %v401_v46  ;;  %v4879_v0 = vpop.eup %4878  ;;  %v2836_v19 = vmul.f32 %v4877_v55, %v5805_v52 }
 0x1e0   : > { %4888 = vrcp.f32 %v2619_v56  ;;  %v2838_v28 = vmul.f32 %v4879_v0, %v5789_v2  ;;  %v405_v2 = vld [vmem:[%s5999_s19 + $0xa8] sm:$0xff] }
 0x1e1   : > { %v4881_v32 = vpop.eup %4880  ;;  %v2631_v59 = vpop.xlane.xlu0 %2630  ;;  %v409_v56 = vld [vmem:[%s5999_s19 + $0xc8] sm:$0xff] }
 0x1e2   : > { %v2613_v23 = vpop.xlane.xlu2 %2612  ;;  %v6204_v58 = vpop.eup %4882  ;;  %v2837_v5 = vmul.f32 %v4881_v32, %v5807_v9  ;;  %v2749_v9 = vsel %vm448_vm0, %v6196_v48, 0.0  ;;  %v410_v32 = vld [vmem:[%s5999_s19 + $0xd0] sm:$0xff] }
 0x1e3   : > { %4890 = vrcp.f32 %v2613_v23  ;;  %v2758_v52 = vsel %vm448_vm0, %v6204_v58, 0.0  ;;  %v6221_v8 = vpop.eup %4884 }
 0x1e4   : > { %4663 = vmatmul.msk.f32.vlgmr.msra.gmra.mxu3 %vm448_vm0, %v2836_v19  ;;  %4664 = vmatmul.msk.f32.vlgmr.msrb.gmra.mxu0 %vm448_vm0, %v2837_v5  ;;  %v4887_v63 = vpop.eup %4886  ;;  %v2752_v3 = vsel %vm448_vm0, %v6221_v8, 0.0 }
 0x1e5   : > { %4665 = vmatmul.msk.f32.vlgmr.msrb.gmra.mxu1 %vm448_vm0, %v2838_v28  ;;  %2756 = vadd.xlane.f32.xlu1 %v2755_v40  ;;  %v2840_v15 = vmul.f32 %v4887_v63, %v5813_v1 }
 0x1e6   : > { %2759 = vadd.xlane.f32.xlu2 %v2758_v52  ;;  %2750 = vadd.xlane.f32.xlu0 %v2749_v9  ;;  %v4889_v33 = vpop.eup %4888  ;;  %v413_v52 = vld [vmem:[%s5999_s19 + $0xe8] sm:$0xff]  ;;  %v414_v9 = vld [vmem:[%s5999_s19 + $0xf0] sm:$0xff] }
 0x1e7   : > { %v2625_v6 = vpop.xlane.xlu1 %2624  ;;  %3367 = vmatpush.msrb.mxu0 %v404_v12  ;;  %3344 = vmatpush.msra.mxu3 %v403_v61  ;;  %v2841_v4 = vmul.f32 %v4889_v33, %v5829_v62  ;;  %v411_v12 = vld [vmem:[%s5999_s19 + $0xd8] sm:$0xff] }
 0x1e8   : > { %3390 = vmatpush.msrb.mxu1 %v405_v2  ;;  %4892 = vrcp.f32 %v2625_v6 }
 0x1e9   : > { %v4891_v57 = vpop.eup %4890  ;;  %v2637_v27 = vpop.xlane.xlu0 %2636  ;;  %4894 = vrcp.f32 %v2631_v59  ;;  %v412_v59 = vld [vmem:[%s5999_s19 + $0xe0] sm:$0xff] }
 0x1ea   : > { %v2622_v25 = vpop.xlane.xlu2 %2621  ;;  %v2839_v20 = vmul.f32 %v4891_v57, %v5831_v35 }
 0x1eb   : > { %4896 = vrcp.f32 %v2622_v25 }
 0x1ec   : > { %4666 = vmatmul.msk.f32.vlgmr.msrb.gmra.mxu2 %vm448_vm0, %v2839_v20  ;;  %4667 = vmatmul.msk.f32.vlgmr.msrb.gmra.mxu3 %vm448_vm0, %v2840_v15  ;;  %v415_v15 = vld [vmem:[%s5999_s19 + $0xf8] sm:$0xff]  ;;  %v417_v20 = vld [vmem:[%s5999_s19 + $0x108] sm:$0xff] }
 0x1ed   : > { %4668 = vmatmul.msk.f32.vlgmr.msra.gmra.mxu0 %vm448_vm0, %v2841_v4  ;;  %2753 = vadd.xlane.f32.xlu1 %v2752_v3 }
 0x1ee   : > { %3413 = vmatpush.msrb.mxu2 %v406_v49  ;;  %3436 = vmatpush.msrb.mxu3 %v407_v31  ;;  %v4893_v1 = vpop.eup %4892 }
 0x1ef   : > { %v2634_v62 = vpop.xlane.xlu1 %2633  ;;  %3459 = vmatpush.msra.mxu0 %v408_v17  ;;  %v4895_v35 = vpop.eup %4894  ;;  %v2843_v26 = vmul.f32 %v4893_v1, %v5853_v11  ;;  %v6626_v17 = vld [vmem:[#allocation4_spill] sm:$0xff] }
 0x1f0   : > { %4898 = vrcp.f32 %v2634_v62  ;;  %v2845_v0 = vmul.f32 %v4895_v35, %v5837_v60  ;;  %v418_v62 = vld [vmem:[%s5999_s19 + $0x110] sm:$0xff]  ;;  %v6627_v35 = vld [vmem:[#allocation2_spill] sm:$0xff] }
 0x1f1   : > { %v4897_v18 = vpop.eup %4896  ;;  %v2646_v46 = vpop.xlane.xlu0 %2645  ;;  %4900 = vrcp.f32 %v2637_v27  ;;  %v416_v27 = vld [vmem:[%s5999_s19 + $0x100] sm:$0xff] }
 0x1f2   : > { %v2628_v43 = vpop.xlane.xlu2 %2627  ;;  %v2842_v55 = vmul.f32 %v4897_v18, %v5855_v51 }
 0x1f3   : > { %4902 = vrcp.f32 %v2628_v43  ;;  %v419_v43 = vld [vmem:[%s5999_s19 + $0x118] sm:$0xff] }
 0x1f4   : > { %4669 = vmatmul.msk.f32.vlgmr.msra.gmra.mxu1 %vm448_vm0, %v2842_v55  ;;  %4670 = vmatmul.msk.f32.vlgmr.msra.gmra.mxu2 %vm448_vm0, %v2843_v26 }
 0x1f5   : > { %4672 = vmatmul.msk.f32.vlgmr.msrb.gmra.mxu0 %vm448_vm0, %v2845_v0  ;;  %3482 = vmatpush.msra.mxu1 %v409_v56 }
 0x1f6   : > { %3505 = vmatpush.msra.mxu2 %v410_v32  ;;  %3551 = vmatpush.msrb.mxu0 %v412_v59  ;;  %v4899_v11 = vpop.eup %4898  ;;  %v6628_v59 = vld [vmem:[#allocation7_spill] sm:$0xff] }
 0x1f7   : > { %v2640_v51 = vpop.xlane.xlu1 %2639  ;;  %v4901_v23 = vpop.eup %4900  ;;  %v2846_v28 = vmul.f32 %v4899_v11, %v5877_v30 }
 0x1f8   : > { %4904 = vrcp.f32 %v2640_v51  ;;  %v2847_v61 = vmul.f32 %v4901_v23, %v5861_v37  ;;  %v6629_v51 = vld [vmem:[#allocation3_spill] sm:$0xff] }
 0x1f9   : > { %v4903_v19 = vpop.eup %4902  ;;  %v2652_v60 = vpop.xlane.xlu0 %2651  ;;  %4906 = vrcp.f32 %v2646_v46  ;;  %v420_v46 = vld [vmem:[%s5999_s19 + $0x120] sm:$0xff] }
 0x1fa   : > { %v2643_v5 = vpop.xlane.xlu2 %2642  ;;  %v2844_v40 = vmul.f32 %v4903_v19, %v5879_v21  ;;  %v422_v19 = vld [vmem:[%s5999_s19 + $0x130] sm:$0xff] }
 0x1fb   : > { %4908 = vrcp.f32 %v2643_v5 }
 0x1fc   : > { %4671 = vmatmul.msk.f32.vlgmr.msra.gmra.mxu3 %vm448_vm0, %v2844_v40  ;;  %4673 = vmatmul.msk.f32.vlgmr.msrb.gmra.mxu1 %vm448_vm0, %v2846_v28  ;;  %4910 = vrcp.f32 %v2652_v60  ;;  %v6630_v60 = vld [vmem:[#allocation29_spill] sm:$0xff]  ;;  %v421_v28 = vld [vmem:[%s5999_s19 + $0x128] sm:$0xff]  ;;  %v424_v40 = vld [vmem:[%s5999_s19 + $0x140] sm:$0xff] }
 0x1fd   : > { %4674 = vmatmul.msk.f32.vlgmr.msrb.gmra.mxu2 %vm448_vm0, %v2847_v61  ;;  %3528 = vmatpush.msra.mxu3 %v411_v12 }
 0x1fe   : > { %3574 = vmatpush.msrb.mxu1 %v413_v52  ;;  %3597 = vmatpush.msrb.mxu2 %v414_v9  ;;  %v4905_v30 = vpop.eup %4904 }
 0x1ff   : > { %v2655_v21 = vpop.xlane.xlu1 %2654  ;;  %v4907_v2 = vpop.eup %4906  ;;  %v2848_v33 = vmul.f32 %v4905_v30, %v5901_v45 }
 0x200   : > { %4912 = vrcp.f32 %v2655_v21  ;;  %v2850_v25 = vmul.f32 %v4907_v2, %v5885_v50  ;;  %v6631_v21 = vld [vmem:[#allocation9_spill] sm:$0xff] }
 0x201   : > { %v4909_v63 = vpop.eup %4908  ;;  %v2667_v37 = vpop.xlane.xlu0 %2666 }
 0x202   : > { %v2649_v6 = vpop.xlane.xlu2 %2648  ;;  %v2849_v57 = vmul.f32 %v4909_v63, %v5903_v54  ;;  %v4911_v45 = vpop.eup %4910 }
 0x203   : > { %4914 = vrcp.f32 %v2649_v6  ;;  %v2852_v3 = vmul.f32 %v4911_v45, %v5909_v53  ;;  %v6632_v6 = vld [vmem:[#allocation10_spill] sm:$0xff]  ;;  %v425_v45 = vld [vmem:[%s5999_s19 + $0x148] sm:$0xff] }
 0x204   : > { %4675 = vmatmul.msk.f32.vlgmr.msrb.gmra.mxu3 %vm448_vm0, %v2848_v33  ;;  %4676 = vmatmul.msk.f32.vlgmr.msra.gmra.mxu0 %vm448_vm0, %v2849_v57  ;;  %v6633_v57 = vld [vmem:[#allocation8_spill] sm:$0xff] }
 0x205   : > { %4677 = vmatmul.msk.f32.vlgmr.msra.gmra.mxu1 %vm448_vm0, %v2850_v25  ;;  %3643 = vmatpush.msra.mxu0 %v416_v27  ;;  %v6634_v25 = vld [vmem:[#allocation5_spill] sm:$0xff] }
 0x206   : > { %3620 = vmatpush.msrb.mxu3 %v415_v15  ;;  %3666 = vmatpush.msra.mxu1 %v417_v20  ;;  %v4913_v4 = vpop.eup %4912  ;;  %v423_v20 = vld [vmem:[%s5999_s19 + $0x138] sm:$0xff] }
 0x207   : > { %v2661_v54 = vpop.xlane.xlu1 %2660  ;;  %v2853_v18 = vmul.f32 %v4913_v4, %v6627_v35  ;;  %v428_v4 = vld [vmem:[%s5999_s19 + $0x160] sm:$0xff]  ;;  %v6636_v35 = vld [vmem:[#allocation11_spill] sm:$0xff] }
 0x208   : > { %4916 = vrcp.f32 %v2661_v54  ;;  %v426_v54 = vld [vmem:[%s5999_s19 + $0x150] sm:$0xff] }
 0x209   : > { %v4915_v49 = vpop.eup %4914  ;;  %v2673_v50 = vpop.xlane.xlu0 %2672  ;;  %4918 = vrcp.f32 %v2667_v37 }
 0x20a   : > { %v2658_v31 = vpop.xlane.xlu2 %2657  ;;  %v2851_v1 = vmul.f32 %v4915_v49, %v6626_v17 }
 0x20b   : > { %4920 = vrcp.f32 %v2658_v31 }
 0x20c   : > { %4678 = vmatmul.msk.f32.vlgmr.msra.gmra.mxu2 %vm448_vm0, %v2851_v1  ;;  %4679 = vmatmul.msk.f32.vlgmr.msra.gmra.mxu3 %vm448_vm0, %v2852_v3  ;;  %4922 = vrcp.f32 %v2673_v50  ;;  %v6635_v1 = vld [vmem:[#allocation6_spill] sm:$0xff] }
 0x20d   : > { %4680 = vmatmul.msk.f32.vlgmr.msrb.gmra.mxu0 %vm448_vm0, %v2853_v18  ;;  %3689 = vmatpush.msra.mxu2 %v418_v62 }
 0x20e   : > { %3735 = vmatpush.msrb.mxu0 %v420_v46  ;;  %3712 = vmatpush.msra.mxu3 %v419_v43  ;;  %v4917_v53 = vpop.eup %4916  ;;  %v427_v46 = vld [vmem:[%s5999_s19 + $0x158] sm:$0xff]  ;;  %v430_v43 = vld [vmem:[%s5999_s19 + $0x170] sm:$0xff] }
 0x20f   : > { %v2670_v26 = vpop.xlane.xlu1 %2669  ;;  %v4919_v55 = vpop.eup %4918  ;;  %v2855_v11 = vmul.f32 %v4917_v53, %v6628_v59 }
 0x210   : > { %4924 = vrcp.f32 %v2670_v26  ;;  %v2857_v5 = vmul.f32 %v4919_v55, %v6630_v60 }
 0x211   : > { %v4921_v56 = vpop.eup %4920  ;;  %v2679_v0 = vpop.xlane.xlu0 %2678 }
 0x212   : > { %v2664_v32 = vpop.xlane.xlu2 %2663  ;;  %v2854_v23 = vmul.f32 %v4921_v56, %v6629_v51  ;;  %4926 = vrcp.f32 %v2679_v0  ;;  %v4923_v12 = vpop.eup %4922  ;;  %v429_v0 = vld [vmem:[%s5999_s19 + $0x168] sm:$0xff] }
 0x213   : > { %4928 = vrcp.f32 %v2664_v32  ;;  %v2859_v15 = vmul.f32 %v4923_v12, %v6634_v25 }
 0x214   : > { %4681 = vmatmul.msk.f32.vlgmr.msrb.gmra.mxu1 %vm448_vm0, %v2854_v23  ;;  %4682 = vmatmul.msk.f32.vlgmr.msrb.gmra.mxu2 %vm448_vm0, %v2855_v11  ;;  %v6637_v11 = vld [vmem:[#allocation14_spill] sm:$0xff]  ;;  %v431_v23 = vld [vmem:[%s5999_s19 + $0x178] sm:$0xff] }
 0x215   : > { %4684 = vmatmul.msk.f32.vlgmr.msra.gmra.mxu0 %vm448_vm0, %v2857_v5  ;;  %3781 = vmatpush.msrb.mxu2 %v422_v19  ;;  %v6638_v5 = vld [vmem:[#allocation13_spill] sm:$0xff] }
 0x216   : > { %3758 = vmatpush.msrb.mxu1 %v421_v28  ;;  %3827 = vmatpush.msra.mxu0 %v424_v40  ;;  %v4925_v61 = vpop.eup %4924 }
 0x217   : > { %v2676_v52 = vpop.xlane.xlu1 %2675  ;;  %v2858_v33 = vmul.f32 %v4925_v61, %v6632_v6  ;;  %v433_v61 = vld [vmem:[%s5999_s19 + $0x188] sm:$0xff]  ;;  %v434_v6 = vld [vmem:[%s5999_s19 + $0x190] sm:$0xff] }
 0x218   : > { %v4927_v9 = vpop.eup %4926  ;;  %4930 = vrcp.f32 %v2676_v52  ;;  %v432_v52 = vld [vmem:[%s5999_s19 + $0x180] sm:$0xff] }
 0x219   : > { %v4929_v30 = vpop.eup %4928  ;;  %v2861_v2 = vmul.f32 %v4927_v9, %v6631_v21  ;;  %v2688_v63 = vpop.xlane.xlu0 %2687 }
 0x21a   : > { %v2685_v37 = vpop.xlane.xlu2 %2684  ;;  %v2856_v27 = vmul.f32 %v4929_v30, %v6633_v57 }
 0x21b   : > { %4932 = vrcp.f32 %v2685_v37 }
 0x21c   : > { %4683 = vmatmul.msk.f32.vlgmr.msrb.gmra.mxu3 %vm448_vm0, %v2856_v27  ;;  %4685 = vmatmul.msk.f32.vlgmr.msra.gmra.mxu1 %vm448_vm0, %v2858_v33  ;;  %v6640_v27 = vld [vmem:[#allocation19_spill] sm:$0xff] }
 0x21d   : > { %4686 = vmatmul.msk.f32.vlgmr.msra.gmra.mxu2 %vm448_vm0, %v2859_v15  ;;  %4688 = vmatmul.msk.f32.vlgmr.msrb.gmra.mxu0 %vm448_vm0, %v2861_v2  ;;  %v6639_v2 = vld [vmem:[#allocation16_spill] sm:$0xff] }
 0x21e   : > { %3804 = vmatpush.msrb.mxu3 %v423_v20  ;;  %3850 = vmatpush.msra.mxu1 %v425_v45  ;;  %v4931_v49 = vpop.eup %4930 }
 0x21f   : > { %v2682_v50 = vpop.xlane.xlu1 %2681  ;;  %3873 = vmatpush.msra.mxu2 %v426_v54  ;;  %3919 = vmatpush.msrb.mxu0 %v428_v4  ;;  %v2860_v62 = vmul.f32 %v4931_v49, %v6635_v1  ;;  %v6641_v54 = vld [vmem:[#allocation15_spill] sm:$0xff]  ;;  %v6643_v1 = vld [vmem:[#allocation22_spill] sm:$0xff] }
 0x220   : > { %4934 = vrcp.f32 %v2682_v50 }
 0x221   : > { %v4933_v31 = vpop.eup %4932  ;;  %4936 = vrcp.f32 %v2688_v63  ;;  %v2700_v3 = vpop.xlane.xlu0 %2699 }
 0x222   : > { %v2694_v17 = vpop.xlane.xlu2 %2693  ;;  %v2863_v18 = vmul.f32 %v4933_v31, %v6636_v35  ;;  %v6642_v31 = vld [vmem:[#allocation12_spill] sm:$0xff]  ;;  %v439_v35 = vld [vmem:[%s5999_s19 + $0x1b8] sm:$0xff] }
 0x223   : > { %4938 = vrcp.f32 %v2694_v17  ;;  %v438_v17 = vld [vmem:[%s5999_s19 + $0x1b0] sm:$0xff] }
 0x224   : > { %4687 = vmatmul.msk.f32.vlgmr.msra.gmra.mxu3 %vm448_vm0, %v2860_v62 }
 0x225   : > { %4690 = vmatmul.msk.f32.vlgmr.msrb.gmra.mxu2 %vm448_vm0, %v2863_v18  ;;  %3896 = vmatpush.msra.mxu3 %v427_v46  ;;  %v436_v18 = vld [vmem:[%s5999_s19 + $0x1a0] sm:$0xff] }
 0x226   : > { %v4935_v53 = vpop.eup %4934  ;;  %3965 = vmatpush.msrb.mxu2 %v430_v43 }
 0x227   : > { %v4937_v26 = vpop.eup %4936  ;;  %v2862_v55 = vmul.f32 %v4935_v53, %v6030_v16  ;;  %v2691_v56 = vpop.xlane.xlu1 %2690  ;;  %v441_v53 = vld [vmem:[%s5999_s19 + $0x1c8] sm:$0xff] }
 0x228   : > { %4940 = vrcp.f32 %v2691_v56  ;;  %v2864_v51 = vmul.f32 %v4937_v26, %v6637_v11 }
 0x229   : > { %4942 = vrcp.f32 %v2700_v3  ;;  %v2706_v32 = vpop.xlane.xlu0 %2705  ;;  %4689 = vmatmul.msk.f32.vlgmr.msrb.gmra.mxu1 %vm448_vm0, %v2862_v55  ;;  %v4939_v19 = vpop.eup %4938 }
 0x22a   : > { %v2697_v59 = vpop.xlane.xlu2 %2696  ;;  %3942 = vmatpush.msrb.mxu1 %v429_v0  ;;  %v2866_v28 = vmul.f32 %v4939_v19, %v6638_v5  ;;  %v443_v19 = vld [vmem:[%s5999_s19 + $0x1d8] sm:$0xff] }
 0x22b   : > { %4944 = vrcp.f32 %v2697_v59 }
 0x22c   : > { %4691 = vmatmul.msk.f32.vlgmr.msrb.gmra.mxu3 %vm448_vm0, %v2864_v51  ;;  %4946 = vrcp.f32 %v2706_v32 }
 0x22d   : > { %3988 = vmatpush.msrb.mxu3 %v431_v23  ;;  %v440_v23 = vld [vmem:[%s5999_s19 + $0x1c0] sm:$0xff] }
 0x22e   : > { %v4941_v16 = vpop.eup %4940 }
 0x22f   : > { %v4943_v60 = vpop.eup %4942  ;;  %v2865_v40 = vmul.f32 %v4941_v16, %v6058_v29  ;;  %v2712_v12 = vpop.xlane.xlu1 %2711  ;;  %v435_v29 = vld [vmem:[%s5999_s19 + $0x198] sm:$0xff] }
 0x230   : > { %4948 = vrcp.f32 %v2712_v12  ;;  %v2868_v63 = vmul.f32 %v4943_v60, %v6639_v2 }
 0x231   : > { %v4945_v9 = vpop.eup %4944  ;;  %v2709_v30 = vpop.xlane.xlu0 %2708  ;;  %4692 = vmatmul.msk.f32.vlgmr.msra.gmra.mxu0 %vm448_vm0, %v2865_v40  ;;  %4693 = vmatmul.msk.f32.vlgmr.msra.gmra.mxu1 %vm448_vm0, %v2866_v28  ;;  %v442_v28 = vld [vmem:[%s5999_s19 + $0x1d0] sm:$0xff] }
 0x232   : > { %v2703_v21 = vpop.xlane.xlu2 %2702  ;;  %v2867_v37 = vmul.f32 %v4945_v9, %v6061_v42  ;;  %4950 = vrcp.f32 %v2709_v30  ;;  %4034 = vmatpush.msra.mxu1 %v433_v61  ;;  %4011 = vmatpush.msra.mxu0 %v432_v52  ;;  %v4947_v33 = vpop.eup %4946  ;;  %v437_v42 = vld [vmem:[%s5999_s19 + $0x1a8] sm:$0xff] }
 0x233   : > { %4952 = vrcp.f32 %v2703_v21  ;;  %v2870_v25 = vmul.f32 %v4947_v33, %v6640_v27  ;;  %v445_v21 = vld [vmem:[%s5999_s19 + $0x1e8] sm:$0xff] }
 0x234   : > { %4694 = vmatmul.msk.f32.vlgmr.msra.gmra.mxu2 %vm448_vm0, %v2867_v37  ;;  %4695 = vmatmul.msk.f32.vlgmr.msra.gmra.mxu3 %vm448_vm0, %v2868_v63  ;;  %v444_v37 = vld [vmem:[%s5999_s19 + $0x1e0] sm:$0xff] }
 0x235   : > { %4080 = vmatpush.msra.mxu3 %v435_v29  ;;  %4057 = vmatpush.msra.mxu2 %v434_v6 }
 0x236   : > { %v4949_v57 = vpop.eup %4948 }
 0x237   : > { %v2718_v15 = vpop.xlane.xlu1 %2717  ;;  %v2872_v62 = vmul.f32 %v4949_v57, %v6643_v1 }
 0x238   : > { %v4951_v20 = vpop.eup %4950  ;;  %4954 = vrcp.f32 %v2718_v15  ;;  %v446_v15 = vld [vmem:[%s5999_s19 + $0x1f0] sm:$0xff] }
 0x239   : > { %v4953_v45 = vpop.eup %4952  ;;  %v2871_v4 = vmul.f32 %v4951_v20, %v6641_v54  ;;  %v2715_v49 = vpop.xlane.xlu0 %2714  ;;  %4697 = vmatmul.msk.f32.vlgmr.msrb.gmra.mxu1 %vm448_vm0, %v2870_v25 }
 0x23a   : > { %v2724_v50 = vpop.xlane.xlu2 %2723  ;;  %v2869_v3 = vmul.f32 %v4953_v45, %v6642_v31  ;;  %4956 = vrcp.f32 %v2715_v49  ;;  %4126 = vmatpush.msrb.mxu1 %v437_v42 }
 0x23b   : > { %4958 = vrcp.f32 %v2724_v50 }
 0x23c   : > { %4696 = vmatmul.msk.f32.vlgmr.msrb.gmra.mxu0 %vm448_vm0, %v2869_v3  ;;  %4698 = vmatmul.msk.f32.vlgmr.msrb.gmra.mxu2 %vm448_vm0, %v2871_v4 }
 0x23d   : > { %4699 = vmatmul.msk.f32.vlgmr.msrb.gmra.mxu3 %vm448_vm0, %v2872_v62  ;;  %4149 = vmatpush.msrb.mxu2 %v438_v17 }
 0x23e   : > { %v4955_v46 = vpop.eup %4954  ;;  %4172 = vmatpush.msrb.mxu3 %v439_v35  ;;  %4103 = vmatpush.msrb.mxu0 %v436_v18 }
 0x23f   : > { %v2874_v43 = vmul.f32 %v4955_v46, %v6101_v38 }
 0x240   : > { %v4957_v26 = vpop.eup %4956  ;;  %v2721_v55 = vpop.xlane.xlu1 %2720 }
 0x241   : > { %v2932_v56 = vpop.f32.mrf.mxu1  ;;  %v4959_v0 = vpop.eup %4958  ;;  %v2873_v32 = vmul.f32 %v4957_v26, %v6095_v10  ;;  %4960 = vrcp.f32 %v2721_v55  ;;  %4701 = vmatmul.msk.f32.vlgmr.msra.gmra.mxu1 %vm448_vm0, %v2874_v43 }
 0x242   : > { %v2909_v59 = vpop.f32.mrf.mxu0  ;;  %4362 = vst.msk [vmem:[%s6331_s22 + $0x8] sm:$0xff] %vm448_vm0, %v2932_v56  ;;  %v2736_v11 = vpop.xlane.xlu0 %2735  ;;  %v2876_v51 = vmul.f32 %v4959_v0, %v6109_v34  ;;  %4218 = vmatpush.msra.mxu1 %v441_v53 }
 0x243   : > { %4361 = vst.msk [vmem:[%s6331_s22] sm:$0xff] %vm448_vm0, %v2909_v59  ;;  %4962 = vrcp.f32 %v2736_v11  ;;  %v2730_v38 = vpop.xlane.xlu2 %2729 }
 0x244   : > { %4964 = vrcp.f32 %v2730_v38  ;;  %4700 = vmatmul.msk.f32.vlgmr.msra.gmra.mxu0 %vm448_vm0, %v2873_v32  ;;  %v2955_v10 = vpop.f32.mrf.mxu2 }
 0x245   : > { %4703 = vmatmul.msk.f32.vlgmr.msra.gmra.mxu3 %vm448_vm0, %v2876_v51  ;;  %4363 = vst.msk [vmem:[%s6331_s22 + $0x10] sm:$0xff] %vm448_vm0, %v2955_v10  ;;  %4195 = vmatpush.msra.mxu0 %v440_v23 }
 0x246   : > { %4264 = vmatpush.msra.mxu3 %v443_v19 }
 0x247   : > { %v4961_v34 = vpop.eup %4960 }
 0x248   : > { %v2875_v60 = vmul.f32 %v4961_v34, %v6126_v39  ;;  %v2727_v5 = vpop.xlane.xlu1 %2726  ;;  %v447_v39 = vld [vmem:[%s5999_s19 + $0x1f8] sm:$0xff] }
 0x249   : > { %v4963_v16 = vpop.eup %4962  ;;  %4966 = vrcp.f32 %v2727_v5 }
 0x24a   : > { %v4965_v40 = vpop.eup %4964  ;;  %v2880_v12 = vmul.f32 %v4963_v16, %v6132_v44  ;;  %v3001_v61 = vpop.f32.mrf.mxu0  ;;  %4702 = vmatmul.msk.f32.vlgmr.msra.gmra.mxu2 %vm448_vm0, %v2875_v60 }
 0x24b   : > { %v2745_v52 = vpop.xlane.xlu0 %2744  ;;  %v2878_v9 = vmul.f32 %v4965_v40, %v6128_v47  ;;  %4365 = vst.msk [vmem:[%s6331_s22 + $0x20] sm:$0xff] %vm448_vm0, %v3001_v61  ;;  %v2733_v30 = vpop.xlane.xlu2 %2732  ;;  %4241 = vmatpush.msra.mxu2 %v442_v28 }
 0x24c   : > { %4968 = vrcp.f32 %v2733_v30 }
 0x24d   : > { %4705 = vmatmul.msk.f32.vlgmr.msrb.gmra.mxu1 %vm448_vm0, %v2878_v9  ;;  %4707 = vmatmul.msk.f32.vlgmr.msrb.gmra.mxu3 %vm448_vm0, %v2880_v12  ;;  %4970 = vrcp.f32 %v2745_v52 }
 0x24e   : > { %4310 = vmatpush.msrb.mxu1 %v445_v21  ;;  %4356 = vmatpush.msrb.mxu3 %v447_v39 }
 0x24f   : > { %v4967_v44 = vpop.eup %4966  ;;  %v2978_v47 = vpop.f32.mrf.mxu3 }
 0x250   : > { %v2877_v2 = vmul.f32 %v4967_v44, %v6146_v7  ;;  %4364 = vst.msk [vmem:[%s6331_s22 + $0x18] sm:$0xff] %vm448_vm0, %v2978_v47  ;;  %v2748_v63 = vpop.xlane.xlu1 %2747 }
 0x251   : > { %4972 = vrcp.f32 %v2748_v63  ;;  %v3024_v6 = vpop.f32.mrf.mxu1 }
 0x252   : > { %v4969_v29 = vpop.eup %4968  ;;  %v3093_v33 = vpop.f32.mrf.mxu0  ;;  %4366 = vst.msk [vmem:[%s6331_s22 + $0x28] sm:$0xff] %vm448_vm0, %v3024_v6  ;;  %4704 = vmatmul.msk.f32.vlgmr.msrb.gmra.mxu0 %vm448_vm0, %v2877_v2 }
 0x253   : > { %v2879_v57 = vmul.f32 %v4969_v29, %v6156_v14  ;;  %v2742_v27 = vpop.xlane.xlu0 %2741  ;;  %v2739_v25 = vpop.xlane.xlu2 %2738  ;;  %4369 = vst.msk [vmem:[%s6331_s22 + $0x40] sm:$0xff] %vm448_vm0, %v3093_v33  ;;  %4287 = vmatpush.msrb.mxu0 %v444_v37 }
 0x254   : > { %4974 = vrcp.f32 %v2742_v27  ;;  %v3047_v7 = vpop.f32.mrf.mxu2  ;;  %v4971_v14 = vpop.eup %4970 }
 0x255   : > { %4976 = vrcp.f32 %v2739_v25  ;;  %4706 = vmatmul.msk.f32.vlgmr.msrb.gmra.mxu2 %vm448_vm0, %v2879_v57  ;;  %4367 = vst.msk [vmem:[%s6331_s22 + $0x30] sm:$0xff] %vm448_vm0, %v3047_v7  ;;  %v2883_v50 = vmul.f32 %v4971_v14, %v6161_v41 }
 0x256   : > { %4333 = vmatpush.msrb.mxu2 %v446_v15 }
 0x257   : > { %v4973_v42 = vpop.eup %4972 }
 0x258   : > { %v2884_v20 = vmul.f32 %v4973_v42, %v6181_v22  ;;  %v2757_v45 = vpop.xlane.xlu1 %2756 }
 0x259   : > { %4978 = vrcp.f32 %v2757_v45  ;;  %v3116_v4 = vpop.f32.mrf.mxu1 }
 0x25a   : > { %v4975_v54 = vpop.eup %4974  ;;  %4370 = vst.msk [vmem:[%s6331_s22 + $0x48] sm:$0xff] %vm448_vm0, %v3116_v4  ;;  %4711 = vmatmul.msk.f32.vlgmr.msra.gmra.mxu3 %vm448_vm0, %v2884_v20 }
 0x25b   : > { %v4977_v49 = vpop.eup %4976  ;;  %v2882_v31 = vmul.f32 %v4975_v54, %v6186_v36  ;;  %v2760_v3 = vpop.xlane.xlu2 %2759 }
 0x25c   : > { %v2751_v17 = vpop.xlane.xlu0 %2750  ;;  %v2881_v1 = vmul.f32 %v4977_v49, %v6177_v13  ;;  %4980 = vrcp.f32 %v2760_v3  ;;  %v3139_v22 = vpop.f32.mrf.mxu2 }
 0x25d   : > { %4982 = vrcp.f32 %v2751_v17  ;;  %4709 = vmatmul.msk.f32.vlgmr.msra.gmra.mxu1 %vm448_vm0, %v2882_v31  ;;  %4710 = vmatmul.msk.f32.vlgmr.msra.gmra.mxu2 %vm448_vm0, %v2883_v50  ;;  %4371 = vst.msk [vmem:[%s6331_s22 + $0x50] sm:$0xff] %vm448_vm0, %v3139_v22 }
 0x25e   : > { %4708 = vmatmul.msk.f32.vlgmr.msra.gmra.mxu0 %vm448_vm0, %v2881_v1 }
 0x25f   : > { %v4979_v41 = vpop.eup %4978  ;;  %v3070_v36 = vpop.f32.mrf.mxu3 }
 0x260   : > { %4368 = vst.msk [vmem:[%s6331_s22 + $0x38] sm:$0xff] %vm448_vm0, %v3070_v36  ;;  %v2754_v62 = vpop.xlane.xlu1 %2753  ;;  %v2887_v46 = vmul.f32 %v4979_v41, %v6202_v24 }
 0x261   : > { %4984 = vrcp.f32 %v2754_v62  ;;  %v3185_v13 = vpop.f32.mrf.mxu0 }
 0x262   : > { %v4981_v35 = vpop.eup %4980  ;;  %4373 = vst.msk [vmem:[%s6331_s22 + $0x60] sm:$0xff] %vm448_vm0, %v3185_v13  ;;  %v3208_v53 = vpop.f32.mrf.mxu1 }
 0x263   : > { %v4983_v18 = vpop.eup %4982  ;;  %v2888_v43 = vmul.f32 %v4981_v35, %v6204_v58  ;;  %4374 = vst.msk [vmem:[%s6331_s22 + $0x68] sm:$0xff] %vm448_vm0, %v3208_v53 }
 0x264   : > { %v2885_v26 = vmul.f32 %v4983_v18, %v6196_v48 }
 0x265   : > { %4714 = vmatmul.msk.f32.vlgmr.msrb.gmra.mxu2 %vm448_vm0, %v2887_v46  ;;  %4715 = vmatmul.msk.f32.vlgmr.msrb.gmra.mxu3 %vm448_vm0, %v2888_v43 }
 0x266   : > { %4712 = vmatmul.msk.f32.vlgmr.msrb.gmra.mxu0 %vm448_vm0, %v2885_v26 }
 0x267   : > { %v4985_v24 = vpop.eup %4984  ;;  %v3162_v58 = vpop.f32.mrf.mxu3 }
 0x268   : > { %v2886_v55 = vmul.f32 %v4985_v24, %v6221_v8  ;;  %4372 = vst.msk [vmem:[%s6331_s22 + $0x58] sm:$0xff] %vm448_vm0, %v3162_v58 }
 0x26a   : > { %v3277_v56 = vpop.f32.mrf.mxu0  ;;  %4713 = vmatmul.msk.f32.vlgmr.msrb.gmra.mxu1 %vm448_vm0, %v2886_v55 }
 0x26b   : > { %4377 = vst.msk [vmem:[%s6331_s22 + $0x80] sm:$0xff] %vm448_vm0, %v3277_v56 }
 0x26f   : > { %v3231_v48 = vpop.f32.mrf.mxu2  ;;  %v3254_v0 = vpop.f32.mrf.mxu3 }
 0x270   : > { %4375 = vst.msk [vmem:[%s6331_s22 + $0x70] sm:$0xff] %vm448_vm0, %v3231_v48 }
 0x271   : > { %4376 = vst.msk [vmem:[%s6331_s22 + $0x78] sm:$0xff] %vm448_vm0, %v3254_v0  ;;  %v3300_v32 = vpop.f32.mrf.mxu1 }
 0x272   : > { %4378 = vst.msk [vmem:[%s6331_s22 + $0x88] sm:$0xff] %vm448_vm0, %v3300_v32  ;;  %v3369_v8 = vpop.f32.mrf.mxu0 }
 0x273   : > { %4381 = vst.msk [vmem:[%s6331_s22 + $0xa0] sm:$0xff] %vm448_vm0, %v3369_v8 }
 0x277   : > { %v3323_v59 = vpop.f32.mrf.mxu2 }
 0x278   : > { %4379 = vst.msk [vmem:[%s6331_s22 + $0x90] sm:$0xff] %vm448_vm0, %v3323_v59 }
 0x279   : > { %v3392_v11 = vpop.f32.mrf.mxu1 }
 0x27a   : > { %4382 = vst.msk [vmem:[%s6331_s22 + $0xa8] sm:$0xff] %vm448_vm0, %v3392_v11 }
 0x27f   : > { %v3346_v51 = vpop.f32.mrf.mxu3 }
 0x280   : > { %4380 = vst.msk [vmem:[%s6331_s22 + $0x98] sm:$0xff] %vm448_vm0, %v3346_v51  ;;  %v3415_v38 = vpop.f32.mrf.mxu2 }
 0x281   : > { %4383 = vst.msk [vmem:[%s6331_s22 + $0xb0] sm:$0xff] %vm448_vm0, %v3415_v38  ;;  %v3461_v23 = vpop.f32.mrf.mxu0 }
 0x282   : > { %4385 = vst.msk [vmem:[%s6331_s22 + $0xc0] sm:$0xff] %vm448_vm0, %v3461_v23  ;;  %v3484_v19 = vpop.f32.mrf.mxu1 }
 0x283   : > { %4386 = vst.msk [vmem:[%s6331_s22 + $0xc8] sm:$0xff] %vm448_vm0, %v3484_v19 }
 0x287   : > { %v3438_v10 = vpop.f32.mrf.mxu3 }
 0x288   : > { %4384 = vst.msk [vmem:[%s6331_s22 + $0xb8] sm:$0xff] %vm448_vm0, %v3438_v10 }
 0x28a   : > { %v3553_v34 = vpop.f32.mrf.mxu0 }
 0x28b   : > { %4389 = vst.msk [vmem:[%s6331_s22 + $0xe0] sm:$0xff] %vm448_vm0, %v3553_v34 }
 0x28f   : > { %v3507_v16 = vpop.f32.mrf.mxu2  ;;  %v3530_v60 = vpop.f32.mrf.mxu3 }
 0x290   : > { %4387 = vst.msk [vmem:[%s6331_s22 + $0xd0] sm:$0xff] %vm448_vm0, %v3507_v16 }
 0x291   : > { %4388 = vst.msk [vmem:[%s6331_s22 + $0xd8] sm:$0xff] %vm448_vm0, %v3530_v60  ;;  %v3576_v5 = vpop.f32.mrf.mxu1 }
 0x292   : > { %4390 = vst.msk [vmem:[%s6331_s22 + $0xe8] sm:$0xff] %vm448_vm0, %v3576_v5  ;;  %v3645_v28 = vpop.f32.mrf.mxu0 }
 0x293   : > { %4393 = vst.msk [vmem:[%s6331_s22 + $0x100] sm:$0xff] %vm448_vm0, %v3645_v28 }
 0x297   : > { %v3599_v40 = vpop.f32.mrf.mxu2 }
 0x298   : > { %4391 = vst.msk [vmem:[%s6331_s22 + $0xf0] sm:$0xff] %vm448_vm0, %v3599_v40 }
 0x299   : > { %v3668_v12 = vpop.f32.mrf.mxu1 }
 0x29a   : > { %4394 = vst.msk [vmem:[%s6331_s22 + $0x108] sm:$0xff] %vm448_vm0, %v3668_v12  ;;  %v3737_v61 = vpop.f32.mrf.mxu0 }
 0x29b   : > { %4397 = vst.msk [vmem:[%s6331_s22 + $0x120] sm:$0xff] %vm448_vm0, %v3737_v61 }
 0x29f   : > { %v3622_v52 = vpop.f32.mrf.mxu3 }
 0x2a0   : > { %4392 = vst.msk [vmem:[%s6331_s22 + $0xf8] sm:$0xff] %vm448_vm0, %v3622_v52  ;;  %v3691_v9 = vpop.f32.mrf.mxu2 }
 0x2a1   : > { %4395 = vst.msk [vmem:[%s6331_s22 + $0x110] sm:$0xff] %vm448_vm0, %v3691_v9 }
 0x2a6   : > { %v3760_v30 = vpop.f32.mrf.mxu1 }
 0x2a7   : > { %v3714_v21 = vpop.f32.mrf.mxu3  ;;  %4398 = vst.msk [vmem:[%s6331_s22 + $0x128] sm:$0xff] %vm448_vm0, %v3760_v30 }
 0x2a8   : > { %4396 = vst.msk [vmem:[%s6331_s22 + $0x118] sm:$0xff] %vm448_vm0, %v3714_v21  ;;  %v3783_v39 = vpop.f32.mrf.mxu2 }
 0x2a9   : > { %4399 = vst.msk [vmem:[%s6331_s22 + $0x130] sm:$0xff] %vm448_vm0, %v3783_v39 }
 0x2ae   : > { %v3829_v44 = vpop.f32.mrf.mxu0  ;;  %v3852_v47 = vpop.f32.mrf.mxu1 }
 0x2af   : > { %v3806_v2 = vpop.f32.mrf.mxu3  ;;  %4401 = vst.msk [vmem:[%s6331_s22 + $0x140] sm:$0xff] %vm448_vm0, %v3829_v44 }
 0x2b0   : > { %4400 = vst.msk [vmem:[%s6331_s22 + $0x138] sm:$0xff] %vm448_vm0, %v3806_v2 }
 0x2b1   : > { %4402 = vst.msk [vmem:[%s6331_s22 + $0x148] sm:$0xff] %vm448_vm0, %v3852_v47 }
 0x2b6   : > { %v3944_v63 = vpop.f32.mrf.mxu1 }
 0x2b7   : > { %v3875_v37 = vpop.f32.mrf.mxu2  ;;  %v3898_v29 = vpop.f32.mrf.mxu3  ;;  %4406 = vst.msk [vmem:[%s6331_s22 + $0x168] sm:$0xff] %vm448_vm0, %v3944_v63 }
 0x2b8   : > { %4403 = vst.msk [vmem:[%s6331_s22 + $0x150] sm:$0xff] %vm448_vm0, %v3875_v37 }
 0x2b9   : > { %4404 = vst.msk [vmem:[%s6331_s22 + $0x158] sm:$0xff] %vm448_vm0, %v3898_v29  ;;  %v3921_v6 = vpop.f32.mrf.mxu0 }
 0x2ba   : > { %4405 = vst.msk [vmem:[%s6331_s22 + $0x160] sm:$0xff] %vm448_vm0, %v3921_v6 }
 0x2be   : > { %v4036_v33 = vpop.f32.mrf.mxu1 }
 0x2bf   : > { %v3967_v57 = vpop.f32.mrf.mxu2  ;;  %4410 = vst.msk [vmem:[%s6331_s22 + $0x188] sm:$0xff] %vm448_vm0, %v4036_v33 }
 0x2c0   : > { %4407 = vst.msk [vmem:[%s6331_s22 + $0x170] sm:$0xff] %vm448_vm0, %v3967_v57  ;;  %v3990_v27 = vpop.f32.mrf.mxu3 }
 0x2c1   : > { %4408 = vst.msk [vmem:[%s6331_s22 + $0x178] sm:$0xff] %vm448_vm0, %v3990_v27  ;;  %v4013_v25 = vpop.f32.mrf.mxu0 }
 0x2c2   : > { %4409 = vst.msk [vmem:[%s6331_s22 + $0x180] sm:$0xff] %vm448_vm0, %v4013_v25 }
 0x2c8   : > { %v4082_v15 = vpop.f32.mrf.mxu3 }
 0x2c9   : > { %4412 = vst.msk [vmem:[%s6331_s22 + $0x198] sm:$0xff] %vm448_vm0, %v4082_v15 }
 0x2ca   : > { %v4128_v7 = vpop.f32.mrf.mxu1 }
 0x2cb   : > { %4414 = vst.msk [vmem:[%s6331_s22 + $0x1a8] sm:$0xff] %vm448_vm0, %v4128_v7 }
 0x2cd   : > { %v4059_v14 = vpop.f32.mrf.mxu2 }
 0x2ce   : > { %4411 = vst.msk [vmem:[%s6331_s22 + $0x190] sm:$0xff] %vm448_vm0, %v4059_v14 }
 0x2cf   : > { %v4105_v42 = vpop.f32.mrf.mxu0 }
 0x2d0   : > { %4413 = vst.msk [vmem:[%s6331_s22 + $0x1a0] sm:$0xff] %vm448_vm0, %v4105_v42  ;;  %v4174_v20 = vpop.f32.mrf.mxu3 }
 0x2d1   : > { %4416 = vst.msk [vmem:[%s6331_s22 + $0x1b8] sm:$0xff] %vm448_vm0, %v4174_v20 }
 0x2d8   : > { %v4151_v45 = vpop.f32.mrf.mxu2 }
 0x2d9   : > { %4415 = vst.msk [vmem:[%s6331_s22 + $0x1b0] sm:$0xff] %vm448_vm0, %v4151_v45 }
 0x2da   : > { %v4220_v54 = vpop.f32.mrf.mxu1 }
 0x2db   : > { %v4197_v4 = vpop.f32.mrf.mxu0  ;;  %4418 = vst.msk [vmem:[%s6331_s22 + $0x1c8] sm:$0xff] %vm448_vm0, %v4220_v54 }
 0x2dc   : > { %4417 = vst.msk [vmem:[%s6331_s22 + $0x1c0] sm:$0xff] %vm448_vm0, %v4197_v4 }
 0x2dd   : > { %v4266_v49 = vpop.f32.mrf.mxu3 }
 0x2de   : > { %4420 = vst.msk [vmem:[%s6331_s22 + $0x1d8] sm:$0xff] %vm448_vm0, %v4266_v49 }
 0x2e0   : > { %v4243_v50 = vpop.f32.mrf.mxu2 }
 0x2e1   : > { %4419 = vst.msk [vmem:[%s6331_s22 + $0x1d0] sm:$0xff] %vm448_vm0, %v4243_v50 }
 0x2e3   : > { %v4289_v31 = vpop.f32.mrf.mxu0 }
 0x2e4   : > { %4421 = vst.msk [vmem:[%s6331_s22 + $0x1e0] sm:$0xff] %vm448_vm0, %v4289_v31 }
 0x2e7   : > { %v4312_v3 = vpop.f32.mrf.mxu1 }
 0x2e8   : > { %v4335_v17 = vpop.f32.mrf.mxu2  ;;  %4422 = vst.msk [vmem:[%s6331_s22 + $0x1e8] sm:$0xff] %vm448_vm0, %v4312_v3  ;;  %v4358_v1 = vpop.f32.mrf.mxu3 }
 0x2e9   : > { %4423 = vst.msk [vmem:[%s6331_s22 + $0x1f0] sm:$0xff] %vm448_vm0, %v4335_v17 }
 0x2ea   : > { %4424 = vst.msk [vmem:[%s6331_s22 + $0x1f8] sm:$0xff] %vm448_vm0, %v4358_v1 }
 0x2eb PF: > { %s14_s15 = sadd.s32 1, %s4992_s15  }
 0x2ec   : > { %p11_p4 = scmp.ge.s32.totalorder %s14_s15, 4  }
 0x2ee   :  { %13 = sbr.rel (!%p11_p4) target bundleno = 1 (0x1), region = 72 }

// kernel: _lambda_.7
= control target key start
LH: loop header
LB: loop body
LE: loop exit
PB: predicated region body
PF: predicated region fallthrough
CT: control target
= control target key end

     0   :  { %vm989_vm0 = vcmask 523264   ;;  %s2766_s0 = inlined_call_operand.vmem [shape: f32[2,12,12,64], index: 0, kind: input, shape index: {}]   ;;  %s2767_s1 = inlined_call_operand.vmem [shape: f32[25,64], index: 1, kind: input, shape index: {}]   ;;  %s2768_s2 = inlined_call_operand.vmem [shape: f32[1,64], index: 2, kind: input, shape index: {}]   ;;  %s2769_s3 = inlined_call_operand.vmem [shape: f32[2,8,8,64], index: 3, kind: output, shape index: {}]  }
   0x1   :  { %v1085_v0 = vld [vmem:[%s2768_s2] ss:$0 sm:$0xff]  ;;  %v20_v2 = vld [vmem:[%s2766_s0 + $0x10] sm:$0xff]  ;;  %v1101_v4 = vld [vmem:[%s2767_s1 + $0x5] ss:$0 sm:$0xff] }
   0x2   :  { %2825 = vst [vmem:[#allocation2_spill] sm:$0xff] %v1085_v0  ;;  %v19_v1 = vld [vmem:[%s2766_s0] sm:$0xff]  ;;  %v1107_v6 = vld [vmem:[%s2767_s1 + $0xa] ss:$0 sm:$0xff]  ;;  %v1112_v7 = vld [vmem:[%s2767_s1 + $0xf] ss:$0 sm:$0xff]  ;;  %v79_v9 = vmul.f32 %v1101_v4, %v20_v2 }
   0x3   :  { %v1096_v3 = vld [vmem:[%s2767_s1] ss:$0 sm:$0xff]  ;;  %2827 = vst [vmem:[#allocation4_spill] sm:$0xff] %v1107_v6  ;;  %v1123_v12 = vld [vmem:[%s2767_s1 + $0x14] ss:$0 sm:$0xff]  ;;  %v213_v19 = vld [vmem:[%s2766_s0 + $0x1] sm:$0xff] }
   0x4   :  { %2826 = vst [vmem:[#allocation3_spill] sm:$0xff] %v1096_v3  ;;  %v45_v5 = vmul.f32 %v1096_v3, %v19_v1  ;;  %v21_v8 = vld [vmem:[%s2766_s0 + $0x20] sm:$0xff]  ;;  %v22_v13 = vld [vmem:[%s2766_s0 + $0x30] sm:$0xff]  ;;  %v46_v14 = vmul.f32 %v1096_v3, %v20_v2  ;;  %v1154_v28 = vld [vmem:[%s2767_s1 + $0xb] ss:$0 sm:$0xff] }
   0x5   :  { %2828 = vst [vmem:[#allocation5_spill] sm:$0xff] %v1112_v7  ;;  %v113_v11 = vmul.f32 %v1107_v6, %v21_v8  ;;  %v147_v16 = vmul.f32 %v1112_v7, %v22_v13  ;;  %v1133_v17 = vld [vmem:[%s2767_s1 + $0x1] ss:$0 sm:$0xff]  ;;  %v1145_v22 = vld [vmem:[%s2767_s1 + $0x6] ss:$0 sm:$0xff]  ;;  %v80_v24 = vmul.f32 %v1101_v4, %v21_v8  ;;  %v47_v25 = vmul.f32 %v1096_v3, %v21_v8  ;;  %v214_v29 = vld [vmem:[%s2766_s0 + $0x11] sm:$0xff] }
   0x6   :  { %v61_v10 = vadd.f32 %v1085_v0, %v45_v5  ;;  %2829 = vst [vmem:[#allocation6_spill] sm:$0xff] %v1123_v12  ;;  %v23_v18 = vld [vmem:[%s2766_s0 + $0x40] sm:$0xff]  ;;  %v62_v23 = vadd.f32 %v1085_v0, %v46_v14  ;;  %v239_v27 = vmul.f32 %v1133_v17, %v213_v19  ;;  %v273_v31 = vmul.f32 %v1145_v22, %v214_v29  ;;  %v1163_v32 = vld [vmem:[%s2767_s1 + $0x10] ss:$0 sm:$0xff]  ;;  %v1175_v40 = vld [vmem:[%s2767_s1 + $0x15] ss:$0 sm:$0xff] }
   0x7   :  { %2830 = vst [vmem:[#allocation7_spill] sm:$0xff] %v1133_v17  ;;  %v181_v21 = vmul.f32 %v1123_v12, %v23_v18  ;;  %v215_v33 = vld [vmem:[%s2766_s0 + $0x21] sm:$0xff]  ;;  %v114_v35 = vmul.f32 %v1107_v6, %v22_v13  ;;  %v63_v36 = vadd.f32 %v1085_v0, %v47_v25  ;;  %v81_v37 = vmul.f32 %v1101_v4, %v22_v13  ;;  %v216_v42 = vld [vmem:[%s2766_s0 + $0x31] sm:$0xff]  ;;  %v1209_v57 = vld [vmem:[%s2767_s1 + $0xc] ss:$0 sm:$0xff] }
   0x8   :  { %v95_v15 = vadd.f32 %v79_v9, %v61_v10  ;;  %2831 = vst [vmem:[#allocation8_spill] sm:$0xff] %v1145_v22  ;;  %v96_v34 = vadd.f32 %v80_v24, %v62_v23  ;;  %v307_v39 = vmul.f32 %v1154_v28, %v215_v33  ;;  %v48_v41 = vmul.f32 %v1096_v3, %v22_v13  ;;  %v1185_v45 = vld [vmem:[%s2767_s1 + $0x2] ss:$0 sm:$0xff]  ;;  %v1202_v54 = vld [vmem:[%s2767_s1 + $0x7] ss:$0 sm:$0xff]  ;;  %v408_v62 = vld [vmem:[%s2766_s0 + $0x12] sm:$0xff] }
   0x9   :  { %2832 = vst [vmem:[#allocation9_spill] sm:$0xff] %v1163_v32  ;;  %v341_v44 = vmul.f32 %v1163_v32, %v216_v42  ;;  %v1190_v46 = vld [vmem:[%s2766_s0 + $0x41] sm:$0xff]  ;;  %v148_v49 = vmul.f32 %v1112_v7, %v23_v18  ;;  %v97_v50 = vadd.f32 %v81_v37, %v63_v36  ;;  %v115_v51 = vmul.f32 %v1107_v6, %v23_v18  ;;  %v1225_v1 = vld [vmem:[%s2767_s1 + $0x11] ss:$0 sm:$0xff]  ;;  %v1237_v8 = vld [vmem:[%s2767_s1 + $0x16] ss:$0 sm:$0xff] }
   0xa   :  { %v129_v20 = vadd.f32 %v113_v11, %v95_v15  ;;  %2833 = vst [vmem:[#allocation10_spill] sm:$0xff] %v1185_v45  ;;  %v407_v47 = vld [vmem:[%s2766_s0 + $0x2] sm:$0xff]  ;;  %v130_v48 = vadd.f32 %v114_v35, %v96_v34  ;;  %v375_v53 = vmul.f32 %v1175_v40, %v1190_v46  ;;  %v64_v55 = vadd.f32 %v1085_v0, %v48_v41  ;;  %v1265_v24 = vld [vmem:[%s2766_s0 + $0x50] sm:$0xff] }
   0xb   :  { %2834 = vst [vmem:[#allocation11_spill] sm:$0xff] %v1202_v54  ;;  %v82_v56 = vmul.f32 %v1101_v4, %v23_v18  ;;  %v240_v58 = vmul.f32 %v1133_v17, %v214_v29  ;;  %v1213_v59 = vmul.f32 %v1145_v22, %v215_v33  ;;  %v1216_v60 = vmul.f32 %v1133_v17, %v215_v33  ;;  %v409_v15 = vld [vmem:[%s2766_s0 + $0x22] sm:$0xff] }
   0xc   :  { %v163_v26 = vadd.f32 %v147_v16, %v129_v20  ;;  %2835 = vst [vmem:[#allocation12_spill] sm:$0xff] %v1209_v57  ;;  %v433_v63 = vmul.f32 %v1185_v45, %v407_v47  ;;  %v1228_v2 = vmul.f32 %v1154_v28, %v216_v42  ;;  %v1232_v5 = vmul.f32 %v1163_v32, %v1190_v46  ;;  %v410_v16 = vld [vmem:[%s2766_s0 + $0x32] sm:$0xff]  ;;  %v1280_v29 = vld [vmem:[%s2766_s0 + $0x42] sm:$0xff] }
   0xd   :  { %2836 = vst [vmem:[#allocation13_spill] sm:$0xff] %v1237_v8  ;;  %v164_v9 = vadd.f32 %v148_v49, %v130_v48  ;;  %v131_v10 = vadd.f32 %v115_v51, %v97_v50  ;;  %v1240_v11 = vmul.f32 %v1145_v22, %v216_v42  ;;  %v49_v13 = vmul.f32 %v1096_v3, %v23_v18  ;;  %v1260_v18 = vld [vmem:[%s2767_s1 + $0x3] ss:$0 sm:$0xff]  ;;  %v1289_v34 = vld [vmem:[%s2767_s1 + $0x8] ss:$0 sm:$0xff] }
   0xe   :  { %v197_v30 = vadd.f32 %v181_v21, %v163_v26  ;;  %v467_v19 = vmul.f32 %v1202_v54, %v408_v62  ;;  %v1252_v20 = vmul.f32 %v1154_v28, %v1190_v46  ;;  %v1254_v21 = vadd.f32 %v82_v56, %v64_v55  ;;  %2837 = vst [vmem:[#allocation14_spill] sm:$0xff] %v1280_v29  ;;  %v601_v33 = vld [vmem:[%s2766_s0 + $0x3] sm:$0xff]  ;;  %v1320_v47 = vld [vmem:[%s2767_s1 + $0x17] ss:$0 sm:$0xff] }
   0xf   :  { %v501_v23 = vmul.f32 %v1209_v57, %v409_v15  ;;  %v1268_v25 = vmul.f32 %v1185_v45, %v408_v62  ;;  %v1271_v26 = vmul.f32 %v1133_v17, %v216_v42  ;;  %v182_v35 = vmul.f32 %v1123_v12, %v1265_v24  ;;  %2841 = vst [vmem:[#allocation18_spill] sm:$0xff] %v1320_v47  ;;  %v1328_v50 = vld [vmem:[%s2766_s0 + $0x60] sm:$0xff] }
  0x10   :  { %v255_v38 = vadd.f32 %v239_v27, %v197_v30  ;;  %v1275_v27 = vmul.f32 %v1145_v22, %v1190_v46  ;;  %v1294_v36 = vmul.f32 %v1202_v54, %v409_v15  ;;  %v569_v37 = vmul.f32 %v1237_v8, %v1280_v29  ;;  %v1340_v55 = vld [vmem:[%s2767_s1 + $0x4] ss:$0 sm:$0xff] }
  0x11   :  { %v1309_v41 = vmul.f32 %v1185_v45, %v409_v15  ;;  %v1312_v42 = vmul.f32 %v1185_v45, %v410_v16  ;;  %v198_v48 = vadd.f32 %v182_v35, %v164_v9  ;;  %v1323_v49 = vmul.f32 %v1209_v57, %v410_v16  ;;  %v1353_v9 = vld [vmem:[%s2766_s0 + $0x23] sm:$0xff] }
  0x12   :  { %v289_v43 = vadd.f32 %v273_v31, %v255_v38  ;;  %v535_v31 = vmul.f32 %v1225_v1, %v410_v16  ;;  %v1301_v38 = vld [vmem:[%s2767_s1 + $0xd] ss:$0 sm:$0xff]  ;;  %v1331_v51 = vmul.f32 %v1202_v54, %v410_v16  ;;  %v149_v56 = vmul.f32 %v1112_v7, %v1265_v24  ;;  %v795_v15 = vld [vmem:[%s2766_s0 + $0x4] sm:$0xff] }
  0x13   :  { %2838 = vst [vmem:[#allocation15_spill] sm:$0xff] %v1301_v38  ;;  %v1348_v62 = vmul.f32 %v1202_v54, %v1280_v29  ;;  %v256_v16 = vadd.f32 %v240_v58, %v198_v48  ;;  %v1386_v54 = vld [vmem:[%s2767_s1 + $0x9] ss:$0 sm:$0xff] }
  0x14   :  { %v323_v52 = vadd.f32 %v307_v39, %v289_v43  ;;  %v1306_v39 = vld [vmem:[%s2767_s1 + $0x12] ss:$0 sm:$0xff]  ;;  %2840 = vst [vmem:[#allocation17_spill] sm:$0xff] %v1312_v42  ;;  %v1315_v43 = vadd.f32 %v1085_v0, %v49_v13  ;;  %v1358_v13 = vld [vmem:[%s2766_s0 + $0x33] sm:$0xff]  ;;  %v165_v35 = vadd.f32 %v149_v56, %v131_v10  ;;  %v1391_v0 = vmul.f32 %v1133_v17, %v1190_v46  ;;  %v1408_v46 = vld [vmem:[%s2767_s1 + $0xe] ss:$0 sm:$0xff] }
  0x15   :  { %2839 = vst [vmem:[#allocation16_spill] sm:$0xff] %v1306_v39  ;;  %v290_v45 = vadd.f32 %v1213_v59, %v256_v16  ;;  %v1394_v10 = vmul.f32 %v1340_v55, %v795_v15  ;;  %v1413_v15 = vld [vmem:[%s2767_s1 + $0x13] ss:$0 sm:$0xff]  ;;  %v1432_v17 = vld [vmem:[%s2767_s1 + $0x18] ss:$0 sm:$0xff] }
  0x16   :  { %v357_v61 = vadd.f32 %v341_v44, %v323_v52  ;;  %v602_v52 = vld [vmem:[%s2766_s0 + $0x13] sm:$0xff]  ;;  %2842 = vst [vmem:[#allocation19_spill] sm:$0xff] %v1348_v62 }
  0x17   :  { %2843 = vst [vmem:[#allocation20_spill] sm:$0xff] %v1391_v0  ;;  %v324_v16 = vadd.f32 %v1228_v2, %v290_v45  ;;  %v1436_v45 = vmul.f32 %v1289_v34, %v1353_v9 }
  0x18   :  { %v391_v14 = vadd.f32 %v375_v53, %v357_v61  ;;  %v627_v53 = vmul.f32 %v1260_v18, %v601_v33  ;;  %v183_v61 = vmul.f32 %v1123_v12, %v1328_v50  ;;  %v729_v33 = vmul.f32 %v1306_v39, %v1358_v13  ;;  %2845 = vst [vmem:[#allocation22_spill] sm:$0xff] %v1432_v17 }
  0x19   :  { %2846 = vst [vmem:[#allocation23_spill] sm:$0xff] %v1436_v45  ;;  %v358_v62 = vadd.f32 %v1232_v5, %v324_v16  ;;  %v1451_v45 = vld [vmem:[%s2766_s0 + $0x24] sm:$0xff] }
  0x1a   :  { %v449_v30 = vadd.f32 %v433_v63, %v391_v14  ;;  %v661_v14 = vmul.f32 %v1289_v34, %v602_v52  ;;  %v199_v56 = vadd.f32 %v183_v61, %v165_v35  ;;  %v1419_v35 = vmul.f32 %v1260_v18, %v602_v52 }
  0x1b   :  { %v889_v16 = vmul.f32 %v1408_v46, %v1451_v45 }
  0x1c   :  { %v483_v44 = vadd.f32 %v467_v19, %v449_v30  ;;  %v1366_v19 = vmul.f32 %v1225_v1, %v1280_v29  ;;  %v695_v30 = vmul.f32 %v1301_v38, %v1353_v9  ;;  %2844 = vst [vmem:[#allocation21_spill] sm:$0xff] %v1419_v35  ;;  %v257_v2 = vadd.f32 %v1216_v60, %v199_v56  ;;  %v1456_v60 = vld [vmem:[%s2766_s0 + $0x34] sm:$0xff] }
  0x1e   :  { %v517_v63 = vadd.f32 %v501_v23, %v483_v44  ;;  %v1371_v23 = vld [vmem:[%s2766_s0 + $0x43] sm:$0xff]  ;;  %v1379_v44 = vmul.f32 %v1209_v57, %v1280_v29  ;;  %v150_v29 = vmul.f32 %v1112_v7, %v1328_v50  ;;  %v1446_v57 = vmul.f32 %v1301_v38, %v1358_v13 }
  0x1f   :  { %v763_v48 = vmul.f32 %v1320_v47, %v1371_v23  ;;  %v291_v5 = vadd.f32 %v1240_v11, %v257_v2  ;;  %v1479_v11 = vld [vmem:[%s2766_s0 + $0x61] sm:$0xff] }
  0x20   :  { %v551_v58 = vadd.f32 %v535_v31, %v517_v63  ;;  %v1399_v31 = vld [vmem:[%s2766_s0 + $0x51] sm:$0xff]  ;;  %v116_v63 = vmul.f32 %v1107_v6, %v1265_v24  ;;  %2847 = vst [vmem:[#allocation24_spill] sm:$0xff] %v1446_v57  ;;  %v1474_v57 = vmul.f32 %v1413_v15, %v1456_v60 }
  0x21   :  { %v376_v61 = vmul.f32 %v1175_v40, %v1399_v31 }
  0x22   :  { %v585_v59 = vadd.f32 %v569_v37, %v551_v58  ;;  %v1424_v37 = vld [vmem:[%s2766_s0 + $0x70] sm:$0xff]  ;;  %v132_v52 = vadd.f32 %v116_v63, %v1254_v21  ;;  %v1460_v21 = vmul.f32 %v1306_v39, %v1371_v23  ;;  %2849 = vst [vmem:[#allocation26_spill] sm:$0xff] %v1474_v57 }
  0x23   :  { %v796_v58 = vld [vmem:[%s2766_s0 + $0x14] sm:$0xff]  ;;  %v184_v3 = vmul.f32 %v1123_v12, %v1424_v37 }
  0x24   :  { %v643_v0 = vadd.f32 %v627_v53, %v585_v59  ;;  %v855_v22 = vmul.f32 %v1386_v54, %v796_v58  ;;  %2848 = vst [vmem:[#allocation25_spill] sm:$0xff] %v1460_v21  ;;  %v343_v53 = vmul.f32 %v1163_v32, %v1399_v31  ;;  %v166_v56 = vadd.f32 %v150_v29, %v132_v52  ;;  %v1468_v59 = vld [vmem:[%s2766_s0 + $0x44] sm:$0xff]  ;;  %v1488_v29 = vld [vmem:[%s2766_s0 + $0x52] sm:$0xff] }
  0x25   :  { %v392_v21 = vadd.f32 %v376_v61, %v358_v62  ;;  %2851 = vst [vmem:[#allocation28_spill] sm:$0xff] %v1488_v29  ;;  %v325_v62 = vadd.f32 %v1252_v20, %v291_v5  ;;  %v377_v61 = vmul.f32 %v1175_v40, %v1479_v11  ;;  %v1506_v12 = vmul.f32 %v1340_v55, %v796_v58  ;;  %v1523_v58 = vld [vmem:[%s2766_s0 + $0x62] sm:$0xff] }
  0x26   :  { %v677_v63 = vadd.f32 %v661_v14, %v643_v0  ;;  %v1483_v0 = vmul.f32 %v1432_v17, %v1468_v59  ;;  %v1493_v14 = vld [vmem:[%s2766_s0 + $0x53] sm:$0xff]  ;;  %v200_v2 = vadd.f32 %v184_v3, %v166_v56  ;;  %v310_v5 = vmul.f32 %v1154_v28, %v1399_v31 }
  0x27   :  { %v450_v57 = vadd.f32 %v1268_v25, %v392_v21  ;;  %v1503_v42 = vmul.f32 %v1320_v47, %v1493_v14  ;;  %v359_v35 = vadd.f32 %v343_v53, %v325_v62  ;;  %v1514_v25 = vmul.f32 %v1386_v54, %v1451_v45  ;;  %v1538_v62 = vld [vmem:[%s2766_s0 + $0x71] sm:$0xff] }
  0x28   :  { %2850 = vst [vmem:[#allocation27_spill] sm:$0xff] %v1483_v0  ;;  %v711_v52 = vadd.f32 %v695_v30, %v677_v63  ;;  %v570_v0 = vmul.f32 %v1237_v8, %v1488_v29  ;;  %v258_v20 = vadd.f32 %v1271_v26, %v200_v2  ;;  %v1518_v21 = vmul.f32 %v1408_v46, %v1456_v60 }
  0x29   :  { %v484_v30 = vadd.f32 %v1294_v36, %v450_v57  ;;  %v393_v56 = vadd.f32 %v377_v61, %v359_v35  ;;  %v537_v26 = vmul.f32 %v1225_v1, %v1488_v29  ;;  %v344_v57 = vmul.f32 %v1163_v32, %v1479_v11 }
  0x2a   :  { %v745_v3 = vadd.f32 %v729_v33, %v711_v52  ;;  %2852 = vst [vmem:[#allocation29_spill] sm:$0xff] %v1518_v21  ;;  %v292_v33 = vadd.f32 %v1275_v27, %v258_v20  ;;  %v571_v63 = vmul.f32 %v1237_v8, %v1523_v58  ;;  %v629_v35 = vmul.f32 %v1260_v18, %v1353_v9 }
  0x2b   :  { %v518_v53 = vadd.f32 %v1323_v49, %v484_v30  ;;  %v451_v27 = vadd.f32 %v1309_v41, %v393_v56  ;;  %v663_v61 = vmul.f32 %v1289_v34, %v1358_v13  ;;  %v378_v49 = vmul.f32 %v1175_v40, %v1538_v62 }
  0x2c   :  { %v779_v36 = vadd.f32 %v763_v48, %v745_v3  ;;  %v326_v48 = vadd.f32 %v310_v5, %v292_v33  ;;  %v83_v9 = vmul.f32 %v1101_v4, %v1265_v24  ;;  %v117_v20 = vmul.f32 %v1107_v6, %v1328_v50 }
  0x2d   :  { %v552_v52 = vadd.f32 %v1366_v19, %v518_v53  ;;  %v1553_v41 = vmul.f32 %v1413_v15, %v1468_v59  ;;  %v485_v3 = vadd.f32 %v1331_v51, %v451_v27  ;;  %v697_v5 = vmul.f32 %v1301_v38, %v1371_v23  ;;  %v1561_v19 = vld [vmem:[%s2766_s0 + $0x54] sm:$0xff] }
  0x2e   :  { %v837_v2 = vadd.f32 %v1394_v10, %v779_v36  ;;  %v360_v30 = vadd.f32 %v344_v57, %v326_v48  ;;  %v99_v33 = vadd.f32 %v83_v9, %v1315_v43  ;;  %v151_v36 = vmul.f32 %v1112_v7, %v1424_v37  ;;  %v1576_v57 = vld [vmem:[%s2766_s0 + $0x80] sm:$0xff]  ;;  %v2855_v43 = vld [vmem:[#allocation21_spill] sm:$0xff] }
  0x2f   :  { %2853 = vst [vmem:[#allocation30_spill] sm:$0xff] %v1553_v41  ;;  %v586_v10 = vadd.f32 %v570_v0, %v552_v52  ;;  %v1568_v53 = vmul.f32 %v1432_v17, %v1561_v19  ;;  %v519_v51 = vadd.f32 %v1379_v44, %v485_v3  ;;  %v2856_v44 = vld [vmem:[#allocation6_spill] sm:$0xff]  ;;  %v2858_v41 = vld [vmem:[#allocation12_spill] sm:$0xff]  ;;  %v823_v7 = vmul.f32 %v1340_v55, %v1451_v45 }
  0x30   :  { %v871_v56 = vadd.f32 %v855_v22, %v837_v2  ;;  %v731_v22 = vmul.f32 %v1306_v39, %v1493_v14  ;;  %v394_v0 = vadd.f32 %v378_v49, %v360_v30  ;;  %v1582_v2 = vld [vmem:[%s2766_s0 + $0x63] sm:$0xff]  ;;  %v133_v52 = vadd.f32 %v117_v20, %v99_v33  ;;  %v2857_v30 = vld [vmem:[#allocation17_spill] sm:$0xff] }
  0x31   :  { %2854 = vst [vmem:[#allocation31_spill] sm:$0xff] %v1568_v53  ;;  %v644_v48 = vadd.f32 %v2855_v43, %v586_v10  ;;  %v185_v9 = vmul.f32 %v2856_v44, %v1576_v57  ;;  %v553_v3 = vadd.f32 %v537_v26, %v519_v51  ;;  %v765_v49 = vmul.f32 %v1320_v47, %v1582_v2  ;;  %v2860_v43 = vld [vmem:[#allocation23_spill] sm:$0xff] }
  0x32   :  { %v905_v27 = vadd.f32 %v889_v16, %v871_v56  ;;  %v452_v53 = vadd.f32 %v2857_v30, %v394_v0  ;;  %v504_v16 = vmul.f32 %v2858_v41, %v1488_v29  ;;  %v2859_v56 = vld [vmem:[#allocation26_spill] sm:$0xff]  ;;  %v167_v20 = vadd.f32 %v151_v36, %v133_v52  ;;  %v2861_v51 = vld [vmem:[#allocation19_spill] sm:$0xff]  ;;  %v2863_v41 = vld [vmem:[#allocation24_spill] sm:$0xff] }
  0x33   :  { %v678_v21 = vadd.f32 %v2860_v43, %v644_v48  ;;  %v587_v33 = vadd.f32 %v571_v63, %v553_v3  ;;  %v857_v26 = vmul.f32 %v1386_v54, %v1456_v60  ;;  %v538_v0 = vmul.f32 %v1225_v1, %v1523_v58  ;;  %v2862_v30 = vld [vmem:[#allocation27_spill] sm:$0xff]  ;;  %v2864_v63 = vld [vmem:[#allocation8_spill] sm:$0xff] }
  0x34   :  { %v939_v10 = vadd.f32 %v2859_v56, %v905_v27  ;;  %v486_v44 = vadd.f32 %v2861_v51, %v452_v53  ;;  %v1605_v27 = vld [vmem:[%s2766_s0 + $0x72] sm:$0xff]  ;;  %v201_v45 = vadd.f32 %v185_v9, %v167_v20  ;;  %v277_v36 = vmul.f32 %v2864_v63, %v1399_v31  ;;  %v1621_v9 = vld [vmem:[%s2766_s0 + $0x64] sm:$0xff] }
  0x35   :  { %v712_v29 = vadd.f32 %v2863_v41, %v678_v21  ;;  %v645_v48 = vadd.f32 %v629_v35, %v587_v33  ;;  %v891_v53 = vmul.f32 %v1408_v46, %v1468_v59  ;;  %v572_v3 = vmul.f32 %v1237_v8, %v1605_v27  ;;  %v2865_v21 = vld [vmem:[#allocation25_spill] sm:$0xff] }
  0x36   :  { %v973_v47 = vadd.f32 %v2862_v30, %v939_v10  ;;  %v520_v52 = vadd.f32 %v504_v16, %v486_v44  ;;  %v1625_v35 = vmul.f32 %v1413_v15, %v1561_v19  ;;  %v2866_v44 = vld [vmem:[#allocation20_spill] sm:$0xff]  ;;  %v311_v56 = vmul.f32 %v1154_v28, %v1479_v11 }
  0x37   :  { %v746_v41 = vadd.f32 %v2865_v21, %v712_v29  ;;  %v259_v16 = vadd.f32 %v2866_v44, %v201_v45  ;;  %v679_v10 = vadd.f32 %v663_v61, %v645_v48  ;;  %v630_v43 = vmul.f32 %v1260_v18, %v1358_v13  ;;  %v1644_v61 = vld [vmem:[%s2766_s0 + $0x81] sm:$0xff] }
  0x38   :  { %990 = vst.msk [vmem:[%s2769_s3] sm:$0xff] %vm989_vm0, %v973_v47  ;;  %v1632_v47 = vmul.f32 %v1432_v17, %v1621_v9  ;;  %v554_v29 = vadd.f32 %v538_v0, %v520_v52  ;;  %v664_v33 = vmul.f32 %v1289_v34, %v1371_v23  ;;  %v345_v30 = vmul.f32 %v1163_v32, %v1538_v62  ;;  %v2867_v0 = vld [vmem:[#allocation3_spill] sm:$0xff]  ;;  %v2868_v44 = vld [vmem:[#allocation2_spill] sm:$0xff] }
  0x39   :  { %v780_v20 = vadd.f32 %v1503_v42, %v746_v41  ;;  %v293_v51 = vadd.f32 %v277_v36, %v259_v16  ;;  %v713_v45 = vadd.f32 %v697_v5, %v679_v10  ;;  %v50_v48 = vmul.f32 %v2867_v0, %v1265_v24  ;;  %v2870_v17 = vld [vmem:[#allocation10_spill] sm:$0xff] }
  0x3a   :  { %v588_v21 = vadd.f32 %v572_v3, %v554_v29  ;;  %v84_v42 = vmul.f32 %v1101_v4, %v1328_v50  ;;  %v698_v36 = vmul.f32 %v1301_v38, %v1493_v14  ;;  %v379_v5 = vmul.f32 %v1175_v40, %v1644_v61 }
  0x3b   :  { %v838_v13 = vadd.f32 %v1506_v12, %v780_v20  ;;  %v327_v52 = vadd.f32 %v311_v56, %v293_v51  ;;  %v747_v3 = vadd.f32 %v731_v22, %v713_v45  ;;  %v66_v16 = vadd.f32 %v2868_v44, %v50_v48  ;;  %v2869_v20 = vld [vmem:[#allocation14_spill] sm:$0xff]  ;;  %v1666_v22 = vld [vmem:[%s2766_s0 + $0x73] sm:$0xff] }
  0x3c   :  { %v646_v41 = vadd.f32 %v630_v43, %v588_v21  ;;  %v118_v10 = vmul.f32 %v1107_v6, %v1424_v37  ;;  %v732_v29 = vmul.f32 %v1306_v39, %v1582_v2  ;;  %v437_v38 = vmul.f32 %v2870_v17, %v2869_v20  ;;  %2871 = vst [vmem:[#allocation21_spill] sm:$0xff] %v1666_v22  ;;  %v2872_v45 = vld [vmem:[#allocation5_spill] sm:$0xff]  ;;  %v2876_v6 = vld [vmem:[#allocation11_spill] sm:$0xff] }
  0x3d   :  { %v872_v24 = vadd.f32 %v1514_v25, %v838_v13  ;;  %v361_v12 = vadd.f32 %v345_v30, %v327_v52  ;;  %v781_v56 = vadd.f32 %v765_v49, %v747_v3  ;;  %v100_v51 = vadd.f32 %v84_v42, %v66_v16  ;;  %v2873_v48 = vld [vmem:[#allocation29_spill] sm:$0xff]  ;;  %v2874_v13 = vld [vmem:[#allocation18_spill] sm:$0xff]  ;;  %v2875_v52 = vld [vmem:[#allocation28_spill] sm:$0xff] }
  0x3e   :  { %v680_v43 = vadd.f32 %v664_v33, %v646_v41  ;;  %v152_v21 = vmul.f32 %v2872_v45, %v1576_v57  ;;  %v766_v39 = vmul.f32 %v2874_v13, %v1666_v22  ;;  %v471_v20 = vmul.f32 %v2876_v6, %v2875_v52  ;;  %v1678_v49 = vld [vmem:[%s2766_s0 + $0x90] sm:$0xff]  ;;  %v2877_v41 = vld [vmem:[#allocation6_spill] sm:$0xff]  ;;  %v2880_v52 = vld [vmem:[#allocation7_spill] sm:$0xff] }
  0x3f   :  { %v906_v25 = vadd.f32 %v2873_v48, %v872_v24  ;;  %v395_v30 = vadd.f32 %v379_v5, %v361_v12  ;;  %v839_v3 = vadd.f32 %v823_v7, %v781_v56  ;;  %v134_v42 = vadd.f32 %v118_v10, %v100_v51  ;;  %v2878_v45 = vld [vmem:[#allocation30_spill] sm:$0xff]  ;;  %v2879_v12 = vld [vmem:[#allocation12_spill] sm:$0xff] }
  0x40   :  { %v714_v33 = vadd.f32 %v698_v36, %v680_v43  ;;  %v186_v16 = vmul.f32 %v2877_v41, %v1678_v49  ;;  %v824_v48 = vmul.f32 %v1340_v55, %v1456_v60  ;;  %v505_v13 = vmul.f32 %v2879_v12, %v1523_v58  ;;  %v2881_v36 = vld [vmem:[#allocation31_spill] sm:$0xff] }
  0x41   :  { %v940_v24 = vadd.f32 %v2878_v45, %v906_v25  ;;  %v453_v5 = vadd.f32 %v437_v38, %v395_v30  ;;  %v873_v6 = vadd.f32 %v857_v26, %v839_v3  ;;  %v168_v17 = vadd.f32 %v152_v21, %v134_v42  ;;  %v1697_v26 = vld [vmem:[%s2766_s0 + $0x82] sm:$0xff] }
  0x42   :  { %v748_v22 = vadd.f32 %v732_v29, %v714_v33  ;;  %v244_v7 = vmul.f32 %v2880_v52, %v1399_v31  ;;  %v858_v56 = vmul.f32 %v1386_v54, %v1468_v59  ;;  %v539_v51 = vmul.f32 %v1225_v1, %v1605_v27 }
  0x43   :  { %v974_v10 = vadd.f32 %v2881_v36, %v940_v24  ;;  %v487_v43 = vadd.f32 %v471_v20, %v453_v5  ;;  %v907_v60 = vadd.f32 %v891_v53, %v873_v6  ;;  %v202_v29 = vadd.f32 %v186_v16, %v168_v17 }
  0x44   :  { %v782_v38 = vadd.f32 %v766_v39, %v748_v22  ;;  %v278_v31 = vmul.f32 %v2864_v63, %v1479_v11  ;;  %v892_v45 = vmul.f32 %v1408_v46, %v1561_v19  ;;  %v573_v6 = vmul.f32 %v1237_v8, %v1697_v26 }
  0x45   :  { %991 = vst.msk [vmem:[%s2769_s3 + $0x8] sm:$0xff] %vm989_vm0, %v974_v10  ;;  %v521_v21 = vadd.f32 %v505_v13, %v487_v43  ;;  %v941_v39 = vadd.f32 %v1625_v35, %v907_v60  ;;  %v260_v22 = vadd.f32 %v244_v7, %v202_v29  ;;  %v312_v17 = vmul.f32 %v1154_v28, %v1538_v62  ;;  %v1722_v35 = vld [vmem:[%s2766_s0 + $0x74] sm:$0xff]  ;;  %v2882_v7 = vld [vmem:[#allocation22_spill] sm:$0xff] }
  0x46   :  { %v840_v53 = vadd.f32 %v824_v48, %v782_v38  ;;  %v926_v25 = vmul.f32 %v1413_v15, %v1621_v9  ;;  %v631_v20 = vmul.f32 %v1260_v18, %v1371_v23  ;;  %v346_v42 = vmul.f32 %v1163_v32, %v1644_v61  ;;  %v1729_v23 = vld [vmem:[%s2766_s0 + $0x91] sm:$0xff] }
  0x47   :  { %v555_v30 = vadd.f32 %v539_v51, %v521_v21  ;;  %v975_v3 = vadd.f32 %v1632_v47, %v941_v39  ;;  %v294_v33 = vadd.f32 %v278_v31, %v260_v22  ;;  %v665_v24 = vmul.f32 %v1289_v34, %v1493_v14  ;;  %v2883_v51 = vld [vmem:[#allocation15_spill] sm:$0xff]  ;;  %v2884_v38 = vld [vmem:[#allocation4_spill] sm:$0xff]  ;;  %v2887_v22 = vld [vmem:[#allocation21_spill] sm:$0xff] }
  0x48   :  { %v874_v13 = vadd.f32 %v858_v56, %v840_v53  ;;  %v51_v47 = vmul.f32 %v2867_v0, %v1328_v50  ;;  %v85_v48 = vmul.f32 %v1101_v4, %v1424_v37  ;;  %v960_v36 = vmul.f32 %v2882_v7, %v1722_v35 }
  0x49   :  { %v589_v16 = vadd.f32 %v573_v6, %v555_v30  ;;  %992 = vst.msk [vmem:[%s2769_s3 + $0x10] sm:$0xff] %vm989_vm0, %v975_v3  ;;  %v328_v10 = vadd.f32 %v312_v17, %v294_v33  ;;  %v380_v56 = vmul.f32 %v1175_v40, %v1729_v23  ;;  %v699_v50 = vmul.f32 %v2883_v51, %v1582_v2  ;;  %v2885_v6 = vld [vmem:[#allocation28_spill] sm:$0xff] }
  0x4a   :  { %v908_v5 = vadd.f32 %v892_v45, %v874_v13  ;;  %v67_v60 = vadd.f32 %v2868_v44, %v51_v47  ;;  %v119_v29 = vmul.f32 %v2884_v38, %v1576_v57  ;;  %v2886_v45 = vld [vmem:[#allocation10_spill] sm:$0xff]  ;;  %v2888_v17 = vld [vmem:[#allocation16_spill] sm:$0xff] }
  0x4b   :  { %v647_v43 = vadd.f32 %v631_v20, %v589_v16  ;;  %v362_v21 = vadd.f32 %v346_v42, %v328_v10  ;;  %v438_v39 = vmul.f32 %v2886_v45, %v2885_v6  ;;  %v733_v30 = vmul.f32 %v2888_v17, %v2887_v22  ;;  %v2889_v20 = vld [vmem:[#allocation5_spill] sm:$0xff]  ;;  %v1757_v16 = vld [vmem:[%s2766_s0 + $0x83] sm:$0xff] }
  0x4c   :  { %v942_v31 = vadd.f32 %v926_v25, %v908_v5  ;;  %v101_v3 = vadd.f32 %v85_v48, %v67_v60  ;;  %v153_v13 = vmul.f32 %v2889_v20, %v1678_v49  ;;  %v2890_v25 = vld [vmem:[#allocation11_spill] sm:$0xff]  ;;  %v2891_v48 = vld [vmem:[#allocation18_spill] sm:$0xff]  ;;  %v859_v60 = vmul.f32 %v1386_v54, %v1561_v19 }
  0x4d   :  { %v681_v53 = vadd.f32 %v665_v24, %v647_v43  ;;  %v396_v47 = vadd.f32 %v380_v56, %v362_v21  ;;  %v472_v42 = vmul.f32 %v2890_v25, %v1523_v58  ;;  %v29_v24 = vld [vmem:[%s2766_s0 + $0xa0] sm:$0xff]  ;;  %v767_v10 = vmul.f32 %v2891_v48, %v1757_v16 }
  0x4e   :  { %v976_v33 = vadd.f32 %v960_v36, %v942_v31  ;;  %v135_v43 = vadd.f32 %v119_v29, %v101_v3  ;;  %v187_v36 = vmul.f32 %v2877_v41, %v29_v24  ;;  %v825_v56 = vmul.f32 %v1340_v55, %v1468_v59 }
  0x4f   :  { %v715_v5 = vadd.f32 %v699_v50, %v681_v53  ;;  %v454_v31 = vadd.f32 %v438_v39, %v396_v47  ;;  %v506_v50 = vmul.f32 %v2879_v12, %v1605_v27  ;;  %v893_v29 = vmul.f32 %v1408_v46, %v1621_v9 }
  0x50   :  { %993 = vst.msk [vmem:[%s2769_s3 + $0x18] sm:$0xff] %vm989_vm0, %v976_v33  ;;  %v169_v6 = vadd.f32 %v153_v13, %v135_v43  ;;  %v245_v53 = vmul.f32 %v2880_v52, %v1479_v11  ;;  %v927_v3 = vmul.f32 %v1413_v15, %v1722_v35  ;;  %v540_v59 = vmul.f32 %v1225_v1, %v1697_v26 }
  0x51   :  { %v749_v21 = vadd.f32 %v733_v30, %v715_v5  ;;  %v488_v33 = vadd.f32 %v472_v42, %v454_v31  ;;  %v52_v39 = vmul.f32 %v2867_v0, %v1424_v37  ;;  %v1790_v30 = vld [vmem:[%s2766_s0 + $0x92] sm:$0xff]  ;;  %v279_v11 = vmul.f32 %v2864_v63, %v1538_v62  ;;  %v1799_v42 = vld [vmem:[%s2766_s0 + $0x84] sm:$0xff] }
  0x52   :  { %v203_v13 = vadd.f32 %v187_v36, %v169_v6  ;;  %v86_v5 = vmul.f32 %v1101_v4, %v1576_v57  ;;  %v574_v37 = vmul.f32 %v1237_v8, %v1790_v30  ;;  %v120_v36 = vmul.f32 %v2884_v38, %v1678_v49 }
  0x53   :  { %v783_v47 = vadd.f32 %v767_v10, %v749_v21  ;;  %v522_v43 = vadd.f32 %v506_v50, %v488_v33  ;;  %v68_v10 = vadd.f32 %v2868_v44, %v52_v39  ;;  %v961_v21 = vmul.f32 %v2882_v7, %v1799_v42  ;;  %v30_v50 = vld [vmem:[%s2766_s0 + $0xb0] sm:$0xff] }
  0x54   :  { %v261_v6 = vadd.f32 %v245_v53, %v203_v13  ;;  %v313_v57 = vmul.f32 %v1154_v28, %v1644_v61  ;;  %v632_v8 = vmul.f32 %v1260_v18, %v1493_v14  ;;  %v154_v44 = vmul.f32 %v2889_v20, %v29_v24 }
  0x55   :  { %v841_v31 = vadd.f32 %v825_v56, %v783_v47  ;;  %v556_v33 = vadd.f32 %v540_v59, %v522_v43  ;;  %v102_v39 = vadd.f32 %v86_v5, %v68_v10  ;;  %v666_v56 = vmul.f32 %v1289_v34, %v1582_v2  ;;  %v223_v59 = vld [vmem:[%s2766_s0 + $0xa1] sm:$0xff] }
  0x56   :  { %v295_v47 = vadd.f32 %v279_v11, %v261_v6  ;;  %v347_v53 = vmul.f32 %v1163_v32, %v1729_v23  ;;  %v700_v38 = vmul.f32 %v2883_v51, %v2887_v22  ;;  %v188_v5 = vmul.f32 %v2877_v41, %v30_v50 }
  0x57   :  { %v875_v49 = vadd.f32 %v859_v60, %v841_v31  ;;  %v590_v13 = vadd.f32 %v574_v37, %v556_v33  ;;  %v136_v14 = vadd.f32 %v120_v36, %v102_v39  ;;  %v1829_v60 = vld [vmem:[%s2766_s0 + $0x93] sm:$0xff]  ;;  %v734_v11 = vmul.f32 %v2888_v17, %v1757_v16 }
  0x58   :  { %v329_v43 = vadd.f32 %v313_v57, %v295_v47  ;;  %v381_v37 = vmul.f32 %v1175_v40, %v223_v59  ;;  %v768_v31 = vmul.f32 %v2891_v48, %v1829_v60  ;;  %v246_v36 = vmul.f32 %v2880_v52, %v1538_v62  ;;  %v31_v62 = vld [vmem:[%s2766_s0 + $0xc0] sm:$0xff] }
  0x59   :  { %v909_v24 = vadd.f32 %v893_v29, %v875_v49  ;;  %v648_v10 = vadd.f32 %v632_v8, %v590_v13  ;;  %v170_v6 = vadd.f32 %v154_v44, %v136_v14  ;;  %v826_v50 = vmul.f32 %v1340_v55, %v1561_v19 }
  0x5a   :  { %v363_v33 = vadd.f32 %v347_v53, %v329_v43  ;;  %v439_v39 = vmul.f32 %v2886_v45, %v1523_v58  ;;  %v860_v57 = vmul.f32 %v1386_v54, %v1621_v9  ;;  %v280_v47 = vmul.f32 %v2864_v63, %v1644_v61  ;;  %v1856_v53 = vld [vmem:[%s2766_s0 + $0x94] sm:$0xff] }
  0x5b   :  { %v943_v29 = vadd.f32 %v927_v3, %v909_v24  ;;  %v682_v49 = vadd.f32 %v666_v56, %v648_v10  ;;  %v204_v8 = vadd.f32 %v188_v5, %v170_v6  ;;  %v894_v19 = vmul.f32 %v1408_v46, %v1722_v35  ;;  %v224_v24 = vld [vmem:[%s2766_s0 + $0xb1] sm:$0xff] }
  0x5c   :  { %v397_v3 = vadd.f32 %v381_v37, %v363_v33  ;;  %v473_v58 = vmul.f32 %v2890_v25, %v1605_v27  ;;  %v928_v61 = vmul.f32 %v1413_v15, %v1799_v42  ;;  %v507_v5 = vmul.f32 %v2879_v12, %v1697_v26  ;;  %v417_v33 = vld [vmem:[%s2766_s0 + $0xa2] sm:$0xff] }
  0x5d   :  { %v977_v44 = vadd.f32 %v961_v21, %v943_v29  ;;  %v716_v56 = vadd.f32 %v700_v38, %v682_v49  ;;  %v262_v13 = vadd.f32 %v246_v36, %v204_v8  ;;  %v314_v21 = vmul.f32 %v1154_v28, %v1729_v23  ;;  %v32_v23 = vld [vmem:[%s2766_s0 + $0xd0] sm:$0xff]  ;;  %v1883_v36 = vld [vmem:[%s2766_s0 + $0xe0] sm:$0xff] }
  0x5e   :  { %v1868_v38 = vmul.f32 %v2882_v7, %v1856_v53  ;;  %v455_v14 = vadd.f32 %v439_v39, %v397_v3  ;;  %v53_v43 = vmul.f32 %v2867_v0, %v31_v62  ;;  %v348_v6 = vmul.f32 %v1163_v32, %v223_v59  ;;  %v2892_v8 = vld [vmem:[#allocation2_spill] sm:$0xff]  ;;  %v1899_v7 = vld [vmem:[%s2766_s0 + $0xf0] sm:$0xff] }
  0x5f   :  { %994 = vst.msk [vmem:[%s2769_s3 + $0x20] sm:$0xff] %vm989_vm0, %v977_v44  ;;  %v750_v37 = vadd.f32 %v734_v11, %v716_v56  ;;  %v296_v10 = vadd.f32 %v280_v47, %v262_v13  ;;  %v87_v29 = vmul.f32 %v1101_v4, %v32_v23  ;;  %v541_v49 = vmul.f32 %v1225_v1, %v1790_v30  ;;  %v2893_v47 = vld [vmem:[#allocation4_spill] sm:$0xff]  ;;  %v2894_v44 = vld [vmem:[#allocation13_spill] sm:$0xff] }
  0x60   :  { %v489_v39 = vadd.f32 %v473_v58, %v455_v14  ;;  %v69_v11 = vadd.f32 %v2892_v8, %v53_v43  ;;  %v121_v59 = vmul.f32 %v2893_v47, %v1883_v36  ;;  %v575_v3 = vmul.f32 %v2894_v44, %v417_v33 }
  0x61   :  { %v784_v62 = vadd.f32 %v768_v31, %v750_v37  ;;  %v330_v56 = vadd.f32 %v314_v21, %v296_v10  ;;  %v382_v13 = vmul.f32 %v1175_v40, %v224_v24  ;;  %v633_v14 = vmul.f32 %v1260_v18, %v1582_v2  ;;  %v1912_v37 = vld [vmem:[%s2766_s0 + $0x100] sm:$0xff] }
  0x62   :  { %v523_v58 = vadd.f32 %v507_v5, %v489_v39  ;;  %v103_v32 = vadd.f32 %v87_v29, %v69_v11  ;;  %v155_v43 = vmul.f32 %v2889_v20, %v1899_v7  ;;  %v667_v31 = vmul.f32 %v1289_v34, %v2887_v22  ;;  %v225_v2 = vld [vmem:[%s2766_s0 + $0xc1] sm:$0xff] }
  0x63   :  { %v842_v8 = vadd.f32 %v826_v50, %v784_v62  ;;  %v364_v21 = vadd.f32 %v348_v6, %v330_v56  ;;  %v440_v24 = vmul.f32 %v2886_v45, %v1605_v27  ;;  %v701_v20 = vmul.f32 %v2883_v51, %v1757_v16  ;;  %v611_v27 = vld [vmem:[%s2766_s0 + $0xa3] sm:$0xff] }
  0x64   :  { %v557_v5 = vadd.f32 %v541_v49, %v523_v58  ;;  %v137_v50 = vadd.f32 %v121_v59, %v103_v32  ;;  %v189_v10 = vmul.f32 %v2877_v41, %v1912_v37  ;;  %v735_v29 = vmul.f32 %v2888_v17, %v1829_v60 }
  0x65   :  { %v876_v6 = vadd.f32 %v860_v57, %v842_v8  ;;  %v398_v39 = vadd.f32 %v382_v13, %v364_v21  ;;  %v474_v11 = vmul.f32 %v2890_v25, %v1697_v26  ;;  %v769_v62 = vmul.f32 %v2891_v48, %v611_v27  ;;  %v418_v57 = vld [vmem:[%s2766_s0 + $0xb2] sm:$0xff] }
  0x66   :  { %v591_v49 = vadd.f32 %v575_v3, %v557_v5  ;;  %v171_v56 = vadd.f32 %v155_v43, %v137_v50  ;;  %v247_v32 = vmul.f32 %v2880_v52, %v225_v2  ;;  %v827_v41 = vmul.f32 %v1340_v55, %v1621_v9  ;;  %v226_v26 = vld [vmem:[%s2766_s0 + $0xd1] sm:$0xff] }
  0x67   :  { %v910_v59 = vadd.f32 %v894_v19, %v876_v6  ;;  %v456_v58 = vadd.f32 %v440_v24, %v398_v39  ;;  %v508_v13 = vmul.f32 %v2879_v12, %v1790_v30  ;;  %v861_v52 = vmul.f32 %v1386_v54, %v1722_v35  ;;  %v1951_v30 = vld [vmem:[%s2766_s0 + $0xe1] sm:$0xff] }
  0x68   :  { %v649_v3 = vadd.f32 %v633_v14, %v591_v49  ;;  %v205_v19 = vadd.f32 %v189_v10, %v171_v56  ;;  %v281_v43 = vmul.f32 %v2864_v63, %v226_v26  ;;  %v1945_v8 = vmul.f32 %v1408_v46, %v1799_v42  ;;  %v1960_v10 = vld [vmem:[%s2766_s0 + $0xf1] sm:$0xff]  ;;  %v419_v49 = vld [vmem:[%s2766_s0 + $0xc2] sm:$0xff]  ;;  %v1993_v56 = vld [vmem:[%s2768_s2] ss:$0 sm:$0xff] }
  0x69   :  { %v944_v9 = vadd.f32 %v928_v61, %v910_v59  ;;  %v490_v21 = vadd.f32 %v474_v11, %v456_v58  ;;  %v542_v24 = vmul.f32 %v1225_v1, %v417_v33  ;;  %v576_v2 = vmul.f32 %v2894_v44, %v418_v57  ;;  %v2896_v57 = vld [vmem:[#allocation22_spill] sm:$0xff] }
  0x6a   :  { %v683_v14 = vadd.f32 %v667_v31, %v649_v3  ;;  %v263_v5 = vadd.f32 %v247_v32, %v205_v19  ;;  %v315_v63 = vmul.f32 %v1154_v28, %v1951_v30  ;;  %v54_v33 = vmul.f32 %v2867_v0, %v32_v23  ;;  %v2895_v28 = vld [vmem:[#allocation9_spill] sm:$0xff]  ;;  %v1978_v0 = vld [vmem:[%s2766_s0 + $0xa4] sm:$0xff] }
  0x6b   :  { %v978_v61 = vadd.f32 %v1868_v38, %v944_v9  ;;  %v524_v50 = vadd.f32 %v508_v13, %v490_v21  ;;  %v88_v6 = vmul.f32 %v1101_v4, %v1883_v36  ;;  %v1967_v39 = vmul.f32 %v1413_v15, %v1856_v53 }
  0x6c   :  { %v717_v31 = vadd.f32 %v701_v20, %v683_v14  ;;  %v297_v11 = vadd.f32 %v281_v43, %v263_v5  ;;  %v349_v38 = vmul.f32 %v2895_v28, %v1960_v10  ;;  %v634_v23 = vmul.f32 %v1260_v18, %v2887_v22  ;;  %v1985_v20 = vld [vmem:[%s2766_s0 + $0x101] sm:$0xff]  ;;  %v612_v43 = vld [vmem:[%s2766_s0 + $0xb3] sm:$0xff] }
  0x6d   :  { %995 = vst.msk [vmem:[%s2769_s3 + $0x28] sm:$0xff] %vm989_vm0, %v978_v61  ;;  %v558_v4 = vadd.f32 %v542_v24, %v524_v50  ;;  %v70_v32 = vadd.f32 %v1993_v56, %v54_v33  ;;  %v122_v59 = vmul.f32 %v2893_v47, %v1899_v7  ;;  %v2000_v58 = vmul.f32 %v2896_v57, %v1978_v0  ;;  %v2012_v47 = vld [vmem:[%s2767_s1 + $0xf] ss:$0 sm:$0xff]  ;;  %v2028_v61 = vld [vmem:[%s2766_s0 + $0xd2] sm:$0xff]  ;;  %v2045_v28 = vld [vmem:[%s2766_s0 + $0xe2] sm:$0xff] }
  0x6e   :  { %v751_v22 = vadd.f32 %v735_v29, %v717_v31  ;;  %v331_v13 = vadd.f32 %v315_v63, %v297_v11  ;;  %v383_v3 = vmul.f32 %v1175_v40, %v1985_v20  ;;  %v668_v9 = vmul.f32 %v1289_v34, %v1757_v16  ;;  %v2022_v16 = vld [vmem:[%s2766_s0 + $0x110] sm:$0xff] }
  0x6f   :  { %v592_v19 = vadd.f32 %v576_v2, %v558_v4  ;;  %v104_v21 = vadd.f32 %v88_v6, %v70_v32  ;;  %v156_v29 = vmul.f32 %v2012_v47, %v1912_v37  ;;  %v702_v40 = vmul.f32 %v2883_v51, %v1829_v60  ;;  %v2033_v60 = vld [vmem:[%s2767_s1 + $0x14] ss:$0 sm:$0xff] }
  0x70   :  { %v785_v24 = vadd.f32 %v769_v62, %v751_v22  ;;  %v365_v14 = vadd.f32 %v349_v38, %v331_v13  ;;  %v441_v2 = vmul.f32 %v2886_v45, %v419_v49  ;;  %v736_v63 = vmul.f32 %v2888_v17, %v611_v27  ;;  %v2062_v22 = vld [vmem:[%s2766_s0 + $0xf2] sm:$0xff] }
  0x71   :  { %v650_v5 = vadd.f32 %v634_v23, %v592_v19  ;;  %v138_v62 = vadd.f32 %v122_v59, %v104_v21  ;;  %v190_v45 = vmul.f32 %v2033_v60, %v2022_v16  ;;  %v770_v33 = vmul.f32 %v2891_v48, %v612_v43 }
  0x72   :  { %v843_v50 = vadd.f32 %v827_v41, %v785_v24  ;;  %v399_v6 = vadd.f32 %v383_v3, %v365_v14  ;;  %v475_v27 = vmul.f32 %v2890_v25, %v2028_v61  ;;  %v828_v11 = vmul.f32 %v1340_v55, %v1722_v35  ;;  %v2050_v41 = vld [vmem:[%s2767_s1 + $0x1] ss:$0 sm:$0xff]  ;;  %v2102_v14 = vld [vmem:[%s2767_s1 + $0x10] ss:$0 sm:$0xff] }
  0x73   :  { %v684_v31 = vadd.f32 %v668_v9, %v650_v5  ;;  %v172_v38 = vadd.f32 %v156_v29, %v138_v62  ;;  %2897 = vst [vmem:[#allocation17_spill] sm:$0xff] %v2050_v41  ;;  %v248_v4 = vmul.f32 %v2050_v41, %v226_v26  ;;  %v862_v25 = vmul.f32 %v1386_v54, %v1799_v42  ;;  %v2067_v26 = vld [vmem:[%s2766_s0 + $0x102] sm:$0xff]  ;;  %v2087_v29 = vld [vmem:[%s2767_s1 + $0xb] ss:$0 sm:$0xff] }
  0x74   :  { %v877_v23 = vadd.f32 %v861_v52, %v843_v50  ;;  %v457_v49 = vadd.f32 %v441_v2, %v399_v6  ;;  %v509_v35 = vmul.f32 %v2879_v12, %v2045_v28  ;;  %v896_v59 = vmul.f32 %v1408_v46, %v1856_v53  ;;  %v2072_v42 = vld [vmem:[%s2767_s1 + $0x6] ss:$0 sm:$0xff]  ;;  %v2109_v5 = vld [vmem:[%s2767_s1 + $0x5] ss:$0 sm:$0xff]  ;;  %v2122_v50 = vld [vmem:[%s2767_s1 + $0xa] ss:$0 sm:$0xff] }
  0x75   :  { %v718_v32 = vadd.f32 %v702_v40, %v684_v31  ;;  %v206_v52 = vadd.f32 %v190_v45, %v172_v38  ;;  %v282_v12 = vmul.f32 %v2072_v42, %v1951_v30  ;;  %v543_v3 = vmul.f32 %v1225_v1, %v2062_v22  ;;  %v613_v9 = vld [vmem:[%s2766_s0 + $0xc3] sm:$0xff]  ;;  %v2094_v1 = vld [vmem:[%s2767_s1] ss:$0 sm:$0xff]  ;;  %v2131_v38 = vld [vmem:[%s2767_s1 + $0x15] ss:$0 sm:$0xff] }
  0x76   :  { %v911_v53 = vadd.f32 %v1945_v8, %v877_v23  ;;  %v491_v13 = vadd.f32 %v475_v27, %v457_v49  ;;  %v577_v19 = vmul.f32 %v2894_v44, %v2067_v26  ;;  %v316_v8 = vmul.f32 %v2087_v29, %v1960_v10  ;;  %2898 = vst [vmem:[#allocation26_spill] sm:$0xff] %v2131_v38  ;;  %v806_v23 = vld [vmem:[%s2766_s0 + $0xb4] sm:$0xff] }
  0x77   :  { %v752_v43 = vadd.f32 %v736_v63, %v718_v32  ;;  %v264_v21 = vadd.f32 %v248_v4, %v206_v52  ;;  %v55_v44 = vmul.f32 %v2094_v1, %v1883_v36  ;;  %v350_v2 = vmul.f32 %v2102_v14, %v1985_v20 }
  0x78   :  { %v945_v24 = vadd.f32 %v1967_v39, %v911_v53  ;;  %v525_v40 = vadd.f32 %v509_v35, %v491_v13  ;;  %v89_v63 = vmul.f32 %v2109_v5, %v1899_v7  ;;  %v2116_v39 = vld [vmem:[%s2766_s0 + $0x111] sm:$0xff]  ;;  %v123_v6 = vmul.f32 %v2122_v50, %v1912_v37  ;;  %v2156_v53 = vld [vmem:[%s2767_s1 + $0x2] ss:$0 sm:$0xff] }
  0x79   :  { %v786_v36 = vadd.f32 %v770_v33, %v752_v43  ;;  %v298_v62 = vadd.f32 %v282_v12, %v264_v21  ;;  %v71_v45 = vadd.f32 %v1993_v56, %v55_v44  ;;  %v635_v33 = vmul.f32 %v1260_v18, %v613_v9 }
  0x7a   :  { %v979_v27 = vadd.f32 %v2000_v58, %v945_v24  ;;  %v559_v31 = vadd.f32 %v543_v3, %v525_v40  ;;  %v384_v4 = vmul.f32 %v2131_v38, %v2116_v39  ;;  %v2141_v58 = vld [vmem:[%s2766_s0 + $0xd3] sm:$0xff]  ;;  %v157_v32 = vmul.f32 %v2012_v47, %v2022_v16  ;;  %v2163_v3 = vld [vmem:[%s2766_s0 + $0x120] sm:$0xff] }
  0x7b   :  { %v844_v49 = vadd.f32 %v828_v11, %v786_v36  ;;  %v332_v35 = vadd.f32 %v316_v8, %v298_v62  ;;  %v105_v18 = vadd.f32 %v89_v63, %v71_v45  ;;  %v930_v52 = vmul.f32 %v1413_v15, %v1978_v0  ;;  %v2168_v0 = vld [vmem:[%s2766_s0 + $0xe3] sm:$0xff]  ;;  %v2185_v40 = vld [vmem:[%s2766_s0 + $0xf3] sm:$0xff]  ;;  %v2194_v45 = vld [vmem:[%s2767_s1 + $0xc] ss:$0 sm:$0xff] }
  0x7c   :  { %996 = vst.msk [vmem:[%s2769_s3 + $0x30] sm:$0xff] %vm989_vm0, %v979_v27  ;;  %v593_v12 = vadd.f32 %v577_v19, %v559_v31  ;;  %v669_v11 = vmul.f32 %v1289_v34, %v2141_v58  ;;  %v442_v13 = vmul.f32 %v2156_v53, %v2028_v61  ;;  %v191_v9 = vmul.f32 %v2033_v60, %v2163_v3  ;;  %v2201_v27 = vld [vmem:[%s2766_s0 + $0x103] sm:$0xff] }
  0x7d   :  { %v878_v43 = vadd.f32 %v862_v25, %v844_v49  ;;  %v366_v34 = vadd.f32 %v350_v2, %v332_v35  ;;  %v139_v19 = vadd.f32 %v123_v6, %v105_v18  ;;  %v964_v21 = vmul.f32 %v2896_v57, %v806_v23  ;;  %v2178_v25 = vld [vmem:[%s2767_s1 + $0x7] ss:$0 sm:$0xff]  ;;  %v2213_v49 = vld [vmem:[%s2767_s1 + $0x11] ss:$0 sm:$0xff] }
  0x7e   :  { %v651_v8 = vadd.f32 %v635_v33, %v593_v12  ;;  %v703_v61 = vmul.f32 %v2883_v51, %v2168_v0  ;;  %2899 = vst [vmem:[#allocation23_spill] sm:$0xff] %v2178_v25  ;;  %v476_v44 = vmul.f32 %v2178_v25, %v2045_v28  ;;  %v249_v36 = vmul.f32 %v2050_v41, %v1951_v30  ;;  %v807_v30 = vld [vmem:[%s2766_s0 + $0xc4] sm:$0xff] }
  0x7f   :  { %v912_v24 = vadd.f32 %v896_v59, %v878_v43  ;;  %v400_v2 = vadd.f32 %v384_v4, %v366_v34  ;;  %v173_v63 = vadd.f32 %v157_v32, %v139_v19  ;;  %v737_v62 = vmul.f32 %v2888_v17, %v2185_v40  ;;  %2900 = vst [vmem:[#allocation19_spill] sm:$0xff] %v2213_v49  ;;  %v2220_v32 = vld [vmem:[%s2766_s0 + $0x112] sm:$0xff] }
  0x80   :  { %v685_v51 = vadd.f32 %v669_v11, %v651_v8  ;;  %v510_v59 = vmul.f32 %v2194_v45, %v2062_v22  ;;  %v283_v33 = vmul.f32 %v2072_v42, %v1960_v10  ;;  %v771_v23 = vmul.f32 %v2891_v48, %v2201_v27  ;;  %v2228_v43 = vld [vmem:[%s2767_s1 + $0x16] ss:$0 sm:$0xff] }
  0x81   :  { %v946_v6 = vadd.f32 %v930_v52, %v912_v24  ;;  %v458_v31 = vadd.f32 %v442_v13, %v400_v2  ;;  %v207_v17 = vadd.f32 %v191_v9, %v173_v63  ;;  %v544_v35 = vmul.f32 %v2213_v49, %v2067_v26  ;;  %v2249_v24 = vld [vmem:[%s2766_s0 + $0x121] sm:$0xff] }
  0x82   :  { %v719_v4 = vadd.f32 %v703_v61, %v685_v51  ;;  %v317_v11 = vmul.f32 %v2087_v29, %v1985_v20  ;;  %v829_v13 = vmul.f32 %v1340_v55, %v807_v30  ;;  %v578_v34 = vmul.f32 %v2228_v43, %v2220_v32  ;;  %v808_v55 = vld [vmem:[%s2766_s0 + $0xd4] sm:$0xff] }
  0x83   :  { %v980_v18 = vadd.f32 %v964_v21, %v946_v6  ;;  %v492_v52 = vadd.f32 %v476_v44, %v458_v31  ;;  %v265_v12 = vadd.f32 %v249_v36, %v207_v17  ;;  %v56_v19 = vmul.f32 %v2094_v1, %v1899_v7  ;;  %v2257_v36 = vld [vmem:[%s2766_s0 + $0xe4] sm:$0xff] }
  0x84   :  { %v753_v48 = vadd.f32 %v737_v62, %v719_v4  ;;  %v351_v8 = vmul.f32 %v2102_v14, %v2116_v39  ;;  %v90_v61 = vmul.f32 %v2109_v5, %v1912_v37  ;;  %v863_v7 = vmul.f32 %v1386_v54, %v808_v55  ;;  %v2262_v54 = vld [vmem:[%s2767_s1 + $0x3] ss:$0 sm:$0xff]  ;;  %v2275_v4 = vld [vmem:[%s2766_s0 + $0xf4] sm:$0xff] }
  0x85   :  { %997 = vst.msk [vmem:[%s2769_s3 + $0x38] sm:$0xff] %vm989_vm0, %v980_v18  ;;  %v526_v9 = vadd.f32 %v510_v59, %v492_v52  ;;  %v299_v21 = vadd.f32 %v283_v33, %v265_v12  ;;  %v72_v2 = vadd.f32 %v1993_v56, %v56_v19  ;;  %v124_v63 = vmul.f32 %v2122_v50, %v2022_v16  ;;  %v2289_v52 = vld [vmem:[%s2766_s0 + $0x130] sm:$0xff] }
  0x86   :  { %v787_v44 = vadd.f32 %v771_v23, %v753_v48  ;;  %v636_v62 = vmul.f32 %v2262_v54, %v2141_v58  ;;  %v385_v6 = vmul.f32 %v2131_v38, %v2249_v24  ;;  %v897_v31 = vmul.f32 %v1408_v46, %v2257_v36  ;;  %v2280_v58 = vld [vmem:[%s2767_s1 + $0x8] ss:$0 sm:$0xff] }
  0x87   :  { %v560_v51 = vadd.f32 %v544_v35, %v526_v9  ;;  %v333_v59 = vadd.f32 %v317_v11, %v299_v21  ;;  %v106_v17 = vadd.f32 %v90_v61, %v72_v2  ;;  %v158_v33 = vmul.f32 %v2012_v47, %v2163_v3  ;;  %v2316_v2 = vld [vmem:[%s2766_s0 + $0x113] sm:$0xff] }
  0x88   :  { %v845_v30 = vadd.f32 %v829_v13, %v787_v44  ;;  %v670_v35 = vmul.f32 %v2280_v58, %v2168_v0  ;;  %v443_v46 = vmul.f32 %v2156_v53, %v2045_v28  ;;  %v931_v11 = vmul.f32 %v1413_v15, %v2275_v4  ;;  %v2303_v28 = vld [vmem:[%s2767_s1 + $0xd] ss:$0 sm:$0xff] }
  0x89   :  { %v594_v23 = vadd.f32 %v578_v34, %v560_v51  ;;  %v367_v18 = vadd.f32 %v351_v8, %v333_v59  ;;  %v140_v48 = vadd.f32 %v124_v63, %v106_v17  ;;  %v192_v13 = vmul.f32 %v2033_v60, %v2289_v52  ;;  %v2298_v34 = vld [vmem:[%s2766_s0 + $0x104] sm:$0xff]  ;;  %2901 = vst [vmem:[#allocation27_spill] sm:$0xff] %v2303_v28  ;;  %v2321_v51 = vld [vmem:[%s2767_s1 + $0x12] ss:$0 sm:$0xff] }
  0x8a   :  { %v879_v12 = vadd.f32 %v863_v7, %v845_v30  ;;  %v704_v9 = vmul.f32 %v2303_v28, %v2185_v40  ;;  %v477_v15 = vmul.f32 %v2178_v25, %v2062_v22  ;;  %v965_v61 = vmul.f32 %v2896_v57, %v2298_v34  ;;  %2902 = vst [vmem:[#allocation24_spill] sm:$0xff] %v2321_v51 }
  0x8b   :  { %v652_v19 = vadd.f32 %v636_v62, %v594_v23  ;;  %v401_v21 = vadd.f32 %v385_v6, %v367_v18  ;;  %v174_v44 = vadd.f32 %v158_v33, %v140_v48  ;;  %v250_v7 = vmul.f32 %v2050_v41, %v1960_v10  ;;  %v2330_v10 = vld [vmem:[%s2767_s1 + $0x17] ss:$0 sm:$0xff]  ;;  %v2339_v23 = vld [vmem:[%s2767_s1 + $0x4] ss:$0 sm:$0xff] }
  0x8c   :  { %v913_v8 = vadd.f32 %v897_v31, %v879_v12  ;;  %v738_v62 = vmul.f32 %v2321_v51, %v2201_v27  ;;  %v511_v57 = vmul.f32 %v2194_v45, %v2067_v26  ;;  %v772_v30 = vmul.f32 %v2330_v10, %v2316_v2  ;;  %v2345_v18 = vld [vmem:[%s2766_s0 + $0x122] sm:$0xff] }
  0x8d   :  { %v686_v63 = vadd.f32 %v670_v35, %v652_v19  ;;  %v459_v59 = vadd.f32 %v443_v46, %v401_v21  ;;  %v208_v31 = vadd.f32 %v192_v13, %v174_v44  ;;  %v284_v17 = vmul.f32 %v2072_v42, %v1985_v20 }
  0x8e   :  { %v947_v6 = vadd.f32 %v931_v11, %v913_v8  ;;  %v830_v35 = vmul.f32 %v2339_v23, %v808_v55  ;;  %v545_v12 = vmul.f32 %v2213_v49, %v2220_v32  ;;  %v579_v48 = vmul.f32 %v2228_v43, %v2345_v18 }
  0x8f   :  { %v720_v33 = vadd.f32 %v704_v9, %v686_v63  ;;  %v493_v46 = vadd.f32 %v477_v15, %v459_v59  ;;  %v266_v13 = vadd.f32 %v250_v7, %v208_v31  ;;  %v318_v19 = vmul.f32 %v2087_v29, %v2116_v39  ;;  %v2364_v15 = vld [vmem:[%s2767_s1 + $0x9] ss:$0 sm:$0xff]  ;;  %v2375_v59 = vld [vmem:[%s2766_s0 + $0x131] sm:$0xff] }
  0x90   :  { %v981_v11 = vadd.f32 %v965_v61, %v947_v6  ;;  %v57_v55 = vmul.f32 %v2094_v1, %v1912_v37  ;;  %v91_v8 = vmul.f32 %v2109_v5, %v2022_v16  ;;  %2903 = vst [vmem:[#allocation8_spill] sm:$0xff] %v2364_v15  ;;  %v864_v61 = vmul.f32 %v2364_v15, %v2257_v36 }
  0x91   :  { %v754_v9 = vadd.f32 %v738_v62, %v720_v33  ;;  %v527_v21 = vadd.f32 %v511_v57, %v493_v46  ;;  %v637_v44 = vmul.f32 %v2262_v54, %v2168_v0  ;;  %v300_v37 = vadd.f32 %v284_v17, %v266_v13  ;;  %v2383_v0 = vld [vmem:[%s2767_s1 + $0xe] ss:$0 sm:$0xff] }
  0x92   :  { %998 = vst.msk [vmem:[%s2769_s3 + $0x40] sm:$0xff] %vm989_vm0, %v981_v11  ;;  %v352_v7 = vmul.f32 %v2102_v14, %v2249_v24  ;;  %v73_v57 = vadd.f32 %v1993_v56, %v57_v55  ;;  %v125_v6 = vmul.f32 %v2122_v50, %v2163_v3  ;;  %v898_v31 = vmul.f32 %v2383_v0, %v2275_v4 }
  0x93   :  { %v788_v63 = vadd.f32 %v772_v30, %v754_v9  ;;  %v561_v62 = vadd.f32 %v545_v12, %v527_v21  ;;  %v671_v30 = vmul.f32 %v2280_v58, %v2185_v40  ;;  %v334_v17 = vadd.f32 %v318_v19, %v300_v37  ;;  %v2396_v9 = vld [vmem:[%s2767_s1 + $0x13] ss:$0 sm:$0xff] }
  0x94   :  { %v386_v33 = vmul.f32 %v2131_v38, %v2375_v59  ;;  %v107_v11 = vadd.f32 %v91_v8, %v73_v57  ;;  %v159_v13 = vmul.f32 %v2012_v47, %v2289_v52  ;;  %v932_v21 = vmul.f32 %v2396_v9, %v2298_v34  ;;  %v2412_v8 = vld [vmem:[%s2766_s0 + $0x114] sm:$0xff] }
  0x95   :  { %v846_v46 = vadd.f32 %v830_v35, %v788_v63  ;;  %v595_v12 = vadd.f32 %v579_v48, %v561_v62  ;;  %v705_v19 = vmul.f32 %v2303_v28, %v2201_v27  ;;  %v368_v55 = vadd.f32 %v352_v7, %v334_v17  ;;  %v2407_v48 = vld [vmem:[%s2766_s0 + $0x140] sm:$0xff] }
  0x96   :  { %v444_v35 = vmul.f32 %v2156_v53, %v2062_v22  ;;  %v141_v62 = vadd.f32 %v125_v6, %v107_v11  ;;  %v193_v57 = vmul.f32 %v2033_v60, %v2407_v48  ;;  %v2419_v22 = vld [vmem:[%s2767_s1 + $0x18] ss:$0 sm:$0xff]  ;;  %v739_v17 = vmul.f32 %v2321_v51, %v2316_v2  ;;  %v2430_v6 = vld [vmem:[%s2766_s0 + $0x123] sm:$0xff] }
  0x97   :  { %v880_v37 = vadd.f32 %v864_v61, %v846_v46  ;;  %v653_v63 = vadd.f32 %v637_v44, %v595_v12  ;;  %2904 = vst [vmem:[#allocation25_spill] sm:$0xff] %v2419_v22  ;;  %v966_v7 = vmul.f32 %v2419_v22, %v2412_v8  ;;  %v402_v28 = vadd.f32 %v386_v33, %v368_v55 }
  0x98   :  { %v478_v61 = vmul.f32 %v2178_v25, %v2067_v26  ;;  %v175_v12 = vadd.f32 %v159_v13, %v141_v62  ;;  %v251_v11 = vmul.f32 %v2050_v41, %v1985_v20  ;;  %v773_v22 = vmul.f32 %v2330_v10, %v2430_v6 }
  0x99   :  { %v914_v44 = vadd.f32 %v898_v31, %v880_v37  ;;  %v687_v46 = vadd.f32 %v671_v30, %v653_v63  ;;  %v831_v33 = vmul.f32 %v2339_v23, %v2257_v36  ;;  %v460_v55 = vadd.f32 %v444_v35, %v402_v28  ;;  %v2443_v30 = vld [vmem:[%s2766_s0 + $0x132] sm:$0xff] }
  0x9a   :  { %v512_v31 = vmul.f32 %v2194_v45, %v2220_v32  ;;  %v209_v13 = vadd.f32 %v193_v57, %v175_v12  ;;  %v285_v20 = vmul.f32 %v2072_v42, %v2116_v39  ;;  %v546_v62 = vmul.f32 %v2213_v49, %v2345_v18 }
  0x9b   :  { %v948_v37 = vadd.f32 %v932_v21, %v914_v44  ;;  %v721_v51 = vadd.f32 %v705_v19, %v687_v46  ;;  %v494_v63 = vadd.f32 %v478_v61, %v460_v55  ;;  %v580_v36 = vmul.f32 %v2228_v43, %v2443_v30 }
  0x9c   :  { %v58_v28 = vmul.f32 %v2094_v1, %v2022_v16  ;;  %v267_v35 = vadd.f32 %v251_v11, %v209_v13  ;;  %v319_v44 = vmul.f32 %v2087_v29, %v2249_v24  ;;  %v92_v61 = vmul.f32 %v2109_v5, %v2163_v3 }
  0x9d   :  { %v982_v21 = vadd.f32 %v966_v7, %v948_v37  ;;  %v755_v19 = vadd.f32 %v739_v17, %v721_v51  ;;  %v528_v57 = vadd.f32 %v512_v31, %v494_v63  ;;  %v126_v12 = vmul.f32 %v2122_v50, %v2289_v52  ;;  %v2473_v31 = vld [vmem:[%s2766_s0 + $0x141] sm:$0xff] }
  0x9e   :  { %v74_v46 = vadd.f32 %v1993_v56, %v58_v28  ;;  %v865_v51 = vmul.f32 %v2364_v15, %v2275_v4  ;;  %v301_v7 = vadd.f32 %v285_v20, %v267_v35  ;;  %v353_v17 = vmul.f32 %v2102_v14, %v2375_v59 }
  0x9f   :  { %999 = vst.msk [vmem:[%s2769_s3 + $0x48] sm:$0xff] %vm989_vm0, %v982_v21  ;;  %v789_v16 = vadd.f32 %v773_v22, %v755_v19  ;;  %v562_v11 = vadd.f32 %v546_v62, %v528_v57  ;;  %v638_v55 = vmul.f32 %v2262_v54, %v2185_v40  ;;  %v160_v22 = vmul.f32 %v2012_v47, %v2407_v48  ;;  %v2484_v40 = vld [vmem:[%s2766_s0 + $0x150] sm:$0xff] }
  0xa0   :  { %v108_v37 = vadd.f32 %v92_v61, %v74_v46  ;;  %v899_v20 = vmul.f32 %v2383_v0, %v2298_v34  ;;  %v335_v63 = vadd.f32 %v319_v44, %v301_v7  ;;  %v387_v62 = vmul.f32 %v2131_v38, %v2473_v31  ;;  %v2497_v61 = vld [vmem:[%s2766_s0 + $0x124] sm:$0xff] }
  0xa1   :  { %v847_v13 = vadd.f32 %v831_v33, %v789_v16  ;;  %v596_v28 = vadd.f32 %v580_v36, %v562_v11  ;;  %v672_v21 = vmul.f32 %v2280_v58, %v2201_v27  ;;  %v194_v33 = vmul.f32 %v2033_v60, %v2484_v40  ;;  %v2905_v16 = vld [vmem:[#allocation27_spill] sm:$0xff] }
  0xa2   :  { %v142_v19 = vadd.f32 %v126_v12, %v108_v37  ;;  %v933_v44 = vmul.f32 %v2396_v9, %v2412_v8  ;;  %v369_v57 = vadd.f32 %v353_v17, %v335_v63  ;;  %v445_v46 = vmul.f32 %v2156_v53, %v2067_v26  ;;  %v2906_v37 = vld [vmem:[#allocation25_spill] sm:$0xff] }
  0xa3   :  { %v881_v35 = vadd.f32 %v865_v51, %v847_v13  ;;  %v654_v36 = vadd.f32 %v638_v55, %v596_v28  ;;  %v706_v12 = vmul.f32 %v2905_v16, %v2316_v2  ;;  %v252_v51 = vmul.f32 %v2050_v41, %v2116_v39  ;;  %v2510_v63 = vld [vmem:[%s2766_s0 + $0x133] sm:$0xff] }
  0xa4   :  { %v176_v7 = vadd.f32 %v160_v22, %v142_v19  ;;  %v967_v17 = vmul.f32 %v2906_v37, %v2497_v61  ;;  %v403_v13 = vadd.f32 %v387_v62, %v369_v57  ;;  %v479_v26 = vmul.f32 %v2178_v25, %v2220_v32  ;;  %v2907_v28 = vld [vmem:[#allocation24_spill] sm:$0xff] }
  0xa5   :  { %v915_v11 = vadd.f32 %v899_v20, %v881_v35  ;;  %v688_v55 = vadd.f32 %v672_v21, %v654_v36  ;;  %v740_v22 = vmul.f32 %v2907_v28, %v2430_v6  ;;  %v286_v39 = vmul.f32 %v2072_v42, %v2249_v24 }
  0xa6   :  { %v210_v19 = vadd.f32 %v194_v33, %v176_v7  ;;  %v774_v62 = vmul.f32 %v2330_v10, %v2510_v63  ;;  %v461_v35 = vadd.f32 %v445_v46, %v403_v13  ;;  %v513_v57 = vmul.f32 %v2194_v45, %v2345_v18 }
  0xa7   :  { %v949_v20 = vadd.f32 %v933_v44, %v915_v11  ;;  %v722_v41 = vadd.f32 %v706_v12, %v688_v55  ;;  %v832_v16 = vmul.f32 %v2339_v23, %v2275_v4  ;;  %v320_v36 = vmul.f32 %v2087_v29, %v2375_v59  ;;  %v2531_v12 = vld [vmem:[%s2766_s0 + $0x142] sm:$0xff]  ;;  %v2536_v4 = vld [vmem:[%s2766_s0 + $0x151] sm:$0xff] }
  0xa8   :  { %v268_v21 = vadd.f32 %v252_v51, %v210_v19  ;;  %v866_v7 = vmul.f32 %v2364_v15, %v2298_v34  ;;  %v495_v44 = vadd.f32 %v479_v26, %v461_v35  ;;  %v547_v11 = vmul.f32 %v2213_v49, %v2443_v30 }
  0xa9   :  { %v983_v33 = vadd.f32 %v967_v17, %v949_v20  ;;  %v756_v46 = vadd.f32 %v740_v22, %v722_v41  ;;  %v354_v17 = vmul.f32 %v2102_v14, %v2473_v31  ;;  %v59_v13 = vmul.f32 %v2094_v1, %v2163_v3 }
  0xaa   :  { %v302_v51 = vadd.f32 %v286_v39, %v268_v21  ;;  %v529_v41 = vadd.f32 %v513_v57, %v495_v44  ;;  %v581_v26 = vmul.f32 %v2228_v43, %v2531_v12  ;;  %v388_v55 = vmul.f32 %v2131_v38, %v2536_v4 }
  0xab   :  { %1000 = vst.msk [vmem:[%s2769_s3 + $0x50] sm:$0xff] %vm989_vm0, %v983_v33  ;;  %v93_v22 = vmul.f32 %v2109_v5, %v2289_v52  ;;  %v790_v19 = vadd.f32 %v774_v62, %v756_v46  ;;  %v75_v20 = vadd.f32 %v1993_v56, %v59_v13  ;;  %v127_v3 = vmul.f32 %v2122_v50, %v2407_v48 }
  0xac   :  { %v336_v39 = vadd.f32 %v320_v36, %v302_v51  ;;  %v900_v35 = vmul.f32 %v2383_v0, %v2412_v8  ;;  %v563_v57 = vadd.f32 %v547_v11, %v529_v41  ;;  %v639_v21 = vmul.f32 %v2262_v54, %v2201_v27  ;;  %v41_v27 = vld [vmem:[%s2766_s0 + $0x160] sm:$0xff] }
  0xad   :  { %v446_v33 = vmul.f32 %v2156_v53, %v2220_v32  ;;  %v848_v44 = vadd.f32 %v832_v16, %v790_v19  ;;  %v109_v15 = vadd.f32 %v93_v22, %v75_v20  ;;  %v161_v62 = vmul.f32 %v2012_v47, %v2484_v40  ;;  %v2575_v32 = vld [vmem:[%s2766_s0 + $0x134] sm:$0xff]  ;;  %v2908_v19 = vld [vmem:[#allocation27_spill] sm:$0xff] }
  0xae   :  { %v370_v38 = vadd.f32 %v354_v17, %v336_v39  ;;  %v934_v36 = vmul.f32 %v2396_v9, %v2497_v61  ;;  %v597_v46 = vadd.f32 %v581_v26, %v563_v57  ;;  %v673_v51 = vmul.f32 %v2280_v58, %v2316_v2 }
  0xaf   :  { %v480_v11 = vmul.f32 %v2178_v25, %v2345_v18  ;;  %v882_v16 = vadd.f32 %v866_v7, %v848_v44  ;;  %v143_v13 = vadd.f32 %v127_v3, %v109_v15  ;;  %v195_v41 = vmul.f32 %v2033_v60, %v41_v27  ;;  %v2587_v25 = vld [vmem:[%s2766_s0 + $0x143] sm:$0xff]  ;;  %v2909_v7 = vld [vmem:[#allocation17_spill] sm:$0xff] }
  0xb0   :  { %v404_v17 = vadd.f32 %v388_v55, %v370_v38  ;;  %v968_v26 = vmul.f32 %v2906_v37, %v2575_v32  ;;  %v655_v22 = vadd.f32 %v639_v21, %v597_v46  ;;  %v707_v39 = vmul.f32 %v2908_v19, %v2430_v6 }
  0xb1   :  { %v514_v20 = vmul.f32 %v2194_v45, %v2443_v30  ;;  %v916_v57 = vadd.f32 %v900_v35, %v882_v16  ;;  %v177_v15 = vadd.f32 %v161_v62, %v143_v13  ;;  %v253_v55 = vmul.f32 %v2909_v7, %v2249_v24  ;;  %v2600_v16 = vld [vmem:[%s2766_s0 + $0x152] sm:$0xff] }
  0xb2   :  { %v462_v38 = vadd.f32 %v446_v33, %v404_v17  ;;  %v689_v3 = vadd.f32 %v673_v51, %v655_v22  ;;  %v741_v21 = vmul.f32 %v2907_v28, %v2510_v63  ;;  %v775_v44 = vmul.f32 %v2330_v10, %v2587_v25 }
  0xb3   :  { %v548_v35 = vmul.f32 %v2213_v49, %v2531_v12  ;;  %v950_v46 = vadd.f32 %v934_v36, %v916_v57  ;;  %v211_v62 = vadd.f32 %v195_v41, %v177_v15  ;;  %v287_v24 = vmul.f32 %v2072_v42, %v2375_v59 }
  0xb4   :  { %v496_v33 = vadd.f32 %v480_v11, %v462_v38  ;;  %v723_v51 = vadd.f32 %v707_v39, %v689_v3  ;;  %v833_v17 = vmul.f32 %v2339_v23, %v2298_v34  ;;  %v582_v13 = vmul.f32 %v2228_v43, %v2600_v16 }
  0xb5   :  { %v60_v36 = vmul.f32 %v2094_v1, %v2289_v52  ;;  %v984_v22 = vadd.f32 %v968_v26, %v950_v46  ;;  %v269_v49 = vadd.f32 %v253_v55, %v211_v62  ;;  %v321_v11 = vmul.f32 %v2087_v29, %v2473_v31 }
  0xb6   :  { %v530_v57 = vadd.f32 %v514_v20, %v496_v33  ;;  %v757_v41 = vadd.f32 %v741_v21, %v723_v51  ;;  %v94_v39 = vmul.f32 %v2109_v5, %v2407_v48  ;;  %v128_v34 = vmul.f32 %v2122_v50, %v2484_v40  ;;  %v2910_v50 = vld [vmem:[#allocation8_spill] sm:$0xff]  ;;  %v235_v40 = vld [vmem:[%s2766_s0 + $0x161] sm:$0xff] }
  0xb7   :  { %v76_v38 = vadd.f32 %v1993_v56, %v60_v36  ;;  %1001 = vst.msk [vmem:[%s2769_s3 + $0x58] sm:$0xff] %vm989_vm0, %v984_v22  ;;  %v640_v52 = vmul.f32 %v2262_v54, %v2316_v2  ;;  %v303_v26 = vadd.f32 %v287_v24, %v269_v49  ;;  %v355_v20 = vmul.f32 %v2102_v14, %v2536_v4  ;;  %v42_v56 = vld [vmem:[%s2766_s0 + $0x170] sm:$0xff]  ;;  %v2911_v21 = vld [vmem:[#allocation26_spill] sm:$0xff] }
  0xb8   :  { %v564_v1 = vadd.f32 %v548_v35, %v530_v57  ;;  %v791_v5 = vadd.f32 %v775_v44, %v757_v41  ;;  %v867_v48 = vmul.f32 %v2910_v50, %v2412_v8  ;;  %v162_v55 = vmul.f32 %v2012_v47, %v41_v27 }
  0xb9   :  { %v110_v15 = vadd.f32 %v94_v39, %v76_v38  ;;  %v674_v49 = vmul.f32 %v2280_v58, %v2430_v6  ;;  %v337_v3 = vadd.f32 %v321_v11, %v303_v26  ;;  %v389_v35 = vmul.f32 %v2911_v21, %v235_v40 }
  0xba   :  { %v598_v2 = vadd.f32 %v582_v13, %v564_v1  ;;  %v849_v46 = vadd.f32 %v833_v17, %v791_v5  ;;  %v901_v44 = vmul.f32 %v2383_v0, %v2497_v61  ;;  %v196_v62 = vmul.f32 %v2033_v60, %v42_v56  ;;  %v2651_v60 = vld [vmem:[%s2766_s0 + $0x144] sm:$0xff] }
  0xbb   :  { %v144_v33 = vadd.f32 %v128_v34, %v110_v15  ;;  %v708_v51 = vmul.f32 %v2908_v19, %v2510_v63  ;;  %v371_v36 = vadd.f32 %v355_v20, %v337_v3  ;;  %v447_v47 = vmul.f32 %v2156_v53, %v2345_v18  ;;  %v2912_v18 = vld [vmem:[#allocation23_spill] sm:$0xff]  ;;  %v236_v3 = vld [vmem:[%s2766_s0 + $0x171] sm:$0xff] }
  0xbc   :  { %v656_v24 = vadd.f32 %v640_v52, %v598_v2  ;;  %v883_v27 = vadd.f32 %v867_v48, %v849_v46  ;;  %v935_v13 = vmul.f32 %v2396_v9, %v2575_v32  ;;  %v254_v17 = vmul.f32 %v2909_v7, %v2375_v59  ;;  %v2662_v59 = vld [vmem:[%s2766_s0 + $0x153] sm:$0xff]  ;;  %v429_v46 = vld [vmem:[%s2766_s0 + $0x162] sm:$0xff] }
  0xbd   :  { %v178_v22 = vadd.f32 %v162_v55, %v144_v33  ;;  %v742_v11 = vmul.f32 %v2907_v28, %v2587_v25  ;;  %v405_v41 = vadd.f32 %v389_v35, %v371_v36  ;;  %v481_v38 = vmul.f32 %v2912_v18, %v2443_v30 }
  0xbe   :  { %v690_v57 = vadd.f32 %v674_v49, %v656_v24  ;;  %v917_v39 = vadd.f32 %v901_v44, %v883_v27  ;;  %v969_v34 = vmul.f32 %v2906_v37, %v2651_v60  ;;  %v288_v1 = vmul.f32 %v2072_v42, %v2473_v31  ;;  %v2913_v42 = vld [vmem:[#allocation19_spill] sm:$0xff] }
  0xbf   :  { %v212_v7 = vadd.f32 %v196_v62, %v178_v22  ;;  %v776_v26 = vmul.f32 %v2330_v10, %v2662_v59  ;;  %v463_v20 = vadd.f32 %v447_v47, %v405_v41  ;;  %v515_v56 = vmul.f32 %v2194_v45, %v2531_v12 }
  0xc0   :  { %v724_v52 = vadd.f32 %v708_v51, %v690_v57  ;;  %v951_v5 = vadd.f32 %v935_v13, %v917_v39  ;;  %v322_v15 = vmul.f32 %v2087_v29, %v2536_v4  ;;  %v834_v2 = vmul.f32 %v2339_v23, %v2412_v8 }
  0xc1   :  { %v270_v48 = vadd.f32 %v254_v17, %v212_v7  ;;  %v497_v49 = vadd.f32 %v481_v38, %v463_v20  ;;  %v549_v31 = vmul.f32 %v2913_v42, %v2600_v16  ;;  %v356_v29 = vmul.f32 %v2102_v14, %v235_v40 }
  0xc2   :  { %v758_v55 = vadd.f32 %v742_v11, %v724_v52  ;;  %v985_v35 = vadd.f32 %v969_v34, %v951_v5  ;;  %v868_v8 = vmul.f32 %v2910_v50, %v2497_v61  ;;  %v583_v62 = vmul.f32 %v2228_v43, %v429_v46  ;;  %v816_v11 = vld [vmem:[%s2766_s0 + $0x154] sm:$0xff] }
  0xc3   :  { %v304_v44 = vadd.f32 %v288_v1, %v270_v48  ;;  %v531_v33 = vadd.f32 %v515_v56, %v497_v49  ;;  %v390_v51 = vmul.f32 %v2911_v21, %v236_v3  ;;  %v902_v47 = vmul.f32 %v2383_v0, %v2575_v32 }
  0xc4   :  { %v792_v4 = vadd.f32 %v776_v26, %v758_v55  ;;  %1002 = vst.msk [vmem:[%s2769_s3 + $0x60] sm:$0xff] %vm989_vm0, %v985_v35  ;;  %v641_v40 = vmul.f32 %v2262_v54, %v2430_v6  ;;  %v448_v13 = vmul.f32 %v2156_v53, %v2443_v30  ;;  %v936_v17 = vmul.f32 %v2396_v9, %v2651_v60 }
  0xc5   :  { %v338_v24 = vadd.f32 %v322_v15, %v304_v44  ;;  %v565_v14 = vadd.f32 %v549_v31, %v531_v33  ;;  %v675_v21 = vmul.f32 %v2280_v58, %v2510_v63  ;;  %v482_v6 = vmul.f32 %v2912_v18, %v2531_v12  ;;  %v430_v12 = vld [vmem:[%s2766_s0 + $0x172] sm:$0xff]  ;;  %v623_v18 = vld [vmem:[%s2766_s0 + $0x163] sm:$0xff] }
  0xc6   :  { %v850_v36 = vadd.f32 %v834_v2, %v792_v4  ;;  %v970_v39 = vmul.f32 %v2906_v37, %v816_v11  ;;  %v709_v30 = vmul.f32 %v2908_v19, %v2587_v25  ;;  %v516_v7 = vmul.f32 %v2194_v45, %v2600_v16 }
  0xc7   :  { %v372_v27 = vadd.f32 %v356_v29, %v338_v24  ;;  %v599_v57 = vadd.f32 %v583_v62, %v565_v14  ;;  %v743_v26 = vmul.f32 %v2907_v28, %v2662_v59  ;;  %v550_v56 = vmul.f32 %v2913_v42, %v429_v46 }
  0xc8   :  { %v884_v22 = vadd.f32 %v868_v8, %v850_v36  ;;  %v777_v45 = vmul.f32 %v2330_v10, %v623_v18  ;;  %v584_v15 = vmul.f32 %v2228_v43, %v430_v12  ;;  %v835_v2 = vmul.f32 %v2339_v23, %v2497_v61 }
  0xc9   :  { %v406_v41 = vadd.f32 %v390_v51, %v372_v27  ;;  %v657_v53 = vadd.f32 %v641_v40, %v599_v57  ;;  %v642_v42 = vmul.f32 %v2262_v54, %v2510_v63  ;;  %v869_v3 = vmul.f32 %v2910_v50, %v2575_v32  ;;  %v624_v54 = vld [vmem:[%s2766_s0 + $0x173] sm:$0xff]  ;;  %v817_v63 = vld [vmem:[%s2766_s0 + $0x164] sm:$0xff] }
  0xca   :  { %v918_v38 = vadd.f32 %v902_v47, %v884_v22  ;;  %v676_v43 = vmul.f32 %v2280_v58, %v2587_v25  ;;  %v903_v44 = vmul.f32 %v2383_v0, %v2651_v60  ;;  %v710_v61 = vmul.f32 %v2908_v19, %v2662_v59 }
  0xcb   :  { %v464_v34 = vadd.f32 %v448_v13, %v406_v41  ;;  %v691_v52 = vadd.f32 %v675_v21, %v657_v53  ;;  %v937_v8 = vmul.f32 %v2396_v9, %v816_v11  ;;  %v744_v58 = vmul.f32 %v2907_v28, %v623_v18 }
  0xcc   :  { %v952_v1 = vadd.f32 %v936_v17, %v918_v38  ;;  %v971_v62 = vmul.f32 %v2906_v37, %v817_v63  ;;  %v778_v19 = vmul.f32 %v2330_v10, %v624_v54  ;;  %v836_v36 = vmul.f32 %v2339_v23, %v2575_v32  ;;  %v818_v10 = vld [vmem:[%s2766_s0 + $0x174] sm:$0xff] }
  0xcd   :  { %v498_v20 = vadd.f32 %v482_v6, %v464_v34  ;;  %v725_v48 = vadd.f32 %v709_v30, %v691_v52  ;;  %v870_v40 = vmul.f32 %v2910_v50, %v2651_v60  ;;  %v904_v27 = vmul.f32 %v2383_v0, %v816_v11 }
  0xce   :  { %v986_v5 = vadd.f32 %v970_v39, %v952_v1  ;;  %v938_v23 = vmul.f32 %v2396_v9, %v817_v63  ;;  %v972_v22 = vmul.f32 %v2906_v37, %v818_v10 }
  0xcf   :  { %v532_v16 = vadd.f32 %v516_v7, %v498_v20  ;;  %v759_v55 = vadd.f32 %v743_v26, %v725_v48 }
  0xd0   :  { %1003 = vst.msk [vmem:[%s2769_s3 + $0x68] sm:$0xff] %vm989_vm0, %v986_v5 }
  0xd1   :  { %v566_v49 = vadd.f32 %v550_v56, %v532_v16  ;;  %v793_v31 = vadd.f32 %v777_v45, %v759_v55 }
  0xd3   :  { %v600_v35 = vadd.f32 %v584_v15, %v566_v49  ;;  %v851_v46 = vadd.f32 %v835_v2, %v793_v31 }
  0xd5   :  { %v658_v29 = vadd.f32 %v642_v42, %v600_v35  ;;  %v885_v4 = vadd.f32 %v869_v3, %v851_v46 }
  0xd7   :  { %v692_v25 = vadd.f32 %v676_v43, %v658_v29  ;;  %v919_v33 = vadd.f32 %v903_v44, %v885_v4 }
  0xd9   :  { %v726_v24 = vadd.f32 %v710_v61, %v692_v25  ;;  %v953_v59 = vadd.f32 %v937_v8, %v919_v33 }
  0xdb   :  { %v760_v51 = vadd.f32 %v744_v58, %v726_v24  ;;  %v987_v47 = vadd.f32 %v971_v62, %v953_v59 }
  0xdd   :  { %v794_v14 = vadd.f32 %v778_v19, %v760_v51  ;;  %1004 = vst.msk [vmem:[%s2769_s3 + $0x70] sm:$0xff] %vm989_vm0, %v987_v47 }
  0xdf   :  { %v852_v28 = vadd.f32 %v836_v36, %v794_v14 }
  0xe1   :  { %v886_v13 = vadd.f32 %v870_v40, %v852_v28 }
  0xe3   :  { %v920_v32 = vadd.f32 %v904_v27, %v886_v13 }
  0xe5   :  { %v954_v17 = vadd.f32 %v938_v23, %v920_v32 }
  0xe7   :  { %v988_v50 = vadd.f32 %v972_v22, %v954_v17 }
  0xe9   :  { %1005 = vst.msk [vmem:[%s2769_s3 + $0x78] sm:$0xff] %vm989_vm0, %v988_v50 }

// kernel: _lambda_.10
= control target key start
LH: loop header
LB: loop body
LE: loop exit
PB: predicated region body
PF: predicated region fallthrough
CT: control target
= control target key end

     0   :  { %vm86_vm0 = vcmask 523264   ;;  %s1381_s3 = inlined_call_operand.vmem [shape: f32[64,64], index: 3, kind: input, shape index: {}]   ;;  %s1382_s0 = inlined_call_operand.vmem [shape: f32[128,64], index: 0, kind: input, shape index: {}]   ;;  %s1383_s1 = inlined_call_operand.vmem [shape: f32[128,64], index: 1, kind: input, shape index: {}]   ;;  %s1384_s4 = inlined_call_operand.vmem [shape: f32[1,64], index: 4, kind: input, shape index: {}, may-alias: {4,6}]   ;;  %s1385_s2 = inlined_call_operand.vmem [shape: f32[128,64], index: 2, kind: input, shape index: {}]   ;;  %s1386_s5 = inlined_call_operand.vmem [shape: f32[1,64], index: 5, kind: input, shape index: {}]   ;;  %s1387_s6 = inlined_call_operand.vmem [shape: f32[1,64], index: 6, kind: input, shape index: {}, may-alias: {4,6}]   ;;  %s1388_s7 = inlined_call_operand.vmem [shape: f32[128,64], index: 7, kind: output, shape index: {}]  }
   0x1   :  { %v81_v0 = vld [vmem:[%s1381_s3 + $0x38] sm:$0xff]  ;;  %v80_v1 = vld [vmem:[%s1381_s3 + $0x30] sm:$0xff]  ;;  %v79_v2 = vld [vmem:[%s1381_s3 + $0x28] sm:$0xff] }
   0x2   :  { %143 = vmatpush.msra.mxu0 %v81_v0  ;;  %667 = vmatpush.msra.mxu1 %v81_v0  ;;  %v78_v3 = vld [vmem:[%s1381_s3 + $0x20] sm:$0xff]  ;;  %v77_v4 = vld [vmem:[%s1381_s3 + $0x18] sm:$0xff]  ;;  %v76_v5 = vld [vmem:[%s1381_s3 + $0x10] sm:$0xff] }
   0x3   :  { %668 = vmatpush.msra.mxu2 %v81_v0  ;;  %669 = vmatpush.msra.mxu3 %v81_v0  ;;  %v75_v6 = vld [vmem:[%s1381_s3 + $0x8] sm:$0xff]  ;;  %v26_v7 = vld [vmem:[%s1382_s0] sm:$0xff]  ;;  %v36_v32 = vld [vmem:[%s1382_s0 + $0x50] sm:$0xff] }
   0x4   :  { %144 = vmatpush.msra.mxu0 %v80_v1  ;;  %670 = vmatpush.msra.mxu1 %v80_v1  ;;  %v42_v8 = vld [vmem:[%s1383_s1] sm:$0xff]  ;;  %v35_v20 = vld [vmem:[%s1382_s0 + $0x48] sm:$0xff]  ;;  %v28_v33 = vld [vmem:[%s1382_s0 + $0x10] sm:$0xff] }
   0x5   :  { %671 = vmatpush.msra.mxu2 %v80_v1  ;;  %672 = vmatpush.msra.mxu3 %v80_v1  ;;  %v30_v9 = vld [vmem:[%s1382_s0 + $0x20] sm:$0xff]  ;;  %v58_v16 = vadd.f32 %v42_v8, %v26_v7  ;;  %v27_v21 = vld [vmem:[%s1382_s0 + $0x8] sm:$0xff]  ;;  %v44_v34 = vld [vmem:[%s1383_s1 + $0x10] sm:$0xff] }
   0x6   :  { %145 = vmatpush.msra.mxu0 %v79_v2  ;;  %673 = vmatpush.msra.mxu1 %v79_v2  ;;  %v46_v10 = vld [vmem:[%s1383_s1 + $0x20] sm:$0xff]  ;;  %v43_v22 = vld [vmem:[%s1383_s1 + $0x8] sm:$0xff]  ;;  %v32_v35 = vld [vmem:[%s1382_s0 + $0x30] sm:$0xff]  ;;  %v60_v40 = vadd.f32 %v44_v34, %v28_v33 }
   0x7   :  { %674 = vmatpush.msra.mxu2 %v79_v2  ;;  %675 = vmatpush.msra.mxu3 %v79_v2  ;;  %v34_v11 = vld [vmem:[%s1382_s0 + $0x40] sm:$0xff]  ;;  %v62_v17 = vadd.f32 %v46_v10, %v30_v9  ;;  %v31_v23 = vld [vmem:[%s1382_s0 + $0x28] sm:$0xff]  ;;  %v59_v28 = vadd.f32 %v43_v22, %v27_v21  ;;  %v48_v36 = vld [vmem:[%s1383_s1 + $0x30] sm:$0xff] }
   0x8   :  { %146 = vmatpush.msra.mxu0 %v78_v3  ;;  %676 = vmatpush.msra.mxu1 %v78_v3  ;;  %v50_v12 = vld [vmem:[%s1383_s1 + $0x40] sm:$0xff]  ;;  %v47_v24 = vld [vmem:[%s1383_s1 + $0x28] sm:$0xff]  ;;  %v52_v37 = vld [vmem:[%s1383_s1 + $0x50] sm:$0xff]  ;;  %v64_v41 = vadd.f32 %v48_v36, %v32_v35 }
   0x9   :  { %677 = vmatpush.msra.mxu2 %v78_v3  ;;  %678 = vmatpush.msra.mxu3 %v78_v3  ;;  %v38_v13 = vld [vmem:[%s1382_s0 + $0x60] sm:$0xff]  ;;  %v66_v18 = vadd.f32 %v50_v12, %v34_v11  ;;  %v51_v25 = vld [vmem:[%s1383_s1 + $0x48] sm:$0xff]  ;;  %v63_v29 = vadd.f32 %v47_v24, %v31_v23  ;;  %v40_v38 = vld [vmem:[%s1382_s0 + $0x70] sm:$0xff]  ;;  %v68_v42 = vadd.f32 %v52_v37, %v36_v32 }
   0xa   :  { %147 = vmatpush.msra.mxu0 %v77_v4  ;;  %679 = vmatpush.msra.mxu1 %v77_v4  ;;  %v54_v14 = vld [vmem:[%s1383_s1 + $0x60] sm:$0xff]  ;;  %v39_v26 = vld [vmem:[%s1382_s0 + $0x68] sm:$0xff]  ;;  %v67_v30 = vadd.f32 %v51_v25, %v35_v20  ;;  %v56_v39 = vld [vmem:[%s1383_s1 + $0x70] sm:$0xff] }
   0xb   :  { %680 = vmatpush.msra.mxu2 %v77_v4  ;;  %681 = vmatpush.msra.mxu3 %v77_v4  ;;  %v74_v15 = vld [vmem:[%s1381_s3] sm:$0xff]  ;;  %v70_v19 = vadd.f32 %v54_v14, %v38_v13  ;;  %v55_v27 = vld [vmem:[%s1383_s1 + $0x68] sm:$0xff]  ;;  %v72_v43 = vadd.f32 %v56_v39, %v40_v38  ;;  %v37_v44 = vld [vmem:[%s1382_s0 + $0x58] sm:$0xff] }
   0xc   :  { %148 = vmatpush.msra.mxu0 %v76_v5  ;;  %682 = vmatpush.msra.mxu1 %v76_v5  ;;  %v71_v31 = vadd.f32 %v55_v27, %v39_v26  ;;  %v29_v45 = vld [vmem:[%s1382_s0 + $0x18] sm:$0xff]  ;;  %v909_v56 = vld [vmem:[%s1384_s4] ss:$0 sm:$0xff]  ;;  %v213_v21 = vld [vmem:[%s1385_s2 + $0x68] sm:$0xff] }
   0xd   :  { %683 = vmatpush.msra.mxu2 %v76_v5  ;;  %684 = vmatpush.msra.mxu3 %v76_v5  ;;  %v45_v46 = vld [vmem:[%s1383_s1 + $0x18] sm:$0xff]  ;;  %v204_v59 = vld [vmem:[%s1385_s2 + $0x20] sm:$0xff]  ;;  %v209_v34 = vld [vmem:[%s1385_s2 + $0x48] sm:$0xff] }
   0xe   :  { %149 = vmatpush.msra.mxu0 %v75_v6  ;;  %685 = vmatpush.msra.mxu1 %v75_v6  ;;  %v33_v47 = vld [vmem:[%s1382_s0 + $0x38] sm:$0xff]  ;;  %v61_v52 = vadd.f32 %v45_v46, %v29_v45  ;;  %v200_v60 = vld [vmem:[%s1385_s2] sm:$0xff] }
   0xf   :  { %686 = vmatpush.msra.mxu2 %v75_v6  ;;  %687 = vmatpush.msra.mxu3 %v75_v6  ;;  %v49_v48 = vld [vmem:[%s1383_s1 + $0x38] sm:$0xff]  ;;  %v208_v5 = vld [vmem:[%s1385_s2 + $0x40] sm:$0xff] }
  0x10   :  { %150 = vmatpush.msra.mxu0 %v74_v15  ;;  %688 = vmatpush.msra.mxu1 %v74_v15  ;;  %v53_v49 = vld [vmem:[%s1383_s1 + $0x58] sm:$0xff]  ;;  %v65_v53 = vadd.f32 %v49_v48, %v33_v47  ;;  %v212_v6 = vld [vmem:[%s1385_s2 + $0x60] sm:$0xff] }
  0x11   :  { %689 = vmatpush.msra.mxu2 %v74_v15  ;;  %690 = vmatpush.msra.mxu3 %v74_v15  ;;  %v41_v50 = vld [vmem:[%s1382_s0 + $0x78] sm:$0xff]  ;;  %v69_v54 = vadd.f32 %v53_v49, %v37_v44  ;;  %v205_v15 = vld [vmem:[%s1385_s2 + $0x28] sm:$0xff] }
  0x12   :  { %651 = vmatmul.msk.f32.vlgmr.msra.gmra.mxu0 %vm86_vm0, %v58_v16  ;;  %655 = vmatmul.msk.f32.vlgmr.msra.gmra.mxu1 %vm86_vm0, %v62_v17  ;;  %v57_v51 = vld [vmem:[%s1383_s1 + $0x78] sm:$0xff] }
  0x13   :  { %659 = vmatmul.msk.f32.vlgmr.msra.gmra.mxu2 %vm86_vm0, %v66_v18  ;;  %663 = vmatmul.msk.f32.vlgmr.msra.gmra.mxu3 %vm86_vm0, %v70_v19  ;;  %v73_v55 = vadd.f32 %v57_v51, %v41_v50  ;;  %v201_v18 = vld [vmem:[%s1385_s2 + $0x8] sm:$0xff]  ;;  %v211_v47 = vld [vmem:[%s1385_s2 + $0x58] sm:$0xff] }
  0x1a   :  { %652 = vmatmul.msk.f32.gmra.mxu0 %vm86_vm0, %v59_v28  ;;  %656 = vmatmul.msk.f32.gmra.mxu1 %vm86_vm0, %v63_v29  ;;  %v202_v29 = vld [vmem:[%s1385_s2 + $0x10] sm:$0xff] }
  0x1b   :  { %660 = vmatmul.msk.f32.gmra.mxu2 %vm86_vm0, %v67_v30  ;;  %664 = vmatmul.msk.f32.gmra.mxu3 %vm86_vm0, %v71_v31 }
  0x22   :  { %653 = vmatmul.msk.f32.gmra.mxu0 %vm86_vm0, %v60_v40  ;;  %657 = vmatmul.msk.f32.gmra.mxu1 %vm86_vm0, %v64_v41 }
  0x23   :  { %661 = vmatmul.msk.f32.gmra.mxu2 %vm86_vm0, %v68_v42  ;;  %665 = vmatmul.msk.f32.gmra.mxu3 %vm86_vm0, %v72_v43  ;;  %v210_v42 = vld [vmem:[%s1385_s2 + $0x50] sm:$0xff] }
  0x24   :  { %v206_v43 = vld [vmem:[%s1385_s2 + $0x30] sm:$0xff] }
  0x2a   :  { %654 = vmatmul.msk.f32.gmra.mxu0 %vm86_vm0, %v61_v52  ;;  %658 = vmatmul.msk.f32.gmra.mxu1 %vm86_vm0, %v65_v53 }
  0x2b   :  { %662 = vmatmul.msk.f32.gmra.mxu2 %vm86_vm0, %v69_v54  ;;  %666 = vmatmul.msk.f32.gmra.mxu3 %vm86_vm0, %v73_v55 }
  0x8f   :  { %v152_v57 = vpop.f32.mrf.mxu0  ;;  %v164_v58 = vpop.f32.mrf.mxu1 }
  0x90   :  { %v153_v61 = vadd.f32 %v909_v56, %v152_v57  ;;  %v165_v62 = vadd.f32 %v909_v56, %v164_v58 }
  0x92   :  { %v919_v63 = vadd.f32 %v204_v59, %v165_v62  ;;  %v921_v0 = vadd.f32 %v200_v60, %v153_v61  ;;  %v214_v59 = vld [vmem:[%s1385_s2 + $0x70] sm:$0xff]  ;;  %v203_v60 = vld [vmem:[%s1385_s2 + $0x18] sm:$0xff] }
  0x93   :  { %v215_v62 = vld [vmem:[%s1385_s2 + $0x78] sm:$0xff] }
  0x94   :  { %v246_v1 = vsel %vm86_vm0, %v919_v63, 0.0  ;;  %v234_v2 = vsel %vm86_vm0, %v921_v0, 0.0 }
  0x95   :  { %247 = vadd.xlane.f32.xlu2 %v246_v1  ;;  %235 = vadd.xlane.f32.xlu0 %v234_v2 }
  0x96   :  { %v176_v3 = vpop.f32.mrf.mxu2  ;;  %v188_v4 = vpop.f32.mrf.mxu3 }
  0x97   :  { %v177_v7 = vadd.f32 %v909_v56, %v176_v3  ;;  %v189_v8 = vadd.f32 %v909_v56, %v188_v4  ;;  %v155_v9 = vpop.f32.mrf.mxu0  ;;  %v167_v10 = vpop.f32.mrf.mxu1 }
  0x98   :  { %v168_v13 = vadd.f32 %v909_v56, %v167_v10  ;;  %v156_v16 = vadd.f32 %v909_v56, %v155_v9  ;;  %v207_v9 = vld [vmem:[%s1385_s2 + $0x38] sm:$0xff] }
  0x99   :  { %v935_v11 = vadd.f32 %v208_v5, %v177_v7  ;;  %v937_v12 = vadd.f32 %v212_v6, %v189_v8 }
  0x9a   :  { %v954_v22 = vadd.f32 %v205_v15, %v168_v13  ;;  %v957_v25 = vadd.f32 %v201_v18, %v156_v16 }
  0x9b   :  { %v258_v14 = vsel %vm86_vm0, %v935_v11, 0.0  ;;  %v270_v17 = vsel %vm86_vm0, %v937_v12, 0.0 }
  0x9c   :  { %v249_v28 = vsel %vm86_vm0, %v954_v22, 0.0  ;;  %v237_v32 = vsel %vm86_vm0, %v957_v25, 0.0 }
  0x9d   :  { %259 = vadd.xlane.f32.xlu2 %v258_v14  ;;  %271 = vadd.xlane.f32.xlu0 %v270_v17  ;;  %v729_v14 = vmov 64.0  }
  0x9e   :  { %v179_v19 = vpop.f32.mrf.mxu2  ;;  %v191_v20 = vpop.f32.mrf.mxu3  ;;  %695 = vrcp.f32 %v729_v14 }
  0x9f   :  { %v192_v23 = vadd.f32 %v909_v56, %v191_v20  ;;  %v158_v24 = vpop.f32.mrf.mxu0  ;;  %v180_v31 = vadd.f32 %v909_v56, %v179_v19  ;;  %v170_v37 = vpop.f32.mrf.mxu1 }
  0xa0   :  { %v159_v27 = vadd.f32 %v909_v56, %v158_v24  ;;  %v171_v41 = vadd.f32 %v909_v56, %v170_v37 }
  0xa1   :  { %v959_v26 = vadd.f32 %v213_v21, %v192_v23  ;;  %v977_v38 = vadd.f32 %v209_v34, %v180_v31 }
  0xa2   :  { %v972_v33 = vadd.f32 %v202_v29, %v159_v27  ;;  %v996_v49 = vadd.f32 %v206_v43, %v171_v41 }
  0xa3   :  { %v273_v30 = vsel %vm86_vm0, %v959_v26, 0.0  ;;  %v261_v44 = vsel %vm86_vm0, %v977_v38, 0.0 }
  0xa4   :  { %274 = vadd.xlane.f32.xlu1 %v273_v30  ;;  %v240_v40 = vsel %vm86_vm0, %v972_v33, 0.0  ;;  %v252_v57 = vsel %vm86_vm0, %v996_v49, 0.0  ;;  %v696_v15 = vpop.eup %695 }
  0xa5   :  { %250 = vadd.xlane.f32.xlu2 %v249_v28  ;;  %238 = vadd.xlane.f32.xlu0 %v237_v32  ;;  %vm287_vm1 = vweird.f32 %v696_v15 }
  0xa6   :  { %v182_v35 = vpop.f32.mrf.mxu2  ;;  %v194_v36 = vpop.f32.mrf.mxu3 }
  0xa7   :  { %v183_v39 = vadd.f32 %v909_v56, %v182_v35  ;;  %v161_v48 = vpop.f32.mrf.mxu0  ;;  %v195_v52 = vadd.f32 %v909_v56, %v194_v36  ;;  %v173_v3 = vpop.f32.mrf.mxu1 }
  0xa8   :  { %v162_v55 = vadd.f32 %v909_v56, %v161_v48  ;;  %v174_v7 = vadd.f32 %v909_v56, %v173_v3 }
  0xa9   :  { %v991_v45 = vadd.f32 %v210_v42, %v183_v39  ;;  %v1019_v1 = vadd.f32 %v214_v59, %v195_v52 }
  0xaa   :  { %v1021_v2 = vadd.f32 %v203_v60, %v162_v55  ;;  %v1035_v10 = vadd.f32 %v207_v9, %v174_v7 }
  0xab   :  { %v264_v54 = vsel %vm86_vm0, %v991_v45, 0.0  ;;  %v276_v5 = vsel %vm86_vm0, %v1019_v1, 0.0 }
  0xac   :  { %241 = vadd.xlane.f32.xlu1 %v240_v40  ;;  %v243_v6 = vsel %vm86_vm0, %v1021_v2, 0.0  ;;  %v255_v13 = vsel %vm86_vm0, %v1035_v10, 0.0 }
  0xad   :  { %262 = vadd.xlane.f32.xlu0 %v261_v44 }
  0xae   :  { %v185_v46 = vpop.f32.mrf.mxu2  ;;  %v197_v51 = vpop.f32.mrf.mxu3 }
  0xaf   :  { %v186_v50 = vadd.f32 %v909_v56, %v185_v46  ;;  %v198_v58 = vadd.f32 %v909_v56, %v197_v51  ;;  %v283_v56 = vmul.f32 64.0, %v696_v15 }
  0xb1   :  { %v1000_v53 = vadd.f32 %v211_v47, %v186_v50  ;;  %v1023_v4 = vadd.f32 %v215_v62, %v198_v58  ;;  %v284_v16 = vsub.f32 1.0, %v283_v56 }
  0xb3   :  { %v267_v61 = vsel %vm86_vm0, %v1000_v53, 0.0  ;;  %v279_v8 = vsel %vm86_vm0, %v1023_v4, 0.0  ;;  %v285_v17 = vmul.f32 %v696_v15, %v284_v16 }
  0xb4   :  { %268 = vadd.xlane.f32.xlu2 %v267_v61  ;;  %265 = vadd.xlane.f32.xlu1 %v264_v54 }
  0xb5   :  { %253 = vadd.xlane.f32.xlu0 %v252_v57  ;;  %v286_v18 = vadd.f32 %v696_v15, %v285_v17 }
  0xb7   :  { %v1039_v19 = vsel %vm287_vm1, %v696_v15, %v286_v18 }
  0xbc   :  { %277 = vadd.xlane.f32.xlu2 %v276_v5  ;;  %244 = vadd.xlane.f32.xlu1 %v243_v6 }
  0xbd   :  { %280 = vadd.xlane.f32.xlu0 %v279_v8 }
  0xc4   :  { %256 = vadd.xlane.f32.xlu1 %v255_v13 }
 0x108   :  { %v248_v20 = vpop.xlane.xlu2 %247  ;;  %v236_v21 = vpop.xlane.xlu0 %235 }
 0x109   :  { %v293_v23 = vmul.f32 %v1039_v19, %v248_v20  ;;  %v289_v24 = vmul.f32 %v1039_v19, %v236_v21 }
 0x10b   :  { %v1044_v27 = vsub.f32 %v919_v63, %v293_v23  ;;  %v1047_v28 = vsub.f32 %v921_v0, %v289_v24 }
 0x10d   :  { %v325_v29 = vmul.f32 %v1044_v27, %v1044_v27  ;;  %v321_v30 = vmul.f32 %v1047_v28, %v1047_v28 }
 0x10f   :  { %v349_v31 = vsel %vm86_vm0, %v325_v29, 0.0  ;;  %v337_v32 = vsel %vm86_vm0, %v321_v30, 0.0 }
 0x110   :  { %350 = vadd.xlane.f32.xlu2 %v349_v31  ;;  %v260_v34 = vpop.xlane.xlu2 %259  ;;  %338 = vadd.xlane.f32.xlu1 %v337_v32  ;;  %v272_v35 = vpop.xlane.xlu0 %271 }
 0x111   :  { %v297_v63 = vmul.f32 %v1039_v19, %v260_v34  ;;  %v301_v36 = vmul.f32 %v1039_v19, %v272_v35 }
 0x113   :  { %v1058_v0 = vsub.f32 %v935_v11, %v297_v63  ;;  %v1061_v37 = vsub.f32 %v937_v12, %v301_v36 }
 0x115   :  { %v329_v39 = vmul.f32 %v1058_v0, %v1058_v0  ;;  %v333_v40 = vmul.f32 %v1061_v37, %v1061_v37 }
 0x117   :  { %v1067_v41 = vpop.xlane.xlu1 %274  ;;  %v361_v42 = vsel %vm86_vm0, %v329_v39, 0.0  ;;  %v373_v43 = vsel %vm86_vm0, %v333_v40, 0.0 }
 0x118   :  { %v251_v44 = vpop.xlane.xlu2 %250  ;;  %362 = vadd.xlane.f32.xlu0 %v361_v42  ;;  %374 = vadd.xlane.f32.xlu1 %v373_v43  ;;  %v239_v11 = vpop.xlane.xlu0 %238 }
 0x119   :  { %v294_v46 = vmul.f32 %v1039_v19, %v251_v44  ;;  %v290_v12 = vmul.f32 %v1039_v19, %v239_v11 }
 0x11b   :  { %v1074_v47 = vsub.f32 %v954_v22, %v294_v46  ;;  %v1077_v48 = vsub.f32 %v957_v25, %v290_v12 }
 0x11d   :  { %v326_v50 = vmul.f32 %v1074_v47, %v1074_v47  ;;  %v322_v51 = vmul.f32 %v1077_v48, %v1077_v48 }
 0x11f   :  { %v242_v52 = vpop.xlane.xlu1 %241  ;;  %v352_v54 = vsel %vm86_vm0, %v326_v50, 0.0  ;;  %v340_v55 = vsel %vm86_vm0, %v322_v51, 0.0 }
 0x120   :  { %v291_v57 = vmul.f32 %v1039_v19, %v242_v52  ;;  %353 = vadd.xlane.f32.xlu0 %v352_v54  ;;  %341 = vadd.xlane.f32.xlu2 %v340_v55  ;;  %v263_v22 = vpop.xlane.xlu0 %262 }
 0x121   :  { %v298_v58 = vmul.f32 %v1039_v19, %v263_v22 }
 0x122   :  { %v1088_v25 = vsub.f32 %v972_v33, %v291_v57 }
 0x123   :  { %v1091_v59 = vsub.f32 %v977_v38, %v298_v58 }
 0x124   :  { %v323_v60 = vmul.f32 %v1088_v25, %v1088_v25 }
 0x125   :  { %v330_v61 = vmul.f32 %v1091_v59, %v1091_v59 }
 0x126   :  { %v343_v5 = vsel %vm86_vm0, %v323_v60, 0.0 }
 0x127   :  { %v269_v62 = vpop.xlane.xlu2 %268  ;;  %v266_v3 = vpop.xlane.xlu1 %265  ;;  %v364_v6 = vsel %vm86_vm0, %v330_v61, 0.0 }
 0x128   :  { %v300_v7 = vmul.f32 %v1039_v19, %v269_v62  ;;  %v299_v33 = vmul.f32 %v1039_v19, %v266_v3  ;;  %344 = vadd.xlane.f32.xlu0 %v343_v5  ;;  %365 = vadd.xlane.f32.xlu1 %v364_v6  ;;  %v254_v38 = vpop.xlane.xlu0 %253 }
 0x129   :  { %v295_v8 = vmul.f32 %v1039_v19, %v254_v38 }
 0x12a   :  { %v1103_v9 = vsub.f32 %v1000_v53, %v300_v7  ;;  %v1106_v13 = vsub.f32 %v991_v45, %v299_v33 }
 0x12b   :  { %v1109_v14 = vsub.f32 %v996_v49, %v295_v8 }
 0x12c   :  { %v331_v15 = vmul.f32 %v1106_v13, %v1106_v13  ;;  %v332_v56 = vmul.f32 %v1103_v9, %v1103_v9 }
 0x12d   :  { %v327_v16 = vmul.f32 %v1109_v14, %v1109_v14 }
 0x12e   :  { %v367_v17 = vsel %vm86_vm0, %v331_v15, 0.0  ;;  %v370_v45 = vsel %vm86_vm0, %v332_v56, 0.0 }
 0x12f   :  { %v278_v18 = vpop.xlane.xlu2 %277  ;;  %v245_v53 = vpop.xlane.xlu1 %244  ;;  %368 = vadd.xlane.f32.xlu2 %v367_v17  ;;  %v355_v20 = vsel %vm86_vm0, %v327_v16, 0.0 }
 0x130   :  { %v303_v49 = vmul.f32 %v1039_v19, %v278_v18  ;;  %v292_v21 = vmul.f32 %v1039_v19, %v245_v53  ;;  %371 = vadd.xlane.f32.xlu0 %v370_v45  ;;  %356 = vadd.xlane.f32.xlu1 %v355_v20  ;;  %v281_v23 = vpop.xlane.xlu0 %280 }
 0x131   :  { %v304_v30 = vmul.f32 %v1039_v19, %v281_v23  ;;  %v1176_v23 = vld [vmem:[%s1386_s5] ss:$0 sm:$0xff] }
 0x132   :  { %v1123_v24 = vsub.f32 %v1019_v1, %v303_v49  ;;  %v1126_v29 = vsub.f32 %v1021_v2, %v292_v21  ;;  %v302_v2 = vmul.f32 %v1039_v19, %v1067_v41 }
 0x133   :  { %v1134_v34 = vsub.f32 %v1023_v4, %v304_v30 }
 0x134   :  { %v335_v31 = vmul.f32 %v1123_v24, %v1123_v24  ;;  %v324_v32 = vmul.f32 %v1126_v29, %v1126_v29  ;;  %v1149_v42 = vsub.f32 %v959_v26, %v302_v2 }
 0x135   :  { %v336_v40 = vmul.f32 %v1134_v34, %v1134_v34 }
 0x136   :  { %v379_v63 = vsel %vm86_vm0, %v335_v31, 0.0  ;;  %v346_v1 = vsel %vm86_vm0, %v324_v32, 0.0  ;;  %v334_v41 = vmul.f32 %v1149_v42, %v1149_v42 }
 0x137   :  { %v257_v35 = vpop.xlane.xlu1 %256  ;;  %v382_v44 = vsel %vm86_vm0, %v336_v40, 0.0 }
 0x138   :  { %v296_v36 = vmul.f32 %v1039_v19, %v257_v35  ;;  %380 = vadd.xlane.f32.xlu0 %v379_v63  ;;  %347 = vadd.xlane.f32.xlu1 %v346_v1  ;;  %v1184_v63 = vld [vmem:[%s1387_s6] ss:$0 sm:$0xff] }
 0x13a   :  { %v1142_v39 = vsub.f32 %v1035_v10, %v296_v36  ;;  %v376_v10 = vsel %vm86_vm0, %v334_v41, 0.0 }
 0x13c   :  { %v328_v4 = vmul.f32 %v1142_v39, %v1142_v39 }
 0x13e   :  { %v358_v43 = vsel %vm86_vm0, %v328_v4, 0.0 }
 0x13f   :  { %359 = vadd.xlane.f32.xlu2 %v358_v43 }
 0x140   :  { %383 = vadd.xlane.f32.xlu1 %v382_v44 }
 0x147   :  { %377 = vadd.xlane.f32.xlu2 %v376_v10 }
 0x183   :  { %v351_v11 = vpop.xlane.xlu2 %350  ;;  %v339_v46 = vpop.xlane.xlu1 %338 }
 0x184   :  { %v389_v12 = vmul.f32 %v351_v11, %v1039_v19  ;;  %v385_v50 = vmul.f32 %v339_v46, %v1039_v19 }
 0x186   :  { %v405_v26 = vadd.f32 1e-06, %v389_v12  ;;  %v401_v51 = vadd.f32 1e-06, %v385_v50 }
 0x188   :  { %697 = vrsqrt.f32 %v405_v26  ;;  %vm463_vm4 = vweird.f32 %v405_v26  ;;  %vm423_vm6 = vweird.f32 %v401_v51 }
 0x189   :  { %699 = vrsqrt.f32 %v401_v51 }
 0x18b   :  { %v375_v52 = vpop.xlane.xlu1 %374  ;;  %v363_v54 = vpop.xlane.xlu0 %362 }
 0x18c   :  { %v397_v55 = vmul.f32 %v375_v52, %v1039_v19  ;;  %v393_v57 = vmul.f32 %v363_v54, %v1039_v19 }
 0x18e   :  { %v698_v22 = vpop.eup %697  ;;  %v1160_v58 = vadd.f32 1e-06, %v397_v55  ;;  %v1162_v60 = vadd.f32 1e-06, %v393_v57 }
 0x18f   :  { %v700_v61 = vpop.eup %699  ;;  %v458_v62 = vmul.f32 %v698_v22, %v405_v26  ;;  %vm464_vm2 = vweird.f32 %v698_v22 }
 0x190   :  { %v418_v3 = vmul.f32 %v700_v61, %v401_v51  ;;  %701 = vrsqrt.f32 %v1160_v58  ;;  %vm424_vm3 = vweird.f32 %v700_v61  ;;  %vm465_vm5 = vmor %vm463_vm4, %vm464_vm2  ;;  %vm543_vm10 = vweird.f32 %v1160_v58 }
 0x191   :  { %v459_v5 = vmul.f32 %v698_v22, %v458_v62  ;;  %703 = vrsqrt.f32 %v1162_v60  ;;  %vm425_vm7 = vmor %vm423_vm6, %vm424_vm3  ;;  %vm503_vm12 = vweird.f32 %v1162_v60 }
 0x192   :  { %v419_v6 = vmul.f32 %v700_v61, %v418_v3 }
 0x193   :  { %v460_v7 = vmul.f32 0.5, %v459_v5  ;;  %v342_v33 = vpop.xlane.xlu2 %341  ;;  %v354_v38 = vpop.xlane.xlu0 %353 }
 0x194   :  { %v420_v8 = vmul.f32 0.5, %v419_v6  ;;  %v386_v15 = vmul.f32 %v342_v33, %v1039_v19  ;;  %v390_v56 = vmul.f32 %v354_v38, %v1039_v19 }
 0x195   :  { %v461_v16 = vsub.f32 1.5, %v460_v7 }
 0x196   :  { %v702_v17 = vpop.eup %701  ;;  %v421_v18 = vsub.f32 1.5, %v420_v8  ;;  %v1168_v53 = vadd.f32 1e-06, %v386_v15  ;;  %v1170_v45 = vadd.f32 1e-06, %v390_v56 }
 0x197   :  { %v704_v20 = vpop.eup %703  ;;  %v462_v49 = vmul.f32 %v698_v22, %v461_v16  ;;  %v538_v21 = vmul.f32 %v702_v17, %v1160_v58  ;;  %vm544_vm8 = vweird.f32 %v702_v17 }
 0x198   :  { %v422_v30 = vmul.f32 %v700_v61, %v421_v18  ;;  %v498_v31 = vmul.f32 %v704_v20, %v1162_v60  ;;  %705 = vrsqrt.f32 %v1168_v53  ;;  %vm504_vm9 = vweird.f32 %v704_v20  ;;  %vm545_vm11 = vmor %vm543_vm10, %vm544_vm8 }
 0x199   :  { %v466_v32 = vsel %vm465_vm5, %v698_v22, %v462_v49  ;;  %v539_v35 = vmul.f32 %v702_v17, %v538_v21  ;;  %707 = vrsqrt.f32 %v1170_v45  ;;  %vm505_vm13 = vmor %vm503_vm12, %vm504_vm9  ;;  %vm433_vm14 = vweird.f32 %v1168_v53 }
 0x19a   :  { %v581_v1 = vmul.f32 %v466_v32, %v1044_v27  ;;  %v426_v36 = vsel %vm425_vm7, %v700_v61, %v422_v30  ;;  %v499_v2 = vmul.f32 %v704_v20, %v498_v31  ;;  %vm473_vm3 = vweird.f32 %v1170_v45 }
 0x19b   :  { %v577_v40 = vmul.f32 %v426_v36, %v1047_v28  ;;  %v540_v4 = vmul.f32 0.5, %v539_v35  ;;  %v366_v43 = vpop.xlane.xlu1 %365  ;;  %v345_v44 = vpop.xlane.xlu0 %344 }
 0x19c   :  { %v600_v41 = vmul.f32 %v1176_v23, %v581_v1  ;;  %v500_v10 = vmul.f32 0.5, %v499_v2  ;;  %v394_v11 = vmul.f32 %v366_v43, %v1039_v19  ;;  %v387_v46 = vmul.f32 %v345_v44, %v1039_v19 }
 0x19d   :  { %v596_v12 = vmul.f32 %v1176_v23, %v577_v40  ;;  %v541_v50 = vsub.f32 1.5, %v540_v4 }
 0x19e   :  { %v706_v27 = vpop.eup %705  ;;  %v619_v26 = vadd.f32 %v1184_v63, %v600_v41  ;;  %v501_v51 = vsub.f32 1.5, %v500_v10  ;;  %v1193_v28 = vadd.f32 1e-06, %v394_v11  ;;  %v1195_v52 = vadd.f32 1e-06, %v387_v46 }
 0x19f   :  { %v708_v54 = vpop.eup %707  ;;  %v615_v55 = vadd.f32 %v1184_v63, %v596_v12  ;;  %v542_v57 = vmul.f32 %v702_v17, %v541_v50  ;;  %v428_v22 = vmul.f32 %v706_v27, %v1168_v53  ;;  %vm434_vm15 = vweird.f32 %v706_v27 }
 0x1a0   :  { %635 = vst.msk [vmem:[%s1388_s7 + $0x20] sm:$0xff] %vm86_vm0, %v619_v26  ;;  %v502_v61 = vmul.f32 %v704_v20, %v501_v51  ;;  %v468_v62 = vmul.f32 %v708_v54, %v1170_v45  ;;  %709 = vrsqrt.f32 %v1193_v28  ;;  %vm474_vm1 = vweird.f32 %v708_v54  ;;  %vm435_vm2 = vmor %vm433_vm14, %vm434_vm15 }
 0x1a1   :  { %631 = vst.msk [vmem:[%s1388_s7] sm:$0xff] %vm86_vm0, %v615_v55  ;;  %v546_v58 = vsel %vm545_vm11, %v702_v17, %v542_v57  ;;  %v429_v3 = vmul.f32 %v706_v27, %v428_v22  ;;  %711 = vrsqrt.f32 %v1195_v52  ;;  %vm475_vm4 = vmor %vm473_vm3, %vm474_vm1  ;;  %vm513_vm7 = vweird.f32 %v1193_v28 }
 0x1a2   :  { %v589_v5 = vmul.f32 %v546_v58, %v1061_v37  ;;  %v506_v6 = vsel %vm505_vm13, %v704_v20, %v502_v61  ;;  %v469_v7 = vmul.f32 %v708_v54, %v468_v62  ;;  %v369_v60 = vpop.xlane.xlu2 %368  ;;  %vm443_vm9 = vweird.f32 %v1195_v52 }
 0x1a3   :  { %v585_v33 = vmul.f32 %v506_v6, %v1058_v0  ;;  %v430_v38 = vmul.f32 0.5, %v429_v3  ;;  %v395_v8 = vmul.f32 %v369_v60, %v1039_v19  ;;  %v357_v15 = vpop.xlane.xlu1 %356  ;;  %v372_v56 = vpop.xlane.xlu0 %371 }
 0x1a4   :  { %v608_v16 = vmul.f32 %v1176_v23, %v589_v5  ;;  %v470_v17 = vmul.f32 0.5, %v469_v7  ;;  %v391_v18 = vmul.f32 %v357_v15, %v1039_v19  ;;  %v396_v49 = vmul.f32 %v372_v56, %v1039_v19 }
 0x1a5   :  { %v604_v37 = vmul.f32 %v1176_v23, %v585_v33  ;;  %v431_v20 = vsub.f32 1.5, %v430_v38  ;;  %v1221_v21 = vadd.f32 1e-06, %v395_v8 }
 0x1a6   :  { %v710_v0 = vpop.eup %709  ;;  %v627_v30 = vadd.f32 %v1184_v63, %v608_v16  ;;  %v471_v31 = vsub.f32 1.5, %v470_v17  ;;  %v1224_v32 = vadd.f32 1e-06, %v391_v18  ;;  %v1228_v40 = vadd.f32 1e-06, %v396_v49 }
 0x1a7   :  { %v712_v35 = vpop.eup %711  ;;  %v623_v1 = vadd.f32 %v1184_v63, %v604_v37  ;;  %v432_v36 = vmul.f32 %v706_v27, %v431_v20  ;;  %v508_v2 = vmul.f32 %v710_v0, %v1193_v28  ;;  %713 = vrsqrt.f32 %v1221_v21 }
 0x1a8   :  { %643 = vst.msk [vmem:[%s1388_s7 + $0x60] sm:$0xff] %vm86_vm0, %v627_v30  ;;  %v472_v4 = vmul.f32 %v708_v54, %v471_v31  ;;  %v438_v43 = vmul.f32 %v712_v35, %v1195_v52  ;;  %715 = vrsqrt.f32 %v1224_v32  ;;  %vm514_vm5 = vweird.f32 %v710_v0 }
 0x1a9   :  { %639 = vst.msk [vmem:[%s1388_s7 + $0x40] sm:$0xff] %vm86_vm0, %v623_v1  ;;  %v436_v44 = vsel %vm435_vm2, %v706_v27, %v432_v36  ;;  %v509_v41 = vmul.f32 %v710_v0, %v508_v2  ;;  %717 = vrsqrt.f32 %v1228_v40  ;;  %vm444_vm6 = vweird.f32 %v712_v35  ;;  %vm515_vm8 = vmor %vm513_vm7, %vm514_vm5 }
 0x1aa   :  { %v578_v53 = vmul.f32 %v436_v44, %v1077_v48  ;;  %v476_v10 = vsel %vm475_vm4, %v708_v54, %v472_v4  ;;  %v439_v11 = vmul.f32 %v712_v35, %v438_v43  ;;  %vm445_vm10 = vmor %vm443_vm9, %vm444_vm6  ;;  %vm523_vm11 = vweird.f32 %v1221_v21 }
 0x1ab   :  { %v582_v45 = vmul.f32 %v476_v10, %v1074_v47  ;;  %v510_v46 = vmul.f32 0.5, %v509_v41  ;;  %v348_v12 = vpop.xlane.xlu1 %347  ;;  %v381_v50 = vpop.xlane.xlu0 %380  ;;  %vm483_vm12 = vweird.f32 %v1224_v32  ;;  %vm533_vm3 = vweird.f32 %v1228_v40 }
 0x1ac   :  { %v597_v26 = vmul.f32 %v1176_v23, %v578_v53  ;;  %v440_v51 = vmul.f32 0.5, %v439_v11  ;;  %v388_v27 = vmul.f32 %v348_v12, %v1039_v19  ;;  %v399_v55 = vmul.f32 %v381_v50, %v1039_v19 }
 0x1ad   :  { %v601_v57 = vmul.f32 %v1176_v23, %v582_v45  ;;  %v511_v22 = vsub.f32 1.5, %v510_v46  ;;  %v1252_v48 = vpop.eup %713 }
 0x1ae   :  { %v616_v47 = vadd.f32 %v1184_v63, %v597_v26  ;;  %v441_v54 = vsub.f32 1.5, %v440_v51  ;;  %v1255_v61 = vadd.f32 1e-06, %v388_v27  ;;  %v1257_v62 = vadd.f32 1e-06, %v399_v55  ;;  %v1259_v58 = vpop.eup %715 }
 0x1af   :  { %v620_v3 = vadd.f32 %v1184_v63, %v601_v57  ;;  %v512_v5 = vmul.f32 %v710_v0, %v511_v22  ;;  %v518_v6 = vmul.f32 %v1252_v48, %v1221_v21  ;;  %v478_v60 = vmul.f32 %v1259_v58, %v1224_v32  ;;  %v718_v33 = vpop.eup %717 }
 0x1b0   :  { %632 = vst.msk [vmem:[%s1388_s7 + $0x8] sm:$0xff] %vm86_vm0, %v616_v47  ;;  %v442_v7 = vmul.f32 %v712_v35, %v441_v54  ;;  %719 = vrsqrt.f32 %v1255_v61  ;;  %v528_v56 = vmul.f32 %v718_v33, %v1228_v40  ;;  %vm524_vm13 = vweird.f32 %v1252_v48 }
 0x1b1   :  { %636 = vst.msk [vmem:[%s1388_s7 + $0x28] sm:$0xff] %vm86_vm0, %v620_v3  ;;  %v516_v28 = vsel %vm515_vm8, %v710_v0, %v512_v5  ;;  %v519_v38 = vmul.f32 %v1252_v48, %v518_v6  ;;  %721 = vrsqrt.f32 %v1257_v62  ;;  %v479_v15 = vmul.f32 %v1259_v58, %v478_v60  ;;  %vm525_vm15 = vmor %vm523_vm11, %vm524_vm13 }
 0x1b2   :  { %v586_v52 = vmul.f32 %v516_v28, %v1091_v59  ;;  %v446_v8 = vsel %vm445_vm10, %v712_v35, %v442_v7  ;;  %v360_v16 = vpop.xlane.xlu2 %359  ;;  %v529_v20 = vmul.f32 %v718_v33, %v528_v56  ;;  %vm484_vm14 = vweird.f32 %v1259_v58 }
 0x1b3   :  { %v579_v17 = vmul.f32 %v446_v8, %v1088_v25  ;;  %v520_v18 = vmul.f32 0.5, %v519_v38  ;;  %v480_v37 = vmul.f32 0.5, %v479_v15  ;;  %v392_v0 = vmul.f32 %v360_v16, %v1039_v19  ;;  %v384_v59 = vpop.xlane.xlu1 %383  ;;  %vm485_vm2 = vmor %vm483_vm12, %vm484_vm14 }
 0x1b4   :  { %v605_v49 = vmul.f32 %v1176_v23, %v586_v52  ;;  %v530_v36 = vmul.f32 0.5, %v529_v20  ;;  %v400_v53 = vmul.f32 %v384_v59, %v1039_v19  ;;  %vm534_vm1 = vweird.f32 %v718_v33 }
 0x1b5   :  { %v598_v30 = vmul.f32 %v1176_v23, %v579_v17  ;;  %v521_v31 = vsub.f32 1.5, %v520_v18  ;;  %v481_v1 = vsub.f32 1.5, %v480_v37  ;;  %v1292_v2 = vadd.f32 1e-06, %v392_v0  ;;  %vm535_vm4 = vmor %vm533_vm3, %vm534_vm1 }
 0x1b6   :  { %v720_v25 = vpop.eup %719  ;;  %v624_v35 = vadd.f32 %v1184_v63, %v605_v49  ;;  %v531_v11 = vsub.f32 1.5, %v530_v36  ;;  %v416_v22 = vadd.f32 1e-06, %v400_v53  ;;  %vm453_vm7 = vweird.f32 %v1255_v61 }
 0x1b7   :  { %v722_v4 = vpop.eup %721  ;;  %v617_v43 = vadd.f32 %v1184_v63, %v598_v30  ;;  %v522_v44 = vmul.f32 %v1252_v48, %v521_v31  ;;  %v448_v41 = vmul.f32 %v720_v25, %v1255_v61  ;;  %v482_v10 = vmul.f32 %v1259_v58, %v481_v1 }
 0x1b8   :  { %640 = vst.msk [vmem:[%s1388_s7 + $0x48] sm:$0xff] %vm86_vm0, %v624_v35  ;;  %v558_v45 = vmul.f32 %v722_v4, %v1257_v62  ;;  %723 = vrsqrt.f32 %v1292_v2  ;;  %v532_v26 = vmul.f32 %v718_v33, %v531_v11  ;;  %vm454_vm5 = vweird.f32 %v720_v25 }
 0x1b9   :  { %633 = vst.msk [vmem:[%s1388_s7 + $0x10] sm:$0xff] %vm86_vm0, %v617_v43  ;;  %v526_v46 = vsel %vm525_vm15, %v1252_v48, %v522_v44  ;;  %v449_v21 = vmul.f32 %v720_v25, %v448_v41  ;;  %v486_v50 = vsel %vm485_vm2, %v1259_v58, %v482_v10  ;;  %725 = vrsqrt.f32 %v416_v22  ;;  %vm455_vm8 = vmor %vm453_vm7, %vm454_vm5 }
 0x1ba   :  { %v587_v12 = vmul.f32 %v526_v46, %v1106_v13  ;;  %v559_v51 = vmul.f32 %v722_v4, %v558_v45  ;;  %v378_v27 = vpop.xlane.xlu2 %377  ;;  %v583_v55 = vmul.f32 %v486_v50, %v1109_v14  ;;  %v536_v40 = vsel %vm535_vm4, %v718_v33, %v532_v26 }
 0x1bb   :  { %v450_v57 = vmul.f32 0.5, %v449_v21  ;;  %v398_v32 = vmul.f32 %v378_v27, %v1039_v19  ;;  %v588_v13 = vmul.f32 %v536_v40, %v1103_v9  ;;  %vm564_vm6 = vweird.f32 %v722_v4 }
 0x1bc   :  { %v606_v48 = vmul.f32 %v1176_v23, %v587_v12  ;;  %v560_v47 = vmul.f32 0.5, %v559_v51  ;;  %v602_v54 = vmul.f32 %v1176_v23, %v583_v55  ;;  %vm563_vm9 = vweird.f32 %v1257_v62 }
 0x1bd   :  { %v451_v58 = vsub.f32 1.5, %v450_v57  ;;  %v414_v14 = vadd.f32 1e-06, %v398_v32  ;;  %v607_v19 = vmul.f32 %v1176_v23, %v588_v13  ;;  %vm565_vm10 = vmor %vm563_vm9, %vm564_vm6  ;;  %vm493_vm12 = vweird.f32 %v1292_v2 }
 0x1be   :  { %v625_v3 = vadd.f32 %v1184_v63, %v606_v48  ;;  %v561_v5 = vsub.f32 1.5, %v560_v47  ;;  %v724_v6 = vpop.eup %723  ;;  %v621_v7 = vadd.f32 %v1184_v63, %v602_v54  ;;  %vm573_vm15 = vweird.f32 %v416_v22 }
 0x1bf   :  { %v452_v60 = vmul.f32 %v720_v25, %v451_v58  ;;  %v488_v33 = vmul.f32 %v724_v6, %v1292_v2  ;;  %727 = vrsqrt.f32 %v414_v14  ;;  %v626_v61 = vadd.f32 %v1184_v63, %v607_v19  ;;  %v726_v15 = vpop.eup %725 }
 0x1c0   :  { %641 = vst.msk [vmem:[%s1388_s7 + $0x50] sm:$0xff] %vm86_vm0, %v625_v3  ;;  %v562_v9 = vmul.f32 %v722_v4, %v561_v5  ;;  %v568_v17 = vmul.f32 %v726_v15, %v416_v22  ;;  %vm494_vm11 = vweird.f32 %v724_v6  ;;  %vm574_vm14 = vweird.f32 %v726_v15 }
 0x1c1   :  { %637 = vst.msk [vmem:[%s1388_s7 + $0x30] sm:$0xff] %vm86_vm0, %v621_v7  ;;  %v456_v28 = vsel %vm455_vm8, %v720_v25, %v452_v60  ;;  %v489_v8 = vmul.f32 %v724_v6, %v488_v33  ;;  %vm495_vm13 = vmor %vm493_vm12, %vm494_vm11  ;;  %vm553_vm3 = vweird.f32 %v414_v14 }
 0x1c2   :  { %v580_v38 = vmul.f32 %v456_v28, %v1126_v29  ;;  %v566_v52 = vsel %vm565_vm10, %v722_v4, %v562_v9  ;;  %642 = vst.msk [vmem:[%s1388_s7 + $0x58] sm:$0xff] %vm86_vm0, %v626_v61  ;;  %v569_v20 = vmul.f32 %v726_v15, %v568_v17  ;;  %vm575_vm1 = vmor %vm573_vm15, %vm574_vm14 }
 0x1c3   :  { %v591_v62 = vmul.f32 %v566_v52, %v1123_v24  ;;  %v490_v16 = vmul.f32 0.5, %v489_v8 }
 0x1c4   :  { %v599_v56 = vmul.f32 %v1176_v23, %v580_v38  ;;  %v570_v30 = vmul.f32 0.5, %v569_v20 }
 0x1c5   :  { %v610_v18 = vmul.f32 %v1176_v23, %v591_v62  ;;  %v728_v49 = vpop.eup %727  ;;  %v491_v29 = vsub.f32 1.5, %v490_v16 }
 0x1c6   :  { %v618_v37 = vadd.f32 %v1184_v63, %v599_v56  ;;  %v548_v59 = vmul.f32 %v728_v49, %v414_v14  ;;  %v571_v35 = vsub.f32 1.5, %v570_v30  ;;  %vm554_vm2 = vweird.f32 %v728_v49 }
 0x1c7   :  { %v629_v0 = vadd.f32 %v1184_v63, %v610_v18  ;;  %v492_v24 = vmul.f32 %v724_v6, %v491_v29  ;;  %vm555_vm4 = vmor %vm553_vm3, %vm554_vm2 }
 0x1c8   :  { %634 = vst.msk [vmem:[%s1388_s7 + $0x18] sm:$0xff] %vm86_vm0, %v618_v37  ;;  %v549_v31 = vmul.f32 %v728_v49, %v548_v59  ;;  %v572_v4 = vmul.f32 %v726_v15, %v571_v35 }
 0x1c9   :  { %645 = vst.msk [vmem:[%s1388_s7 + $0x70] sm:$0xff] %vm86_vm0, %v629_v0  ;;  %v496_v25 = vsel %vm495_vm13, %v724_v6, %v492_v24 }
 0x1ca   :  { %v584_v1 = vmul.f32 %v496_v25, %v1142_v39  ;;  %v550_v36 = vmul.f32 0.5, %v549_v31  ;;  %v576_v44 = vsel %vm575_vm1, %v726_v15, %v572_v4 }
 0x1cb   :  { %v592_v53 = vmul.f32 %v576_v44, %v1134_v34 }
 0x1cc   :  { %v603_v43 = vmul.f32 %v1176_v23, %v584_v1  ;;  %v551_v2 = vsub.f32 1.5, %v550_v36 }
 0x1cd   :  { %v611_v39 = vmul.f32 %v1176_v23, %v592_v53 }
 0x1ce   :  { %v622_v41 = vadd.f32 %v1184_v63, %v603_v43  ;;  %v552_v10 = vmul.f32 %v728_v49, %v551_v2 }
 0x1cf   :  { %v630_v46 = vadd.f32 %v1184_v63, %v611_v39 }
 0x1d0   :  { %638 = vst.msk [vmem:[%s1388_s7 + $0x38] sm:$0xff] %vm86_vm0, %v622_v41  ;;  %v556_v11 = vsel %vm555_vm4, %v728_v49, %v552_v10 }
 0x1d1   :  { %v590_v45 = vmul.f32 %v556_v11, %v1149_v42  ;;  %646 = vst.msk [vmem:[%s1388_s7 + $0x78] sm:$0xff] %vm86_vm0, %v630_v46 }
 0x1d3   :  { %v609_v21 = vmul.f32 %v1176_v23, %v590_v45 }
 0x1d5   :  { %v628_v34 = vadd.f32 %v1184_v63, %v609_v21 }
 0x1d7   :  { %644 = vst.msk [vmem:[%s1388_s7 + $0x68] sm:$0xff] %vm86_vm0, %v628_v34 }

// kernel: _lambda_.11
= control target key start
LH: loop header
LB: loop body
LE: loop exit
PB: predicated region body
PF: predicated region fallthrough
CT: control target
= control target key end

     0   :  { %s1255_s0 = inlined_call_operand.vmem [shape: f32[128,64], index: 0, kind: input, shape index: {}]   ;;  %s1256_s1 = inlined_call_operand.vmem [shape: f32[64,64], index: 1, kind: input, shape index: {}]   ;;  %s1257_s2 = inlined_call_operand.vmem [shape: f32[1,64], index: 2, kind: input, shape index: {}]   ;;  %s1258_s3 = inlined_call_operand.vmem [shape: f32[1,64], index: 3, kind: input, shape index: {}]   ;;  %s1259_s4 = inlined_call_operand.vmem [shape: f32[1,64], index: 4, kind: input, shape index: {}]   ;;  %s1260_s5 = inlined_call_operand.hbm [shape: f32[128,64], index: 5, kind: output, shape index: {}]  }
   0x1   :  { %v44_v0 = vld [vmem:[%s1256_s1 + $0x38] sm:$0xff]  ;;  %v43_v1 = vld [vmem:[%s1256_s1 + $0x30] sm:$0xff]  ;;  %v42_v2 = vld [vmem:[%s1256_s1 + $0x28] sm:$0xff] }
   0x2   :  { %106 = vmatpush.msra.mxu0 %v44_v0  ;;  %628 = vmatpush.msra.mxu1 %v44_v0  ;;  %v41_v3 = vld [vmem:[%s1256_s1 + $0x20] sm:$0xff]  ;;  %v40_v4 = vld [vmem:[%s1256_s1 + $0x18] sm:$0xff] }
   0x3   :  { %629 = vmatpush.msra.mxu2 %v44_v0  ;;  %630 = vmatpush.msra.mxu3 %v44_v0 }
   0x4   :  { %107 = vmatpush.msra.mxu0 %v43_v1  ;;  %631 = vmatpush.msra.mxu1 %v43_v1 }
   0x5   :  { %632 = vmatpush.msra.mxu2 %v43_v1  ;;  %633 = vmatpush.msra.mxu3 %v43_v1 }
   0x6   :  { %108 = vmatpush.msra.mxu0 %v42_v2  ;;  %634 = vmatpush.msra.mxu1 %v42_v2 }
   0x7   :  { %635 = vmatpush.msra.mxu2 %v42_v2  ;;  %636 = vmatpush.msra.mxu3 %v42_v2 }
   0x8   :  { %109 = vmatpush.msra.mxu0 %v41_v3  ;;  %637 = vmatpush.msra.mxu1 %v41_v3 }
   0x9   :  { %10 = vsyncpa [#allocation3], 0  ;;  %638 = vmatpush.msra.mxu2 %v41_v3  ;;  %639 = vmatpush.msra.mxu3 %v41_v3  ;;  %v39_v5 = vld [vmem:[%s1256_s1 + $0x10] sm:$0xff]  ;;  %v38_v6 = vld [vmem:[%s1256_s1 + $0x8] sm:$0xff]  ;;  %vm49_vm0 = vcmask 523264   ;;  %s600_s20 = sshll.u32 %s1260_s5, 4  ;;  %s601_s20 = int_to_ptr.hbm [resolvable:$true] %s600_s20 }
   0xa   :  { %110 = vmatpush.msra.mxu0 %v40_v4  ;;  %640 = vmatpush.msra.mxu1 %v40_v4  ;;  %v37_v7 = vld [vmem:[%s1256_s1] sm:$0xff]  ;;  %v22_v12 = vld [vmem:[%s1255_s0 + $0x8] sm:$0xff]  ;;  %v23_v16 = vld [vmem:[%s1255_s0 + $0x10] sm:$0xff]  ;;  %s721_s21 = smov 128   ;;  %s722_s22 = smov 8  }
   0xb   :  { %641 = vmatpush.msra.mxu2 %v40_v4  ;;  %642 = vmatpush.msra.mxu3 %v40_v4  ;;  %v21_v8 = vld [vmem:[%s1255_s0] sm:$0xff]  ;;  %v26_v13 = vld [vmem:[%s1255_s0 + $0x28] sm:$0xff]  ;;  %v818_v17 = vld [vmem:[%s1255_s0 + $0x30] sm:$0xff] }
   0xc   :  { %111 = vmatpush.msra.mxu0 %v39_v5  ;;  %643 = vmatpush.msra.mxu1 %v39_v5  ;;  %v25_v9 = vld [vmem:[%s1255_s0 + $0x20] sm:$0xff]  ;;  %v802_v14 = vld [vmem:[%s1255_s0 + $0x48] sm:$0xff]  ;;  %v823_v18 = vld [vmem:[%s1255_s0 + $0x50] sm:$0xff] }
   0xd   :  { %644 = vmatpush.msra.mxu2 %v39_v5  ;;  %645 = vmatpush.msra.mxu3 %v39_v5  ;;  %v29_v10 = vld [vmem:[%s1255_s0 + $0x40] sm:$0xff]  ;;  %v34_v15 = vld [vmem:[%s1255_s0 + $0x68] sm:$0xff]  ;;  %v828_v19 = vld [vmem:[%s1255_s0 + $0x70] sm:$0xff] }
   0xe   :  { %112 = vmatpush.msra.mxu0 %v38_v6  ;;  %646 = vmatpush.msra.mxu1 %v38_v6  ;;  %v33_v11 = vld [vmem:[%s1255_s0 + $0x60] sm:$0xff]  ;;  %v840_v20 = vld [vmem:[%s1255_s0 + $0x18] sm:$0xff] }
   0xf   :  { %647 = vmatpush.msra.mxu2 %v38_v6  ;;  %648 = vmatpush.msra.mxu3 %v38_v6  ;;  %v845_v21 = vld [vmem:[%s1255_s0 + $0x38] sm:$0xff]  ;;  %v868_v24 = vld [vmem:[%s1257_s2] ss:$0 sm:$0xff] }
  0x10   :  { %113 = vmatpush.msra.mxu0 %v37_v7  ;;  %649 = vmatpush.msra.mxu1 %v37_v7  ;;  %v850_v22 = vld [vmem:[%s1255_s0 + $0x58] sm:$0xff] }
  0x11   :  { %650 = vmatpush.msra.mxu2 %v37_v7  ;;  %651 = vmatpush.msra.mxu3 %v37_v7  ;;  %v855_v23 = vld [vmem:[%s1255_s0 + $0x78] sm:$0xff] }
  0x12   :  { %612 = vmatmul.msk.f32.vlgmr.msra.gmra.mxu0 %vm49_vm0, %v21_v8  ;;  %616 = vmatmul.msk.f32.vlgmr.msra.gmra.mxu1 %vm49_vm0, %v25_v9 }
  0x13   :  { %620 = vmatmul.msk.f32.vlgmr.msra.gmra.mxu2 %vm49_vm0, %v29_v10  ;;  %624 = vmatmul.msk.f32.vlgmr.msra.gmra.mxu3 %vm49_vm0, %v33_v11 }
  0x1a   :  { %613 = vmatmul.msk.f32.gmra.mxu0 %vm49_vm0, %v22_v12  ;;  %617 = vmatmul.msk.f32.gmra.mxu1 %vm49_vm0, %v26_v13 }
  0x1b   :  { %621 = vmatmul.msk.f32.gmra.mxu2 %vm49_vm0, %v802_v14  ;;  %625 = vmatmul.msk.f32.gmra.mxu3 %vm49_vm0, %v34_v15 }
  0x22   :  { %614 = vmatmul.msk.f32.gmra.mxu0 %vm49_vm0, %v23_v16  ;;  %618 = vmatmul.msk.f32.gmra.mxu1 %vm49_vm0, %v818_v17 }
  0x23   :  { %622 = vmatmul.msk.f32.gmra.mxu2 %vm49_vm0, %v823_v18  ;;  %626 = vmatmul.msk.f32.gmra.mxu3 %vm49_vm0, %v828_v19 }
  0x2a   :  { %615 = vmatmul.msk.f32.gmra.mxu0 %vm49_vm0, %v840_v20  ;;  %619 = vmatmul.msk.f32.gmra.mxu1 %vm49_vm0, %v845_v21 }
  0x2b   :  { %623 = vmatmul.msk.f32.gmra.mxu2 %vm49_vm0, %v850_v22  ;;  %627 = vmatmul.msk.f32.gmra.mxu3 %vm49_vm0, %v855_v23 }
  0x8f   :  { %v115_v25 = vpop.f32.mrf.mxu0  ;;  %v127_v26 = vpop.f32.mrf.mxu1 }
  0x90   :  { %v116_v27 = vadd.f32 %v868_v24, %v115_v25  ;;  %v128_v28 = vadd.f32 %v868_v24, %v127_v26 }
  0x92   :  { %v872_v29 = vadd.f32 %v128_v28, %v25_v9  ;;  %v874_v30 = vadd.f32 %v116_v27, %v21_v8 }
  0x94   :  { %v193_v31 = vsel %vm49_vm0, %v872_v29, 0.0  ;;  %v181_v32 = vsel %vm49_vm0, %v874_v30, 0.0 }
  0x95   :  { %194 = vadd.xlane.f32.xlu2 %v193_v31  ;;  %182 = vadd.xlane.f32.xlu0 %v181_v32 }
  0x96   :  { %v139_v33 = vpop.f32.mrf.mxu2  ;;  %v151_v34 = vpop.f32.mrf.mxu3 }
  0x97   :  { %v140_v35 = vadd.f32 %v868_v24, %v139_v33  ;;  %v152_v36 = vadd.f32 %v868_v24, %v151_v34  ;;  %v118_v37 = vpop.f32.mrf.mxu0  ;;  %v130_v38 = vpop.f32.mrf.mxu1 }
  0x98   :  { %v131_v41 = vadd.f32 %v868_v24, %v130_v38  ;;  %v119_v43 = vadd.f32 %v868_v24, %v118_v37 }
  0x99   :  { %v882_v39 = vadd.f32 %v140_v35, %v29_v10  ;;  %v884_v40 = vadd.f32 %v152_v36, %v33_v11 }
  0x9a   :  { %v892_v47 = vadd.f32 %v131_v41, %v26_v13  ;;  %v895_v50 = vadd.f32 %v119_v43, %v22_v12 }
  0x9b   :  { %v205_v42 = vsel %vm49_vm0, %v882_v39, 0.0  ;;  %v217_v44 = vsel %vm49_vm0, %v884_v40, 0.0 }
  0x9c   :  { %v196_v53 = vsel %vm49_vm0, %v892_v47, 0.0  ;;  %v184_v56 = vsel %vm49_vm0, %v895_v50, 0.0 }
  0x9d   :  { %206 = vadd.xlane.f32.xlu2 %v205_v42  ;;  %218 = vadd.xlane.f32.xlu0 %v217_v44 }
  0x9e   :  { %v142_v45 = vpop.f32.mrf.mxu2  ;;  %v154_v46 = vpop.f32.mrf.mxu3 }
  0x9f   :  { %v155_v48 = vadd.f32 %v868_v24, %v154_v46  ;;  %v121_v49 = vpop.f32.mrf.mxu0  ;;  %v143_v55 = vadd.f32 %v868_v24, %v142_v45  ;;  %v133_v60 = vpop.f32.mrf.mxu1 }
  0xa0   :  { %v122_v52 = vadd.f32 %v868_v24, %v121_v49  ;;  %v134_v0 = vadd.f32 %v868_v24, %v133_v60 }
  0xa1   :  { %v897_v51 = vadd.f32 %v155_v48, %v34_v15  ;;  %v910_v61 = vadd.f32 %v143_v55, %v802_v14 }
  0xa2   :  { %v907_v57 = vadd.f32 %v122_v52, %v23_v16  ;;  %v922_v5 = vadd.f32 %v134_v0, %v818_v17 }
  0xa3   :  { %v220_v54 = vsel %vm49_vm0, %v897_v51, 0.0  ;;  %v208_v1 = vsel %vm49_vm0, %v910_v61, 0.0 }
  0xa4   :  { %221 = vadd.xlane.f32.xlu1 %v220_v54  ;;  %v187_v63 = vsel %vm49_vm0, %v907_v57, 0.0  ;;  %v199_v12 = vsel %vm49_vm0, %v922_v5, 0.0 }
  0xa5   :  { %197 = vadd.xlane.f32.xlu2 %v196_v53  ;;  %185 = vadd.xlane.f32.xlu0 %v184_v56 }
  0xa6   :  { %v145_v58 = vpop.f32.mrf.mxu2  ;;  %v157_v59 = vpop.f32.mrf.mxu3 }
  0xa7   :  { %v146_v62 = vadd.f32 %v868_v24, %v145_v58  ;;  %v124_v4 = vpop.f32.mrf.mxu0  ;;  %v158_v8 = vadd.f32 %v868_v24, %v157_v59  ;;  %v136_v17 = vpop.f32.mrf.mxu1 }
  0xa8   :  { %v125_v11 = vadd.f32 %v868_v24, %v124_v4  ;;  %v137_v26 = vadd.f32 %v868_v24, %v136_v17 }
  0xa9   :  { %v919_v2 = vadd.f32 %v146_v62, %v823_v18  ;;  %v938_v15 = vadd.f32 %v158_v8, %v828_v19 }
  0xaa   :  { %v941_v16 = vadd.f32 %v125_v11, %v840_v20  ;;  %v954_v19 = vadd.f32 %v137_v26, %v845_v21 }
  0xab   :  { %v211_v10 = vsel %vm49_vm0, %v919_v2, 0.0 }
  0xac   :  { %188 = vadd.xlane.f32.xlu1 %v187_v63  ;;  %v190_v25 = vsel %vm49_vm0, %v941_v16, 0.0  ;;  %v202_v20 = vsel %vm49_vm0, %v954_v19, 0.0 }
  0xad   :  { %209 = vadd.xlane.f32.xlu0 %v208_v1 }
  0xae   :  { %v148_v3 = vpop.f32.mrf.mxu2  ;;  %v160_v7 = vpop.f32.mrf.mxu3 }
  0xaf   :  { %v149_v6 = vadd.f32 %v868_v24, %v148_v3  ;;  %v161_v13 = vadd.f32 %v868_v24, %v160_v7 }
  0xb1   :  { %v927_v9 = vadd.f32 %v149_v6, %v850_v22  ;;  %v944_v18 = vadd.f32 %v161_v13, %v855_v23  ;;  %v223_v22 = vsel %vm49_vm0, %v938_v15, 0.0  ;;  %v719_v23 = vmov 64.0  }
  0xb2   :  { %659 = vrcp.f32 %v719_v23 }
  0xb3   :  { %v214_v14 = vsel %vm49_vm0, %v927_v9, 0.0  ;;  %v226_v27 = vsel %vm49_vm0, %v944_v18, 0.0 }
  0xb4   :  { %215 = vadd.xlane.f32.xlu2 %v214_v14  ;;  %212 = vadd.xlane.f32.xlu1 %v211_v10 }
  0xb5   :  { %200 = vadd.xlane.f32.xlu0 %v199_v12 }
  0xb8   :  { %v660_v28 = vpop.eup %659 }
  0xb9   :  { %v230_v31 = vmul.f32 64.0, %v660_v28  ;;  %vm234_vm1 = vweird.f32 %v660_v28 }
  0xbb   :  { %v231_v32 = vsub.f32 1.0, %v230_v31 }
  0xbc   :  { %224 = vadd.xlane.f32.xlu2 %v223_v22  ;;  %191 = vadd.xlane.f32.xlu1 %v190_v25 }
  0xbd   :  { %227 = vadd.xlane.f32.xlu0 %v226_v27  ;;  %v232_v33 = vmul.f32 %v660_v28, %v231_v32 }
  0xbf   :  { %v233_v24 = vadd.f32 %v660_v28, %v232_v33 }
  0xc1   :  { %v958_v34 = vsel %vm234_vm1, %v660_v28, %v233_v24 }
  0xc4   :  { %203 = vadd.xlane.f32.xlu1 %v202_v20 }
 0x108   :  { %v195_v35 = vpop.xlane.xlu2 %194  ;;  %v183_v36 = vpop.xlane.xlu0 %182 }
 0x109   :  { %v240_v37 = vmul.f32 %v958_v34, %v195_v35  ;;  %v236_v21 = vmul.f32 %v958_v34, %v183_v36 }
 0x10b   :  { %v963_v38 = vsub.f32 %v872_v29, %v240_v37  ;;  %v966_v41 = vsub.f32 %v874_v30, %v236_v21 }
 0x10d   :  { %v272_v42 = vmul.f32 %v963_v38, %v963_v38  ;;  %v268_v43 = vmul.f32 %v966_v41, %v966_v41 }
 0x10f   :  { %v296_v44 = vsel %vm49_vm0, %v272_v42, 0.0  ;;  %v284_v45 = vsel %vm49_vm0, %v268_v43, 0.0 }
 0x110   :  { %297 = vadd.xlane.f32.xlu2 %v296_v44  ;;  %v207_v46 = vpop.xlane.xlu2 %206  ;;  %285 = vadd.xlane.f32.xlu1 %v284_v45  ;;  %v219_v48 = vpop.xlane.xlu0 %218 }
 0x111   :  { %v244_v29 = vmul.f32 %v958_v34, %v207_v46  ;;  %v248_v49 = vmul.f32 %v958_v34, %v219_v48 }
 0x113   :  { %v977_v30 = vsub.f32 %v882_v39, %v244_v29  ;;  %v980_v52 = vsub.f32 %v884_v40, %v248_v49 }
 0x115   :  { %v276_v53 = vmul.f32 %v977_v30, %v977_v30  ;;  %v280_v54 = vmul.f32 %v980_v52, %v980_v52 }
 0x117   :  { %v986_v55 = vpop.xlane.xlu1 %221  ;;  %v308_v56 = vsel %vm49_vm0, %v276_v53, 0.0  ;;  %v320_v58 = vsel %vm49_vm0, %v280_v54, 0.0 }
 0x118   :  { %v198_v59 = vpop.xlane.xlu2 %197  ;;  %309 = vadd.xlane.f32.xlu0 %v308_v56  ;;  %321 = vadd.xlane.f32.xlu1 %v320_v58  ;;  %v186_v39 = vpop.xlane.xlu0 %185 }
 0x119   :  { %v241_v60 = vmul.f32 %v958_v34, %v198_v59  ;;  %v237_v40 = vmul.f32 %v958_v34, %v186_v39 }
 0x11b   :  { %v993_v62 = vsub.f32 %v892_v47, %v241_v60  ;;  %v996_v63 = vsub.f32 %v895_v50, %v237_v40 }
 0x11d   :  { %v273_v0 = vmul.f32 %v993_v62, %v993_v62  ;;  %v269_v1 = vmul.f32 %v996_v63, %v996_v63 }
 0x11f   :  { %v189_v3 = vpop.xlane.xlu1 %188  ;;  %v299_v4 = vsel %vm49_vm0, %v273_v0, 0.0  ;;  %v287_v6 = vsel %vm49_vm0, %v269_v1, 0.0 }
 0x120   :  { %v238_v7 = vmul.f32 %v958_v34, %v189_v3  ;;  %300 = vadd.xlane.f32.xlu0 %v299_v4  ;;  %288 = vadd.xlane.f32.xlu2 %v287_v6  ;;  %v210_v47 = vpop.xlane.xlu0 %209 }
 0x121   :  { %v245_v8 = vmul.f32 %v958_v34, %v210_v47 }
 0x122   :  { %v1007_v50 = vsub.f32 %v907_v57, %v238_v7 }
 0x123   :  { %v1010_v10 = vsub.f32 %v910_v61, %v245_v8 }
 0x124   :  { %v270_v11 = vmul.f32 %v1007_v50, %v1007_v50 }
 0x125   :  { %v277_v12 = vmul.f32 %v1010_v10, %v1010_v10 }
 0x126   :  { %v290_v17 = vsel %vm49_vm0, %v270_v11, 0.0 }
 0x127   :  { %v216_v13 = vpop.xlane.xlu2 %215  ;;  %v213_v14 = vpop.xlane.xlu1 %212  ;;  %v311_v22 = vsel %vm49_vm0, %v277_v12, 0.0 }
 0x128   :  { %v247_v25 = vmul.f32 %v958_v34, %v216_v13  ;;  %v246_v57 = vmul.f32 %v958_v34, %v213_v14  ;;  %291 = vadd.xlane.f32.xlu0 %v290_v17  ;;  %312 = vadd.xlane.f32.xlu1 %v311_v22  ;;  %v201_v61 = vpop.xlane.xlu0 %200 }
 0x129   :  { %v242_v26 = vmul.f32 %v958_v34, %v201_v61 }
 0x12a   :  { %v1022_v27 = vsub.f32 %v927_v9, %v247_v25  ;;  %v1025_v20 = vsub.f32 %v919_v2, %v246_v57 }
 0x12b   :  { %v1028_v23 = vsub.f32 %v922_v5, %v242_v26 }
 0x12c   :  { %v278_v28 = vmul.f32 %v1025_v20, %v1025_v20  ;;  %v279_v31 = vmul.f32 %v1022_v27, %v1022_v27 }
 0x12d   :  { %v274_v32 = vmul.f32 %v1028_v23, %v1028_v23 }
 0x12e   :  { %v314_v33 = vsel %vm49_vm0, %v278_v28, 0.0  ;;  %v317_v2 = vsel %vm49_vm0, %v279_v31, 0.0 }
 0x12f   :  { %v225_v24 = vpop.xlane.xlu2 %224  ;;  %v192_v9 = vpop.xlane.xlu1 %191  ;;  %315 = vadd.xlane.f32.xlu2 %v314_v33  ;;  %v302_v35 = vsel %vm49_vm0, %v274_v32, 0.0 }
 0x130   :  { %v250_v5 = vmul.f32 %v958_v34, %v225_v24  ;;  %v239_v36 = vmul.f32 %v958_v34, %v192_v9  ;;  %318 = vadd.xlane.f32.xlu0 %v317_v2  ;;  %303 = vadd.xlane.f32.xlu1 %v302_v35  ;;  %v228_v37 = vpop.xlane.xlu0 %227 }
 0x131   :  { %v251_v43 = vmul.f32 %v958_v34, %v228_v37  ;;  %v1095_v37 = vld [vmem:[%s1258_s3] ss:$0 sm:$0xff]  ;;  %s720_s3 = smov [#allocation2]  }
 0x132   :  { %v1042_v21 = vsub.f32 %v938_v15, %v250_v5  ;;  %v1045_v42 = vsub.f32 %v941_v16, %v239_v36  ;;  %v249_v16 = vmul.f32 %v958_v34, %v986_v55 }
 0x133   :  { %v1053_v46 = vsub.f32 %v944_v18, %v251_v43 }
 0x134   :  { %v282_v44 = vmul.f32 %v1042_v21, %v1042_v21  ;;  %v271_v45 = vmul.f32 %v1045_v42, %v1045_v42  ;;  %v1068_v56 = vsub.f32 %v897_v51, %v249_v16 }
 0x135   :  { %v283_v54 = vmul.f32 %v1053_v46, %v1053_v46 }
 0x136   :  { %v326_v29 = vsel %vm49_vm0, %v282_v44, 0.0  ;;  %v293_v15 = vsel %vm49_vm0, %v271_v45, 0.0  ;;  %v281_v55 = vmul.f32 %v1068_v56, %v1068_v56 }
 0x137   :  { %v204_v48 = vpop.xlane.xlu1 %203  ;;  %v329_v59 = vsel %vm49_vm0, %v283_v54, 0.0 }
 0x138   :  { %v243_v49 = vmul.f32 %v958_v34, %v204_v48  ;;  %327 = vadd.xlane.f32.xlu0 %v326_v29  ;;  %294 = vadd.xlane.f32.xlu1 %v293_v15  ;;  %v1103_v29 = vld [vmem:[%s1259_s4] ss:$0 sm:$0xff]  ;;  %s598_s4 = sshll.u32 %s720_s3, 4  ;;  %s599_s4 = int_to_ptr.vmem [resolvable:$true] %s598_s4 }
 0x13a   :  { %v1061_v53 = vsub.f32 %v954_v19, %v243_v49  ;;  %v323_v19 = vsel %vm49_vm0, %v281_v55, 0.0 }
 0x13c   :  { %v275_v18 = vmul.f32 %v1061_v53, %v1061_v53 }
 0x13e   :  { %v305_v58 = vsel %vm49_vm0, %v275_v18, 0.0 }
 0x13f   :  { %306 = vadd.xlane.f32.xlu2 %v305_v58 }
 0x140   :  { %330 = vadd.xlane.f32.xlu1 %v329_v59 }
 0x147   :  { %324 = vadd.xlane.f32.xlu2 %v323_v19 }
 0x183   :  { %v298_v39 = vpop.xlane.xlu2 %297  ;;  %v286_v60 = vpop.xlane.xlu1 %285 }
 0x184   :  { %v336_v40 = vmul.f32 %v298_v39, %v958_v34  ;;  %v332_v0 = vmul.f32 %v286_v60, %v958_v34 }
 0x186   :  { %v352_v51 = vadd.f32 1e-06, %v336_v40  ;;  %v348_v1 = vadd.f32 1e-06, %v332_v0 }
 0x188   :  { %661 = vrsqrt.f32 %v352_v51  ;;  %vm410_vm4 = vweird.f32 %v352_v51  ;;  %vm370_vm6 = vweird.f32 %v348_v1 }
 0x189   :  { %663 = vrsqrt.f32 %v348_v1 }
 0x18b   :  { %v322_v3 = vpop.xlane.xlu1 %321  ;;  %v310_v4 = vpop.xlane.xlu0 %309 }
 0x18c   :  { %v344_v6 = vmul.f32 %v322_v3, %v958_v34  ;;  %v340_v7 = vmul.f32 %v310_v4, %v958_v34 }
 0x18e   :  { %v662_v47 = vpop.eup %661  ;;  %v1079_v8 = vadd.f32 1e-06, %v344_v6  ;;  %v1081_v11 = vadd.f32 1e-06, %v340_v7 }
 0x18f   :  { %v664_v12 = vpop.eup %663  ;;  %v405_v13 = vmul.f32 %v662_v47, %v352_v51  ;;  %vm411_vm2 = vweird.f32 %v662_v47 }
 0x190   :  { %v365_v14 = vmul.f32 %v664_v12, %v348_v1  ;;  %665 = vrsqrt.f32 %v1079_v8  ;;  %vm371_vm3 = vweird.f32 %v664_v12  ;;  %vm412_vm5 = vmor %vm410_vm4, %vm411_vm2  ;;  %vm490_vm10 = vweird.f32 %v1079_v8 }
 0x191   :  { %v406_v17 = vmul.f32 %v662_v47, %v405_v13  ;;  %667 = vrsqrt.f32 %v1081_v11  ;;  %vm372_vm7 = vmor %vm370_vm6, %vm371_vm3  ;;  %vm450_vm12 = vweird.f32 %v1081_v11 }
 0x192   :  { %v366_v22 = vmul.f32 %v664_v12, %v365_v14 }
 0x193   :  { %v407_v25 = vmul.f32 0.5, %v406_v17  ;;  %v289_v57 = vpop.xlane.xlu2 %288  ;;  %v301_v61 = vpop.xlane.xlu0 %300 }
 0x194   :  { %v367_v26 = vmul.f32 0.5, %v366_v22  ;;  %v333_v28 = vmul.f32 %v289_v57, %v958_v34  ;;  %v337_v31 = vmul.f32 %v301_v61, %v958_v34 }
 0x195   :  { %v408_v32 = vsub.f32 1.5, %v407_v25 }
 0x196   :  { %v666_v33 = vpop.eup %665  ;;  %v368_v24 = vsub.f32 1.5, %v367_v26  ;;  %v1087_v9 = vadd.f32 1e-06, %v333_v28  ;;  %v1089_v2 = vadd.f32 1e-06, %v337_v31 }
 0x197   :  { %v668_v35 = vpop.eup %667  ;;  %v409_v5 = vmul.f32 %v662_v47, %v408_v32  ;;  %v485_v36 = vmul.f32 %v666_v33, %v1079_v8  ;;  %vm491_vm8 = vweird.f32 %v666_v33 }
 0x198   :  { %v369_v43 = vmul.f32 %v664_v12, %v368_v24  ;;  %v445_v44 = vmul.f32 %v668_v35, %v1081_v11  ;;  %669 = vrsqrt.f32 %v1087_v9  ;;  %vm451_vm9 = vweird.f32 %v668_v35  ;;  %vm492_vm11 = vmor %vm490_vm10, %vm491_vm8 }
 0x199   :  { %v413_v45 = vsel %vm412_vm5, %v662_v47, %v409_v5  ;;  %v486_v48 = vmul.f32 %v666_v33, %v485_v36  ;;  %671 = vrsqrt.f32 %v1089_v2  ;;  %vm452_vm13 = vmor %vm450_vm12, %vm451_vm9  ;;  %vm380_vm14 = vweird.f32 %v1087_v9 }
 0x19a   :  { %v528_v15 = vmul.f32 %v413_v45, %v963_v38  ;;  %v373_v49 = vsel %vm372_vm7, %v664_v12, %v369_v43  ;;  %v446_v16 = vmul.f32 %v668_v35, %v445_v44  ;;  %vm420_vm3 = vweird.f32 %v1089_v2 }
 0x19b   :  { %v524_v54 = vmul.f32 %v373_v49, %v966_v41  ;;  %v487_v18 = vmul.f32 0.5, %v486_v48  ;;  %v313_v58 = vpop.xlane.xlu1 %312  ;;  %v292_v59 = vpop.xlane.xlu0 %291 }
 0x19c   :  { %v547_v55 = vmul.f32 %v1095_v37, %v528_v15  ;;  %v447_v19 = vmul.f32 0.5, %v446_v16  ;;  %v341_v39 = vmul.f32 %v313_v58, %v958_v34  ;;  %v334_v60 = vmul.f32 %v292_v59, %v958_v34 }
 0x19d   :  { %v543_v40 = vmul.f32 %v1095_v37, %v524_v54  ;;  %v488_v0 = vsub.f32 1.5, %v487_v18 }
 0x19e   :  { %v670_v38 = vpop.eup %669  ;;  %v566_v51 = vadd.f32 %v1103_v29, %v547_v55  ;;  %v448_v1 = vsub.f32 1.5, %v447_v19  ;;  %v1112_v41 = vadd.f32 1e-06, %v341_v39  ;;  %v1114_v3 = vadd.f32 1e-06, %v334_v60 }
 0x19f   :  { %v672_v4 = vpop.eup %671  ;;  %v562_v6 = vadd.f32 %v1103_v29, %v543_v40  ;;  %v489_v7 = vmul.f32 %v666_v33, %v488_v0  ;;  %v375_v47 = vmul.f32 %v670_v38, %v1087_v9  ;;  %vm381_vm15 = vweird.f32 %v670_v38 }
 0x1a0   :  { %582 = vst.msk [vmem:[#allocation2 + $0x20] sm:$0xff] %vm49_vm0, %v566_v51  ;;  %v449_v12 = vmul.f32 %v668_v35, %v448_v1  ;;  %v415_v13 = vmul.f32 %v672_v4, %v1089_v2  ;;  %673 = vrsqrt.f32 %v1112_v41  ;;  %vm421_vm1 = vweird.f32 %v672_v4  ;;  %vm382_vm2 = vmor %vm380_vm14, %vm381_vm15 }
 0x1a1   :  { %578 = vst.msk [vmem:[#allocation2] sm:$0xff] %vm49_vm0, %v562_v6  ;;  %v493_v14 = vsel %vm492_vm11, %v666_v33, %v489_v7  ;;  %v376_v17 = vmul.f32 %v670_v38, %v375_v47  ;;  %675 = vrsqrt.f32 %v1114_v3  ;;  %vm422_vm4 = vmor %vm420_vm3, %vm421_vm1  ;;  %vm460_vm7 = vweird.f32 %v1112_v41 }
 0x1a2   :  { %v536_v8 = vmul.f32 %v493_v14, %v980_v52  ;;  %v453_v22 = vsel %vm452_vm13, %v668_v35, %v449_v12  ;;  %v416_v25 = vmul.f32 %v672_v4, %v415_v13  ;;  %v316_v57 = vpop.xlane.xlu2 %315  ;;  %vm390_vm9 = vweird.f32 %v1114_v3 }
 0x1a3   :  { %v532_v61 = vmul.f32 %v453_v22, %v977_v30  ;;  %v377_v11 = vmul.f32 0.5, %v376_v17  ;;  %v342_v26 = vmul.f32 %v316_v57, %v958_v34  ;;  %v304_v28 = vpop.xlane.xlu1 %303  ;;  %v319_v31 = vpop.xlane.xlu0 %318 }
 0x1a4   :  { %v555_v32 = vmul.f32 %v1095_v37, %v536_v8  ;;  %v417_v33 = vmul.f32 0.5, %v416_v25  ;;  %v338_v24 = vmul.f32 %v304_v28, %v958_v34  ;;  %v343_v5 = vmul.f32 %v319_v31, %v958_v34 }
 0x1a5   :  { %v551_v52 = vmul.f32 %v1095_v37, %v532_v61  ;;  %v378_v35 = vsub.f32 1.5, %v377_v11  ;;  %v1134_v36 = vadd.f32 1e-06, %v342_v26 }
 0x1a6   :  { %v674_v30 = vpop.eup %673  ;;  %v574_v43 = vadd.f32 %v1103_v29, %v555_v32  ;;  %v418_v44 = vsub.f32 1.5, %v417_v33  ;;  %v1137_v45 = vadd.f32 1e-06, %v338_v24  ;;  %v1141_v54 = vadd.f32 1e-06, %v343_v5 }
 0x1a7   :  { %v676_v48 = vpop.eup %675  ;;  %v570_v15 = vadd.f32 %v1103_v29, %v551_v52  ;;  %v379_v49 = vmul.f32 %v670_v38, %v378_v35  ;;  %v455_v16 = vmul.f32 %v674_v30, %v1112_v41  ;;  %677 = vrsqrt.f32 %v1134_v36 }
 0x1a8   :  { %590 = vst.msk [vmem:[#allocation2 + $0x60] sm:$0xff] %vm49_vm0, %v574_v43  ;;  %v419_v18 = vmul.f32 %v672_v4, %v418_v44  ;;  %v385_v58 = vmul.f32 %v676_v48, %v1114_v3  ;;  %679 = vrsqrt.f32 %v1137_v45  ;;  %vm461_vm5 = vweird.f32 %v674_v30 }
 0x1a9   :  { %586 = vst.msk [vmem:[#allocation2 + $0x40] sm:$0xff] %vm49_vm0, %v570_v15  ;;  %v383_v59 = vsel %vm382_vm2, %v670_v38, %v379_v49  ;;  %v456_v55 = vmul.f32 %v674_v30, %v455_v16  ;;  %681 = vrsqrt.f32 %v1141_v54  ;;  %vm391_vm6 = vweird.f32 %v676_v48  ;;  %vm462_vm8 = vmor %vm460_vm7, %vm461_vm5 }
 0x1aa   :  { %v525_v19 = vmul.f32 %v383_v59, %v996_v63  ;;  %v423_v39 = vsel %vm422_vm4, %v672_v4, %v419_v18  ;;  %v386_v9 = vmul.f32 %v676_v48, %v385_v58  ;;  %vm392_vm10 = vmor %vm390_vm9, %vm391_vm6  ;;  %vm470_vm11 = vweird.f32 %v1134_v36 }
 0x1ab   :  { %v529_v60 = vmul.f32 %v423_v39, %v993_v62  ;;  %v457_v40 = vmul.f32 0.5, %v456_v55  ;;  %v295_v2 = vpop.xlane.xlu1 %294  ;;  %v328_v0 = vpop.xlane.xlu0 %327  ;;  %vm430_vm12 = vweird.f32 %v1137_v45  ;;  %vm480_vm3 = vweird.f32 %v1141_v54 }
 0x1ac   :  { %v544_v51 = vmul.f32 %v1095_v37, %v525_v19  ;;  %v387_v1 = vmul.f32 0.5, %v386_v9  ;;  %v335_v38 = vmul.f32 %v295_v2, %v958_v34  ;;  %v346_v6 = vmul.f32 %v328_v0, %v958_v34 }
 0x1ad   :  { %v548_v7 = vmul.f32 %v1095_v37, %v529_v60  ;;  %v458_v47 = vsub.f32 1.5, %v457_v40  ;;  %v1159_v63 = vpop.eup %677 }
 0x1ae   :  { %v563_v62 = vadd.f32 %v1103_v29, %v544_v51  ;;  %v388_v4 = vsub.f32 1.5, %v387_v1  ;;  %v1162_v12 = vadd.f32 1e-06, %v335_v38  ;;  %v1164_v13 = vadd.f32 1e-06, %v346_v6  ;;  %v1166_v14 = vpop.eup %679 }
 0x1af   :  { %v567_v17 = vadd.f32 %v1103_v29, %v548_v7  ;;  %v459_v8 = vmul.f32 %v674_v30, %v458_v47  ;;  %v465_v22 = vmul.f32 %v1159_v63, %v1134_v36  ;;  %v425_v57 = vmul.f32 %v1166_v14, %v1137_v45  ;;  %v682_v61 = vpop.eup %681 }
 0x1b0   :  { %579 = vst.msk [vmem:[#allocation2 + $0x8] sm:$0xff] %vm49_vm0, %v563_v62  ;;  %v389_v25 = vmul.f32 %v676_v48, %v388_v4  ;;  %683 = vrsqrt.f32 %v1162_v12  ;;  %v475_v31 = vmul.f32 %v682_v61, %v1141_v54  ;;  %vm471_vm13 = vweird.f32 %v1159_v63 }
 0x1b1   :  { %583 = vst.msk [vmem:[#allocation2 + $0x28] sm:$0xff] %vm49_vm0, %v567_v17  ;;  %v463_v11 = vsel %vm462_vm8, %v674_v30, %v459_v8  ;;  %v466_v41 = vmul.f32 %v1159_v63, %v465_v22  ;;  %685 = vrsqrt.f32 %v1164_v13  ;;  %v426_v3 = vmul.f32 %v1166_v14, %v425_v57  ;;  %vm472_vm15 = vmor %vm470_vm11, %vm471_vm13 }
 0x1b2   :  { %v533_v26 = vmul.f32 %v463_v11, %v1010_v10  ;;  %v393_v28 = vsel %vm392_vm10, %v676_v48, %v389_v25  ;;  %v307_v32 = vpop.xlane.xlu2 %306  ;;  %v476_v35 = vmul.f32 %v682_v61, %v475_v31  ;;  %vm431_vm14 = vweird.f32 %v1166_v14 }
 0x1b3   :  { %v526_v33 = vmul.f32 %v393_v28, %v1007_v50  ;;  %v467_v24 = vmul.f32 0.5, %v466_v41  ;;  %v427_v52 = vmul.f32 0.5, %v426_v3  ;;  %v339_v30 = vmul.f32 %v307_v32, %v958_v34  ;;  %v331_v10 = vpop.xlane.xlu1 %330  ;;  %vm432_vm2 = vmor %vm430_vm12, %vm431_vm14 }
 0x1b4   :  { %v552_v5 = vmul.f32 %v1095_v37, %v533_v26  ;;  %v477_v49 = vmul.f32 0.5, %v476_v35  ;;  %v347_v19 = vmul.f32 %v331_v10, %v958_v34  ;;  %vm481_vm1 = vweird.f32 %v682_v61 }
 0x1b5   :  { %v545_v43 = vmul.f32 %v1095_v37, %v526_v33  ;;  %v468_v44 = vsub.f32 1.5, %v467_v24  ;;  %v428_v15 = vsub.f32 1.5, %v427_v52  ;;  %v1193_v16 = vadd.f32 1e-06, %v339_v30  ;;  %vm482_vm4 = vmor %vm480_vm3, %vm481_vm1 }
 0x1b6   :  { %v684_v50 = vpop.eup %683  ;;  %v571_v48 = vadd.f32 %v1103_v29, %v552_v5  ;;  %v478_v9 = vsub.f32 1.5, %v477_v49  ;;  %v363_v47 = vadd.f32 1e-06, %v347_v19  ;;  %vm400_vm7 = vweird.f32 %v1162_v12 }
 0x1b7   :  { %v686_v18 = vpop.eup %685  ;;  %v564_v58 = vadd.f32 %v1103_v29, %v545_v43  ;;  %v469_v59 = vmul.f32 %v1159_v63, %v468_v44  ;;  %v395_v55 = vmul.f32 %v684_v50, %v1162_v12  ;;  %v429_v39 = vmul.f32 %v1166_v14, %v428_v15 }
 0x1b8   :  { %587 = vst.msk [vmem:[#allocation2 + $0x48] sm:$0xff] %vm49_vm0, %v571_v48  ;;  %v505_v60 = vmul.f32 %v686_v18, %v1164_v13  ;;  %687 = vrsqrt.f32 %v1193_v16  ;;  %v479_v51 = vmul.f32 %v682_v61, %v478_v9  ;;  %vm401_vm5 = vweird.f32 %v684_v50 }
 0x1b9   :  { %580 = vst.msk [vmem:[#allocation2 + $0x10] sm:$0xff] %vm49_vm0, %v564_v58  ;;  %v473_v40 = vsel %vm472_vm15, %v1159_v63, %v469_v59  ;;  %v396_v2 = vmul.f32 %v684_v50, %v395_v55  ;;  %v433_v0 = vsel %vm432_vm2, %v1166_v14, %v429_v39  ;;  %689 = vrsqrt.f32 %v363_v47  ;;  %vm402_vm8 = vmor %vm400_vm7, %vm401_vm5 }
 0x1ba   :  { %v534_v36 = vmul.f32 %v473_v40, %v1025_v20  ;;  %v506_v1 = vmul.f32 %v686_v18, %v505_v60  ;;  %v325_v38 = vpop.xlane.xlu2 %324  ;;  %v530_v6 = vmul.f32 %v433_v0, %v1028_v23  ;;  %v483_v54 = vsel %vm482_vm4, %v682_v61, %v479_v51 }
 0x1bb   :  { %v397_v7 = vmul.f32 0.5, %v396_v2  ;;  %v345_v45 = vmul.f32 %v325_v38, %v958_v34  ;;  %v535_v20 = vmul.f32 %v483_v54, %v1022_v27  ;;  %vm511_vm6 = vweird.f32 %v686_v18 }
 0x1bc   :  { %v553_v63 = vmul.f32 %v1095_v37, %v534_v36  ;;  %v507_v62 = vmul.f32 0.5, %v506_v1  ;;  %v549_v4 = vmul.f32 %v1095_v37, %v530_v6  ;;  %vm510_vm9 = vweird.f32 %v1164_v13 }
 0x1bd   :  { %v398_v14 = vsub.f32 1.5, %v397_v7  ;;  %v361_v23 = vadd.f32 1e-06, %v345_v45  ;;  %v554_v34 = vmul.f32 %v1095_v37, %v535_v20  ;;  %vm512_vm10 = vmor %vm510_vm9, %vm511_vm6  ;;  %vm440_vm12 = vweird.f32 %v1193_v16 }
 0x1be   :  { %v572_v17 = vadd.f32 %v1103_v29, %v553_v63  ;;  %v508_v8 = vsub.f32 1.5, %v507_v62  ;;  %v688_v22 = vpop.eup %687  ;;  %v568_v25 = vadd.f32 %v1103_v29, %v549_v4  ;;  %vm520_vm15 = vweird.f32 %v363_v47 }
 0x1bf   :  { %v399_v57 = vmul.f32 %v684_v50, %v398_v14  ;;  %v435_v61 = vmul.f32 %v688_v22, %v1193_v16  ;;  %691 = vrsqrt.f32 %v361_v23  ;;  %v573_v11 = vadd.f32 %v1103_v29, %v554_v34  ;;  %v690_v3 = vpop.eup %689 }
 0x1c0   :  { %588 = vst.msk [vmem:[#allocation2 + $0x50] sm:$0xff] %vm49_vm0, %v572_v17  ;;  %v509_v27 = vmul.f32 %v686_v18, %v508_v8  ;;  %v515_v33 = vmul.f32 %v690_v3, %v363_v47  ;;  %vm441_vm11 = vweird.f32 %v688_v22  ;;  %vm521_vm14 = vweird.f32 %v690_v3 }
 0x1c1   :  { %584 = vst.msk [vmem:[#allocation2 + $0x30] sm:$0xff] %vm49_vm0, %v568_v25  ;;  %v403_v41 = vsel %vm402_vm8, %v684_v50, %v399_v57  ;;  %v436_v28 = vmul.f32 %v688_v22, %v435_v61  ;;  %vm442_vm13 = vmor %vm440_vm12, %vm441_vm11  ;;  %vm500_vm3 = vweird.f32 %v361_v23 }
 0x1c2   :  { %v527_v26 = vmul.f32 %v403_v41, %v1045_v42  ;;  %v513_v12 = vsel %vm512_vm10, %v686_v18, %v509_v27  ;;  %589 = vst.msk [vmem:[#allocation2 + $0x58] sm:$0xff] %vm49_vm0, %v573_v11  ;;  %v516_v30 = vmul.f32 %v690_v3, %v515_v33  ;;  %vm522_vm1 = vmor %vm520_vm15, %vm521_vm14 }
 0x1c3   :  { %v538_v31 = vmul.f32 %v513_v12, %v1042_v21  ;;  %v437_v32 = vmul.f32 0.5, %v436_v28 }
 0x1c4   :  { %v546_v13 = vmul.f32 %v1095_v37, %v527_v26  ;;  %v517_v21 = vmul.f32 0.5, %v516_v30 }
 0x1c5   :  { %v557_v24 = vmul.f32 %v1095_v37, %v538_v31  ;;  %v692_v5 = vpop.eup %691  ;;  %v438_v35 = vsub.f32 1.5, %v437_v32 }
 0x1c6   :  { %v565_v52 = vadd.f32 %v1103_v29, %v546_v13  ;;  %v495_v10 = vmul.f32 %v692_v5, %v361_v23  ;;  %v518_v48 = vsub.f32 1.5, %v517_v21  ;;  %vm501_vm2 = vweird.f32 %v692_v5 }
 0x1c7   :  { %v576_v42 = vadd.f32 %v1103_v29, %v557_v24  ;;  %v439_v43 = vmul.f32 %v688_v22, %v438_v35  ;;  %vm502_vm4 = vmor %vm500_vm3, %vm501_vm2 }
 0x1c8   :  { %581 = vst.msk [vmem:[#allocation2 + $0x18] sm:$0xff] %vm49_vm0, %v565_v52  ;;  %v496_v44 = vmul.f32 %v692_v5, %v495_v10  ;;  %v519_v18 = vmul.f32 %v690_v3, %v518_v48 }
 0x1c9   :  { %592 = vst.msk [vmem:[#allocation2 + $0x70] sm:$0xff] %vm49_vm0, %v576_v42  ;;  %v443_v50 = vsel %vm442_vm13, %v688_v22, %v439_v43 }
 0x1ca   :  { %v531_v15 = vmul.f32 %v443_v50, %v1061_v53  ;;  %v497_v49 = vmul.f32 0.5, %v496_v44  ;;  %v523_v55 = vsel %vm522_vm1, %v690_v3, %v519_v18 }
 0x1cb   :  { %v539_v19 = vmul.f32 %v523_v55, %v1053_v46 }
 0x1cc   :  { %v550_v58 = vmul.f32 %v1095_v37, %v531_v15  ;;  %v498_v59 = vsub.f32 1.5, %v497_v49 }
 0x1cd   :  { %v558_v53 = vmul.f32 %v1095_v37, %v539_v19 }
 0x1ce   :  { %v569_v16 = vadd.f32 %v1103_v29, %v550_v58  ;;  %v499_v39 = vmul.f32 %v692_v5, %v498_v59 }
 0x1cf   :  { %v577_v40 = vadd.f32 %v1103_v29, %v558_v53 }
 0x1d0   :  { %585 = vst.msk [vmem:[#allocation2 + $0x38] sm:$0xff] %vm49_vm0, %v569_v16  ;;  %v503_v9 = vsel %vm502_vm4, %v692_v5, %v499_v39 }
 0x1d1   :  { %v537_v60 = vmul.f32 %v503_v9, %v1068_v56  ;;  %593 = vst.msk [vmem:[#allocation2 + $0x78] sm:$0xff] %vm49_vm0, %v577_v40 }
 0x1d3   :  { %v556_v46 = vmul.f32 %v1095_v37, %v537_v60 }
 0x1d5   :  { %v575_v2 = vadd.f32 %v1103_v29, %v556_v46 }
 0x1d7   :  { %591 = vst.msk [vmem:[#allocation2 + $0x68] sm:$0xff] %vm49_vm0, %v575_v2 }
 0x1d8   :  { %606 = dma.vmem_to_hbm [thread:$0]  %s599_s4, 2048, %s601_s20, [#allocation3], %s721_s21, %s721_s21, %s722_s22  }
 0x1d9   :  { %717 = dma.done.wait [#allocation3], 2048  }
 0x1da   :  { %718 = vsyncadd [#allocation3], 4294965248 }
 0x1db   :  { %611 = vsyncpa [#allocation3], 1 }

</bundles_post_ra>
